<compile_context>
chip_gen: v7x
topology: tpu7x:2x2x1
jax: 0.10.0
libtpu: 0.0.40
codegen_flags: <defaults>
</compile_context>

<pallas_src>
import jax
import jax.numpy as jnp
from jax.experimental import pallas as pl
from jax.experimental.pallas import tpu as pltpu

BN_EPS = 1e-5
LANE = 128
_VMEM_LIMIT = 48 * 1024 * 1024   # > 32 MiB default, still safe on v7x (64 MiB)


def _round_up(x, m):
    return ((x + m - 1) // m) * m


def _pick_band(H, W):
    """Largest TH dividing H with TH*W <= 256 (MXU M target, v6e/v7x)."""
    best = 1
    for t in range(1, H + 1):
        if H % t == 0 and t * W <= 256:
            best = t
    return best


def _pick_rows(M):
    """Largest row tile <= 1024 dividing M (multiple of 8, or the full M)."""
    for t in range(min(M, 1024), 0, -1):
        if M % t == 0 and (t % 8 == 0 or t == M):
            return t
    return M


# ---------------------------------------------------------------------------
# Conv3x3 (SAME) + per-band BN partial stats; optional fused input BN+ReLU.
# ---------------------------------------------------------------------------
def _make_conv_kernel(H, W, TH, Cin_p, Cout_p, fuse_bn_relu):
    def kernel(x_ref, sc_ref, sh_ref, w_ref, y_ref, s_ref, ss_ref,
               pad_ref, acc_ref):
        band = pl.program_id(1)

        # Once per image: build the zero-padded (and, for stage 2, BN+ReLU
        # activated) input in VMEM. Removes the XLA-side jnp.pad round trip and
        # fuses the previous stage's BN affine + ReLU into this kernel.
        @pl.when(band == 0)
        def _():
            pad_ref[...] = jnp.zeros_like(pad_ref)
            if fuse_bn_relu:
                act = jnp.maximum(
                    x_ref[...].astype(jnp.float32) * sc_ref[...] + sh_ref[...],
                    0.0)
                pad_ref[1:H + 1, 1:W + 1, :] = act.astype(pad_ref.dtype)
            else:
                pad_ref[1:H + 1, 1:W + 1, :] = x_ref[...]

        # 3x3 conv for a band of TH output rows: 9 shifted MXU dots with
        # M = TH*W, accumulated into a VMEM f32 scratch.
        row0 = band * TH
        for kh in range(3):
            xs = pad_ref[pl.ds(row0 + kh, TH), :, :]          # (TH, W+2, Cin_p)
            for kw in range(3):
                xk = xs[:, kw:kw + W, :].reshape(TH * W, Cin_p)
                contrib = jnp.dot(xk, w_ref[kh * 3 + kw],
                                  preferred_element_type=jnp.float32)
                if kh == 0 and kw == 0:
                    acc_ref[...] = contrib
                else:
                    acc_ref[...] += contrib

        acc = acc_ref[...]
        # bf16 writeback (stats come from the f32 accumulator, not the cast).
        y_ref[...] = acc.reshape(TH, W, Cout_p).astype(y_ref.dtype)
        # Per-band partial sums / sums-of-squares, reduced in the wrapper.
        s_ref[...] = jnp.sum(acc, axis=0, keepdims=True)
        ss_ref[...] = jnp.sum(acc * acc, axis=0, keepdims=True)

    return kernel


def _conv3x3_stats(x, in_scale, in_shift, w9, fuse_bn_relu):
    """x: (N, H, W, Cin_p) bf16; in_scale/in_shift: (1, Cin_p) f32;
       w9: (9, Cin_p, Cout_p) bf16 (tap index = kh*3 + kw).
       Returns y (N,H,W,Cout_p) bf16, s, ss (N, n_bands, Cout_p) f32."""
    N, H, W, Cin_p = x.shape
    Cout_p = w9.shape[-1]
    TH = _pick_band(H, W)
    n_bands = H // TH

    kernel = _make_conv_kernel(H, W, TH, Cin_p, Cout_p, fuse_bn_relu)
    return pl.pallas_call(
        kernel,
        grid=(N, n_bands),
        in_specs=[
            # Full image per n, resident in VMEM across the band axis.
            pl.BlockSpec((None, H, W, Cin_p), lambda n, h: (n, 0, 0, 0)),
            pl.BlockSpec((1, Cin_p), lambda n, h: (0, 0)),
            pl.BlockSpec((1, Cin_p), lambda n, h: (0, 0)),
            pl.BlockSpec((9, Cin_p, Cout_p), lambda n, h: (0, 0, 0)),  # resident
        ],
        out_specs=[
            pl.BlockSpec((None, TH, W, Cout_p), lambda n, h: (n, h, 0, 0)),
            pl.BlockSpec((None, 1, Cout_p), lambda n, h: (n, h, 0)),
            pl.BlockSpec((None, 1, Cout_p), lambda n, h: (n, h, 0)),
        ],
        out_shape=[
            jax.ShapeDtypeStruct((N, H, W, Cout_p), jnp.bfloat16),
            jax.ShapeDtypeStruct((N, n_bands, Cout_p), jnp.float32),
            jax.ShapeDtypeStruct((N, n_bands, Cout_p), jnp.float32),
        ],
        scratch_shapes=[
            pltpu.VMEM((H + 2, W + 2, Cin_p), jnp.bfloat16),   # padded image
            pltpu.VMEM((TH * W, Cout_p), jnp.float32),          # f32 accumulator
        ],
        compiler_params=pltpu.CompilerParams(
            dimension_semantics=("parallel", "arbitrary"),
            vmem_limit_bytes=_VMEM_LIMIT),
    )(x, in_scale, in_shift, w9)


# ---------------------------------------------------------------------------
# Fused per-channel BN affine (y*scale + shift) + ReLU on big lane-dense tiles.
# ---------------------------------------------------------------------------
def _bn_relu_kernel(y_ref, sc_ref, sh_ref, o_ref):
    o_ref[...] = jnp.maximum(
        y_ref[...].astype(jnp.float32) * sc_ref[...] + sh_ref[...],
        0.0).astype(o_ref.dtype)


def _bn_relu(y_flat, scale, shift, out_dtype):
    """y_flat: (M, Cp) bf16; scale/shift: (1, Cp) f32."""
    M, Cp = y_flat.shape
    TM = _pick_rows(M)
    return pl.pallas_call(
        _bn_relu_kernel,
        grid=(M // TM,),
        in_specs=[
            pl.BlockSpec((TM, Cp), lambda i: (i, 0)),
            pl.BlockSpec((1, Cp), lambda i: (0, 0)),
            pl.BlockSpec((1, Cp), lambda i: (0, 0)),
        ],
        out_specs=pl.BlockSpec((TM, Cp), lambda i: (i, 0)),
        out_shape=jax.ShapeDtypeStruct((M, Cp), out_dtype),
        compiler_params=pltpu.CompilerParams(
            dimension_semantics=("parallel",),
            vmem_limit_bytes=_VMEM_LIMIT),
    )(y_flat, scale, shift)


def _bn_affine(s, ss, gamma_p, beta_p, count):
    """Per-channel train-mode BN folded into y*scale + shift (tiny O(C) math)."""
    mean = jnp.sum(s, axis=(0, 1)) / count
    ex2 = jnp.sum(ss, axis=(0, 1)) / count
    var = jnp.maximum(ex2 - mean * mean, 0.0)
    scale = gamma_p * jax.lax.rsqrt(var + BN_EPS)
    shift = beta_p - mean * scale
    return scale.reshape(1, -1), shift.reshape(1, -1)


@jax.jit
def double_conv(x_nchw, params):
    """DoubleConv forward. x_nchw: (N, Cin, H, W) -> (N, Cout, H, W)."""
    N, Cin, H, W = x_nchw.shape
    Cout = params["w1"].shape[-1]
    Cin_p = _round_up(Cin, LANE)
    Cout_p = _round_up(Cout, LANE)

    # NCHW -> NHWC, pad channels to 128 lanes, bf16 for the MXU.
    x = jnp.transpose(x_nchw, (0, 2, 3, 1))
    x = jnp.pad(x, ((0, 0), (0, 0), (0, 0), (0, Cin_p - Cin))).astype(jnp.bfloat16)

    def prep_w(w_hwio, cin_p, cout_p):
        kh, kw, ci, co = w_hwio.shape
        w = w_hwio.reshape(kh * kw, ci, co)
        w = jnp.pad(w, ((0, 0), (0, cin_p - ci), (0, cout_p - co)))
        return w.astype(jnp.bfloat16)

    def prep_cvec(v, cp):
        return jnp.pad(v, (0, cp - v.shape[0])).astype(jnp.float32)

    w1 = prep_w(params["w1"], Cin_p, Cout_p)
    w2 = prep_w(params["w2"], Cout_p, Cout_p)
    g1, bt1 = prep_cvec(params["g1"], Cout_p), prep_cvec(params["bt1"], Cout_p)
    g2, bt2 = prep_cvec(params["g2"], Cout_p), prep_cvec(params["bt2"], Cout_p)

    count = jnp.float32(N * H * W)
    one = jnp.ones((1, Cin_p), jnp.float32)
    zero = jnp.zeros((1, Cin_p), jnp.float32)

    # Conv biases (params["b1"], params["b2"]) intentionally not added:
    # train-mode BN subtracts the batch mean, which cancels them exactly.

    # Stage 1: conv + BN stats (raw bf16 conv output to HBM).
    y1, s1, ss1 = _conv3x3_stats(x, one, zero, w1, fuse_bn_relu=False)
    scale1, shift1 = _bn_affine(s1, ss1, g1, bt1, count)

    # Stage 2: conv + BN stats, stage-1 BN affine + ReLU fused into the input.
    y2, s2, ss2 = _conv3x3_stats(y1, scale1, shift1, w2, fuse_bn_relu=True)
    scale2, shift2 = _bn_affine(s2, ss2, g2, bt2, count)

    # Final BN affine + ReLU on flattened lane-dense tiles.
    out_flat = _bn_relu(y2.reshape(N * H * W, Cout_p), scale2, shift2,
                        jnp.float32)
    out = out_flat.reshape(N, H, W, Cout_p)[..., :Cout]
    # TODO(synk): when W % 128 == 0 the final kernel could emit NCHW directly
    # (W on lanes) and skip this XLA slice+transpose; left generic here.
    return jnp.transpose(out, (0, 3, 1, 2))


# ---------------------------------------------------------------------------
# Synthetic params + pure-JAX reference (keeps the conv bias to show that the
# kernel's bias-drop optimization preserves forward semantics exactly).
# ---------------------------------------------------------------------------
def _init_params(key, in_channels, out_channels):
    ks = jax.random.split(key, 6)
    fan1 = in_channels * 9
    fan2 = out_channels * 9
    w1_oihw = jax.random.normal(ks[0], (out_channels, in_channels, 3, 3),
                                jnp.float32) / jnp.sqrt(fan1)
    w2_oihw = jax.random.normal(ks[1], (out_channels, out_channels, 3, 3),
                                jnp.float32) / jnp.sqrt(fan2)
    return {
        "w1": jnp.transpose(w1_oihw, (2, 3, 1, 0)),  # HWIO
        "b1": jax.random.normal(ks[2], (out_channels,), jnp.float32) * 0.1,
        "g1": 1.0 + 0.1 * jax.random.normal(ks[4], (out_channels,), jnp.float32),
        "bt1": 0.1 * jax.random.normal(ks[5], (out_channels,), jnp.float32),
        "w2": jnp.transpose(w2_oihw, (2, 3, 1, 0)),  # HWIO
        "b2": jax.random.normal(ks[3], (out_channels,), jnp.float32) * 0.1,
        "g2": jnp.ones((out_channels,), jnp.float32),
        "bt2": jnp.zeros((out_channels,), jnp.float32),
    }


def _ref_stage(x_nhwc, w_hwio, b, g, bt):
    y = jax.lax.conv_general_dilated(
        x_nhwc, w_hwio, window_strides=(1, 1), padding="SAME",
        dimension_numbers=("NHWC", "HWIO", "NHWC"),
    ) + b.reshape(1, 1, 1, -1)
    mean = y.mean(axis=(0, 1, 2), keepdims=True)
    var = ((y - mean) ** 2).mean(axis=(0, 1, 2), keepdims=True)
    yh = (y - mean) / jnp.sqrt(var + BN_EPS)
    return jnp.maximum(yh * g.reshape(1, 1, 1, -1) + bt.reshape(1, 1, 1, -1), 0.0)


def _ref_double_conv(x_nchw, p):
    x = jnp.transpose(x_nchw, (0, 2, 3, 1))
    y = _ref_stage(x, p["w1"], p["b1"], p["g1"], p["bt1"])
    y = _ref_stage(y, p["w2"], p["b2"], p["g2"], p["bt2"])
    return jnp.transpose(y, (0, 3, 1, 2))


if __name__ == "__main__":
    key = jax.random.PRNGKey(0)
    kx, kp = jax.random.split(key)

    N, Cin, Cout, H, W = 2, 4, 8, 16, 16
    x = jax.random.normal(kx, (N, Cin, H, W), jnp.float32)
    params = _init_params(kp, Cin, Cout)

    out = jax.block_until_ready(double_conv(x, params))
    assert out.shape == (N, Cout, H, W), out.shape

    ref = _ref_double_conv(x, params)
    max_err = float(jnp.max(jnp.abs(out - ref)))
    # bf16 MXU inputs / bf16 intermediates (f32 accumulation & stats) -> slightly
    # looser tolerance vs the f32 reference.
    assert jnp.allclose(out, ref, atol=3e-2, rtol=3e-2), max_err

    print("KERNEL_OK")
</pallas_src>

<mosaic_0001>
module attributes {stable_mosaic.version = 11 : i64} {
  func.func @kernel(%arg0: i32, %arg1: i32, %arg2: memref<1x16x16x128xbf16, #tpu.memory_space<vmem>>, %arg3: memref<1x128xf32, #tpu.memory_space<vmem>>, %arg4: memref<1x128xf32, #tpu.memory_space<vmem>>, %arg5: memref<9x128x128xbf16, #tpu.memory_space<vmem>>, %arg6: memref<1x16x16x128xbf16, #tpu.memory_space<vmem>>, %arg7: memref<1x1x128xf32, #tpu.memory_space<vmem>>, %arg8: memref<1x1x128xf32, #tpu.memory_space<vmem>>, %arg9: memref<18x18x128xbf16, #tpu.memory_space<vmem>>, %arg10: memref<256x128xf32, #tpu.memory_space<vmem>>) attributes {dimension_semantics = [#tpu.dimension_semantics<parallel>, #tpu.dimension_semantics<arbitrary>], iteration_bounds = array<i64: 2, 1>, scalar_prefetch = 0 : i64, scratch_operands = 2 : i64, tpu.core_type = #tpu.core_type<tc>, window_params = [{transform_indices = @transform_0, window_bounds = array<i64: 1, 16, 16, 128>}, {pipeline_mode = #tpu.pipeline_mode<synchronous>, transform_indices = @transform_1, window_bounds = array<i64: 1, 128>}, {pipeline_mode = #tpu.pipeline_mode<synchronous>, transform_indices = @transform_2, window_bounds = array<i64: 1, 128>}, {pipeline_mode = #tpu.pipeline_mode<synchronous>, transform_indices = @transform_3, window_bounds = array<i64: 9, 128, 128>}, {transform_indices = @transform_4, window_bounds = array<i64: 1, 16, 16, 128>}, {transform_indices = @transform_5, window_bounds = array<i64: 1, 1, 128>}, {transform_indices = @transform_6, window_bounds = array<i64: 1, 1, 128>}]} {
    %c0_i32 = arith.constant 0 : i32
    %0 = arith.cmpi eq, %arg1, %c0_i32 : i32
    %1 = arith.extui %0 : i1 to i32
    %c0_i32_0 = arith.constant 0 : i32
    %2 = arith.cmpi ne, %1, %c0_i32_0 : i32
    scf.if %2 {
      %cst_82 = arith.constant 0.000000e+00 : bf16
      %100 = vector.broadcast %cst_82 : bf16 to vector<18x18x128xbf16>
      %c0_83 = arith.constant 0 : index
      %c0_84 = arith.constant 0 : index
      %c0_85 = arith.constant 0 : index
      %101 = vector.load %arg9[%c0_83, %c0_84, %c0_85] : memref<18x18x128xbf16, #tpu.memory_space<vmem>>, vector<18x18x128xbf16>
      tpu.vector_store %arg9[%c0_83, %c0_84, %c0_85], %100 {strides = array<i32>} : memref<18x18x128xbf16, #tpu.memory_space<vmem>>, vector<18x18x128xbf16>,
      %c0_86 = arith.constant 0 : index
      %c0_87 = arith.constant 0 : index
      %c0_88 = arith.constant 0 : index
      %c0_89 = arith.constant 0 : index
      %102 = vector.load %arg2[%c0_86, %c0_87, %c0_88, %c0_89] : memref<1x16x16x128xbf16, #tpu.memory_space<vmem>>, vector<1x16x16x128xbf16>
      %103 = vector.shape_cast %102 : vector<1x16x16x128xbf16> to vector<16x16x128xbf16>
      %c1_90 = arith.constant 1 : index
      %c1_91 = arith.constant 1 : index
      %c0_92 = arith.constant 0 : index
      %104 = vector.load %arg9[%c1_90, %c1_91, %c0_92] : memref<18x18x128xbf16, #tpu.memory_space<vmem>>, vector<16x16x128xbf16>
      tpu.vector_store %arg9[%c1_90, %c1_91, %c0_92], %103 {strides = array<i32>} : memref<18x18x128xbf16, #tpu.memory_space<vmem>>, vector<16x16x128xbf16>,
    } else {
    }
    %c16_i32 = arith.constant 16 : i32
    %3 = arith.muli %arg1, %c16_i32 : i32
    %c0_i32_1 = arith.constant 0 : i32
    %4 = arith.addi %3, %c0_i32_1 : i32
    %5 = arith.index_cast %4 : i32 to index
    %c0 = arith.constant 0 : index
    %c0_2 = arith.constant 0 : index
    %6 = vector.load %arg9[%5, %c0, %c0_2] : memref<18x18x128xbf16, #tpu.memory_space<vmem>>, vector<16x18x128xbf16>
    %7 = vector.extract_strided_slice %6 {offsets = [0, 0, 0], sizes = [16, 16, 128], strides = [1, 1, 1]} : vector<16x18x128xbf16> to vector<16x16x128xbf16>
    %8 = vector.shape_cast %7 : vector<16x16x128xbf16> to vector<256x128xbf16>
    %c0_3 = arith.constant 0 : index
    %c0_4 = arith.constant 0 : index
    %c0_5 = arith.constant 0 : index
    %9 = vector.load %arg5[%c0_3, %c0_4, %c0_5] : memref<9x128x128xbf16, #tpu.memory_space<vmem>>, vector<1x128x128xbf16>
    %10 = vector.shape_cast %9 : vector<1x128x128xbf16> to vector<128x128xbf16>
    %cst = arith.constant dense<0.000000e+00> : vector<256x128xf32>
    %11 = tpu.matmul %8, %10, %cst {dimension_numbers = #tpu.dot_dimension_numbers<[1], [0], [0], [1], [0, 0, 1, 1], [], []>} : vector<256x128xbf16>, vector<128x128xbf16>, vector<256x128xf32> -> vector<256x128xf32>
    %c0_6 = arith.constant 0 : index
    %c0_7 = arith.constant 0 : index
    %12 = vector.load %arg10[%c0_6, %c0_7] : memref<256x128xf32, #tpu.memory_space<vmem>>, vector<256x128xf32>
    tpu.vector_store %arg10[%c0_6, %c0_7], %11 {strides = array<i32>} : memref<256x128xf32, #tpu.memory_space<vmem>>, vector<256x128xf32>,
    %13 = vector.extract_strided_slice %6 {offsets = [0, 1, 0], sizes = [16, 16, 128], strides = [1, 1, 1]} : vector<16x18x128xbf16> to vector<16x16x128xbf16>
    %14 = vector.shape_cast %13 : vector<16x16x128xbf16> to vector<256x128xbf16>
    %c1 = arith.constant 1 : index
    %c0_8 = arith.constant 0 : index
    %c0_9 = arith.constant 0 : index
    %15 = vector.load %arg5[%c1, %c0_8, %c0_9] : memref<9x128x128xbf16, #tpu.memory_space<vmem>>, vector<1x128x128xbf16>
    %16 = vector.shape_cast %15 : vector<1x128x128xbf16> to vector<128x128xbf16>
    %cst_10 = arith.constant dense<0.000000e+00> : vector<256x128xf32>
    %17 = tpu.matmul %14, %16, %cst_10 {dimension_numbers = #tpu.dot_dimension_numbers<[1], [0], [0], [1], [0, 0, 1, 1], [], []>} : vector<256x128xbf16>, vector<128x128xbf16>, vector<256x128xf32> -> vector<256x128xf32>
    %c0_11 = arith.constant 0 : index
    %c0_12 = arith.constant 0 : index
    %18 = vector.load %arg10[%c0_11, %c0_12] : memref<256x128xf32, #tpu.memory_space<vmem>>, vector<256x128xf32>
    %19 = arith.addf %18, %17 : vector<256x128xf32>
    %c0_13 = arith.constant 0 : index
    %c0_14 = arith.constant 0 : index
    %20 = vector.load %arg10[%c0_13, %c0_14] : memref<256x128xf32, #tpu.memory_space<vmem>>, vector<256x128xf32>
    tpu.vector_store %arg10[%c0_13, %c0_14], %19 {strides = array<i32>} : memref<256x128xf32, #tpu.memory_space<vmem>>, vector<256x128xf32>,
    %21 = vector.extract_strided_slice %6 {offsets = [0, 2, 0], sizes = [16, 16, 128], strides = [1, 1, 1]} : vector<16x18x128xbf16> to vector<16x16x128xbf16>
    %22 = vector.shape_cast %21 : vector<16x16x128xbf16> to vector<256x128xbf16>
    %c2 = arith.constant 2 : index
    %c0_15 = arith.constant 0 : index
    %c0_16 = arith.constant 0 : index
    %23 = vector.load %arg5[%c2, %c0_15, %c0_16] : memref<9x128x128xbf16, #tpu.memory_space<vmem>>, vector<1x128x128xbf16>
    %24 = vector.shape_cast %23 : vector<1x128x128xbf16> to vector<128x128xbf16>
    %cst_17 = arith.constant dense<0.000000e+00> : vector<256x128xf32>
    %25 = tpu.matmul %22, %24, %cst_17 {dimension_numbers = #tpu.dot_dimension_numbers<[1], [0], [0], [1], [0, 0, 1, 1], [], []>} : vector<256x128xbf16>, vector<128x128xbf16>, vector<256x128xf32> -> vector<256x128xf32>
    %c0_18 = arith.constant 0 : index
    %c0_19 = arith.constant 0 : index
    %26 = vector.load %arg10[%c0_18, %c0_19] : memref<256x128xf32, #tpu.memory_space<vmem>>, vector<256x128xf32>
    %27 = arith.addf %26, %25 : vector<256x128xf32>
    %c0_20 = arith.constant 0 : index
    %c0_21 = arith.constant 0 : index
    %28 = vector.load %arg10[%c0_20, %c0_21] : memref<256x128xf32, #tpu.memory_space<vmem>>, vector<256x128xf32>
    tpu.vector_store %arg10[%c0_20, %c0_21], %27 {strides = array<i32>} : memref<256x128xf32, #tpu.memory_space<vmem>>, vector<256x128xf32>,
    %c1_i32 = arith.constant 1 : i32
    %29 = arith.addi %3, %c1_i32 : i32
    %30 = arith.index_cast %29 : i32 to index
    %c0_22 = arith.constant 0 : index
    %c0_23 = arith.constant 0 : index
    %31 = vector.load %arg9[%30, %c0_22, %c0_23] : memref<18x18x128xbf16, #tpu.memory_space<vmem>>, vector<16x18x128xbf16>
    %32 = vector.extract_strided_slice %31 {offsets = [0, 0, 0], sizes = [16, 16, 128], strides = [1, 1, 1]} : vector<16x18x128xbf16> to vector<16x16x128xbf16>
    %33 = vector.shape_cast %32 : vector<16x16x128xbf16> to vector<256x128xbf16>
    %c3 = arith.constant 3 : index
    %c0_24 = arith.constant 0 : index
    %c0_25 = arith.constant 0 : index
    %34 = vector.load %arg5[%c3, %c0_24, %c0_25] : memref<9x128x128xbf16, #tpu.memory_space<vmem>>, vector<1x128x128xbf16>
    %35 = vector.shape_cast %34 : vector<1x128x128xbf16> to vector<128x128xbf16>
    %cst_26 = arith.constant dense<0.000000e+00> : vector<256x128xf32>
    %36 = tpu.matmul %33, %35, %cst_26 {dimension_numbers = #tpu.dot_dimension_numbers<[1], [0], [0], [1], [0, 0, 1, 1], [], []>} : vector<256x128xbf16>, vector<128x128xbf16>, vector<256x128xf32> -> vector<256x128xf32>
    %c0_27 = arith.constant 0 : index
    %c0_28 = arith.constant 0 : index
    %37 = vector.load %arg10[%c0_27, %c0_28] : memref<256x128xf32, #tpu.memory_space<vmem>>, vector<256x128xf32>
    %38 = arith.addf %37, %36 : vector<256x128xf32>
    %c0_29 = arith.constant 0 : index
    %c0_30 = arith.constant 0 : index
    %39 = vector.load %arg10[%c0_29, %c0_30] : memref<256x128xf32, #tpu.memory_space<vmem>>, vector<256x128xf32>
    tpu.vector_store %arg10[%c0_29, %c0_30], %38 {strides = array<i32>} : memref<256x128xf32, #tpu.memory_space<vmem>>, vector<256x128xf32>,
    %40 = vector.extract_strided_slice %31 {offsets = [0, 1, 0], sizes = [16, 16, 128], strides = [1, 1, 1]} : vector<16x18x128xbf16> to vector<16x16x128xbf16>
    %41 = vector.shape_cast %40 : vector<16x16x128xbf16> to vector<256x128xbf16>
    %c4 = arith.constant 4 : index
    %c0_31 = arith.constant 0 : index
    %c0_32 = arith.constant 0 : index
    %42 = vector.load %arg5[%c4, %c0_31, %c0_32] : memref<9x128x128xbf16, #tpu.memory_space<vmem>>, vector<1x128x128xbf16>
    %43 = vector.shape_cast %42 : vector<1x128x128xbf16> to vector<128x128xbf16>
    %cst_33 = arith.constant dense<0.000000e+00> : vector<256x128xf32>
    %44 = tpu.matmul %41, %43, %cst_33 {dimension_numbers = #tpu.dot_dimension_numbers<[1], [0], [0], [1], [0, 0, 1, 1], [], []>} : vector<256x128xbf16>, vector<128x128xbf16>, vector<256x128xf32> -> vector<256x128xf32>
    %c0_34 = arith.constant 0 : index
    %c0_35 = arith.constant 0 : index
    %45 = vector.load %arg10[%c0_34, %c0_35] : memref<256x128xf32, #tpu.memory_space<vmem>>, vector<256x128xf32>
    %46 = arith.addf %45, %44 : vector<256x128xf32>
    %c0_36 = arith.constant 0 : index
    %c0_37 = arith.constant 0 : index
    %47 = vector.load %arg10[%c0_36, %c0_37] : memref<256x128xf32, #tpu.memory_space<vmem>>, vector<256x128xf32>
    tpu.vector_store %arg10[%c0_36, %c0_37], %46 {strides = array<i32>} : memref<256x128xf32, #tpu.memory_space<vmem>>, vector<256x128xf32>,
    %48 = vector.extract_strided_slice %31 {offsets = [0, 2, 0], sizes = [16, 16, 128], strides = [1, 1, 1]} : vector<16x18x128xbf16> to vector<16x16x128xbf16>
    %49 = vector.shape_cast %48 : vector<16x16x128xbf16> to vector<256x128xbf16>
    %c5 = arith.constant 5 : index
    %c0_38 = arith.constant 0 : index
    %c0_39 = arith.constant 0 : index
    %50 = vector.load %arg5[%c5, %c0_38, %c0_39] : memref<9x128x128xbf16, #tpu.memory_space<vmem>>, vector<1x128x128xbf16>
    %51 = vector.shape_cast %50 : vector<1x128x128xbf16> to vector<128x128xbf16>
    %cst_40 = arith.constant dense<0.000000e+00> : vector<256x128xf32>
    %52 = tpu.matmul %49, %51, %cst_40 {dimension_numbers = #tpu.dot_dimension_numbers<[1], [0], [0], [1], [0, 0, 1, 1], [], []>} : vector<256x128xbf16>, vector<128x128xbf16>, vector<256x128xf32> -> vector<256x128xf32>
    %c0_41 = arith.constant 0 : index
    %c0_42 = arith.constant 0 : index
    %53 = vector.load %arg10[%c0_41, %c0_42] : memref<256x128xf32, #tpu.memory_space<vmem>>, vector<256x128xf32>
    %54 = arith.addf %53, %52 : vector<256x128xf32>
    %c0_43 = arith.constant 0 : index
    %c0_44 = arith.constant 0 : index
    %55 = vector.load %arg10[%c0_43, %c0_44] : memref<256x128xf32, #tpu.memory_space<vmem>>, vector<256x128xf32>
    tpu.vector_store %arg10[%c0_43, %c0_44], %54 {strides = array<i32>} : memref<256x128xf32, #tpu.memory_space<vmem>>, vector<256x128xf32>,
    %c2_i32 = arith.constant 2 : i32
    %56 = arith.addi %3, %c2_i32 : i32
    %57 = arith.index_cast %56 : i32 to index
    %c0_45 = arith.constant 0 : index
    %c0_46 = arith.constant 0 : index
    %58 = vector.load %arg9[%57, %c0_45, %c0_46] : memref<18x18x128xbf16, #tpu.memory_space<vmem>>, vector<16x18x128xbf16>
    %59 = vector.extract_strided_slice %58 {offsets = [0, 0, 0], sizes = [16, 16, 128], strides = [1, 1, 1]} : vector<16x18x128xbf16> to vector<16x16x128xbf16>
    %60 = vector.shape_cast %59 : vector<16x16x128xbf16> to vector<256x128xbf16>
    %c6 = arith.constant 6 : index
    %c0_47 = arith.constant 0 : index
    %c0_48 = arith.constant 0 : index
    %61 = vector.load %arg5[%c6, %c0_47, %c0_48] : memref<9x128x128xbf16, #tpu.memory_space<vmem>>, vector<1x128x128xbf16>
    %62 = vector.shape_cast %61 : vector<1x128x128xbf16> to vector<128x128xbf16>
    %cst_49 = arith.constant dense<0.000000e+00> : vector<256x128xf32>
    %63 = tpu.matmul %60, %62, %cst_49 {dimension_numbers = #tpu.dot_dimension_numbers<[1], [0], [0], [1], [0, 0, 1, 1], [], []>} : vector<256x128xbf16>, vector<128x128xbf16>, vector<256x128xf32> -> vector<256x128xf32>
    %c0_50 = arith.constant 0 : index
    %c0_51 = arith.constant 0 : index
    %64 = vector.load %arg10[%c0_50, %c0_51] : memref<256x128xf32, #tpu.memory_space<vmem>>, vector<256x128xf32>
    %65 = arith.addf %64, %63 : vector<256x128xf32>
    %c0_52 = arith.constant 0 : index
    %c0_53 = arith.constant 0 : index
    %66 = vector.load %arg10[%c0_52, %c0_53] : memref<256x128xf32, #tpu.memory_space<vmem>>, vector<256x128xf32>
    tpu.vector_store %arg10[%c0_52, %c0_53], %65 {strides = array<i32>} : memref<256x128xf32, #tpu.memory_space<vmem>>, vector<256x128xf32>,
    %67 = vector.extract_strided_slice %58 {offsets = [0, 1, 0], sizes = [16, 16, 128], strides = [1, 1, 1]} : vector<16x18x128xbf16> to vector<16x16x128xbf16>
    %68 = vector.shape_cast %67 : vector<16x16x128xbf16> to vector<256x128xbf16>
    %c7 = arith.constant 7 : index
    %c0_54 = arith.constant 0 : index
    %c0_55 = arith.constant 0 : index
    %69 = vector.load %arg5[%c7, %c0_54, %c0_55] : memref<9x128x128xbf16, #tpu.memory_space<vmem>>, vector<1x128x128xbf16>
    %70 = vector.shape_cast %69 : vector<1x128x128xbf16> to vector<128x128xbf16>
    %cst_56 = arith.constant dense<0.000000e+00> : vector<256x128xf32>
    %71 = tpu.matmul %68, %70, %cst_56 {dimension_numbers = #tpu.dot_dimension_numbers<[1], [0], [0], [1], [0, 0, 1, 1], [], []>} : vector<256x128xbf16>, vector<128x128xbf16>, vector<256x128xf32> -> vector<256x128xf32>
    %c0_57 = arith.constant 0 : index
    %c0_58 = arith.constant 0 : index
    %72 = vector.load %arg10[%c0_57, %c0_58] : memref<256x128xf32, #tpu.memory_space<vmem>>, vector<256x128xf32>
    %73 = arith.addf %72, %71 : vector<256x128xf32>
    %c0_59 = arith.constant 0 : index
    %c0_60 = arith.constant 0 : index
    %74 = vector.load %arg10[%c0_59, %c0_60] : memref<256x128xf32, #tpu.memory_space<vmem>>, vector<256x128xf32>
    tpu.vector_store %arg10[%c0_59, %c0_60], %73 {strides = array<i32>} : memref<256x128xf32, #tpu.memory_space<vmem>>, vector<256x128xf32>,
    %75 = vector.extract_strided_slice %58 {offsets = [0, 2, 0], sizes = [16, 16, 128], strides = [1, 1, 1]} : vector<16x18x128xbf16> to vector<16x16x128xbf16>
    %76 = vector.shape_cast %75 : vector<16x16x128xbf16> to vector<256x128xbf16>
    %c8 = arith.constant 8 : index
    %c0_61 = arith.constant 0 : index
    %c0_62 = arith.constant 0 : index
    %77 = vector.load %arg5[%c8, %c0_61, %c0_62] : memref<9x128x128xbf16, #tpu.memory_space<vmem>>, vector<1x128x128xbf16>
    %78 = vector.shape_cast %77 : vector<1x128x128xbf16> to vector<128x128xbf16>
    %cst_63 = arith.constant dense<0.000000e+00> : vector<256x128xf32>
    %79 = tpu.matmul %76, %78, %cst_63 {dimension_numbers = #tpu.dot_dimension_numbers<[1], [0], [0], [1], [0, 0, 1, 1], [], []>} : vector<256x128xbf16>, vector<128x128xbf16>, vector<256x128xf32> -> vector<256x128xf32>
    %c0_64 = arith.constant 0 : index
    %c0_65 = arith.constant 0 : index
    %80 = vector.load %arg10[%c0_64, %c0_65] : memref<256x128xf32, #tpu.memory_space<vmem>>, vector<256x128xf32>
    %81 = arith.addf %80, %79 : vector<256x128xf32>
    %c0_66 = arith.constant 0 : index
    %c0_67 = arith.constant 0 : index
    %82 = vector.load %arg10[%c0_66, %c0_67] : memref<256x128xf32, #tpu.memory_space<vmem>>, vector<256x128xf32>
    tpu.vector_store %arg10[%c0_66, %c0_67], %81 {strides = array<i32>} : memref<256x128xf32, #tpu.memory_space<vmem>>, vector<256x128xf32>,
    %c0_68 = arith.constant 0 : index
    %c0_69 = arith.constant 0 : index
    %83 = vector.load %arg10[%c0_68, %c0_69] : memref<256x128xf32, #tpu.memory_space<vmem>>, vector<256x128xf32>
    %84 = vector.shape_cast %83 : vector<256x128xf32> to vector<16x16x128xf32>
    %85 = arith.truncf %84 : vector<16x16x128xf32> to vector<16x16x128xbf16>
    %c0_70 = arith.constant 0 : index
    %c0_71 = arith.constant 0 : index
    %c0_72 = arith.constant 0 : index
    %c0_73 = arith.constant 0 : index
    %86 = vector.load %arg6[%c0_70, %c0_71, %c0_72, %c0_73] : memref<1x16x16x128xbf16, #tpu.memory_space<vmem>>, vector<1x16x16x128xbf16>
    %87 = vector.shape_cast %86 : vector<1x16x16x128xbf16> to vector<16x16x128xbf16>
    %88 = vector.shape_cast %85 : vector<16x16x128xbf16> to vector<1x16x16x128xbf16>
    tpu.vector_store %arg6[%c0_70, %c0_71, %c0_72, %c0_73], %88 {strides = array<i32>} : memref<1x16x16x128xbf16, #tpu.memory_space<vmem>>, vector<1x16x16x128xbf16>,
    %cst_74 = arith.constant dense<0.000000e+00> : vector<128xf32>
    %89 = vector.multi_reduction <add>, %83, %cst_74 [0] : vector<256x128xf32> to vector<128xf32>
    %90 = vector.shape_cast %89 : vector<128xf32> to vector<1x128xf32>
    %c0_75 = arith.constant 0 : index
    %c0_76 = arith.constant 0 : index
    %c0_77 = arith.constant 0 : index
    %91 = vector.load %arg7[%c0_75, %c0_76, %c0_77] : memref<1x1x128xf32, #tpu.memory_space<vmem>>, vector<1x1x128xf32>
    %92 = vector.shape_cast %91 : vector<1x1x128xf32> to vector<1x128xf32>
    %93 = vector.shape_cast %90 : vector<1x128xf32> to vector<1x1x128xf32>
    tpu.vector_store %arg7[%c0_75, %c0_76, %c0_77], %93 {strides = array<i32>} : memref<1x1x128xf32, #tpu.memory_space<vmem>>, vector<1x1x128xf32>,
    %94 = arith.mulf %83, %83 : vector<256x128xf32>
    %cst_78 = arith.constant dense<0.000000e+00> : vector<128xf32>
    %95 = vector.multi_reduction <add>, %94, %cst_78 [0] : vector<256x128xf32> to vector<128xf32>
    %96 = vector.shape_cast %95 : vector<128xf32> to vector<1x128xf32>
    %c0_79 = arith.constant 0 : index
    %c0_80 = arith.constant 0 : index
    %c0_81 = arith.constant 0 : index
    %97 = vector.load %arg8[%c0_79, %c0_80, %c0_81] : memref<1x1x128xf32, #tpu.memory_space<vmem>>, vector<1x1x128xf32>
    %98 = vector.shape_cast %97 : vector<1x1x128xf32> to vector<1x128xf32>
    %99 = vector.shape_cast %96 : vector<1x128xf32> to vector<1x1x128xf32>
    tpu.vector_store %arg8[%c0_79, %c0_80, %c0_81], %99 {strides = array<i32>} : memref<1x1x128xf32, #tpu.memory_space<vmem>>, vector<1x1x128xf32>,
    return
  }
  func.func @transform_0(%arg0: i32, %arg1: i32) -> (i32, i32, i32, i32) {
    %c0_i32 = arith.constant 0 : i32
    %c0_i32_0 = arith.constant 0 : i32
    %c0_i32_1 = arith.constant 0 : i32
    %c0_i32_2 = arith.constant 0 : i32
    return %arg0, %c0_i32, %c0_i32_0, %c0_i32_1 : i32, i32, i32, i32
  }
  func.func @transform_1(%arg0: i32, %arg1: i32) -> (i32, i32) {
    %c0_i32 = arith.constant 0 : i32
    %c0_i32_0 = arith.constant 0 : i32
    %c0_i32_1 = arith.constant 0 : i32
    return %c0_i32, %c0_i32_0 : i32, i32
  }
  func.func @transform_2(%arg0: i32, %arg1: i32) -> (i32, i32) {
    %c0_i32 = arith.constant 0 : i32
    %c0_i32_0 = arith.constant 0 : i32
    %c0_i32_1 = arith.constant 0 : i32
    return %c0_i32, %c0_i32_0 : i32, i32
  }
  func.func @transform_3(%arg0: i32, %arg1: i32) -> (i32, i32, i32) {
    %c0_i32 = arith.constant 0 : i32
    %c0_i32_0 = arith.constant 0 : i32
    %c0_i32_1 = arith.constant 0 : i32
    %c0_i32_2 = arith.constant 0 : i32
    return %c0_i32, %c0_i32_0, %c0_i32_1 : i32, i32, i32
  }
  func.func @transform_4(%arg0: i32, %arg1: i32) -> (i32, i32, i32, i32) {
    %c0_i32 = arith.constant 0 : i32
    %c0_i32_0 = arith.constant 0 : i32
    %c0_i32_1 = arith.constant 0 : i32
    return %arg0, %arg1, %c0_i32, %c0_i32_0 : i32, i32, i32, i32
  }
  func.func @transform_5(%arg0: i32, %arg1: i32) -> (i32, i32, i32) {
    %c0_i32 = arith.constant 0 : i32
    %c0_i32_0 = arith.constant 0 : i32
    return %arg0, %arg1, %c0_i32 : i32, i32, i32
  }
  func.func @transform_6(%arg0: i32, %arg1: i32) -> (i32, i32, i32) {
    %c0_i32 = arith.constant 0 : i32
    %c0_i32_0 = arith.constant 0 : i32
    return %arg0, %arg1, %c0_i32 : i32, i32, i32
  }
}

module attributes {stable_mosaic.version = 11 : i64} {
  func.func @_bn_relu_kernel(%arg0: i32, %arg1: memref<512x128xbf16, #tpu.memory_space<vmem>>, %arg2: memref<1x128xf32, #tpu.memory_space<vmem>>, %arg3: memref<1x128xf32, #tpu.memory_space<vmem>>, %arg4: memref<512x128xf32, #tpu.memory_space<vmem>>) attributes {dimension_semantics = [#tpu.dimension_semantics<parallel>], iteration_bounds = array<i64: 1>, scalar_prefetch = 0 : i64, scratch_operands = 0 : i64, tpu.core_type = #tpu.core_type<tc>, window_params = [{transform_indices = @transform_0, window_bounds = array<i64: 512, 128>}, {pipeline_mode = #tpu.pipeline_mode<synchronous>, transform_indices = @transform_1, window_bounds = array<i64: 1, 128>}, {pipeline_mode = #tpu.pipeline_mode<synchronous>, transform_indices = @transform_2, window_bounds = array<i64: 1, 128>}, {transform_indices = @transform_3, window_bounds = array<i64: 512, 128>}]} {
    %c0 = arith.constant 0 : index
    %c0_0 = arith.constant 0 : index
    %0 = vector.load %arg1[%c0, %c0_0] : memref<512x128xbf16, #tpu.memory_space<vmem>>, vector<512x128xbf16>
    %1 = arith.extf %0 : vector<512x128xbf16> to vector<512x128xf32>
    %c0_1 = arith.constant 0 : index
    %c0_2 = arith.constant 0 : index
    %2 = vector.load %arg2[%c0_1, %c0_2] : memref<1x128xf32, #tpu.memory_space<vmem>>, vector<1x128xf32>
    %3 = vector.broadcast %2 : vector<1x128xf32> to vector<512x128xf32>
    %4 = arith.mulf %1, %3 : vector<512x128xf32>
    %c0_3 = arith.constant 0 : index
    %c0_4 = arith.constant 0 : index
    %5 = vector.load %arg3[%c0_3, %c0_4] : memref<1x128xf32, #tpu.memory_space<vmem>>, vector<1x128xf32>
    %6 = vector.broadcast %5 : vector<1x128xf32> to vector<512x128xf32>
    %7 = arith.addf %4, %6 : vector<512x128xf32>
    %cst = arith.constant 0.000000e+00 : f32
    %8 = vector.broadcast %cst : f32 to vector<512x128xf32>
    %9 = arith.maximumf %7, %8 : vector<512x128xf32>
    %c0_5 = arith.constant 0 : index
    %c0_6 = arith.constant 0 : index
    %10 = vector.load %arg4[%c0_5, %c0_6] : memref<512x128xf32, #tpu.memory_space<vmem>>, vector<512x128xf32>
    tpu.vector_store %arg4[%c0_5, %c0_6], %9 {strides = array<i32>} : memref<512x128xf32, #tpu.memory_space<vmem>>, vector<512x128xf32>,
    return
  }
  func.func @transform_0(%arg0: i32) -> (i32, i32) {
    %c0_i32 = arith.constant 0 : i32
    %c0_i32_0 = arith.constant 0 : i32
    return %arg0, %c0_i32 : i32, i32
  }
  func.func @transform_1(%arg0: i32) -> (i32, i32) {
    %c0_i32 = arith.constant 0 : i32
    %c0_i32_0 = arith.constant 0 : i32
    %c0_i32_1 = arith.constant 0 : i32
    return %c0_i32, %c0_i32_0 : i32, i32
  }
  func.func @transform_2(%arg0: i32) -> (i32, i32) {
    %c0_i32 = arith.constant 0 : i32
    %c0_i32_0 = arith.constant 0 : i32
    %c0_i32_1 = arith.constant 0 : i32
    return %c0_i32, %c0_i32_0 : i32, i32
  }
  func.func @transform_3(%arg0: i32) -> (i32, i32) {
    %c0_i32 = arith.constant 0 : i32
    %c0_i32_0 = arith.constant 0 : i32
    return %arg0, %c0_i32 : i32, i32
  }
}

module attributes {stable_mosaic.version = 11 : i64} {
  func.func @kernel(%arg0: i32, %arg1: i32, %arg2: memref<1x16x16x128xbf16, #tpu.memory_space<vmem>>, %arg3: memref<1x128xf32, #tpu.memory_space<vmem>>, %arg4: memref<1x128xf32, #tpu.memory_space<vmem>>, %arg5: memref<9x128x128xbf16, #tpu.memory_space<vmem>>, %arg6: memref<1x16x16x128xbf16, #tpu.memory_space<vmem>>, %arg7: memref<1x1x128xf32, #tpu.memory_space<vmem>>, %arg8: memref<1x1x128xf32, #tpu.memory_space<vmem>>, %arg9: memref<18x18x128xbf16, #tpu.memory_space<vmem>>, %arg10: memref<256x128xf32, #tpu.memory_space<vmem>>) attributes {dimension_semantics = [#tpu.dimension_semantics<parallel>, #tpu.dimension_semantics<arbitrary>], iteration_bounds = array<i64: 2, 1>, scalar_prefetch = 0 : i64, scratch_operands = 2 : i64, tpu.core_type = #tpu.core_type<tc>, window_params = [{transform_indices = @transform_0, window_bounds = array<i64: 1, 16, 16, 128>}, {pipeline_mode = #tpu.pipeline_mode<synchronous>, transform_indices = @transform_1, window_bounds = array<i64: 1, 128>}, {pipeline_mode = #tpu.pipeline_mode<synchronous>, transform_indices = @transform_2, window_bounds = array<i64: 1, 128>}, {pipeline_mode = #tpu.pipeline_mode<synchronous>, transform_indices = @transform_3, window_bounds = array<i64: 9, 128, 128>}, {transform_indices = @transform_4, window_bounds = array<i64: 1, 16, 16, 128>}, {transform_indices = @transform_5, window_bounds = array<i64: 1, 1, 128>}, {transform_indices = @transform_6, window_bounds = array<i64: 1, 1, 128>}]} {
    %c0_i32 = arith.constant 0 : i32
    %0 = arith.cmpi eq, %arg1, %c0_i32 : i32
    %1 = arith.extui %0 : i1 to i32
    %c0_i32_0 = arith.constant 0 : i32
    %2 = arith.cmpi ne, %1, %c0_i32_0 : i32
    scf.if %2 {
      %cst_82 = arith.constant 0.000000e+00 : bf16
      %100 = vector.broadcast %cst_82 : bf16 to vector<18x18x128xbf16>
      %c0_83 = arith.constant 0 : index
      %c0_84 = arith.constant 0 : index
      %c0_85 = arith.constant 0 : index
      %101 = vector.load %arg9[%c0_83, %c0_84, %c0_85] : memref<18x18x128xbf16, #tpu.memory_space<vmem>>, vector<18x18x128xbf16>
      tpu.vector_store %arg9[%c0_83, %c0_84, %c0_85], %100 {strides = array<i32>} : memref<18x18x128xbf16, #tpu.memory_space<vmem>>, vector<18x18x128xbf16>,
      %c0_86 = arith.constant 0 : index
      %c0_87 = arith.constant 0 : index
      %c0_88 = arith.constant 0 : index
      %c0_89 = arith.constant 0 : index
      %102 = vector.load %arg2[%c0_86, %c0_87, %c0_88, %c0_89] : memref<1x16x16x128xbf16, #tpu.memory_space<vmem>>, vector<1x16x16x128xbf16>
      %103 = vector.shape_cast %102 : vector<1x16x16x128xbf16> to vector<16x16x128xbf16>
      %104 = arith.extf %103 : vector<16x16x128xbf16> to vector<16x16x128xf32>
      %c0_90 = arith.constant 0 : index
      %c0_91 = arith.constant 0 : index
      %105 = vector.load %arg3[%c0_90, %c0_91] : memref<1x128xf32, #tpu.memory_space<vmem>>, vector<1x128xf32>
      %106 = vector.shape_cast %105 : vector<1x128xf32> to vector<1x1x128xf32>
      %107 = vector.broadcast %106 : vector<1x1x128xf32> to vector<16x16x128xf32>
      %108 = arith.mulf %104, %107 : vector<16x16x128xf32>
      %c0_92 = arith.constant 0 : index
      %c0_93 = arith.constant 0 : index
      %109 = vector.load %arg4[%c0_92, %c0_93] : memref<1x128xf32, #tpu.memory_space<vmem>>, vector<1x128xf32>
      %110 = vector.shape_cast %109 : vector<1x128xf32> to vector<1x1x128xf32>
      %111 = vector.broadcast %110 : vector<1x1x128xf32> to vector<16x16x128xf32>
      %112 = arith.addf %108, %111 : vector<16x16x128xf32>
      %cst_94 = arith.constant 0.000000e+00 : f32
      %113 = vector.broadcast %cst_94 : f32 to vector<16x16x128xf32>
      %114 = arith.maximumf %112, %113 : vector<16x16x128xf32>
      %115 = arith.truncf %114 : vector<16x16x128xf32> to vector<16x16x128xbf16>
      %c1_95 = arith.constant 1 : index
      %c1_96 = arith.constant 1 : index
      %c0_97 = arith.constant 0 : index
      %116 = vector.load %arg9[%c1_95, %c1_96, %c0_97] : memref<18x18x128xbf16, #tpu.memory_space<vmem>>, vector<16x16x128xbf16>
      tpu.vector_store %arg9[%c1_95, %c1_96, %c0_97], %115 {strides = array<i32>} : memref<18x18x128xbf16, #tpu.memory_space<vmem>>, vector<16x16x128xbf16>,
    } else {
    }
    %c16_i32 = arith.constant 16 : i32
    %3 = arith.muli %arg1, %c16_i32 : i32
    %c0_i32_1 = arith.constant 0 : i32
    %4 = arith.addi %3, %c0_i32_1 : i32
    %5 = arith.index_cast %4 : i32 to index
    %c0 = arith.constant 0 : index
    %c0_2 = arith.constant 0 : index
    %6 = vector.load %arg9[%5, %c0, %c0_2] : memref<18x18x128xbf16, #tpu.memory_space<vmem>>, vector<16x18x128xbf16>
    %7 = vector.extract_strided_slice %6 {offsets = [0, 0, 0], sizes = [16, 16, 128], strides = [1, 1, 1]} : vector<16x18x128xbf16> to vector<16x16x128xbf16>
    %8 = vector.shape_cast %7 : vector<16x16x128xbf16> to vector<256x128xbf16>
    %c0_3 = arith.constant 0 : index
    %c0_4 = arith.constant 0 : index
    %c0_5 = arith.constant 0 : index
    %9 = vector.load %arg5[%c0_3, %c0_4, %c0_5] : memref<9x128x128xbf16, #tpu.memory_space<vmem>>, vector<1x128x128xbf16>
    %10 = vector.shape_cast %9 : vector<1x128x128xbf16> to vector<128x128xbf16>
    %cst = arith.constant dense<0.000000e+00> : vector<256x128xf32>
    %11 = tpu.matmul %8, %10, %cst {dimension_numbers = #tpu.dot_dimension_numbers<[1], [0], [0], [1], [0, 0, 1, 1], [], []>} : vector<256x128xbf16>, vector<128x128xbf16>, vector<256x128xf32> -> vector<256x128xf32>
    %c0_6 = arith.constant 0 : index
    %c0_7 = arith.constant 0 : index
    %12 = vector.load %arg10[%c0_6, %c0_7] : memref<256x128xf32, #tpu.memory_space<vmem>>, vector<256x128xf32>
    tpu.vector_store %arg10[%c0_6, %c0_7], %11 {strides = array<i32>} : memref<256x128xf32, #tpu.memory_space<vmem>>, vector<256x128xf32>,
    %13 = vector.extract_strided_slice %6 {offsets = [0, 1, 0], sizes = [16, 16, 128], strides = [1, 1, 1]} : vector<16x18x128xbf16> to vector<16x16x128xbf16>
    %14 = vector.shape_cast %13 : vector<16x16x128xbf16> to vector<256x128xbf16>
    %c1 = arith.constant 1 : index
    %c0_8 = arith.constant 0 : index
    %c0_9 = arith.constant 0 : index
    %15 = vector.load %arg5[%c1, %c0_8, %c0_9] : memref<9x128x128xbf16, #tpu.memory_space<vmem>>, vector<1x128x128xbf16>
    %16 = vector.shape_cast %15 : vector<1x128x128xbf16> to vector<128x128xbf16>
    %cst_10 = arith.constant dense<0.000000e+00> : vector<256x128xf32>
    %17 = tpu.matmul %14, %16, %cst_10 {dimension_numbers = #tpu.dot_dimension_numbers<[1], [0], [0], [1], [0, 0, 1, 1], [], []>} : vector<256x128xbf16>, vector<128x128xbf16>, vector<256x128xf32> -> vector<256x128xf32>
    %c0_11 = arith.constant 0 : index
    %c0_12 = arith.constant 0 : index
    %18 = vector.load %arg10[%c0_11, %c0_12] : memref<256x128xf32, #tpu.memory_space<vmem>>, vector<256x128xf32>
    %19 = arith.addf %18, %17 : vector<256x128xf32>
    %c0_13 = arith.constant 0 : index
    %c0_14 = arith.constant 0 : index
    %20 = vector.load %arg10[%c0_13, %c0_14] : memref<256x128xf32, #tpu.memory_space<vmem>>, vector<256x128xf32>
    tpu.vector_store %arg10[%c0_13, %c0_14], %19 {strides = array<i32>} : memref<256x128xf32, #tpu.memory_space<vmem>>, vector<256x128xf32>,
    %21 = vector.extract_strided_slice %6 {offsets = [0, 2, 0], sizes = [16, 16, 128], strides = [1, 1, 1]} : vector<16x18x128xbf16> to vector<16x16x128xbf16>
    %22 = vector.shape_cast %21 : vector<16x16x128xbf16> to vector<256x128xbf16>
    %c2 = arith.constant 2 : index
    %c0_15 = arith.constant 0 : index
    %c0_16 = arith.constant 0 : index
    %23 = vector.load %arg5[%c2, %c0_15, %c0_16] : memref<9x128x128xbf16, #tpu.memory_space<vmem>>, vector<1x128x128xbf16>
    %24 = vector.shape_cast %23 : vector<1x128x128xbf16> to vector<128x128xbf16>
    %cst_17 = arith.constant dense<0.000000e+00> : vector<256x128xf32>
    %25 = tpu.matmul %22, %24, %cst_17 {dimension_numbers = #tpu.dot_dimension_numbers<[1], [0], [0], [1], [0, 0, 1, 1], [], []>} : vector<256x128xbf16>, vector<128x128xbf16>, vector<256x128xf32> -> vector<256x128xf32>
    %c0_18 = arith.constant 0 : index
    %c0_19 = arith.constant 0 : index
    %26 = vector.load %arg10[%c0_18, %c0_19] : memref<256x128xf32, #tpu.memory_space<vmem>>, vector<256x128xf32>
    %27 = arith.addf %26, %25 : vector<256x128xf32>
    %c0_20 = arith.constant 0 : index
    %c0_21 = arith.constant 0 : index
    %28 = vector.load %arg10[%c0_20, %c0_21] : memref<256x128xf32, #tpu.memory_space<vmem>>, vector<256x128xf32>
    tpu.vector_store %arg10[%c0_20, %c0_21], %27 {strides = array<i32>} : memref<256x128xf32, #tpu.memory_space<vmem>>, vector<256x128xf32>,
    %c1_i32 = arith.constant 1 : i32
    %29 = arith.addi %3, %c1_i32 : i32
    %30 = arith.index_cast %29 : i32 to index
    %c0_22 = arith.constant 0 : index
    %c0_23 = arith.constant 0 : index
    %31 = vector.load %arg9[%30, %c0_22, %c0_23] : memref<18x18x128xbf16, #tpu.memory_space<vmem>>, vector<16x18x128xbf16>
    %32 = vector.extract_strided_slice %31 {offsets = [0, 0, 0], sizes = [16, 16, 128], strides = [1, 1, 1]} : vector<16x18x128xbf16> to vector<16x16x128xbf16>
    %33 = vector.shape_cast %32 : vector<16x16x128xbf16> to vector<256x128xbf16>
    %c3 = arith.constant 3 : index
    %c0_24 = arith.constant 0 : index
    %c0_25 = arith.constant 0 : index
    %34 = vector.load %arg5[%c3, %c0_24, %c0_25] : memref<9x128x128xbf16, #tpu.memory_space<vmem>>, vector<1x128x128xbf16>
    %35 = vector.shape_cast %34 : vector<1x128x128xbf16> to vector<128x128xbf16>
    %cst_26 = arith.constant dense<0.000000e+00> : vector<256x128xf32>
    %36 = tpu.matmul %33, %35, %cst_26 {dimension_numbers = #tpu.dot_dimension_numbers<[1], [0], [0], [1], [0, 0, 1, 1], [], []>} : vector<256x128xbf16>, vector<128x128xbf16>, vector<256x128xf32> -> vector<256x128xf32>
    %c0_27 = arith.constant 0 : index
    %c0_28 = arith.constant 0 : index
    %37 = vector.load %arg10[%c0_27, %c0_28] : memref<256x128xf32, #tpu.memory_space<vmem>>, vector<256x128xf32>
    %38 = arith.addf %37, %36 : vector<256x128xf32>
    %c0_29 = arith.constant 0 : index
    %c0_30 = arith.constant 0 : index
    %39 = vector.load %arg10[%c0_29, %c0_30] : memref<256x128xf32, #tpu.memory_space<vmem>>, vector<256x128xf32>
    tpu.vector_store %arg10[%c0_29, %c0_30], %38 {strides = array<i32>} : memref<256x128xf32, #tpu.memory_space<vmem>>, vector<256x128xf32>,
    %40 = vector.extract_strided_slice %31 {offsets = [0, 1, 0], sizes = [16, 16, 128], strides = [1, 1, 1]} : vector<16x18x128xbf16> to vector<16x16x128xbf16>
    %41 = vector.shape_cast %40 : vector<16x16x128xbf16> to vector<256x128xbf16>
    %c4 = arith.constant 4 : index
    %c0_31 = arith.constant 0 : index
    %c0_32 = arith.constant 0 : index
    %42 = vector.load %arg5[%c4, %c0_31, %c0_32] : memref<9x128x128xbf16, #tpu.memory_space<vmem>>, vector<1x128x128xbf16>
    %43 = vector.shape_cast %42 : vector<1x128x128xbf16> to vector<128x128xbf16>
    %cst_33 = arith.constant dense<0.000000e+00> : vector<256x128xf32>
    %44 = tpu.matmul %41, %43, %cst_33 {dimension_numbers = #tpu.dot_dimension_numbers<[1], [0], [0], [1], [0, 0, 1, 1], [], []>} : vector<256x128xbf16>, vector<128x128xbf16>, vector<256x128xf32> -> vector<256x128xf32>
    %c0_34 = arith.constant 0 : index
    %c0_35 = arith.constant 0 : index
    %45 = vector.load %arg10[%c0_34, %c0_35] : memref<256x128xf32, #tpu.memory_space<vmem>>, vector<256x128xf32>
    %46 = arith.addf %45, %44 : vector<256x128xf32>
    %c0_36 = arith.constant 0 : index
    %c0_37 = arith.constant 0 : index
    %47 = vector.load %arg10[%c0_36, %c0_37] : memref<256x128xf32, #tpu.memory_space<vmem>>, vector<256x128xf32>
    tpu.vector_store %arg10[%c0_36, %c0_37], %46 {strides = array<i32>} : memref<256x128xf32, #tpu.memory_space<vmem>>, vector<256x128xf32>,
    %48 = vector.extract_strided_slice %31 {offsets = [0, 2, 0], sizes = [16, 16, 128], strides = [1, 1, 1]} : vector<16x18x128xbf16> to vector<16x16x128xbf16>
    %49 = vector.shape_cast %48 : vector<16x16x128xbf16> to vector<256x128xbf16>
    %c5 = arith.constant 5 : index
    %c0_38 = arith.constant 0 : index
    %c0_39 = arith.constant 0 : index
    %50 = vector.load %arg5[%c5, %c0_38, %c0_39] : memref<9x128x128xbf16, #tpu.memory_space<vmem>>, vector<1x128x128xbf16>
    %51 = vector.shape_cast %50 : vector<1x128x128xbf16> to vector<128x128xbf16>
    %cst_40 = arith.constant dense<0.000000e+00> : vector<256x128xf32>
    %52 = tpu.matmul %49, %51, %cst_40 {dimension_numbers = #tpu.dot_dimension_numbers<[1], [0], [0], [1], [0, 0, 1, 1], [], []>} : vector<256x128xbf16>, vector<128x128xbf16>, vector<256x128xf32> -> vector<256x128xf32>
    %c0_41 = arith.constant 0 : index
    %c0_42 = arith.constant 0 : index
    %53 = vector.load %arg10[%c0_41, %c0_42] : memref<256x128xf32, #tpu.memory_space<vmem>>, vector<256x128xf32>
    %54 = arith.addf %53, %52 : vector<256x128xf32>
    %c0_43 = arith.constant 0 : index
    %c0_44 = arith.constant 0 : index
    %55 = vector.load %arg10[%c0_43, %c0_44] : memref<256x128xf32, #tpu.memory_space<vmem>>, vector<256x128xf32>
    tpu.vector_store %arg10[%c0_43, %c0_44], %54 {strides = array<i32>} : memref<256x128xf32, #tpu.memory_space<vmem>>, vector<256x128xf32>,
    %c2_i32 = arith.constant 2 : i32
    %56 = arith.addi %3, %c2_i32 : i32
    %57 = arith.index_cast %56 : i32 to index
    %c0_45 = arith.constant 0 : index
    %c0_46 = arith.constant 0 : index
    %58 = vector.load %arg9[%57, %c0_45, %c0_46] : memref<18x18x128xbf16, #tpu.memory_space<vmem>>, vector<16x18x128xbf16>
    %59 = vector.extract_strided_slice %58 {offsets = [0, 0, 0], sizes = [16, 16, 128], strides = [1, 1, 1]} : vector<16x18x128xbf16> to vector<16x16x128xbf16>
    %60 = vector.shape_cast %59 : vector<16x16x128xbf16> to vector<256x128xbf16>
    %c6 = arith.constant 6 : index
    %c0_47 = arith.constant 0 : index
    %c0_48 = arith.constant 0 : index
    %61 = vector.load %arg5[%c6, %c0_47, %c0_48] : memref<9x128x128xbf16, #tpu.memory_space<vmem>>, vector<1x128x128xbf16>
    %62 = vector.shape_cast %61 : vector<1x128x128xbf16> to vector<128x128xbf16>
    %cst_49 = arith.constant dense<0.000000e+00> : vector<256x128xf32>
    %63 = tpu.matmul %60, %62, %cst_49 {dimension_numbers = #tpu.dot_dimension_numbers<[1], [0], [0], [1], [0, 0, 1, 1], [], []>} : vector<256x128xbf16>, vector<128x128xbf16>, vector<256x128xf32> -> vector<256x128xf32>
    %c0_50 = arith.constant 0 : index
    %c0_51 = arith.constant 0 : index
    %64 = vector.load %arg10[%c0_50, %c0_51] : memref<256x128xf32, #tpu.memory_space<vmem>>, vector<256x128xf32>
    %65 = arith.addf %64, %63 : vector<256x128xf32>
    %c0_52 = arith.constant 0 : index
    %c0_53 = arith.constant 0 : index
    %66 = vector.load %arg10[%c0_52, %c0_53] : memref<256x128xf32, #tpu.memory_space<vmem>>, vector<256x128xf32>
    tpu.vector_store %arg10[%c0_52, %c0_53], %65 {strides = array<i32>} : memref<256x128xf32, #tpu.memory_space<vmem>>, vector<256x128xf32>,
    %67 = vector.extract_strided_slice %58 {offsets = [0, 1, 0], sizes = [16, 16, 128], strides = [1, 1, 1]} : vector<16x18x128xbf16> to vector<16x16x128xbf16>
    %68 = vector.shape_cast %67 : vector<16x16x128xbf16> to vector<256x128xbf16>
    %c7 = arith.constant 7 : index
    %c0_54 = arith.constant 0 : index
    %c0_55 = arith.constant 0 : index
    %69 = vector.load %arg5[%c7, %c0_54, %c0_55] : memref<9x128x128xbf16, #tpu.memory_space<vmem>>, vector<1x128x128xbf16>
    %70 = vector.shape_cast %69 : vector<1x128x128xbf16> to vector<128x128xbf16>
    %cst_56 = arith.constant dense<0.000000e+00> : vector<256x128xf32>
    %71 = tpu.matmul %68, %70, %cst_56 {dimension_numbers = #tpu.dot_dimension_numbers<[1], [0], [0], [1], [0, 0, 1, 1], [], []>} : vector<256x128xbf16>, vector<128x128xbf16>, vector<256x128xf32> -> vector<256x128xf32>
    %c0_57 = arith.constant 0 : index
    %c0_58 = arith.constant 0 : index
    %72 = vector.load %arg10[%c0_57, %c0_58] : memref<256x128xf32, #tpu.memory_space<vmem>>, vector<256x128xf32>
    %73 = arith.addf %72, %71 : vector<256x128xf32>
    %c0_59 = arith.constant 0 : index
    %c0_60 = arith.constant 0 : index
    %74 = vector.load %arg10[%c0_59, %c0_60] : memref<256x128xf32, #tpu.memory_space<vmem>>, vector<256x128xf32>
    tpu.vector_store %arg10[%c0_59, %c0_60], %73 {strides = array<i32>} : memref<256x128xf32, #tpu.memory_space<vmem>>, vector<256x128xf32>,
    %75 = vector.extract_strided_slice %58 {offsets = [0, 2, 0], sizes = [16, 16, 128], strides = [1, 1, 1]} : vector<16x18x128xbf16> to vector<16x16x128xbf16>
    %76 = vector.shape_cast %75 : vector<16x16x128xbf16> to vector<256x128xbf16>
    %c8 = arith.constant 8 : index
    %c0_61 = arith.constant 0 : index
    %c0_62 = arith.constant 0 : index
    %77 = vector.load %arg5[%c8, %c0_61, %c0_62] : memref<9x128x128xbf16, #tpu.memory_space<vmem>>, vector<1x128x128xbf16>
    %78 = vector.shape_cast %77 : vector<1x128x128xbf16> to vector<128x128xbf16>
    %cst_63 = arith.constant dense<0.000000e+00> : vector<256x128xf32>
    %79 = tpu.matmul %76, %78, %cst_63 {dimension_numbers = #tpu.dot_dimension_numbers<[1], [0], [0], [1], [0, 0, 1, 1], [], []>} : vector<256x128xbf16>, vector<128x128xbf16>, vector<256x128xf32> -> vector<256x128xf32>
    %c0_64 = arith.constant 0 : index
    %c0_65 = arith.constant 0 : index
    %80 = vector.load %arg10[%c0_64, %c0_65] : memref<256x128xf32, #tpu.memory_space<vmem>>, vector<256x128xf32>
    %81 = arith.addf %80, %79 : vector<256x128xf32>
    %c0_66 = arith.constant 0 : index
    %c0_67 = arith.constant 0 : index
    %82 = vector.load %arg10[%c0_66, %c0_67] : memref<256x128xf32, #tpu.memory_space<vmem>>, vector<256x128xf32>
    tpu.vector_store %arg10[%c0_66, %c0_67], %81 {strides = array<i32>} : memref<256x128xf32, #tpu.memory_space<vmem>>, vector<256x128xf32>,
    %c0_68 = arith.constant 0 : index
    %c0_69 = arith.constant 0 : index
    %83 = vector.load %arg10[%c0_68, %c0_69] : memref<256x128xf32, #tpu.memory_space<vmem>>, vector<256x128xf32>
    %84 = vector.shape_cast %83 : vector<256x128xf32> to vector<16x16x128xf32>
    %85 = arith.truncf %84 : vector<16x16x128xf32> to vector<16x16x128xbf16>
    %c0_70 = arith.constant 0 : index
    %c0_71 = arith.constant 0 : index
    %c0_72 = arith.constant 0 : index
    %c0_73 = arith.constant 0 : index
    %86 = vector.load %arg6[%c0_70, %c0_71, %c0_72, %c0_73] : memref<1x16x16x128xbf16, #tpu.memory_space<vmem>>, vector<1x16x16x128xbf16>
    %87 = vector.shape_cast %86 : vector<1x16x16x128xbf16> to vector<16x16x128xbf16>
    %88 = vector.shape_cast %85 : vector<16x16x128xbf16> to vector<1x16x16x128xbf16>
    tpu.vector_store %arg6[%c0_70, %c0_71, %c0_72, %c0_73], %88 {strides = array<i32>} : memref<1x16x16x128xbf16, #tpu.memory_space<vmem>>, vector<1x16x16x128xbf16>,
    %cst_74 = arith.constant dense<0.000000e+00> : vector<128xf32>
    %89 = vector.multi_reduction <add>, %83, %cst_74 [0] : vector<256x128xf32> to vector<128xf32>
    %90 = vector.shape_cast %89 : vector<128xf32> to vector<1x128xf32>
    %c0_75 = arith.constant 0 : index
    %c0_76 = arith.constant 0 : index
    %c0_77 = arith.constant 0 : index
    %91 = vector.load %arg7[%c0_75, %c0_76, %c0_77] : memref<1x1x128xf32, #tpu.memory_space<vmem>>, vector<1x1x128xf32>
    %92 = vector.shape_cast %91 : vector<1x1x128xf32> to vector<1x128xf32>
    %93 = vector.shape_cast %90 : vector<1x128xf32> to vector<1x1x128xf32>
    tpu.vector_store %arg7[%c0_75, %c0_76, %c0_77], %93 {strides = array<i32>} : memref<1x1x128xf32, #tpu.memory_space<vmem>>, vector<1x1x128xf32>,
    %94 = arith.mulf %83, %83 : vector<256x128xf32>
    %cst_78 = arith.constant dense<0.000000e+00> : vector<128xf32>
    %95 = vector.multi_reduction <add>, %94, %cst_78 [0] : vector<256x128xf32> to vector<128xf32>
    %96 = vector.shape_cast %95 : vector<128xf32> to vector<1x128xf32>
    %c0_79 = arith.constant 0 : index
    %c0_80 = arith.constant 0 : index
    %c0_81 = arith.constant 0 : index
    %97 = vector.load %arg8[%c0_79, %c0_80, %c0_81] : memref<1x1x128xf32, #tpu.memory_space<vmem>>, vector<1x1x128xf32>
    %98 = vector.shape_cast %97 : vector<1x1x128xf32> to vector<1x128xf32>
    %99 = vector.shape_cast %96 : vector<1x128xf32> to vector<1x1x128xf32>
    tpu.vector_store %arg8[%c0_79, %c0_80, %c0_81], %99 {strides = array<i32>} : memref<1x1x128xf32, #tpu.memory_space<vmem>>, vector<1x1x128xf32>,
    return
  }
  func.func @transform_0(%arg0: i32, %arg1: i32) -> (i32, i32, i32, i32) {
    %c0_i32 = arith.constant 0 : i32
    %c0_i32_0 = arith.constant 0 : i32
    %c0_i32_1 = arith.constant 0 : i32
    %c0_i32_2 = arith.constant 0 : i32
    return %arg0, %c0_i32, %c0_i32_0, %c0_i32_1 : i32, i32, i32, i32
  }
  func.func @transform_1(%arg0: i32, %arg1: i32) -> (i32, i32) {
    %c0_i32 = arith.constant 0 : i32
    %c0_i32_0 = arith.constant 0 : i32
    %c0_i32_1 = arith.constant 0 : i32
    return %c0_i32, %c0_i32_0 : i32, i32
  }
  func.func @transform_2(%arg0: i32, %arg1: i32) -> (i32, i32) {
    %c0_i32 = arith.constant 0 : i32
    %c0_i32_0 = arith.constant 0 : i32
    %c0_i32_1 = arith.constant 0 : i32
    return %c0_i32, %c0_i32_0 : i32, i32
  }
  func.func @transform_3(%arg0: i32, %arg1: i32) -> (i32, i32, i32) {
    %c0_i32 = arith.constant 0 : i32
    %c0_i32_0 = arith.constant 0 : i32
    %c0_i32_1 = arith.constant 0 : i32
    %c0_i32_2 = arith.constant 0 : i32
    return %c0_i32, %c0_i32_0, %c0_i32_1 : i32, i32, i32
  }
  func.func @transform_4(%arg0: i32, %arg1: i32) -> (i32, i32, i32, i32) {
    %c0_i32 = arith.constant 0 : i32
    %c0_i32_0 = arith.constant 0 : i32
    %c0_i32_1 = arith.constant 0 : i32
    return %arg0, %arg1, %c0_i32, %c0_i32_0 : i32, i32, i32, i32
  }
  func.func @transform_5(%arg0: i32, %arg1: i32) -> (i32, i32, i32) {
    %c0_i32 = arith.constant 0 : i32
    %c0_i32_0 = arith.constant 0 : i32
    return %arg0, %arg1, %c0_i32 : i32, i32, i32
  }
  func.func @transform_6(%arg0: i32, %arg1: i32) -> (i32, i32, i32) {
    %c0_i32 = arith.constant 0 : i32
    %c0_i32_0 = arith.constant 0 : i32
    return %arg0, %arg1, %c0_i32 : i32, i32, i32
  }
}

</mosaic_0001>

<bundles_post_ra>
// kernel: double_conv.5
= control target key start
LH: loop header
LB: loop body
LE: loop exit
PB: predicated region body
PF: predicated region fallthrough
CT: control target
= control target key end

     0   :  { %s1023_s0 = inlined_call_operand.vmem [shape: bf16[512,128], index: 0, kind: input, shape index: {}]   ;;  %s1024_s1 = inlined_call_operand.vmem [shape: f32[1,128], index: 1, kind: input, shape index: {}]   ;;  %s1025_s2 = inlined_call_operand.vmem [shape: f32[1,128], index: 2, kind: input, shape index: {}]   ;;  %s1026_s3 = inlined_call_operand.vmem [shape: f32[512,128], index: 3, kind: output, shape index: {}]  }
   0x1   :  { %v419_v0 = vld [vmem:[%s1023_s0] sm:$0xff]   ;;  %v546_v4 = vld [vmem:[%s1023_s0 + $0x8] sm:$0xff]   ;;  %v547_v5 = vld [vmem:[%s1023_s0 + $0x10] sm:$0xff]  }
   0x2   :  { %v603_v1 = vld [vmem:[%s1024_s1] ss:$0 sm:$0xff]  ;;  %v420_v2 = vunpack.c.l.bf16 %v419_v0  ;;  %v421_v3 = vunpack.c.h.bf16 %v419_v0  ;;  %v548_v6 = vld [vmem:[%s1023_s0 + $0x18] sm:$0xff]   ;;  %v424_v8 = vunpack.c.l.bf16 %v546_v4  ;;  %v425_v9 = vunpack.c.h.bf16 %v546_v4  ;;  %v550_v33 = vld [vmem:[%s1023_s0 + $0x28] sm:$0xff]  }
   0x3   :  { %v617_v7 = vld [vmem:[%s1025_s2] ss:$0 sm:$0xff]  ;;  %v428_v10 = vunpack.c.l.bf16 %v547_v5  ;;  %v429_v11 = vunpack.c.h.bf16 %v547_v5  ;;  %v432_v14 = vunpack.c.l.bf16 %v548_v6  ;;  %v433_v15 = vunpack.c.h.bf16 %v548_v6  ;;  %v551_v34 = vld [vmem:[%s1023_s0 + $0x30] sm:$0xff]   ;;  %v552_v39 = vld [vmem:[%s1023_s0 + $0x38] sm:$0xff]  }
   0x4   :  { %v149_v12 = vmul.f32 %v420_v2, %v603_v1  ;;  %v150_v13 = vmul.f32 %v421_v3, %v603_v1  ;;  %v151_v16 = vmul.f32 %v424_v8, %v603_v1  ;;  %v152_v17 = vmul.f32 %v425_v9, %v603_v1  ;;  %v549_v28 = vld [vmem:[%s1023_s0 + $0x20] sm:$0xff]   ;;  %v554_v6 = vld [vmem:[%s1023_s0 + $0x48] sm:$0xff]   ;;  %v555_v8 = vld [vmem:[%s1023_s0 + $0x50] sm:$0xff]  }
   0x5   :  { %v153_v18 = vmul.f32 %v428_v10, %v603_v1  ;;  %v154_v19 = vmul.f32 %v429_v11, %v603_v1  ;;  %v155_v22 = vmul.f32 %v432_v14, %v603_v1  ;;  %v156_v23 = vmul.f32 %v433_v15, %v603_v1  ;;  %v553_v0 = vld [vmem:[%s1023_s0 + $0x40] sm:$0xff]  }
   0x6   :  { %v220_v20 = vadd.f32 %v617_v7, %v149_v12  ;;  %v221_v21 = vadd.f32 %v617_v7, %v150_v13  ;;  %v222_v24 = vadd.f32 %v617_v7, %v151_v16  ;;  %v223_v25 = vadd.f32 %v617_v7, %v152_v17  ;;  %v556_v13 = vld [vmem:[%s1023_s0 + $0x58] sm:$0xff]  }
   0x7   :  { %v224_v26 = vadd.f32 %v617_v7, %v153_v18  ;;  %v225_v27 = vadd.f32 %v617_v7, %v154_v19  ;;  %v226_v31 = vadd.f32 %v617_v7, %v155_v22  ;;  %v227_v32 = vadd.f32 %v617_v7, %v156_v23 }
   0x8   :  { %v284_v29 = vmax.f32 %v220_v20, 0.0  ;;  %v285_v30 = vmax.f32 %v221_v21, 0.0  ;;  %v286_v35 = vmax.f32 %v222_v24, 0.0  ;;  %v287_v36 = vmax.f32 %v223_v25, 0.0 }
   0x9   :  { %v288_v37 = vmax.f32 %v224_v26, 0.0  ;;  %v289_v38 = vmax.f32 %v225_v27, 0.0  ;;  %v290_v40 = vmax.f32 %v226_v31, 0.0  ;;  %v291_v41 = vmax.f32 %v227_v32, 0.0 }
   0xa   :  { %348 = vst [vmem:[%s1026_s3] sm:$0xff] %v284_v29  ;;  %349 = vst [vmem:[%s1026_s3 + $0x8] sm:$0xff] %v285_v30  ;;  %v436_v42 = vunpack.c.l.bf16 %v549_v28  ;;  %v437_v43 = vunpack.c.h.bf16 %v549_v28  ;;  %v440_v44 = vunpack.c.l.bf16 %v550_v33  ;;  %v441_v45 = vunpack.c.h.bf16 %v550_v33 }
   0xb   :  { %350 = vst [vmem:[%s1026_s3 + $0x10] sm:$0xff] %v286_v35  ;;  %351 = vst [vmem:[%s1026_s3 + $0x18] sm:$0xff] %v287_v36  ;;  %v444_v46 = vunpack.c.l.bf16 %v551_v34  ;;  %v445_v47 = vunpack.c.h.bf16 %v551_v34  ;;  %v448_v50 = vunpack.c.l.bf16 %v552_v39  ;;  %v449_v51 = vunpack.c.h.bf16 %v552_v39 }
   0xc   :  { %352 = vst [vmem:[%s1026_s3 + $0x20] sm:$0xff] %v288_v37  ;;  %353 = vst [vmem:[%s1026_s3 + $0x28] sm:$0xff] %v289_v38  ;;  %v157_v48 = vmul.f32 %v436_v42, %v603_v1  ;;  %v158_v49 = vmul.f32 %v437_v43, %v603_v1  ;;  %v159_v52 = vmul.f32 %v440_v44, %v603_v1  ;;  %v452_v16 = vunpack.c.l.bf16 %v553_v0  ;;  %v557_v38 = vld [vmem:[%s1023_s0 + $0x60] sm:$0xff]   ;;  %v558_v43 = vld [vmem:[%s1023_s0 + $0x68] sm:$0xff]  }
   0xd   :  { %354 = vst [vmem:[%s1026_s3 + $0x30] sm:$0xff] %v290_v40  ;;  %355 = vst [vmem:[%s1026_s3 + $0x38] sm:$0xff] %v291_v41  ;;  %v160_v53 = vmul.f32 %v441_v45, %v603_v1  ;;  %v161_v54 = vmul.f32 %v444_v46, %v603_v1  ;;  %v162_v55 = vmul.f32 %v445_v47, %v603_v1  ;;  %v453_v17 = vunpack.c.h.bf16 %v553_v0  ;;  %v559_v44 = vld [vmem:[%s1023_s0 + $0x70] sm:$0xff]  }
   0xe   :  { %v228_v56 = vadd.f32 %v617_v7, %v157_v48  ;;  %v229_v57 = vadd.f32 %v617_v7, %v158_v49  ;;  %v163_v58 = vmul.f32 %v448_v50, %v603_v1  ;;  %v164_v59 = vmul.f32 %v449_v51, %v603_v1  ;;  %v560_v49 = vld [vmem:[%s1023_s0 + $0x78] sm:$0xff]  }
   0xf   :  { %v230_v60 = vadd.f32 %v617_v7, %v159_v52  ;;  %v231_v61 = vadd.f32 %v617_v7, %v160_v53  ;;  %v232_v62 = vadd.f32 %v617_v7, %v161_v54  ;;  %v233_v63 = vadd.f32 %v617_v7, %v162_v55 }
  0x10   :  { %v292_v2 = vmax.f32 %v228_v56, 0.0  ;;  %v293_v3 = vmax.f32 %v229_v57, 0.0  ;;  %v234_v4 = vadd.f32 %v617_v7, %v163_v58  ;;  %v235_v5 = vadd.f32 %v617_v7, %v164_v59 }
  0x11   :  { %v294_v9 = vmax.f32 %v230_v60, 0.0  ;;  %v295_v10 = vmax.f32 %v231_v61, 0.0  ;;  %v296_v11 = vmax.f32 %v232_v62, 0.0  ;;  %v297_v12 = vmax.f32 %v233_v63, 0.0 }
  0x12   :  { %356 = vst [vmem:[%s1026_s3 + $0x40] sm:$0xff] %v292_v2  ;;  %357 = vst [vmem:[%s1026_s3 + $0x48] sm:$0xff] %v293_v3  ;;  %v298_v14 = vmax.f32 %v234_v4, 0.0  ;;  %v299_v15 = vmax.f32 %v235_v5, 0.0  ;;  %v456_v18 = vunpack.c.l.bf16 %v554_v6  ;;  %v457_v19 = vunpack.c.h.bf16 %v554_v6 }
  0x13   :  { %358 = vst [vmem:[%s1026_s3 + $0x50] sm:$0xff] %v294_v9  ;;  %359 = vst [vmem:[%s1026_s3 + $0x58] sm:$0xff] %v295_v10  ;;  %v460_v20 = vunpack.c.l.bf16 %v555_v8  ;;  %v461_v21 = vunpack.c.h.bf16 %v555_v8  ;;  %v165_v22 = vmul.f32 %v452_v16, %v603_v1  ;;  %v166_v23 = vmul.f32 %v453_v17, %v603_v1  ;;  %v562_v17 = vld [vmem:[%s1023_s0 + $0x88] sm:$0xff]  }
  0x14   :  { %360 = vst [vmem:[%s1026_s3 + $0x60] sm:$0xff] %v296_v11  ;;  %361 = vst [vmem:[%s1026_s3 + $0x68] sm:$0xff] %v297_v12  ;;  %v464_v24 = vunpack.c.l.bf16 %v556_v13  ;;  %v465_v25 = vunpack.c.h.bf16 %v556_v13  ;;  %v167_v26 = vmul.f32 %v456_v18, %v603_v1  ;;  %v168_v27 = vmul.f32 %v457_v19, %v603_v1  ;;  %v561_v12 = vld [vmem:[%s1023_s0 + $0x80] sm:$0xff]   ;;  %v563_v18 = vld [vmem:[%s1023_s0 + $0x90] sm:$0xff]  }
  0x15   :  { %362 = vst [vmem:[%s1026_s3 + $0x70] sm:$0xff] %v298_v14  ;;  %363 = vst [vmem:[%s1026_s3 + $0x78] sm:$0xff] %v299_v15  ;;  %v169_v28 = vmul.f32 %v460_v20, %v603_v1  ;;  %v170_v29 = vmul.f32 %v461_v21, %v603_v1  ;;  %v236_v30 = vadd.f32 %v617_v7, %v165_v22  ;;  %v468_v52 = vunpack.c.l.bf16 %v557_v38 }
  0x16   :  { %v237_v31 = vadd.f32 %v617_v7, %v166_v23  ;;  %v171_v32 = vmul.f32 %v464_v24, %v603_v1  ;;  %v172_v33 = vmul.f32 %v465_v25, %v603_v1  ;;  %v238_v34 = vadd.f32 %v617_v7, %v167_v26  ;;  %v564_v23 = vld [vmem:[%s1023_s0 + $0x98] sm:$0xff]  }
  0x17   :  { %v239_v35 = vadd.f32 %v617_v7, %v168_v27  ;;  %v240_v36 = vadd.f32 %v617_v7, %v169_v28  ;;  %v241_v37 = vadd.f32 %v617_v7, %v170_v29  ;;  %v300_v39 = vmax.f32 %v236_v30, 0.0 }
  0x18   :  { %v301_v40 = vmax.f32 %v237_v31, 0.0  ;;  %v242_v41 = vadd.f32 %v617_v7, %v171_v32  ;;  %v243_v42 = vadd.f32 %v617_v7, %v172_v33  ;;  %v302_v45 = vmax.f32 %v238_v34, 0.0 }
  0x19   :  { %v303_v46 = vmax.f32 %v239_v35, 0.0  ;;  %v304_v47 = vmax.f32 %v240_v36, 0.0  ;;  %v305_v48 = vmax.f32 %v241_v37, 0.0  ;;  %364 = vst [vmem:[%s1026_s3 + $0x80] sm:$0xff] %v300_v39  ;;  %v469_v53 = vunpack.c.h.bf16 %v557_v38 }
  0x1a   :  { %365 = vst [vmem:[%s1026_s3 + $0x88] sm:$0xff] %v301_v40  ;;  %v306_v50 = vmax.f32 %v242_v41, 0.0  ;;  %v307_v51 = vmax.f32 %v243_v42, 0.0  ;;  %366 = vst [vmem:[%s1026_s3 + $0x90] sm:$0xff] %v302_v45  ;;  %v472_v54 = vunpack.c.l.bf16 %v558_v43  ;;  %v473_v55 = vunpack.c.h.bf16 %v558_v43 }
  0x1b   :  { %367 = vst [vmem:[%s1026_s3 + $0x98] sm:$0xff] %v303_v46  ;;  %368 = vst [vmem:[%s1026_s3 + $0xa0] sm:$0xff] %v304_v47  ;;  %v476_v56 = vunpack.c.l.bf16 %v559_v44  ;;  %v477_v57 = vunpack.c.h.bf16 %v559_v44  ;;  %v173_v58 = vmul.f32 %v468_v52, %v603_v1  ;;  %v174_v59 = vmul.f32 %v469_v53, %v603_v1  ;;  %v566_v53 = vld [vmem:[%s1023_s0 + $0xa8] sm:$0xff]  }
  0x1c   :  { %369 = vst [vmem:[%s1026_s3 + $0xa8] sm:$0xff] %v305_v48  ;;  %370 = vst [vmem:[%s1026_s3 + $0xb0] sm:$0xff] %v306_v50  ;;  %v480_v60 = vunpack.c.l.bf16 %v560_v49  ;;  %v481_v61 = vunpack.c.h.bf16 %v560_v49  ;;  %v175_v62 = vmul.f32 %v472_v54, %v603_v1  ;;  %v176_v63 = vmul.f32 %v473_v55, %v603_v1  ;;  %v565_v48 = vld [vmem:[%s1023_s0 + $0xa0] sm:$0xff]   ;;  %v567_v54 = vld [vmem:[%s1023_s0 + $0xb0] sm:$0xff]  }
  0x1d   :  { %371 = vst [vmem:[%s1026_s3 + $0xb8] sm:$0xff] %v307_v51  ;;  %v177_v0 = vmul.f32 %v476_v56, %v603_v1  ;;  %v178_v2 = vmul.f32 %v477_v57, %v603_v1  ;;  %v244_v3 = vadd.f32 %v617_v7, %v173_v58  ;;  %v245_v4 = vadd.f32 %v617_v7, %v174_v59  ;;  %v568_v59 = vld [vmem:[%s1023_s0 + $0xb8] sm:$0xff]  }
  0x1e   :  { %v179_v5 = vmul.f32 %v480_v60, %v603_v1  ;;  %v180_v6 = vmul.f32 %v481_v61, %v603_v1  ;;  %v246_v8 = vadd.f32 %v617_v7, %v175_v62  ;;  %v247_v9 = vadd.f32 %v617_v7, %v176_v63 }
  0x1f   :  { %v248_v10 = vadd.f32 %v617_v7, %v177_v0  ;;  %v249_v11 = vadd.f32 %v617_v7, %v178_v2  ;;  %v308_v13 = vmax.f32 %v244_v3, 0.0  ;;  %v309_v14 = vmax.f32 %v245_v4, 0.0 }
  0x20   :  { %v250_v15 = vadd.f32 %v617_v7, %v179_v5  ;;  %v251_v16 = vadd.f32 %v617_v7, %v180_v6  ;;  %v310_v19 = vmax.f32 %v246_v8, 0.0  ;;  %v311_v20 = vmax.f32 %v247_v9, 0.0 }
  0x21   :  { %v312_v21 = vmax.f32 %v248_v10, 0.0  ;;  %v313_v22 = vmax.f32 %v249_v11, 0.0  ;;  %372 = vst [vmem:[%s1026_s3 + $0xc0] sm:$0xff] %v308_v13  ;;  %373 = vst [vmem:[%s1026_s3 + $0xc8] sm:$0xff] %v309_v14  ;;  %v484_v26 = vunpack.c.l.bf16 %v561_v12  ;;  %v485_v27 = vunpack.c.h.bf16 %v561_v12 }
  0x22   :  { %v314_v24 = vmax.f32 %v250_v15, 0.0  ;;  %v315_v25 = vmax.f32 %v251_v16, 0.0  ;;  %374 = vst [vmem:[%s1026_s3 + $0xd0] sm:$0xff] %v310_v19  ;;  %375 = vst [vmem:[%s1026_s3 + $0xd8] sm:$0xff] %v311_v20  ;;  %v488_v28 = vunpack.c.l.bf16 %v562_v17  ;;  %v489_v29 = vunpack.c.h.bf16 %v562_v17 }
  0x23   :  { %376 = vst [vmem:[%s1026_s3 + $0xe0] sm:$0xff] %v312_v21  ;;  %377 = vst [vmem:[%s1026_s3 + $0xe8] sm:$0xff] %v313_v22  ;;  %v492_v30 = vunpack.c.l.bf16 %v563_v18  ;;  %v493_v31 = vunpack.c.h.bf16 %v563_v18  ;;  %v181_v32 = vmul.f32 %v484_v26, %v603_v1  ;;  %v182_v33 = vmul.f32 %v485_v27, %v603_v1  ;;  %v569_v22 = vld [vmem:[%s1023_s0 + $0xc0] sm:$0xff]   ;;  %v570_v27 = vld [vmem:[%s1023_s0 + $0xc8] sm:$0xff]  }
  0x24   :  { %378 = vst [vmem:[%s1026_s3 + $0xf0] sm:$0xff] %v314_v24  ;;  %379 = vst [vmem:[%s1026_s3 + $0xf8] sm:$0xff] %v315_v25  ;;  %v496_v34 = vunpack.c.l.bf16 %v564_v23  ;;  %v497_v35 = vunpack.c.h.bf16 %v564_v23  ;;  %v183_v36 = vmul.f32 %v488_v28, %v603_v1  ;;  %v184_v37 = vmul.f32 %v489_v29, %v603_v1  ;;  %v571_v28 = vld [vmem:[%s1023_s0 + $0xd0] sm:$0xff]  }
  0x25   :  { %v185_v38 = vmul.f32 %v492_v30, %v603_v1  ;;  %v186_v39 = vmul.f32 %v493_v31, %v603_v1  ;;  %v252_v40 = vadd.f32 %v617_v7, %v181_v32  ;;  %v253_v41 = vadd.f32 %v617_v7, %v182_v33  ;;  %v572_v33 = vld [vmem:[%s1023_s0 + $0xd8] sm:$0xff]  }
  0x26   :  { %v187_v42 = vmul.f32 %v496_v34, %v603_v1  ;;  %v188_v43 = vmul.f32 %v497_v35, %v603_v1  ;;  %v254_v44 = vadd.f32 %v617_v7, %v183_v36  ;;  %v255_v45 = vadd.f32 %v617_v7, %v184_v37 }
  0x27   :  { %v256_v46 = vadd.f32 %v617_v7, %v185_v38  ;;  %v257_v47 = vadd.f32 %v617_v7, %v186_v39  ;;  %v316_v49 = vmax.f32 %v252_v40, 0.0  ;;  %v317_v50 = vmax.f32 %v253_v41, 0.0 }
  0x28   :  { %v258_v51 = vadd.f32 %v617_v7, %v187_v42  ;;  %v259_v52 = vadd.f32 %v617_v7, %v188_v43  ;;  %v318_v55 = vmax.f32 %v254_v44, 0.0  ;;  %v319_v56 = vmax.f32 %v255_v45, 0.0 }
  0x29   :  { %v320_v57 = vmax.f32 %v256_v46, 0.0  ;;  %v321_v58 = vmax.f32 %v257_v47, 0.0  ;;  %380 = vst [vmem:[%s1026_s3 + $0x100] sm:$0xff] %v316_v49  ;;  %381 = vst [vmem:[%s1026_s3 + $0x108] sm:$0xff] %v317_v50  ;;  %v500_v62 = vunpack.c.l.bf16 %v565_v48  ;;  %v501_v63 = vunpack.c.h.bf16 %v565_v48 }
  0x2a   :  { %v322_v60 = vmax.f32 %v258_v51, 0.0  ;;  %v323_v61 = vmax.f32 %v259_v52, 0.0  ;;  %382 = vst [vmem:[%s1026_s3 + $0x110] sm:$0xff] %v318_v55  ;;  %383 = vst [vmem:[%s1026_s3 + $0x118] sm:$0xff] %v319_v56  ;;  %v504_v0 = vunpack.c.l.bf16 %v566_v53  ;;  %v505_v2 = vunpack.c.h.bf16 %v566_v53 }
  0x2b   :  { %384 = vst [vmem:[%s1026_s3 + $0x120] sm:$0xff] %v320_v57  ;;  %385 = vst [vmem:[%s1026_s3 + $0x128] sm:$0xff] %v321_v58  ;;  %v508_v3 = vunpack.c.l.bf16 %v567_v54  ;;  %v509_v4 = vunpack.c.h.bf16 %v567_v54  ;;  %v189_v5 = vmul.f32 %v500_v62, %v603_v1  ;;  %v190_v6 = vmul.f32 %v501_v63, %v603_v1  ;;  %v573_v58 = vld [vmem:[%s1023_s0 + $0xe0] sm:$0xff]   ;;  %v574_v63 = vld [vmem:[%s1023_s0 + $0xe8] sm:$0xff]  }
  0x2c   :  { %386 = vst [vmem:[%s1026_s3 + $0x130] sm:$0xff] %v322_v60  ;;  %387 = vst [vmem:[%s1026_s3 + $0x138] sm:$0xff] %v323_v61  ;;  %v512_v8 = vunpack.c.l.bf16 %v568_v59  ;;  %v513_v9 = vunpack.c.h.bf16 %v568_v59  ;;  %v191_v10 = vmul.f32 %v504_v0, %v603_v1  ;;  %v192_v11 = vmul.f32 %v505_v2, %v603_v1  ;;  %v575_v0 = vld [vmem:[%s1023_s0 + $0xf0] sm:$0xff]  }
  0x2d   :  { %v193_v12 = vmul.f32 %v508_v3, %v603_v1  ;;  %v194_v13 = vmul.f32 %v509_v4, %v603_v1  ;;  %v260_v14 = vadd.f32 %v617_v7, %v189_v5  ;;  %v261_v15 = vadd.f32 %v617_v7, %v190_v6  ;;  %v576_v6 = vld [vmem:[%s1023_s0 + $0xf8] sm:$0xff]  }
  0x2e   :  { %v195_v16 = vmul.f32 %v512_v8, %v603_v1  ;;  %v196_v17 = vmul.f32 %v513_v9, %v603_v1  ;;  %v262_v18 = vadd.f32 %v617_v7, %v191_v10  ;;  %v263_v19 = vadd.f32 %v617_v7, %v192_v11 }
  0x2f   :  { %v264_v20 = vadd.f32 %v617_v7, %v193_v12  ;;  %v265_v21 = vadd.f32 %v617_v7, %v194_v13  ;;  %v324_v23 = vmax.f32 %v260_v14, 0.0  ;;  %v325_v24 = vmax.f32 %v261_v15, 0.0 }
  0x30   :  { %v266_v25 = vadd.f32 %v617_v7, %v195_v16  ;;  %v267_v26 = vadd.f32 %v617_v7, %v196_v17  ;;  %v326_v29 = vmax.f32 %v262_v18, 0.0  ;;  %v327_v30 = vmax.f32 %v263_v19, 0.0 }
  0x31   :  { %v328_v31 = vmax.f32 %v264_v20, 0.0  ;;  %v329_v32 = vmax.f32 %v265_v21, 0.0  ;;  %388 = vst [vmem:[%s1026_s3 + $0x140] sm:$0xff] %v324_v23  ;;  %389 = vst [vmem:[%s1026_s3 + $0x148] sm:$0xff] %v325_v24  ;;  %v516_v36 = vunpack.c.l.bf16 %v569_v22  ;;  %v517_v37 = vunpack.c.h.bf16 %v569_v22 }
  0x32   :  { %v330_v34 = vmax.f32 %v266_v25, 0.0  ;;  %v331_v35 = vmax.f32 %v267_v26, 0.0  ;;  %390 = vst [vmem:[%s1026_s3 + $0x150] sm:$0xff] %v326_v29  ;;  %391 = vst [vmem:[%s1026_s3 + $0x158] sm:$0xff] %v327_v30  ;;  %v520_v38 = vunpack.c.l.bf16 %v570_v27  ;;  %v521_v39 = vunpack.c.h.bf16 %v570_v27 }
  0x33   :  { %392 = vst [vmem:[%s1026_s3 + $0x160] sm:$0xff] %v328_v31  ;;  %393 = vst [vmem:[%s1026_s3 + $0x168] sm:$0xff] %v329_v32  ;;  %v524_v40 = vunpack.c.l.bf16 %v571_v28  ;;  %v525_v41 = vunpack.c.h.bf16 %v571_v28  ;;  %v197_v42 = vmul.f32 %v516_v36, %v603_v1  ;;  %v198_v43 = vmul.f32 %v517_v37, %v603_v1 }
  0x34   :  { %394 = vst [vmem:[%s1026_s3 + $0x170] sm:$0xff] %v330_v34  ;;  %395 = vst [vmem:[%s1026_s3 + $0x178] sm:$0xff] %v331_v35  ;;  %v528_v44 = vunpack.c.l.bf16 %v572_v33  ;;  %v529_v45 = vunpack.c.h.bf16 %v572_v33  ;;  %v199_v46 = vmul.f32 %v520_v38, %v603_v1  ;;  %v200_v47 = vmul.f32 %v521_v39, %v603_v1 }
  0x35   :  { %v201_v48 = vmul.f32 %v524_v40, %v603_v1  ;;  %v202_v49 = vmul.f32 %v525_v41, %v603_v1  ;;  %v268_v50 = vadd.f32 %v617_v7, %v197_v42  ;;  %v269_v51 = vadd.f32 %v617_v7, %v198_v43 }
  0x36   :  { %v203_v52 = vmul.f32 %v528_v44, %v603_v1  ;;  %v204_v53 = vmul.f32 %v529_v45, %v603_v1  ;;  %v270_v54 = vadd.f32 %v617_v7, %v199_v46  ;;  %v271_v55 = vadd.f32 %v617_v7, %v200_v47 }
  0x37   :  { %v272_v56 = vadd.f32 %v617_v7, %v201_v48  ;;  %v273_v57 = vadd.f32 %v617_v7, %v202_v49  ;;  %v332_v59 = vmax.f32 %v268_v50, 0.0  ;;  %v333_v60 = vmax.f32 %v269_v51, 0.0 }
  0x38   :  { %v274_v61 = vadd.f32 %v617_v7, %v203_v52  ;;  %v275_v62 = vadd.f32 %v617_v7, %v204_v53  ;;  %v334_v2 = vmax.f32 %v270_v54, 0.0  ;;  %v335_v3 = vmax.f32 %v271_v55, 0.0 }
  0x39   :  { %v336_v4 = vmax.f32 %v272_v56, 0.0  ;;  %v337_v5 = vmax.f32 %v273_v57, 0.0  ;;  %396 = vst [vmem:[%s1026_s3 + $0x180] sm:$0xff] %v332_v59  ;;  %397 = vst [vmem:[%s1026_s3 + $0x188] sm:$0xff] %v333_v60  ;;  %v532_v10 = vunpack.c.l.bf16 %v573_v58  ;;  %v533_v11 = vunpack.c.h.bf16 %v573_v58 }
  0x3a   :  { %v338_v8 = vmax.f32 %v274_v61, 0.0  ;;  %v339_v9 = vmax.f32 %v275_v62, 0.0  ;;  %398 = vst [vmem:[%s1026_s3 + $0x190] sm:$0xff] %v334_v2  ;;  %399 = vst [vmem:[%s1026_s3 + $0x198] sm:$0xff] %v335_v3  ;;  %v536_v12 = vunpack.c.l.bf16 %v574_v63  ;;  %v537_v13 = vunpack.c.h.bf16 %v574_v63 }
  0x3b   :  { %400 = vst [vmem:[%s1026_s3 + $0x1a0] sm:$0xff] %v336_v4  ;;  %401 = vst [vmem:[%s1026_s3 + $0x1a8] sm:$0xff] %v337_v5  ;;  %v540_v14 = vunpack.c.l.bf16 %v575_v0  ;;  %v541_v15 = vunpack.c.h.bf16 %v575_v0  ;;  %v205_v16 = vmul.f32 %v532_v10, %v603_v1  ;;  %v206_v17 = vmul.f32 %v533_v11, %v603_v1 }
  0x3c   :  { %402 = vst [vmem:[%s1026_s3 + $0x1b0] sm:$0xff] %v338_v8  ;;  %403 = vst [vmem:[%s1026_s3 + $0x1b8] sm:$0xff] %v339_v9  ;;  %v544_v18 = vunpack.c.l.bf16 %v576_v6  ;;  %v545_v19 = vunpack.c.h.bf16 %v576_v6  ;;  %v207_v20 = vmul.f32 %v536_v12, %v603_v1  ;;  %v208_v21 = vmul.f32 %v537_v13, %v603_v1 }
  0x3d   :  { %v209_v22 = vmul.f32 %v540_v14, %v603_v1  ;;  %v210_v23 = vmul.f32 %v541_v15, %v603_v1  ;;  %v276_v24 = vadd.f32 %v617_v7, %v205_v16  ;;  %v277_v25 = vadd.f32 %v617_v7, %v206_v17 }
  0x3e   :  { %v211_v26 = vmul.f32 %v544_v18, %v603_v1  ;;  %v212_v27 = vmul.f32 %v545_v19, %v603_v1  ;;  %v278_v28 = vadd.f32 %v617_v7, %v207_v20  ;;  %v279_v29 = vadd.f32 %v617_v7, %v208_v21 }
  0x3f   :  { %v280_v30 = vadd.f32 %v617_v7, %v209_v22  ;;  %v281_v31 = vadd.f32 %v617_v7, %v210_v23  ;;  %v340_v32 = vmax.f32 %v276_v24, 0.0  ;;  %v341_v33 = vmax.f32 %v277_v25, 0.0 }
  0x40   :  { %v282_v34 = vadd.f32 %v617_v7, %v211_v26  ;;  %v283_v35 = vadd.f32 %v617_v7, %v212_v27  ;;  %v342_v36 = vmax.f32 %v278_v28, 0.0  ;;  %v343_v37 = vmax.f32 %v279_v29, 0.0 }
  0x41   :  { %v344_v38 = vmax.f32 %v280_v30, 0.0  ;;  %v345_v39 = vmax.f32 %v281_v31, 0.0  ;;  %404 = vst [vmem:[%s1026_s3 + $0x1c0] sm:$0xff] %v340_v32  ;;  %405 = vst [vmem:[%s1026_s3 + $0x1c8] sm:$0xff] %v341_v33 }
  0x42   :  { %v346_v1 = vmax.f32 %v282_v34, 0.0  ;;  %v347_v40 = vmax.f32 %v283_v35, 0.0  ;;  %406 = vst [vmem:[%s1026_s3 + $0x1d0] sm:$0xff] %v342_v36  ;;  %407 = vst [vmem:[%s1026_s3 + $0x1d8] sm:$0xff] %v343_v37 }
  0x43   :  { %408 = vst [vmem:[%s1026_s3 + $0x1e0] sm:$0xff] %v344_v38  ;;  %409 = vst [vmem:[%s1026_s3 + $0x1e8] sm:$0xff] %v345_v39 }
  0x44   :  { %410 = vst [vmem:[%s1026_s3 + $0x1f0] sm:$0xff] %v346_v1  ;;  %411 = vst [vmem:[%s1026_s3 + $0x1f8] sm:$0xff] %v347_v40 }

// kernel: double_conv.3
= control target key start
LH: loop header
LB: loop body
LE: loop exit
PB: predicated region body
PF: predicated region fallthrough
CT: control target
= control target key end

     0   :  { %s8409_s21 = smov 0   ;;  %s8411_s22 = smov 0   ;;  %s10587_s0 = inlined_call_operand.vmem [shape: bf16[2,16,16,128], index: 0, kind: input, shape index: {}]   ;;  %s10588_s1 = inlined_call_operand.vmem [shape: f32[1,128], index: 1, kind: input, shape index: {}]   ;;  %s10589_s2 = inlined_call_operand.vmem [shape: f32[1,128], index: 2, kind: input, shape index: {}]   ;;  %s10590_s3 = inlined_call_operand.vmem [shape: bf16[9,128,128], index: 3, kind: input, shape index: {}]   ;;  %s10591_s4 = inlined_call_operand.vmem [shape: bf16[2,16,16,128], index: 4, kind: output, shape index: {0}]   ;;  %s10592_s5 = inlined_call_operand.vmem [shape: f32[2,1,128], index: 5, kind: output, shape index: {1}]   ;;  %s10593_s6 = inlined_call_operand.vmem [shape: f32[2,1,128], index: 6, kind: output, shape index: {2}]  }
   0x1   :  { %s8413_s1 = smov 0  }
   0x2 LB: > { %s29_s2 = sadd.s32 1, %s8367_s22  ;;  %p6516_p0 = scmp.ge.s32.totalorder %s8371_s1, 1  ;;  %s8371_s1 = sphi %s8413_s1, %s17_s1   ;;  %s8367_s22 = sphi %s8411_s22, %s10798_s22   ;;  %s8363_s21 = sphi %s8409_s21, %s10797_s21  }
   0x3   : > { %p31_p1 = scmp.ge.s32.totalorder %s29_s2, 2  ;;  %p235_p2 = scmp.lt.s32.totalorder %s8371_s1, 3 }
   0x5   : > { %s10800_s2 = smov (%p31_p1, %s29_s2), 0  ;;  %p236_p3 = pnand %p6516_p0, %p235_p2 }
   0x7   : > { %239 = sbr.rel (%p236_p3) target bundleno = 657 (0x291), region = 36 }
   0xe   : > { %v8117_v0 = vld [vmem:[%s10590_s3] sm:$0xff]   ;;  %v8373_v2 = vmov 0   ;;  %v8119_v3 = vld [vmem:[%s10590_s3 + $0x8] sm:$0xff]   ;;  %p282_p4 = scmp.lt.s32.totalorder %s8363_s21, 1  ;;  %v8121_v5 = vld [vmem:[%s10590_s3 + $0x10] sm:$0xff]   ;;  %vm732_vm0 = vcmask 1040384  }
   0xf   : > { %v8118_v1 = vld [vmem:[%s10590_s3 + $0x100] sm:$0xff]   ;;  %315 = vst [vmem:[#allocation2] sm:$0xf] %v8373_v2  ;;  %316 = vst [vmem:[#allocation2 + $0x4] sm:$0xf] %v8373_v2  ;;  %7388 = vmatprep.subr.bf16.mxu1 %v8117_v0  ;;  %v8120_v4 = vld [vmem:[%s10590_s3 + $0x108] sm:$0xff]  }
  0x10   : > { %317 = vst [vmem:[#allocation2 + $0x8] sm:$0x1] %v8373_v2  ;;  %318 = vst [vmem:[#allocation2 + $0xc] sm:$0xf] %v8373_v2  ;;  %7580 = vmatprep.subr.bf16.mxu0 %v8118_v1  ;;  %7389 = vmatpush3.bf16.msra.mxu1 %v8117_v0  ;;  %v8122_v6 = vld [vmem:[%s10590_s3 + $0x110] sm:$0xff]   ;;  %s10802_s21 = smov (!%p282_p4, %s8363_s21), 1 }
  0x11   : > { %319 = vst [vmem:[#allocation2 + $0x10] sm:$0xf] %v8373_v2  ;;  %320 = vst [vmem:[#allocation2 + $0x14] sm:$0x1] %v8373_v2  ;;  %7581 = vmatpush3.bf16.msra.mxu0 %v8118_v1  ;;  %7390 = vmatprep.subr.bf16.mxu1 %v8119_v3  ;;  %v8123_v7 = vld [vmem:[%s10590_s3 + $0x18] sm:$0xff]   ;;  %s7043_s15 = sshll.u32 %s10802_s21, 7  ;;  %s303_s27 = scalar_lea.vmem %s10592_s5, %s10802_s21 }
  0x12   : > { %321 = vst [vmem:[#allocation2 + $0x18] sm:$0xf] %v8373_v2  ;;  %322 = vst [vmem:[#allocation2 + $0x1c] sm:$0xf] %v8373_v2  ;;  %7582 = vmatprep.subr.bf16.mxu0 %v8120_v4  ;;  %v8124_v8 = vld [vmem:[%s10590_s3 + $0x118] sm:$0xff]   ;;  %v8125_v9 = vld [vmem:[%s10590_s3 + $0x20] sm:$0xff]   ;;  %s8469_s24 = scalar_lea.vmem %s10587_s0, %s7043_s15  ;;  %s10548_s25 = scalar_lea.vmem %s10591_s4, %s7043_s15 }
  0x13   : > { %323 = vst [vmem:[#allocation2 + $0x20] sm:$0x1] %v8373_v2  ;;  %324 = vst [vmem:[#allocation2 + $0x24] sm:$0xf] %v8373_v2  ;;  %v8126_v10 = vld [vmem:[%s10590_s3 + $0x120] sm:$0xff]   ;;  %v8127_v11 = vld [vmem:[%s10590_s3 + $0x28] sm:$0xff]   ;;  %s309_s30 = scalar_lea.vmem %s10593_s6, %s10802_s21 }
  0x14   : > { %325 = vst [vmem:[#allocation2 + $0x28] sm:$0xf] %v8373_v2  ;;  %326 = vst [vmem:[#allocation2 + $0x2c] sm:$0x1] %v8373_v2  ;;  %7391 = vmatpush3.bf16.msra.mxu1 %v8119_v3  ;;  %v8128_v12 = vld [vmem:[%s10590_s3 + $0x128] sm:$0xff]   ;;  %v8129_v23 = vld [vmem:[%s10590_s3 + $0x30] sm:$0xff]  }
  0x15   : > { %327 = vst [vmem:[#allocation2 + $0x30] sm:$0xf] %v8373_v2  ;;  %328 = vst [vmem:[#allocation2 + $0x34] sm:$0xf] %v8373_v2  ;;  %7583 = vmatpush3.bf16.msra.mxu0 %v8120_v4  ;;  %7392 = vmatprep.subr.bf16.mxu1 %v8121_v5  ;;  %v369_v18 = vld [vmem:[%s8469_s24] sm:$0xf] }
  0x16   : > { %329 = vst [vmem:[#allocation2 + $0x38] sm:$0x1] %v8373_v2  ;;  %330 = vst [vmem:[#allocation2 + $0x3c] sm:$0xf] %v8373_v2  ;;  %7584 = vmatprep.subr.bf16.mxu0 %v8122_v6  ;;  %v8477_v13 = vld [vmem:[#allocation2] sm:$0xf] }
  0x17   : > { %331 = vst [vmem:[#allocation2 + $0x40] sm:$0xf] %v8373_v2  ;;  %332 = vst [vmem:[#allocation2 + $0x44] sm:$0x1] %v8373_v2  ;;  %v8479_v14 = vld [vmem:[#allocation2 + $0x4] sm:$0xf] }
  0x18   : > { %333 = vst [vmem:[#allocation2 + $0x48] sm:$0xf] %v8373_v2  ;;  %334 = vst [vmem:[#allocation2 + $0x4c] sm:$0xf] %v8373_v2  ;;  %7393 = vmatpush3.bf16.msra.mxu1 %v8121_v5  ;;  %v6521_v15 = vcombine.low %v8477_v13, %v8479_v14  ;;  %v1251_v16 = vshrl.u32 %v8477_v13, 16  ;;  %v1254_v17 = vshll.u32 %v8477_v13, 16 }
  0x19   : > { %335 = vst [vmem:[#allocation2 + $0x50] sm:$0x1] %v8373_v2  ;;  %336 = vst [vmem:[#allocation2 + $0x54] sm:$0xf] %v8373_v2  ;;  %7585 = vmatpush3.bf16.msra.mxu0 %v8122_v6  ;;  %7394 = vmatprep.subr.bf16.mxu1 %v8123_v7  ;;  %v370_v19 = vld [vmem:[%s8469_s24 + $0x4] sm:$0xf] }
  0x1a   : > { %337 = vst [vmem:[#allocation2 + $0x58] sm:$0xf] %v8373_v2  ;;  %338 = vst [vmem:[#allocation2 + $0x5c] sm:$0x1] %v8373_v2  ;;  %7586 = vmatprep.subr.bf16.mxu0 %v8124_v8  ;;  %v1260_v20 = vshll.u32 %v8479_v14, 16  ;;  %7404 = vmatprep.mubr.bf16.mxu1 %v6521_v15  ;;  %v1253_v21 = vrot.slane %v1251_v16, 4 }
  0x1b   : > { %339 = vst [vmem:[#allocation2 + $0x60] sm:$0xf] %v8373_v2  ;;  %340 = vst [vmem:[#allocation2 + $0x64] sm:$0xf] %v8373_v2  ;;  %v1256_v22 = vrot.slane %v1254_v17, 5  ;;  %v8130_v24 = vld [vmem:[%s10590_s3 + $0x130] sm:$0xff]  }
  0x1c   : > { %341 = vst [vmem:[#allocation2 + $0x68] sm:$0x1] %v8373_v2  ;;  %342 = vst [vmem:[#allocation2 + $0x6c] sm:$0xf] %v8373_v2  ;;  %7395 = vmatpush3.bf16.msra.mxu1 %v8123_v7  ;;  %vm401_vm1 = vsmask.f32 256 }
  0x1d   : > { %343 = vst [vmem:[#allocation2 + $0x70] sm:$0xf] %v8373_v2  ;;  %344 = vst [vmem:[#allocation2 + $0x74] sm:$0x1] %v8373_v2  ;;  %7587 = vmatpush3.bf16.msra.mxu0 %v8124_v8  ;;  %7396 = vmatprep.subr.bf16.mxu1 %v8125_v9  ;;  %vm402_vm2 = vsmask.f32 4368  ;;  %v1257_v33 = vor.u32 %v1256_v22, %v1253_v21 }
  0x1e   : > { %345 = vst [vmem:[#allocation2 + $0x78] sm:$0xf] %v8373_v2  ;;  %346 = vst [vmem:[#allocation2 + $0x7c] sm:$0xf] %v8373_v2  ;;  %7588 = vmatprep.subr.bf16.mxu0 %v8126_v10  ;;  %v405_v25 = vshrl.u32 %v369_v18, 16  ;;  %v408_v26 = vshll.u32 %v369_v18, 16 }
  0x1f   : > { %347 = vst [vmem:[#allocation2 + $0x80] sm:$0x1] %v8373_v2  ;;  %348 = vst [vmem:[#allocation2 + $0x84] sm:$0xf] %v8373_v2  ;;  %v413_v27 = vshrl.u32 %v370_v19, 16  ;;  %vm725_vm3 = vcmask 1043456  }
  0x20   : > { %349 = vst [vmem:[#allocation2 + $0x88] sm:$0xf] %v8373_v2  ;;  %350 = vst [vmem:[#allocation2 + $0x8c] sm:$0x1] %v8373_v2  ;;  %7397 = vmatpush3.bf16.msra.mxu1 %v8125_v9  ;;  %v1264_v28 = vshrl.u32 %v8479_v14, 16  ;;  %v416_v29 = vshll.u32 %v370_v19, 16 }
  0x21   : > { %351 = vst [vmem:[#allocation2 + $0x90] sm:$0xf] %v8373_v2  ;;  %352 = vst [vmem:[#allocation2 + $0x94] sm:$0xf] %v8373_v2  ;;  %7589 = vmatpush3.bf16.msra.mxu0 %v8126_v10  ;;  %7398 = vmatprep.subr.bf16.mxu1 %v8127_v11  ;;  %vm726_vm4 = vsmask.f32 7938 }
  0x22   : > { %353 = vst [vmem:[#allocation2 + $0x98] sm:$0x1] %v8373_v2  ;;  %354 = vst [vmem:[#allocation2 + $0x9c] sm:$0xf] %v8373_v2  ;;  %7590 = vmatprep.subr.bf16.mxu0 %v8128_v12  ;;  %v728_v30 = vld [vmem:[#allocation2 + $0xc] sm:$0xf] }
  0x23   : > { %355 = vst [vmem:[#allocation2 + $0xa0] sm:$0xf] %v8373_v2  ;;  %356 = vst [vmem:[#allocation2 + $0xa4] sm:$0x1] %v8373_v2  ;;  %v10629_v31 = vmov 0  ;;  %v8131_v34 = vld [vmem:[%s10590_s3 + $0x38] sm:$0xff]  }
  0x24   : > { %357 = vst [vmem:[#allocation2 + $0xa8] sm:$0xf] %v8373_v2  ;;  %358 = vst [vmem:[#allocation2 + $0xac] sm:$0xf] %v8373_v2  ;;  %v734_v32 = vld [vmem:[#allocation2 + $0x14] sm:$0x1]  ;;  %7399 = vmatpush3.bf16.msra.mxu1 %v8127_v11 }
  0x25   : > { %359 = vst [vmem:[#allocation2 + $0xb0] sm:$0x1] %v8373_v2  ;;  %360 = vst [vmem:[#allocation2 + $0xb4] sm:$0xf] %v8373_v2  ;;  %v407_v36 = vrot.slane %v405_v25, 7  ;;  %v415_v37 = vrot.slane %v413_v27, 7  ;;  %7591 = vmatpush3.bf16.msra.mxu0 %v8128_v12  ;;  %7400 = vmatprep.subr.bf16.mxu1 %v8129_v23 }
  0x26   : > { %361 = vst [vmem:[#allocation2 + $0xb8] sm:$0xf] %v8373_v2  ;;  %362 = vst [vmem:[#allocation2 + $0xbc] sm:$0x1] %v8373_v2  ;;  %vm1247_vm7 = vsmask.f32 3328  ;;  %7592 = vmatprep.subr.bf16.mxu0 %v8130_v24 }
  0x27   : > { %363 = vst [vmem:[#allocation2 + $0xc0] sm:$0xf] %v8373_v2  ;;  %364 = vst [vmem:[#allocation2 + $0xc4] sm:$0xf] %v8373_v2  ;;  %vm1248_vm8 = vsmask.f32 7440  ;;  %v410_v41 = vor.u32 %v408_v26, %v407_v36  ;;  %v418_v43 = vor.u32 %v416_v29, %v415_v37 }
  0x28   : > { %365 = vst [vmem:[#allocation2 + $0xc8] sm:$0x1] %v8373_v2  ;;  %366 = vst [vmem:[#allocation2 + $0xcc] sm:$0xf] %v8373_v2  ;;  %v8510_v38 = vrot.slane %v1260_v20, 5  ;;  %v8517_v40 = vrot.slane %v1257_v33, 4  ;;  %7401 = vmatpush3.bf16.msra.mxu1 %v8129_v23 }
  0x29   : > { %367 = vst [vmem:[#allocation2 + $0xd0] sm:$0xf] %v8373_v2  ;;  %368 = vst [vmem:[#allocation2 + $0xd4] sm:$0x1] %v8373_v2  ;;  %v411_v42 = vrot.slane %v407_v36, 4  ;;  %v420_v44 = vrot.slane %v415_v37, 4  ;;  %7593 = vmatpush3.bf16.msra.mxu0 %v8130_v24  ;;  %7402 = vmatprep.subr.bf16.mxu1 %v8131_v34 }
  0x2a   : > { %vm8497_vm5 = vmand %vm732_vm0, %vm401_vm1  ;;  %10636 = vst [vmem:[#allocation5_spill] sm:$0xff] %v8517_v40  ;;  %v371_v45 = vld [vmem:[%s8469_s24 + $0x8] sm:$0xf]  ;;  %v372_v46 = vld [vmem:[%s8469_s24 + $0xc] sm:$0xf]  ;;  %v8567_v11 = vrot.slane %v1264_v28, 4 }
  0x2b   : > { %v10630_v31 = vsel %vm8497_vm5, 4294967295, %v10629_v31  ;;  %vm8506_vm6 = vmor %vm401_vm1, %vm402_vm2  ;;  %v8132_v47 = vld [vmem:[%s10590_s3 + $0x138] sm:$0xff]   ;;  %v422_v49 = vshrl.u32 %v371_v45, 16  ;;  %v425_v50 = vshll.u32 %v371_v45, 16  ;;  %v430_v51 = vshrl.u32 %v372_v46, 16  ;;  %v8539_v56 = vld [vmem:[%s10590_s3 + $0x40] sm:$0xff]  }
  0x2c   : > { %10631 = vst [vmem:[#allocation4_spill] sm:$0xff] %v10630_v31  ;;  %vm8513_vm9 = vmand %vm725_vm3, %vm726_vm4  ;;  %v433_v52 = vshll.u32 %v372_v46, 16  ;;  %v419_v53 = vsel %vm8506_vm6, %v411_v42, %v418_v43  ;;  %v735_v55 = vsel %vm8497_vm5, %v420_v44, %v734_v32  ;;  %v737_v57 = vld [vmem:[#allocation2 + $0x18] sm:$0xf]  ;;  %v741_v61 = vld [vmem:[#allocation2 + $0x20] sm:$0x1]  ;;  %7594 = vmatprep.subr.bf16.mxu0 %v8132_v47  ;;  %7403 = vmatpush3.bf16.msra.mxu1 %v8131_v34 }
  0x2d   : > { %vm8526_vm10 = vmor %vm1247_vm7, %vm1248_vm8  ;;  %v729_v54 = vsel %vm8513_vm9, %v410_v41, %v728_v30  ;;  %731 = vst [vmem:[#allocation2 + $0x10] sm:$0xf] %v419_v53  ;;  %v424_v59 = vrot.slane %v422_v49, 7  ;;  %v432_v60 = vrot.slane %v430_v51, 7  ;;  %v8546_v62 = vld [vmem:[%s8469_s24 + $0x10] sm:$0xf]  ;;  %7595 = vmatpush3.bf16.msra.mxu0 %v8132_v47  ;;  %7436 = vmatprep.subr.bf16.mxu1 %v8539_v56 }
  0x2e   : > { %730 = vst [vmem:[#allocation2 + $0xc] sm:$0xf] %v729_v54  ;;  %736 = vst [vmem:[#allocation2 + $0x14] sm:$0x1] %v735_v55  ;;  %v8549_v63 = vld [vmem:[%s8469_s24 + $0x14] sm:$0xf] }
  0x2f   : > { %v427_v0 = vor.u32 %v425_v50, %v424_v59  ;;  %v428_v1 = vrot.slane %v424_v59, 4  ;;  %v435_v2 = vor.u32 %v433_v52, %v432_v60  ;;  %v437_v3 = vrot.slane %v432_v60, 4  ;;  %v8554_v4 = vld [vmem:[%s10590_s3 + $0x140] sm:$0xff]   ;;  %v8574_v17 = vld [vmem:[%s8469_s24 + $0x18] sm:$0xf]  ;;  %v8140_v47 = vld [vmem:[%s10590_s3 + $0x48] sm:$0xff]  }
  0x30   : > { %v439_v5 = vshrl.u32 %v8546_v62, 16  ;;  %v447_v6 = vshrl.u32 %v8549_v63, 16  ;;  %v442_v15 = vshll.u32 %v8546_v62, 16  ;;  %v450_v16 = vshll.u32 %v8549_v63, 16  ;;  %7628 = vmatprep.subr.bf16.mxu0 %v8554_v4  ;;  %v8600_v42 = vld [vmem:[%s8469_s24 + $0x1c] sm:$0xf] }
  0x31   : > { %v436_v8 = vsel %vm8506_vm6, %v428_v1, %v435_v2  ;;  %v738_v9 = vsel %vm8513_vm9, %v427_v0, %v737_v57  ;;  %v742_v10 = vsel %vm8497_vm5, %v437_v3, %v741_v61  ;;  %v456_v33 = vshrl.u32 %v8574_v17, 16  ;;  %v8145_v2 = vld [vmem:[%s10590_s3 + $0x50] sm:$0xff]  }
  0x32   : > { %739 = vst [vmem:[#allocation2 + $0x18] sm:$0xf] %v738_v9  ;;  %740 = vst [vmem:[#allocation2 + $0x1c] sm:$0xf] %v436_v8  ;;  %v8577_v18 = vrot.slane %v439_v5, 7  ;;  %v8579_v19 = vrot.slane %v447_v6, 7 }
  0x33   : > { %743 = vst [vmem:[#allocation2 + $0x20] sm:$0x1] %v742_v10  ;;  %v459_v57 = vshll.u32 %v8574_v17, 16  ;;  %v464_v59 = vshrl.u32 %v8600_v42, 16  ;;  %v467_v60 = vshll.u32 %v8600_v42, 16  ;;  %v8137_v42 = vld [vmem:[%s10590_s3 + $0x148] sm:$0xff]  }
  0x34   : > { %v8583_v21 = vld [vmem:[#allocation2 + $0x10] sm:$0xf]  ;;  %v444_v1 = vor.u32 %v442_v15, %v8577_v18  ;;  %v452_v10 = vor.u32 %v450_v16, %v8579_v19  ;;  %vm2036_vm11 = vcmask 1042432   ;;  %vm2037_vm12 = vcmask 1046532  }
  0x35   : > { %v8581_v20 = vld [vmem:[#allocation2 + $0xc] sm:$0xf]  ;;  %v8585_v22 = vld [vmem:[#allocation2 + $0x14] sm:$0x1]  ;;  %v3017_v25 = vshll.u32 %v8583_v21, 16  ;;  %v3021_v26 = vshrl.u32 %v8583_v21, 16  ;;  %vm8900_vm13 = vmor %vm2036_vm11, %vm2037_vm12 }
  0x36   : > { %v3008_v23 = vshrl.u32 %v8581_v20, 16  ;;  %v3011_v24 = vshll.u32 %v8581_v20, 16  ;;  %v8591_v27 = vld [vmem:[#allocation2 + $0xc] sm:$0xf]  ;;  %v3027_v28 = vshll.u32 %v8585_v22, 16 }
  0x37   : > { %10639 = vst [vmem:[#allocation6_spill] sm:$0xff] %v8591_v27  ;;  %v8594_v29 = vld [vmem:[#allocation2 + $0x10] sm:$0xf]  ;;  %v1275_v30 = vshrl.u32 %v8591_v27, 16  ;;  %v1278_v32 = vshll.u32 %v8591_v27, 16  ;;  %v3019_v37 = vrot.slane %v3017_v25, 5 }
  0x38   : > { %10640 = vst [vmem:[#allocation7_spill] sm:$0xff] %v8594_v29  ;;  %v3010_v34 = vrot.slane %v3008_v23, 4  ;;  %v3013_v36 = vrot.slane %v3011_v24, 5  ;;  %v3023_v41 = vrot.slane %v3021_v26, 4  ;;  %v3029_v43 = vrot.slane %v3027_v28, 5 }
  0x39   : > { %v6522_v44 = vcombine.low %v8591_v27, %v8594_v29  ;;  %v1277_v45 = vrot.slane %v1275_v30, 4  ;;  %v1280_v46 = vrot.slane %v1278_v32, 5  ;;  %v1284_v51 = vshll.u32 %v8594_v29, 16  ;;  %v8609_v53 = vld [vmem:[#allocation2 + $0x18] sm:$0xf] }
  0x3a   : > { %v3014_v49 = vor.u32 %v3013_v36, %v3010_v34  ;;  %v3024_v50 = vor.u32 %v3023_v41, %v3019_v37  ;;  %v1288_v52 = vshrl.u32 %v8594_v29, 16  ;;  %v8611_v54 = vld [vmem:[#allocation2 + $0x1c] sm:$0xf]  ;;  %v3032_v55 = vshrl.u32 %v8609_v53, 16  ;;  %v8619_v0 = vld [vmem:[#allocation2 + $0x20] sm:$0x1] }
  0x3b   : > { %7405 = vmatmul.mubr.bf16.vlgmr.msra.gmra.mrb[0].mxu1 %v6522_v44  ;;  %v8617_v63 = vrot.slane %v1284_v51, 5  ;;  %v1281_v3 = vor.u32 %v1280_v46, %v1277_v45  ;;  %v3035_v6 = vshll.u32 %v8609_v53, 16  ;;  %v8627_v8 = vld [vmem:[#allocation2 + $0x18] sm:$0xf]  ;;  %v8629_v9 = vld [vmem:[#allocation2 + $0x1c] sm:$0xf] }
  0x3c   : > { %v3015_v61 = vrot.slane %v3014_v49, 4  ;;  %v3025_v62 = vrot.slane %v3024_v50, 4  ;;  %7437 = vmatpush3.bf16.msra.mxu1 %v8539_v56  ;;  %v3034_v5 = vrot.slane %v3032_v55, 4  ;;  %10642 = vst [vmem:[#allocation9_spill] sm:$0xff] %v8627_v8  ;;  %10643 = vst [vmem:[#allocation10_spill] sm:$0xff] %v8629_v9  ;;  %v8636_v23 = vrot.slane %v1288_v52, 4 }
  0x3d   : > { %10641 = vst [vmem:[#allocation8_spill] sm:$0xff] %v8617_v63  ;;  %7438 = vmatprep.subr.bf16.mxu1 %v8140_v47  ;;  %v3041_v24 = vshll.u32 %v8611_v54, 16  ;;  %v3037_v26 = vrot.slane %v3035_v6, 5  ;;  %v3045_v28 = vshrl.u32 %v8611_v54, 16  ;;  %v3051_v30 = vshll.u32 %v8619_v0, 16  ;;  %v8150_v50 = vld [vmem:[%s10590_s3 + $0x58] sm:$0xff]  }
  0x3e   : > { %v3020_v56 = vsel %vm8526_vm10, %v3015_v61, %v3019_v37  ;;  %v3030_v15 = vsel %vm8526_vm10, %v3025_v62, %v3029_v43  ;;  %v744_v32 = vld [vmem:[#allocation2 + $0x24] sm:$0xf]  ;;  %v6523_v37 = vcombine.low %v8627_v8, %v8629_v9  ;;  %v748_v41 = vld [vmem:[#allocation2 + $0x2c] sm:$0x1]  ;;  %v8645_v43 = vrot.slane %v1281_v3, 4 }
  0x3f   : > { %v6745_v25 = vcombine.low %v3020_v56, %v3030_v15  ;;  %v3043_v36 = vrot.slane %v3041_v24, 5  ;;  %v10594_v44 = vrot.slane %v8594_v29, 5  ;;  %v3038_v45 = vor.u32 %v3037_v26, %v3034_v5  ;;  %v377_v49 = vld [vmem:[%s8469_s24 + $0x20] sm:$0xf]  ;;  %v751_v6 = vld [vmem:[#allocation2 + $0x30] sm:$0xf] }
  0x40   : > { %7439 = vmatpush3.bf16.msra.mxu1 %v8140_v47  ;;  %10644 = vst [vmem:[#allocation11_spill] sm:$0xff] %v8645_v43  ;;  %v3047_v46 = vrot.slane %v3045_v28, 4  ;;  %v1291_v51 = vor.u32 %v8636_v23, %v8617_v63  ;;  %v3053_v52 = vrot.slane %v3051_v30, 5  ;;  %7408 = vmatprep.mubr.bf16.mxu1 %v6523_v37  ;;  %v445_v47 = vrot.slane %v8577_v18, 4  ;;  %v755_v18 = vld [vmem:[#allocation2 + $0x38] sm:$0x1] }
  0x41   : > { %7596 = vmatprep.mubr.bf16.mxu0 %v6745_v25  ;;  %7440 = vmatprep.subr.bf16.mxu1 %v8145_v2  ;;  %v454_v55 = vrot.slane %v8579_v19, 4  ;;  %v3039_v61 = vrot.slane %v3038_v45, 4  ;;  %v745_v3 = vsel %vm8513_vm9, %v444_v1, %v744_v32  ;;  %v458_v5 = vrot.slane %v456_v33, 7  ;;  %v378_v24 = vld [vmem:[%s8469_s24 + $0x24] sm:$0xf] }
  0x42   : > { %v3048_v62 = vor.u32 %v3047_v46, %v3043_v36  ;;  %v453_v56 = vsel %vm8506_vm6, %v445_v47, %v452_v10  ;;  %746 = vst [vmem:[#allocation2 + $0x24] sm:$0xf] %v745_v3  ;;  %v466_v23 = vrot.slane %v464_v59, 7  ;;  %v473_v19 = vshrl.u32 %v377_v49, 16  ;;  %v758_v26 = vld [vmem:[#allocation2 + $0x3c] sm:$0xf] }
  0x43   : > { %v749_v15 = vsel %vm8497_vm5, %v454_v55, %v748_v41  ;;  %v3044_v25 = vsel %vm8526_vm10, %v3039_v61, %v3043_v36  ;;  %747 = vst [vmem:[#allocation2 + $0x28] sm:$0xf] %v453_v56  ;;  %v461_v17 = vor.u32 %v459_v57, %v458_v5  ;;  %v462_v33 = vrot.slane %v458_v5, 4  ;;  %v8703_v3 = vld [vmem:[%s8469_s24 + $0x28] sm:$0xf] }
  0x44   : > { %7441 = vmatpush3.bf16.msra.mxu1 %v8145_v2  ;;  %v3049_v1 = vrot.slane %v3048_v62, 4  ;;  %750 = vst [vmem:[#allocation2 + $0x2c] sm:$0x1] %v749_v15  ;;  %v469_v10 = vor.u32 %v467_v60, %v466_v23  ;;  %v471_v28 = vrot.slane %v466_v23, 4  ;;  %v8669_v30 = vrot.slane %v473_v19, 7  ;;  %v8155_v2 = vld [vmem:[%s10590_s3 + $0x60] sm:$0xff]  }
  0x45   : > { %7442 = vmatprep.subr.bf16.mxu1 %v8150_v50  ;;  %v476_v59 = vshll.u32 %v377_v49, 16  ;;  %v752_v57 = vsel %vm8513_vm9, %v461_v17, %v751_v6  ;;  %v481_v36 = vshrl.u32 %v378_v24, 16  ;;  %v484_v37 = vshll.u32 %v378_v24, 16  ;;  %v765_v47 = vld [vmem:[#allocation2 + $0x48] sm:$0xf] }
  0x46   : > { %v3054_v32 = vsel %vm8526_vm10, %v3049_v1, %v3053_v52  ;;  %v470_v60 = vsel %vm8506_vm6, %v462_v33, %v469_v10  ;;  %753 = vst [vmem:[#allocation2 + $0x30] sm:$0xf] %v752_v57  ;;  %v756_v45 = vsel %vm8497_vm5, %v471_v28, %v755_v18  ;;  %v8686_v49 = vrot.slane %v1291_v51, 4  ;;  %v8729_v10 = vld [vmem:[%s8469_s24 + $0x2c] sm:$0xf] }
  0x47   : > { %v6746_v41 = vcombine.low %v3044_v25, %v3054_v32  ;;  %v478_v46 = vor.u32 %v476_v59, %v8669_v30  ;;  %v8690_v52 = vrot.slane %v10594_v44, 4  ;;  %754 = vst [vmem:[#allocation2 + $0x34] sm:$0xf] %v470_v60  ;;  %757 = vst [vmem:[#allocation2 + $0x38] sm:$0x1] %v756_v45  ;;  %v8693_v55 = vrot.slane %v481_v36, 7 }
  0x48   : > { %7443 = vmatpush3.bf16.msra.mxu1 %v8150_v50  ;;  %10645 = vst [vmem:[#allocation12_spill] sm:$0xff] %v8686_v49  ;;  %v8141_v50 = vld [vmem:[%s10590_s3 + $0x150] sm:$0xff]   ;;  %v479_v15 = vrot.slane %v8669_v30, 4  ;;  %v490_v28 = vshrl.u32 %v8703_v3, 16  ;;  %v493_v57 = vshll.u32 %v8703_v3, 16  ;;  %v8159_v36 = vld [vmem:[%s10590_s3 + $0x68] sm:$0xff]  }
  0x49   : > { %10646 = vst [vmem:[#allocation13_spill] sm:$0xff] %v8690_v52  ;;  %7444 = vmatprep.subr.bf16.mxu1 %v8155_v2  ;;  %7597 = vmatmul.mubr.bf16.vlgmr.msra.gmra.mrb[0].mxu0 %v6746_v41  ;;  %v759_v51 = vsel %vm8513_vm9, %v478_v46, %v758_v26  ;;  %v8707_v6 = vld [vmem:[#allocation2 + $0x24] sm:$0xf]  ;;  %v486_v25 = vor.u32 %v484_v37, %v8693_v55  ;;  %v488_v46 = vrot.slane %v8693_v55, 4  ;;  %v772_v9 = vld [vmem:[#allocation2 + $0x54] sm:$0xf] }
  0x4a   : > { %7629 = vmatpush3.bf16.msra.mxu0 %v8554_v4  ;;  %v8709_v56 = vld [vmem:[#allocation2 + $0x24] sm:$0xf]  ;;  %760 = vst [vmem:[#allocation2 + $0x3c] sm:$0xf] %v759_v51  ;;  %v8716_v18 = vld [vmem:[#allocation2 + $0x28] sm:$0xf] }
  0x4b   : > { %10647 = vst [vmem:[#allocation14_spill] sm:$0xff] %v8709_v56  ;;  %7630 = vmatprep.subr.bf16.mxu0 %v8137_v42  ;;  %v8718_v24 = vld [vmem:[#allocation2 + $0x2c] sm:$0x1]  ;;  %v3056_v4 = vshrl.u32 %v8707_v6, 16  ;;  %v3059_v19 = vshll.u32 %v8707_v6, 16  ;;  %v3065_v1 = vshll.u32 %v8716_v18, 16 }
  0x4c   : > { %7445 = vmatpush3.bf16.msra.mxu1 %v8155_v2  ;;  %v3069_v17 = vshrl.u32 %v8716_v18, 16  ;;  %v3075_v33 = vshll.u32 %v8718_v24, 16  ;;  %v8726_v26 = vld [vmem:[#allocation2 + $0x28] sm:$0xf]  ;;  %v8142_v2 = vld [vmem:[%s10590_s3 + $0x158] sm:$0xff]   ;;  %v8762_v58 = vrot.slane %v490_v28, 7 }
  0x4d   : > { %10648 = vst [vmem:[#allocation15_spill] sm:$0xff] %v8726_v26  ;;  %v3058_v30 = vrot.slane %v3056_v4, 4  ;;  %v3061_v59 = vrot.slane %v3059_v19, 5  ;;  %v6524_v32 = vcombine.low %v8709_v56, %v8726_v26  ;;  %v3067_v37 = vrot.slane %v3065_v1, 5  ;;  %v8741_v45 = vld [vmem:[#allocation2 + $0x30] sm:$0xf]  ;;  %7446 = vmatprep.subr.bf16.mxu1 %v8159_v36 }
  0x4e   : > { %7631 = vmatpush3.bf16.msra.mxu0 %v8137_v42  ;;  %v3071_v41 = vrot.slane %v3069_v17, 4  ;;  %v3077_v60 = vrot.slane %v3075_v33, 5  ;;  %v8744_v4 = vld [vmem:[#allocation2 + $0x34] sm:$0xf]  ;;  %v8746_v19 = vld [vmem:[#allocation2 + $0x38] sm:$0x1]  ;;  %v487_v42 = vsel %vm8506_vm6, %v479_v15, %v486_v25 }
  0x4f   : > { %v3062_v51 = vor.u32 %v3061_v59, %v3058_v30  ;;  %7409 = vmatmul.mubr.bf16.gmra.mrb[4].mxu1 %v6524_v32  ;;  %v3080_v3 = vshrl.u32 %v8741_v45, 16  ;;  %v3083_v5 = vshll.u32 %v8741_v45, 16  ;;  %7632 = vmatprep.subr.bf16.mxu0 %v8141_v50  ;;  %v762_v1 = vld [vmem:[#allocation2 + $0x44] sm:$0x1]  ;;  %v3089_v33 = vshll.u32 %v8744_v4, 16 }
  0x50   : > { %v3072_v17 = vor.u32 %v3071_v41, %v3067_v37  ;;  %v3093_v55 = vshrl.u32 %v8744_v4, 16  ;;  %v3099_v30 = vshll.u32 %v8746_v19, 16  ;;  %v8755_v59 = vld [vmem:[#allocation2 + $0x30] sm:$0xf]  ;;  %761 = vst [vmem:[#allocation2 + $0x40] sm:$0xf] %v487_v42  ;;  %7447 = vmatpush3.bf16.msra.mxu1 %v8159_v36 }
  0x51   : > { %10649 = vst [vmem:[#allocation16_spill] sm:$0xff] %v8755_v59  ;;  %v3063_v32 = vrot.slane %v3062_v51, 4  ;;  %v3082_v62 = vrot.slane %v3080_v3, 4  ;;  %v3085_v61 = vrot.slane %v3083_v5, 5  ;;  %v8757_v34 = vld [vmem:[#allocation2 + $0x34] sm:$0xf] }
  0x52   : > { %10650 = vst [vmem:[#allocation17_spill] sm:$0xff] %v8757_v34  ;;  %v498_v15 = vshrl.u32 %v8729_v10, 16  ;;  %v3073_v25 = vrot.slane %v3072_v17, 4  ;;  %v3091_v41 = vrot.slane %v3089_v33, 5  ;;  %v3095_v44 = vrot.slane %v3093_v55, 4  ;;  %7633 = vmatpush3.bf16.msra.mxu0 %v8141_v50  ;;  %v8146_v36 = vld [vmem:[%s10590_s3 + $0x160] sm:$0xff]  }
  0x53   : > { %v8760_v23 = vld [vmem:[#allocation2 + $0x3c] sm:$0xf]  ;;  %v3068_v42 = vsel %vm8526_vm10, %v3063_v32, %v3067_v37  ;;  %v3086_v51 = vor.u32 %v3085_v61, %v3082_v62  ;;  %7634 = vmatprep.subr.bf16.mxu0 %v8142_v2  ;;  %v6525_v5 = vcombine.low %v8755_v59, %v8757_v34  ;;  %v8773_v17 = vld [vmem:[%s8469_s24 + $0x30] sm:$0xf]  ;;  %v3101_v62 = vrot.slane %v3099_v30, 5  ;;  %v8147_v30 = vld [vmem:[%s10590_s3 + $0x168] sm:$0xff]  }
  0x54   : > { %v8163_v50 = vld [vmem:[%s10590_s3 + $0x70] sm:$0xff]   ;;  %v3078_v28 = vsel %vm8526_vm10, %v3073_v25, %v3077_v60  ;;  %v3096_v61 = vor.u32 %v3095_v44, %v3091_v41  ;;  %v763_v37 = vsel %vm8497_vm5, %v488_v46, %v762_v1  ;;  %v3104_v32 = vshrl.u32 %v8760_v23, 16  ;;  %v8784_v12 = vld [vmem:[#allocation2 + $0x3c] sm:$0xf]  ;;  %v385_v59 = vld [vmem:[%s8469_s24 + $0x40] sm:$0xf] }
  0x55   : > { %v6747_v33 = vcombine.low %v3068_v42, %v3078_v28  ;;  %v3087_v55 = vrot.slane %v3086_v51, 4  ;;  %7412 = vmatprep.mubr.bf16.mxu1 %v6525_v5  ;;  %764 = vst [vmem:[#allocation2 + $0x44] sm:$0x1] %v763_v37  ;;  %v3107_v7 = vshll.u32 %v8760_v23, 16  ;;  %7448 = vmatprep.subr.bf16.mxu1 %v8163_v50  ;;  %v8167_v44 = vld [vmem:[%s10590_s3 + $0x78] sm:$0xff]   ;;  %v495_v1 = vor.u32 %v493_v57, %v8762_v58 }
  0x56   : > { %v3097_v46 = vrot.slane %v3096_v61, 4  ;;  %7635 = vmatpush3.bf16.msra.mxu0 %v8142_v2  ;;  %v8795_v25 = vld [vmem:[%s8469_s24 + $0x34] sm:$0xf]  ;;  %v507_v42 = vshrl.u32 %v8773_v17, 16  ;;  %7449 = vmatpush3.bf16.msra.mxu1 %v8163_v50  ;;  %v3106_v28 = vrot.slane %v3104_v32, 4  ;;  %v500_v3 = vrot.slane %v498_v15, 7 }
  0x57   : > { %7600 = vmatprep.mubr.bf16.mxu0 %v6747_v33  ;;  %v3092_v51 = vsel %vm8526_vm10, %v3087_v55, %v3091_v41  ;;  %v8800_v5 = vld [vmem:[#allocation2 + $0x40] sm:$0xf]  ;;  %v3109_v61 = vrot.slane %v3107_v7, 5  ;;  %7636 = vmatprep.subr.bf16.mxu0 %v8146_v36  ;;  %v496_v7 = vrot.slane %v8762_v58, 4  ;;  %v769_v32 = vld [vmem:[#allocation2 + $0x50] sm:$0x1]  ;;  %v766_v52 = vsel %vm8513_vm9, %v495_v1, %v765_v47 }
  0x58   : > { %v8802_v2 = vld [vmem:[#allocation2 + $0x40] sm:$0xf]  ;;  %v3102_v57 = vsel %vm8526_vm10, %v3097_v46, %v3101_v62  ;;  %v3113_v37 = vshll.u32 %v8800_v5, 16  ;;  %v3117_v60 = vshrl.u32 %v8800_v5, 16  ;;  %7450 = vmatprep.subr.bf16.mxu1 %v8167_v44  ;;  %v8151_v62 = vld [vmem:[%s10590_s3 + $0x170] sm:$0xff]   ;;  %v515_v15 = vshrl.u32 %v8795_v25, 16 }
  0x59   : > { %v6526_v50 = vcombine.low %v8784_v12, %v8802_v2  ;;  %v6748_v33 = vcombine.low %v3092_v51, %v3102_v57  ;;  %v3110_v55 = vor.u32 %v3109_v61, %v3106_v28  ;;  %v8818_v41 = vld [vmem:[%s8469_s24 + $0x38] sm:$0xf]  ;;  %v8169_v58 = vld [vmem:[%s10590_s3 + $0x80] sm:$0xff]   ;;  %767 = vst [vmem:[#allocation2 + $0x48] sm:$0xf] %v766_v52  ;;  %v509_v28 = vrot.slane %v507_v42, 7 }
  0x5a   : > { %v3115_v46 = vrot.slane %v3113_v37, 5  ;;  %v3119_v16 = vrot.slane %v3117_v60, 4  ;;  %7637 = vmatpush3.bf16.msra.mxu0 %v8146_v36  ;;  %v510_v60 = vshll.u32 %v8773_v17, 16  ;;  %v384_v61 = vld [vmem:[%s8469_s24 + $0x3c] sm:$0xf]  ;;  %v10651_v36 = vshll.u32 %v8729_v10, 16  ;;  %7451 = vmatpush3.bf16.msra.mxu1 %v8167_v44 }
  0x5b   : > { %7413 = vmatmul.mubr.bf16.gmra.mrb[8].mxu1 %v6526_v50  ;;  %7601 = vmatmul.mubr.bf16.gmra.mrb[4].mxu0 %v6748_v33  ;;  %v3111_v51 = vrot.slane %v3110_v55, 4  ;;  %v505_v37 = vrot.slane %v500_v3, 4  ;;  %v518_v50 = vshll.u32 %v8795_v25, 16  ;;  %v513_v17 = vrot.slane %v509_v28, 4  ;;  %v776_v25 = vld [vmem:[#allocation2 + $0x5c] sm:$0x1] }
  0x5c   : > { %7638 = vmatprep.subr.bf16.mxu0 %v8147_v30  ;;  %v8826_v57 = vld [vmem:[#allocation2 + $0x44] sm:$0x1]  ;;  %v3120_v47 = vor.u32 %v3119_v16, %v3115_v46  ;;  %v503_v1 = vor.u32 %v10651_v36, %v500_v3  ;;  %v512_v33 = vor.u32 %v510_v60, %v509_v28  ;;  %7484 = vmatprep.subr.bf16.mxu1 %v8169_v58  ;;  %v517_v10 = vrot.slane %v515_v15, 7 }
  0x5d   : > { %v3116_v52 = vsel %vm8526_vm10, %v3111_v51, %v3115_v46  ;;  %v3123_v42 = vshll.u32 %v8826_v57, 16  ;;  %v770_v16 = vsel %vm8497_vm5, %v505_v37, %v769_v32  ;;  %v524_v46 = vshrl.u32 %v8818_v41, 16  ;;  %v779_v37 = vld [vmem:[#allocation2 + $0x60] sm:$0xf]  ;;  %v386_v29 = vld [vmem:[%s8469_s24 + $0x44] sm:$0xf] }
  0x5e   : > { %v3121_v55 = vrot.slane %v3120_v47, 4  ;;  %v504_v56 = vsel %vm8506_vm6, %v496_v7, %v503_v1  ;;  %7639 = vmatpush3.bf16.msra.mxu0 %v8147_v30  ;;  %771 = vst [vmem:[#allocation2 + $0x50] sm:$0x1] %v770_v16  ;;  %v773_v44 = vsel %vm8513_vm9, %v512_v33, %v772_v9  ;;  %v527_v58 = vshll.u32 %v8818_v41, 16  ;;  %v8152_v7 = vld [vmem:[%s10590_s3 + $0x178] sm:$0xff]  }
  0x5f   : > { %v3125_v3 = vrot.slane %v3123_v42, 5  ;;  %768 = vst [vmem:[#allocation2 + $0x4c] sm:$0xf] %v504_v56  ;;  %7640 = vmatprep.subr.bf16.mxu0 %v8151_v62  ;;  %v520_v51 = vor.u32 %v518_v50, %v517_v10  ;;  %v522_v32 = vrot.slane %v517_v10, 4  ;;  %774 = vst [vmem:[#allocation2 + $0x54] sm:$0xf] %v773_v44 }
  0x60   : > { %v532_v30 = vshrl.u32 %v384_v61, 16  ;;  %v535_v28 = vshll.u32 %v384_v61, 16  ;;  %v526_v41 = vrot.slane %v524_v46, 7  ;;  %v8849_v47 = vld [vmem:[#allocation2 + $0x48] sm:$0xf]  ;;  %v8858_v50 = vld [vmem:[%s10590_s3 + $0x180] sm:$0xff]  }
  0x61   : > { %v3126_v60 = vsel %vm8526_vm10, %v3121_v55, %v3125_v3  ;;  %v521_v36 = vsel %vm8506_vm6, %v513_v17, %v520_v51  ;;  %v777_v1 = vsel %vm8497_vm5, %v522_v32, %v776_v25  ;;  %v3128_v42 = vshrl.u32 %v8849_v47, 16  ;;  %v783_v33 = vld [vmem:[#allocation2 + $0x68] sm:$0x1] }
  0x62   : > { %v6749_v15 = vcombine.low %v3116_v52, %v3126_v60  ;;  %v534_v61 = vrot.slane %v532_v30, 7  ;;  %7641 = vmatpush3.bf16.msra.mxu0 %v8151_v62  ;;  %v3131_v52 = vshll.u32 %v8849_v47, 16  ;;  %775 = vst [vmem:[#allocation2 + $0x58] sm:$0xf] %v521_v36  ;;  %778 = vst [vmem:[#allocation2 + $0x5c] sm:$0x1] %v777_v1  ;;  %v529_v16 = vor.u32 %v527_v58, %v526_v41 }
  0x63   : > { %7642 = vmatprep.subr.bf16.mxu0 %v8152_v7  ;;  %v6769_v17 = vrot.slane %v8581_v20, 9  ;;  %v3795_v55 = vrot.slane %v8583_v21, 5  ;;  %v530_v62 = vrot.slane %v526_v41, 4  ;;  %v3130_v44 = vrot.slane %v3128_v42, 4  ;;  %v8864_v46 = vld [vmem:[#allocation2 + $0x48] sm:$0xf] }
  0x64   : > { %7604 = vmatprep.mubr.bf16.mxu0 %v6749_v15  ;;  %v537_v10 = vor.u32 %v535_v28, %v534_v61  ;;  %v539_v3 = vrot.slane %v534_v61, 4  ;;  %v3133_v25 = vrot.slane %v3131_v52, 5  ;;  %v780_v21 = vsel %vm8513_vm9, %v529_v16, %v779_v37 }
  0x65   : > { %v8868_v32 = vld [vmem:[#allocation2 + $0x50] sm:$0x1]  ;;  %781 = vst [vmem:[#allocation2 + $0x60] sm:$0xf] %v780_v21  ;;  %v3797_v42 = vrot.slane %v3795_v55, 4  ;;  %v549_v34 = vshrl.u32 %v386_v29, 16 }
  0x66   : > { %v8866_v51 = vld [vmem:[#allocation2 + $0x4c] sm:$0xf]  ;;  %v538_v20 = vsel %vm8506_vm6, %v530_v62, %v537_v10  ;;  %v784_v58 = vsel %vm8497_vm5, %v539_v3, %v783_v33  ;;  %7643 = vmatpush3.bf16.msra.mxu0 %v8152_v7  ;;  %v3134_v28 = vor.u32 %v3133_v25, %v3130_v44  ;;  %v3147_v15 = vshll.u32 %v8868_v32, 16  ;;  %v8881_v36 = vld [vmem:[#allocation2 + $0x54] sm:$0xf] }
  0x67   : > { %v8870_v30 = vld [vmem:[#allocation2 + $0x4c] sm:$0xf]  ;;  %v3137_v60 = vshll.u32 %v8866_v51, 16  ;;  %v3141_v41 = vshrl.u32 %v8866_v51, 16  ;;  %782 = vst [vmem:[#allocation2 + $0x64] sm:$0xf] %v538_v20  ;;  %7676 = vmatprep.subr.bf16.mxu0 %v8858_v50 }
  0x68   : > { %785 = vst [vmem:[#allocation2 + $0x68] sm:$0x1] %v784_v58  ;;  %v6527_v1 = vcombine.low %v8864_v46, %v8870_v30  ;;  %v3152_v61 = vshrl.u32 %v8881_v36, 16  ;;  %v3155_v7 = vshll.u32 %v8881_v36, 16  ;;  %v8888_v37 = vld [vmem:[#allocation2 + $0x54] sm:$0xf] }
  0x69   : > { %v3135_v52 = vrot.slane %v3134_v28, 4  ;;  %v3139_v33 = vrot.slane %v3137_v60, 5  ;;  %v3143_v16 = vrot.slane %v3141_v41, 4  ;;  %v3149_v62 = vrot.slane %v3147_v15, 5  ;;  %v8890_v10 = vld [vmem:[#allocation2 + $0x58] sm:$0xf] }
  0x6a   : > { %7416 = vmatprep.mubr.bf16.mxu1 %v6527_v1  ;;  %v8892_v3 = vld [vmem:[#allocation2 + $0x5c] sm:$0x1]  ;;  %v3154_v44 = vrot.slane %v3152_v61, 4  ;;  %v3157_v25 = vrot.slane %v3155_v7, 5  ;;  %v3161_v21 = vshll.u32 %v8890_v10, 16  ;;  %v3165_v58 = vshrl.u32 %v8890_v10, 16 }
  0x6b   : > { %v3144_v20 = vor.u32 %v3143_v16, %v3139_v33  ;;  %v8896_v9 = vld [vmem:[#allocation2 + $0x58] sm:$0xf]  ;;  %v3171_v15 = vshll.u32 %v8892_v3, 16  ;;  %v3140_v61 = vsel %vm8526_vm10, %v3135_v52, %v3139_v33  ;;  %v8914_v60 = vsel %vm8900_vm13, %v6769_v17, %v3795_v55 }
  0x6c   : > { %v3158_v41 = vor.u32 %v3157_v25, %v3154_v44  ;;  %v6528_v1 = vcombine.low %v8888_v37, %v8896_v9  ;;  %v3163_v16 = vrot.slane %v3161_v21, 5  ;;  %v3167_v56 = vrot.slane %v3165_v58, 4  ;;  %v8910_v27 = vld [vmem:[#allocation2 + $0x60] sm:$0xf] }
  0x6d   : > { %v3145_v7 = vrot.slane %v3144_v20, 4  ;;  %v3173_v8 = vrot.slane %v3171_v15, 5  ;;  %v10654_v44 = vrot.slane %v8585_v22, 5  ;;  %v3176_v58 = vshrl.u32 %v8910_v27, 16 }
  0x6e   : > { %v3159_v26 = vrot.slane %v3158_v41, 4  ;;  %7417 = vmatmul.mubr.bf16.gmra.mrb[12].mxu1 %v6528_v1  ;;  %v3168_v33 = vor.u32 %v3167_v56, %v3163_v16  ;;  %v8924_v20 = vld [vmem:[#allocation2 + $0x64] sm:$0xf]  ;;  %v3179_v17 = vshll.u32 %v8910_v27, 16  ;;  %v552_v31 = vshll.u32 %v386_v29, 16 }
  0x6f   : > { %v8920_v25 = vsel %vm8900_vm13, %v3797_v42, %v10654_v44  ;;  %v3150_v52 = vsel %vm8526_vm10, %v3145_v7, %v3149_v62  ;;  %v8926_v21 = vld [vmem:[#allocation2 + $0x68] sm:$0x1]  ;;  %v3185_v42 = vshll.u32 %v8924_v20, 16  ;;  %v3189_v41 = vshrl.u32 %v8924_v20, 16  ;;  %v8934_v62 = vld [vmem:[#allocation2 + $0x60] sm:$0xf] }
  0x70   : > { %10655 = vst [vmem:[#allocation18_spill] sm:$0xff] %v8926_v21  ;;  %v6750_v55 = vcombine.low %v3140_v61, %v3150_v52  ;;  %v3164_v22 = vsel %vm8526_vm10, %v3159_v26, %v3163_v16  ;;  %v8936_v56 = vld [vmem:[#allocation2 + $0x64] sm:$0xf]  ;;  %v3169_v15 = vrot.slane %v3168_v33, 4  ;;  %v3178_v1 = vrot.slane %v3176_v58, 4 }
  0x71   : > { %10656 = vst [vmem:[#allocation19_spill] sm:$0xff] %v8936_v56  ;;  %v3181_v7 = vrot.slane %v3179_v17, 5  ;;  %v3195_v44 = vshll.u32 %v8926_v21, 16  ;;  %v3187_v52 = vrot.slane %v3185_v42, 5  ;;  %v3191_v26 = vrot.slane %v3189_v41, 4 }
  0x72   : > { %7605 = vmatmul.mubr.bf16.gmra.mrb[8].mxu0 %v6750_v55  ;;  %v6529_v16 = vcombine.low %v8934_v62, %v8936_v56  ;;  %v3174_v43 = vsel %vm8526_vm10, %v3169_v15, %v3173_v8  ;;  %v6801_v58 = vcombine.low %v8914_v60, %v8920_v25  ;;  %v387_v17 = vld [vmem:[%s8469_s24 + $0x48] sm:$0xf]  ;;  %v541_v42 = vshrl.u32 %v385_v59, 16  ;;  %v786_v21 = vld [vmem:[#allocation2 + $0x6c] sm:$0xf] }
  0x73   : > { %v3182_v33 = vor.u32 %v3181_v7, %v3178_v1  ;;  %v6751_v49 = vcombine.low %v3164_v22, %v3174_v43  ;;  %v3192_v40 = vor.u32 %v3191_v26, %v3187_v52  ;;  %v3197_v55 = vrot.slane %v3195_v44, 5  ;;  %v388_v22 = vld [vmem:[%s8469_s24 + $0x4c] sm:$0xf]  ;;  %v793_v1 = vld [vmem:[#allocation2 + $0x78] sm:$0xf] }
  0x74   : > { %7420 = vmatprep.mubr.bf16.mxu1 %v6529_v16  ;;  %v544_v61 = vshll.u32 %v385_v59, 16  ;;  %v543_v56 = vrot.slane %v541_v42, 7  ;;  %v6770_v8 = vrot.slane %v8609_v53, 9  ;;  %v3802_v60 = vrot.slane %v8611_v54, 5 }
  0x75   : > { %v3183_v41 = vrot.slane %v3182_v33, 4  ;;  %7608 = vmatprep.mubr.bf16.mxu0 %v6751_v49  ;;  %v3193_v63 = vrot.slane %v3192_v40, 4  ;;  %v8954_v25 = vrot.slane %v549_v34, 7  ;;  %v558_v15 = vshrl.u32 %v387_v17, 16  ;;  %v390_v34 = vld [vmem:[%s8469_s24 + $0x54] sm:$0xf] }
  0x76   : > { %v561_v59 = vshll.u32 %v387_v17, 16  ;;  %v546_v40 = vor.u32 %v544_v61, %v543_v56  ;;  %v547_v49 = vrot.slane %v543_v56, 4  ;;  %v3803_v53 = vsel %vm8900_vm13, %v6770_v8, %v3802_v60 }
  0x77   : > { %v3188_v43 = vsel %vm8526_vm10, %v3183_v41, %v3187_v52  ;;  %v3198_v29 = vsel %vm8526_vm10, %v3193_v63, %v3197_v55  ;;  %v554_v54 = vor.u32 %v552_v31, %v8954_v25  ;;  %v3804_v44 = vrot.slane %v3802_v60, 4  ;;  %v389_v52 = vld [vmem:[%s8469_s24 + $0x50] sm:$0xf] }
  0x78   : > { %v6752_v7 = vcombine.low %v3188_v43, %v3198_v29  ;;  %v560_v26 = vrot.slane %v558_v15, 7  ;;  %v787_v16 = vsel %vm8513_vm9, %v546_v40, %v786_v21  ;;  %v566_v33 = vshrl.u32 %v388_v22, 16  ;;  %v391_v15 = vld [vmem:[%s8469_s24 + $0x58] sm:$0xf] }
  0x79   : > { %v569_v17 = vshll.u32 %v388_v22, 16  ;;  %v6771_v63 = vrot.slane %v8707_v6, 9  ;;  %v555_v56 = vsel %vm8506_vm6, %v547_v49, %v554_v54  ;;  %788 = vst [vmem:[#allocation2 + $0x6c] sm:$0xf] %v787_v16  ;;  %v10657_v61 = vrot.slane %v8619_v0, 5 }
  0x7a   : > { %7609 = vmatmul.mubr.bf16.gmra.mrb[12].mxu0 %v6752_v7  ;;  %v563_v55 = vor.u32 %v561_v59, %v560_v26  ;;  %v564_v42 = vrot.slane %v560_v26, 4  ;;  %789 = vst [vmem:[#allocation2 + $0x70] sm:$0xf] %v555_v56  ;;  %v8973_v41 = vrot.slane %v566_v33, 7  ;;  %v3809_v6 = vrot.slane %v8716_v18, 5 }
  0x7b   : > { %v3806_v31 = vsel %vm8900_vm13, %v3804_v44, %v10657_v61  ;;  %7644 = vmatprep.mubr.bf16.mxu0 %v6801_v58  ;;  %v3812_v8 = vrot.slane %v8718_v24, 5  ;;  %v575_v43 = vshrl.u32 %v389_v52, 16  ;;  %v578_v22 = vshll.u32 %v389_v52, 16  ;;  %v800_v49 = vld [vmem:[#allocation2 + $0x84] sm:$0xf] }
  0x7c   : > { %v6802_v21 = vcombine.low %v3803_v53, %v3806_v31  ;;  %v794_v60 = vsel %vm8513_vm9, %v563_v55, %v793_v1  ;;  %v583_v0 = vshrl.u32 %v390_v34, 16  ;;  %v571_v59 = vor.u32 %v569_v17, %v8973_v41  ;;  %v392_v26 = vld [vmem:[%s8469_s24 + $0x5c] sm:$0xf] }
  0x7d   : > { %795 = vst [vmem:[#allocation2 + $0x78] sm:$0xf] %v794_v60  ;;  %v3810_v58 = vsel %vm8900_vm13, %v6771_v63, %v3809_v6  ;;  %v3811_v29 = vrot.slane %v3809_v6, 4  ;;  %v586_v40 = vshll.u32 %v390_v34, 16  ;;  %v577_v18 = vrot.slane %v575_v43, 7 }
  0x7e   : > { %v8983_v53 = vrot.slane %v583_v0, 7  ;;  %v6772_v24 = vrot.slane %v8741_v45, 9  ;;  %v3816_v1 = vrot.slane %v8744_v4, 5  ;;  %v572_v7 = vsel %vm8506_vm6, %v564_v42, %v571_v59  ;;  %v8160_v45 = vld [vmem:[%s10590_s3 + $0x188] sm:$0xff]   ;;  %v807_v60 = vld [vmem:[#allocation2 + $0x90] sm:$0xf] }
  0x7f   : > { %v3813_v54 = vsel %vm8900_vm13, %v3811_v29, %v3812_v8  ;;  %v3819_v44 = vrot.slane %v8746_v19, 5  ;;  %v592_v52 = vshrl.u32 %v391_v15, 16  ;;  %796 = vst [vmem:[#allocation2 + $0x7c] sm:$0xf] %v572_v7  ;;  %v580_v16 = vor.u32 %v578_v22, %v577_v18  ;;  %v8164_v59 = vld [vmem:[%s10590_s3 + $0x190] sm:$0xff]  }
  0x80   : > { %v6803_v34 = vcombine.low %v3810_v58, %v3813_v54  ;;  %v581_v33 = vrot.slane %v577_v18, 4  ;;  %v588_v17 = vor.u32 %v586_v40, %v8983_v53  ;;  %v8998_v63 = vld [vmem:[#allocation2 + $0x6c] sm:$0xf]  ;;  %v3818_v56 = vrot.slane %v3816_v1, 4 }
  0x81   : > { %v594_v61 = vrot.slane %v592_v52, 7  ;;  %v595_v31 = vshll.u32 %v391_v15, 16  ;;  %v9001_v55 = vld [vmem:[#allocation2 + $0x70] sm:$0xf]  ;;  %v801_v6 = vsel %vm8513_vm9, %v580_v16, %v800_v49  ;;  %v3817_v8 = vsel %vm8900_vm13, %v6772_v24, %v3816_v1  ;;  %v393_v15 = vld [vmem:[%s8469_s24 + $0x60] sm:$0xf] }
  0x82   : > { %7645 = vmatmul.mubr.bf16.vlgmr.msra.gmra.mrb[0].mxu0 %v6802_v21  ;;  %v589_v42 = vsel %vm8506_vm6, %v581_v33, %v588_v17  ;;  %v6530_v22 = vcombine.low %v8998_v63, %v9001_v55  ;;  %802 = vst [vmem:[#allocation2 + $0x84] sm:$0xf] %v801_v6  ;;  %v3820_v21 = vsel %vm8900_vm13, %v3818_v56, %v3819_v44  ;;  %v600_v40 = vshrl.u32 %v392_v26, 16  ;;  %v394_v49 = vld [vmem:[%s8469_s24 + $0x64] sm:$0xf] }
  0x83   : > { %7677 = vmatpush3.bf16.msra.mxu0 %v8858_v50  ;;  %7648 = vmatprep.mubr.bf16.mxu0 %v6803_v34  ;;  %803 = vst [vmem:[#allocation2 + $0x88] sm:$0xf] %v589_v42  ;;  %v597_v0 = vor.u32 %v595_v31, %v594_v61  ;;  %v603_v50 = vshll.u32 %v392_v26, 16  ;;  %v6804_v1 = vcombine.low %v3817_v8, %v3820_v21  ;;  %v598_v7 = vrot.slane %v594_v61, 4  ;;  %v9032_v26 = vld [vmem:[%s8469_s24 + $0x68] sm:$0xf] }
  0x84   : > { %7678 = vmatprep.subr.bf16.mxu0 %v8160_v45  ;;  %7421 = vmatmul.mubr.bf16.gmra.mrb[16].mxu1 %v6530_v22  ;;  %v9023_v24 = vld [vmem:[#allocation2 + $0x78] sm:$0xf]  ;;  %v9027_v44 = vrot.slane %v600_v40, 7  ;;  %v6773_v52 = vrot.slane %v8760_v23, 9  ;;  %v3823_v34 = vrot.slane %v8800_v5, 5  ;;  %v609_v16 = vshrl.u32 %v393_v15, 16 }
  0x85   : > { %v808_v54 = vsel %vm8513_vm9, %v597_v0, %v807_v60  ;;  %v3826_v56 = vrot.slane %v8826_v57, 5  ;;  %v612_v61 = vshll.u32 %v393_v15, 16  ;;  %v617_v31 = vshrl.u32 %v394_v49, 16  ;;  %v8168_v8 = vld [vmem:[%s10590_s3 + $0x198] sm:$0xff]   ;;  %v804_v33 = vld [vmem:[#allocation2 + $0x8c] sm:$0x1] }
  0x86   : > { %809 = vst [vmem:[#allocation2 + $0x90] sm:$0xf] %v808_v54  ;;  %v9035_v17 = vld [vmem:[#allocation2 + $0x7c] sm:$0xf]  ;;  %v605_v6 = vor.u32 %v603_v50, %v9027_v44  ;;  %v620_v23 = vshll.u32 %v394_v49, 16  ;;  %v6774_v5 = vrot.slane %v8849_v47, 9  ;;  %v3824_v15 = vsel %vm8900_vm13, %v6773_v52, %v3823_v34 }
  0x87   : > { %7679 = vmatpush3.bf16.msra.mxu0 %v8160_v45  ;;  %v6531_v42 = vcombine.low %v9023_v24, %v9035_v17  ;;  %v3825_v60 = vrot.slane %v3823_v34, 4  ;;  %v611_v22 = vrot.slane %v609_v16, 7  ;;  %v9045_v45 = vrot.slane %v617_v31, 7  ;;  %v814_v16 = vld [vmem:[#allocation2 + $0x9c] sm:$0xf] }
  0x88   : > { %7680 = vmatprep.subr.bf16.mxu0 %v8164_v59  ;;  %v3830_v57 = vrot.slane %v8866_v51, 5  ;;  %v606_v47 = vsel %vm8506_vm6, %v598_v7, %v605_v6  ;;  %v626_v40 = vshrl.u32 %v9032_v26, 16  ;;  %v10658_v50 = vrot.slane %v8479_v14, 5  ;;  %v396_v6 = vld [vmem:[%s8469_s24 + $0x6c] sm:$0xf] }
  0x89   : > { %7424 = vmatprep.mubr.bf16.mxu1 %v6531_v42  ;;  %v9048_v21 = vld [vmem:[#allocation2 + $0x84] sm:$0xf]  ;;  %v10659_v49 = vrot.slane %v8477_v13, 9  ;;  %810 = vst [vmem:[#allocation2 + $0x94] sm:$0xf] %v606_v47  ;;  %v3833_v52 = vrot.slane %v8868_v32, 5  ;;  %v3827_v13 = vsel %vm8900_vm13, %v3825_v60, %v3826_v56  ;;  %v614_v34 = vor.u32 %v612_v61, %v611_v22 }
  0x8a   : > { %v9050_v0 = vld [vmem:[#allocation2 + $0x88] sm:$0xf]  ;;  %7649 = vmatmul.mubr.bf16.gmra.mrb[4].mxu0 %v6804_v1  ;;  %v615_v31 = vrot.slane %v611_v22, 4  ;;  %v622_v42 = vor.u32 %v620_v23, %v9045_v45  ;;  %v6805_v47 = vcombine.low %v3824_v15, %v3827_v13  ;;  %v3831_v32 = vsel %vm8900_vm13, %v6774_v5, %v3830_v57  ;;  %v397_v60 = vld [vmem:[%s8469_s24 + $0x70] sm:$0xf] }
  0x8b   : > { %v9063_v51 = vsel %vm8900_vm13, %v10659_v49, %v10658_v50  ;;  %v6532_v7 = vcombine.low %v9048_v21, %v9050_v0  ;;  %7681 = vmatpush3.bf16.msra.mxu0 %v8164_v59  ;;  %v8170_v50 = vld [vmem:[%s10590_s3 + $0x1a0] sm:$0xff]   ;;  %v3832_v59 = vrot.slane %v3830_v57, 4  ;;  %v628_v49 = vrot.slane %v626_v40, 7  ;;  %v821_v23 = vld [vmem:[#allocation2 + $0xa8] sm:$0xf] }
  0x8c   : > { %10660 = vst [vmem:[#allocation20_spill] sm:$0xff] %v9063_v51  ;;  %7682 = vmatprep.subr.bf16.mxu0 %v8168_v8  ;;  %v623_v56 = vsel %vm8506_vm6, %v615_v31, %v622_v42  ;;  %v815_v61 = vsel %vm8513_vm9, %v614_v34, %v814_v16  ;;  %v398_v22 = vld [vmem:[%s8469_s24 + $0x74] sm:$0xf]  ;;  %v1267_v1 = vor.u32 %v8567_v11, %v8510_v38  ;;  %v629_v57 = vshll.u32 %v9032_v26, 16  ;;  %v8172_v42 = vld [vmem:[%s10590_s3 + $0x1a8] sm:$0xff]  }
  0x8d   : > { %7425 = vmatmul.mubr.bf16.gmra.mrb[20].mxu1 %v6532_v7  ;;  %7652 = vmatprep.mubr.bf16.mxu0 %v6805_v47  ;;  %816 = vst [vmem:[#allocation2 + $0x9c] sm:$0xf] %v815_v61  ;;  %817 = vst [vmem:[#allocation2 + $0xa0] sm:$0xf] %v623_v56  ;;  %v3834_v5 = vsel %vm8900_vm13, %v3832_v59, %v3833_v52  ;;  %v632_v15 = vrot.slane %v628_v49, 4  ;;  %v634_v40 = vshrl.u32 %v396_v6, 16 }
  0x8e   : > { %v9090_v7 = vld [vmem:[#allocation2 + $0x90] sm:$0xf]  ;;  %v6806_v16 = vcombine.low %v3831_v32, %v3834_v5  ;;  %v637_v13 = vshll.u32 %v396_v6, 16  ;;  %v6775_v34 = vrot.slane %v8881_v36, 9  ;;  %v3837_v31 = vrot.slane %v8890_v10, 5 }
  0x8f   : > { %7683 = vmatpush3.bf16.msra.mxu0 %v8168_v8  ;;  %v631_v47 = vor.u32 %v629_v57, %v628_v49  ;;  %v9097_v52 = vrot.slane %v634_v40, 7  ;;  %v3840_v26 = vrot.slane %v8892_v3, 5  ;;  %v643_v59 = vshrl.u32 %v397_v60, 16  ;;  %v828_v5 = vld [vmem:[#allocation2 + $0xb4] sm:$0xf] }
  0x90   : > { %7684 = vmatprep.subr.bf16.mxu0 %v8170_v50  ;;  %v9100_v8 = vld [vmem:[#allocation2 + $0x94] sm:$0xf]  ;;  %v3838_v6 = vsel %vm8900_vm13, %v6775_v34, %v3837_v31  ;;  %v3839_v36 = vrot.slane %v3837_v31, 4  ;;  %v646_v32 = vshll.u32 %v397_v60, 16  ;;  %v651_v10 = vshrl.u32 %v398_v22, 16 }
  0x91   : > { %v6533_v61 = vcombine.low %v9090_v7, %v9100_v8  ;;  %v639_v49 = vor.u32 %v637_v13, %v9097_v52  ;;  %v822_v3 = vsel %vm8513_vm9, %v631_v47, %v821_v23  ;;  %v645_v40 = vrot.slane %v643_v59, 7  ;;  %v8174_v34 = vld [vmem:[%s10590_s3 + $0x1b0] sm:$0xff]   ;;  %v848_v47 = vld [vmem:[#allocation2 + $0x8] sm:$0x1] }
  0x92   : > { %7653 = vmatmul.mubr.bf16.gmra.mrb[8].mxu0 %v6806_v16  ;;  %823 = vst [vmem:[#allocation2 + $0xa8] sm:$0xf] %v822_v3  ;;  %v3841_v57 = vsel %vm8900_vm13, %v3839_v36, %v3840_v26  ;;  %v9112_v16 = vrot.slane %v651_v10, 7  ;;  %v654_v60 = vshll.u32 %v398_v22, 16  ;;  %v3844_v31 = vrot.slane %v8924_v20, 5  ;;  %v10661_v3 = vld [vmem:[#allocation18_spill] sm:$0xff] }
  0x93   : > { %7685 = vmatpush3.bf16.msra.mxu0 %v8170_v50  ;;  %7428 = vmatprep.mubr.bf16.mxu1 %v6533_v61  ;;  %v640_v13 = vsel %vm8506_vm6, %v632_v15, %v639_v49  ;;  %v6807_v23 = vcombine.low %v3838_v6, %v3841_v57  ;;  %v6776_v50 = vrot.slane %v8910_v27, 9  ;;  %v648_v22 = vor.u32 %v646_v32, %v645_v40  ;;  %v10662_v56 = vld [vmem:[#allocation19_spill] sm:$0xff] }
  0x94   : > { %7686 = vmatprep.subr.bf16.mxu0 %v8172_v42  ;;  %v9121_v26 = vld [vmem:[#allocation2 + $0x9c] sm:$0xf]  ;;  %v9123_v59 = vld [vmem:[#allocation2 + $0xa0] sm:$0xf]  ;;  %824 = vst [vmem:[#allocation2 + $0xac] sm:$0xf] %v640_v13  ;;  %v656_v10 = vor.u32 %v654_v60, %v9112_v16 }
  0x95   : > { %v649_v36 = vrot.slane %v645_v40, 4  ;;  %v3847_v61 = vrot.slane %v10661_v3, 5  ;;  %v6534_v27 = vcombine.low %v9121_v26, %v9123_v59  ;;  %7656 = vmatprep.mubr.bf16.mxu0 %v6807_v23  ;;  %v790_v20 = vld [vmem:[#allocation2 + $0x74] sm:$0x1]  ;;  %v829_v32 = vsel %vm8513_vm9, %v648_v22, %v828_v5  ;;  %v797_v60 = vld [vmem:[#allocation2 + $0x80] sm:$0x1] }
  0x96   : > { %v851_v6 = vld [vmem:[#allocation2 + $0x14] sm:$0x1]  ;;  %v3845_v57 = vsel %vm8900_vm13, %v6776_v50, %v3844_v31  ;;  %v3846_v40 = vrot.slane %v3844_v31, 4  ;;  %v8176_v13 = vld [vmem:[%s10590_s3 + $0x1b8] sm:$0xff]   ;;  %830 = vst [vmem:[#allocation2 + $0xb4] sm:$0xf] %v829_v32 }
  0x97   : > { %7687 = vmatpush3.bf16.msra.mxu0 %v8172_v42  ;;  %v657_v49 = vsel %vm8506_vm6, %v649_v36, %v656_v10  ;;  %7429 = vmatmul.mubr.bf16.gmra.mrb[24].mxu1 %v6534_v27  ;;  %v1268_v42 = vrot.slane %v1267_v1, 4  ;;  %v1270_v5 = vshll.u32 %v848_v47, 16  ;;  %v556_v22 = vrot.slane %v8954_v25, 4  ;;  %v6665_v36 = vld [vmem:[#allocation2 + $0x6c] sm:$0xf] }
  0x98   : > { %7688 = vmatprep.subr.bf16.mxu0 %v8174_v34  ;;  %831 = vst [vmem:[#allocation2 + $0xb8] sm:$0xf] %v657_v49  ;;  %v3848_v31 = vsel %vm8900_vm13, %v3846_v40, %v3847_v61  ;;  %v1294_v10 = vshll.u32 %v851_v6, 16  ;;  %v573_v3 = vrot.slane %v8973_v41, 4  ;;  %v6666_v47 = vld [vmem:[#allocation2 + $0x70] sm:$0xf] }
  0x99   : > { %v9150_v32 = vld [vmem:[#allocation2 + $0xa8] sm:$0xf]  ;;  %v6808_v49 = vcombine.low %v3845_v57, %v3848_v31  ;;  %v1272_v23 = vrot.slane %v1270_v5, 5  ;;  %v791_v1 = vsel %vm8497_vm5, %v556_v22, %v790_v20  ;;  %v9161_v41 = vld [vmem:[%s10590_s3 + $0x1c0] sm:$0xff]   ;;  %v6669_v22 = vld [vmem:[#allocation2 + $0x7c] sm:$0xf] }
  0x9a   : > { %792 = vst [vmem:[#allocation2 + $0x74] sm:$0x1] %v791_v1  ;;  %v1296_v40 = vrot.slane %v1294_v10, 5  ;;  %v798_v5 = vsel %vm8497_vm5, %v573_v3, %v797_v60  ;;  %v10664_v1 = vld [vmem:[#allocation5_spill] sm:$0xff]  ;;  %v6777_v61 = vrot.slane %v6665_v36, 9  ;;  %v3851_v50 = vrot.slane %v6666_v47, 5 }
  0x9b   : > { %7689 = vmatpush3.bf16.msra.mxu0 %v8174_v34  ;;  %v9164_v20 = vld [vmem:[#allocation2 + $0xac] sm:$0xf]  ;;  %v1273_v34 = vsel %vm8526_vm10, %v1268_v42, %v1272_v23  ;;  %v10665_v6 = vsel %vm8526_vm10, %v10664_v1, %v8510_v38  ;;  %799 = vst [vmem:[#allocation2 + $0x80] sm:$0x1] %v798_v5  ;;  %v854_v25 = vld [vmem:[#allocation2 + $0x20] sm:$0x1] }
  0x9c   : > { %7690 = vmatprep.subr.bf16.mxu0 %v8176_v13  ;;  %7657 = vmatmul.mubr.bf16.gmra.mrb[12].mxu0 %v6808_v49  ;;  %v6535_v31 = vcombine.low %v9150_v32, %v9164_v20  ;;  %v6561_v57 = vcombine.low %v10665_v6, %v1273_v34  ;;  %v6668_v49 = vld [vmem:[#allocation2 + $0x78] sm:$0xf]  ;;  %v6671_v27 = vld [vmem:[#allocation2 + $0x84] sm:$0xf]  ;;  %v10667_v6 = vld [vmem:[#allocation11_spill] sm:$0xff]  ;;  %v3858_v60 = vrot.slane %v6669_v22, 5  ;;  %v3852_v22 = vsel %vm8900_vm13, %v6777_v61, %v3851_v50 }
  0x9d   : > { %v10666_v10 = vld [vmem:[#allocation12_spill] sm:$0xff]  ;;  %v9184_v36 = vld [vmem:[#allocation2 + $0xb4] sm:$0xf]  ;;  %v1318_v43 = vshll.u32 %v854_v25, 16  ;;  %v590_v61 = vrot.slane %v8983_v53, 4  ;;  %v6779_v19 = vrot.slane %v6671_v27, 9 }
  0x9e   : > { %v1297_v3 = vsel %vm8526_vm10, %v10666_v10, %v1296_v40  ;;  %7432 = vmatprep.mubr.bf16.mxu1 %v6535_v31  ;;  %v10668_v34 = vld [vmem:[#allocation8_spill] sm:$0xff]  ;;  %v10670_v42 = vld [vmem:[#allocation7_spill] sm:$0xff]  ;;  %v10672_v10 = vld [vmem:[#allocation6_spill] sm:$0xff]  ;;  %v10704_v39 = vshrl.u32 %v10662_v56, 16  ;;  %v1600_v56 = vshrl.u32 %v9164_v20, 16 }
  0x9f   : > { %7691 = vmatpush3.bf16.msra.mxu0 %v8176_v13  ;;  %v9186_v47 = vld [vmem:[#allocation2 + $0xb8] sm:$0xf]  ;;  %v10669_v5 = vsel %vm8526_vm10, %v10667_v6, %v10668_v34  ;;  %v10671_v40 = vrot.slane %v10670_v42, 5  ;;  %v10673_v13 = vrot.slane %v10672_v10, 9  ;;  %v6778_v6 = vrot.slane %v6668_v49, 9  ;;  %v10679_v49 = vld [vmem:[#allocation10_spill] sm:$0xff] }
  0xa0   : > { %v6562_v1 = vcombine.low %v10669_v5, %v1297_v3  ;;  %7724 = vmatprep.subr.bf16.mxu0 %v9161_v41  ;;  %v6536_v15 = vcombine.low %v9184_v36, %v9186_v47  ;;  %v6672_v3 = vld [vmem:[#allocation2 + $0x88] sm:$0xf]  ;;  %v3853_v34 = vrot.slane %v3851_v50, 4  ;;  %v3860_v42 = vrot.slane %v3858_v60, 4  ;;  %v10675_v5 = vld [vmem:[#allocation9_spill] sm:$0xff] }
  0xa1   : > { %v9200_v31 = vsel %vm8900_vm13, %v10673_v13, %v10671_v40  ;;  %v10676_v10 = vshrl.u32 %v10675_v5, 16  ;;  %v6667_v40 = vld [vmem:[#allocation2 + $0x74] sm:$0x1]  ;;  %v10677_v13 = vshll.u32 %v10675_v5, 16  ;;  %v9212_v23 = vld [vmem:[#allocation2 + $0x1c] sm:$0xf]  ;;  %v3859_v5 = vsel %vm8900_vm13, %v6778_v6, %v3858_v60 }
  0xa2   : > { %10674 = vst [vmem:[#allocation18_spill] sm:$0xff] %v9200_v31  ;;  %7433 = vmatmul.mubr.bf16.gmra.mrb[28].mxu1 %v6536_v15  ;;  %10678 = vst [vmem:[#allocation19_spill] sm:$0xff] %v9212_v23  ;;  %v1308_v18 = vshll.u32 %v9212_v23, 16  ;;  %v10680_v29 = vshrl.u32 %v10679_v49, 16  ;;  %v3854_v50 = vrot.slane %v6667_v40, 5  ;;  %v10682_v53 = vld [vmem:[#allocation14_spill] sm:$0xff] }
  0xa3   : > { %v1301_v54 = vrot.slane %v10676_v10, 4  ;;  %v1304_v38 = vrot.slane %v10677_v13, 5  ;;  %7452 = vmatprep.mubr.bf16.mxu1 %v6561_v57  ;;  %v3865_v10 = vrot.slane %v6672_v3, 5  ;;  %v6670_v4 = vld [vmem:[#allocation2 + $0x80] sm:$0x1]  ;;  %v10683_v27 = vshrl.u32 %v10682_v53, 16 }
  0xa4   : > { %v1314_v58 = vrot.slane %v10680_v29, 4  ;;  %v1310_v31 = vrot.slane %v1308_v18, 5  ;;  %v3855_v23 = vsel %vm8900_vm13, %v3853_v34, %v3854_v50  ;;  %v3861_v49 = vrot.slane %v6670_v4, 5  ;;  %v9225_v25 = vld [vmem:[#allocation2 + $0x2c] sm:$0x1] }
  0xa5   : > { %v1305_v13 = vor.u32 %v1304_v38, %v1301_v54  ;;  %v805_v29 = vsel %vm8497_vm5, %v590_v61, %v804_v33  ;;  %10681 = vst [vmem:[#allocation4_spill] sm:$0xff] %v9225_v25  ;;  %v1325_v57 = vrot.slane %v10683_v27, 4  ;;  %v6809_v3 = vcombine.low %v3852_v22, %v3855_v23  ;;  %v6674_v60 = vld [vmem:[#allocation2 + $0x90] sm:$0xf]  ;;  %v6675_v6 = vld [vmem:[#allocation2 + $0x94] sm:$0xf] }
  0xa6   : > { %v1315_v15 = vor.u32 %v1314_v58, %v1310_v31  ;;  %v1320_v51 = vrot.slane %v1318_v43, 5  ;;  %806 = vst [vmem:[#allocation2 + $0x8c] sm:$0x1] %v805_v29  ;;  %v3862_v18 = vsel %vm8900_vm13, %v3860_v42, %v3861_v49  ;;  %v9233_v4 = vsel %vm8900_vm13, %v6779_v19, %v3865_v10  ;;  %v9239_v23 = vld [vmem:[#allocation2 + $0x28] sm:$0xf]  ;;  %v10685_v61 = vld [vmem:[#allocation15_spill] sm:$0xff] }
  0xa7   : > { %v1306_v40 = vrot.slane %v1305_v13, 4  ;;  %v3867_v54 = vrot.slane %v3865_v10, 4  ;;  %v10684_v33 = vshll.u32 %v10682_v53, 16  ;;  %7660 = vmatprep.mubr.bf16.mxu0 %v6809_v3  ;;  %v6810_v34 = vcombine.low %v3859_v5, %v3862_v18  ;;  %v8171_v19 = vld [vmem:[%s10590_s3 + $0x88] sm:$0xff]   ;;  %v811_v42 = vld [vmem:[#allocation2 + $0x98] sm:$0x1] }
  0xa8   : > { %v1316_v43 = vrot.slane %v1315_v15, 4  ;;  %v1332_v22 = vshll.u32 %v9239_v23, 16  ;;  %v10686_v10 = vshrl.u32 %v10685_v61, 16  ;;  %v1342_v49 = vshll.u32 %v9225_v25, 16  ;;  %v9251_v27 = vld [vmem:[#allocation2 + $0x38] sm:$0x1] }
  0xa9   : > { %v1328_v38 = vrot.slane %v10684_v33, 5  ;;  %v1311_v58 = vsel %vm8526_vm10, %v1306_v40, %v1310_v31  ;;  %v607_v5 = vrot.slane %v9027_v44, 4  ;;  %7661 = vmatmul.mubr.bf16.gmra.mrb[16].mxu0 %v6810_v34  ;;  %v6780_v29 = vrot.slane %v6674_v60, 9  ;;  %v8239_v3 = vld [vmem:[%s10590_s3 + $0x80] sm:$0xff]  }
  0xaa   : > { %v1338_v13 = vrot.slane %v10686_v10, 4  ;;  %7453 = vmatmul.mubr.bf16.vlgmr.msra.gmra.mrb[0].mxu1 %v6562_v1  ;;  %v1321_v31 = vsel %vm8526_vm10, %v1316_v43, %v1320_v51  ;;  %v1334_v15 = vrot.slane %v1332_v22, 5  ;;  %v3872_v53 = vrot.slane %v6675_v6, 5  ;;  %v818_v18 = vld [vmem:[#allocation2 + $0xa4] sm:$0x1]  ;;  %v10687_v6 = vld [vmem:[#allocation16_spill] sm:$0xff] }
  0xab   : > { %v1329_v50 = vor.u32 %v1328_v38, %v1325_v57  ;;  %v8173_v57 = vld [vmem:[%s10590_s3 + $0x90] sm:$0xff]   ;;  %7485 = vmatpush3.bf16.msra.mxu1 %v8239_v3  ;;  %v6563_v44 = vcombine.low %v1311_v58, %v1321_v31  ;;  %v1344_v40 = vrot.slane %v1342_v49, 5  ;;  %v812_v51 = vsel %vm8497_vm5, %v607_v5, %v811_v42  ;;  %v6677_v22 = vld [vmem:[#allocation2 + $0x9c] sm:$0xf]  ;;  %v6678_v61 = vld [vmem:[#allocation2 + $0xa0] sm:$0xf] }
  0xac   : > { %v1339_v60 = vor.u32 %v1338_v13, %v1334_v15  ;;  %7486 = vmatprep.subr.bf16.mxu1 %v8171_v19  ;;  %813 = vst [vmem:[#allocation2 + $0x98] sm:$0x1] %v812_v51  ;;  %v9263_v33 = vsel %vm8900_vm13, %v6780_v29, %v3872_v53  ;;  %v3874_v38 = vrot.slane %v3872_v53, 4  ;;  %v10688_v34 = vshrl.u32 %v10687_v6, 16  ;;  %v9271_v13 = vld [vmem:[#allocation2 + $0x34] sm:$0xf] }
  0xad   : > { %v1330_v1 = vrot.slane %v1329_v50, 4  ;;  %7456 = vmatprep.mubr.bf16.mxu1 %v6563_v44  ;;  %v6673_v58 = vld [vmem:[#allocation2 + $0x8c] sm:$0x1]  ;;  %v10689_v42 = vshll.u32 %v10687_v6, 16  ;;  %10690 = vst [vmem:[#allocation5_spill] sm:$0xff] %v9271_v13  ;;  %v1356_v49 = vshll.u32 %v9271_v13, 16 }
  0xae   : > { %v1349_v43 = vrot.slane %v10688_v34, 4  ;;  %v10691_v5 = vld [vmem:[#allocation17_spill] sm:$0xff]  ;;  %v3868_v53 = vrot.slane %v6673_v58, 5  ;;  %v1340_v3 = vrot.slane %v1339_v60, 4  ;;  %v1366_v51 = vshll.u32 %v9251_v27, 16 }
  0xaf   : > { %v1335_v50 = vsel %vm8526_vm10, %v1330_v1, %v1334_v15  ;;  %v1352_v10 = vrot.slane %v10689_v42, 5  ;;  %v10692_v31 = vshrl.u32 %v10691_v5, 16  ;;  %v624_v44 = vrot.slane %v9045_v45, 4  ;;  %7487 = vmatpush3.bf16.msra.mxu1 %v8171_v19  ;;  %v9284_v60 = vld [vmem:[#allocation2 + $0x44] sm:$0x1] }
  0xb0   : > { %v1358_v25 = vrot.slane %v1356_v49, 5  ;;  %v6781_v15 = vrot.slane %v6677_v22, 9  ;;  %v3879_v1 = vrot.slane %v6678_v61, 5  ;;  %v3869_v6 = vsel %vm8900_vm13, %v3867_v54, %v3868_v53  ;;  %7488 = vmatprep.subr.bf16.mxu1 %v8173_v57  ;;  %v6680_v22 = vld [vmem:[#allocation2 + $0xa8] sm:$0xf]  ;;  %v8175_v54 = vld [vmem:[%s10590_s3 + $0x98] sm:$0xff]  }
  0xb1   : > { %v1362_v29 = vrot.slane %v10692_v31, 4  ;;  %v1353_v34 = vor.u32 %v1352_v10, %v1349_v43  ;;  %v1345_v42 = vsel %vm8526_vm10, %v1340_v3, %v1344_v40  ;;  %v1368_v13 = vrot.slane %v1366_v51, 5  ;;  %v6681_v61 = vld [vmem:[#allocation2 + $0xac] sm:$0xf]  ;;  %v825_v31 = vld [vmem:[#allocation2 + $0xb0] sm:$0x1] }
  0xb2   : > { %v819_v58 = vsel %vm8497_vm5, %v624_v44, %v818_v18  ;;  %v6811_v45 = vcombine.low %v9233_v4, %v3869_v6  ;;  %v6564_v19 = vcombine.low %v1335_v50, %v1345_v42  ;;  %v9292_v40 = vsel %vm8900_vm13, %v6781_v15, %v3879_v1  ;;  %v9300_v51 = vld [vmem:[#allocation2 + $0x40] sm:$0xf] }
  0xb3   : > { %v1354_v43 = vrot.slane %v1353_v34, 4  ;;  %v1363_v10 = vor.u32 %v1362_v29, %v1358_v25  ;;  %820 = vst [vmem:[#allocation2 + $0xa4] sm:$0x1] %v819_v58  ;;  %v3881_v18 = vrot.slane %v3879_v1, 4  ;;  %v10693_v49 = vshrl.u32 %v8784_v12, 16  ;;  %7489 = vmatpush3.bf16.msra.mxu1 %v8173_v57 }
  0xb4   : > { %v10694_v4 = vshll.u32 %v8784_v12, 16  ;;  %7664 = vmatprep.mubr.bf16.mxu0 %v6811_v45  ;;  %7457 = vmatmul.mubr.bf16.gmra.mrb[4].mxu1 %v6564_v19  ;;  %v6676_v29 = vld [vmem:[#allocation2 + $0x98] sm:$0x1]  ;;  %v1380_v44 = vshll.u32 %v9300_v51, 16  ;;  %v10695_v34 = vshrl.u32 %v8802_v2, 16  ;;  %v1390_v12 = vshll.u32 %v9284_v60, 16 }
  0xb5   : > { %v1373_v5 = vrot.slane %v10693_v49, 4  ;;  %v1359_v53 = vsel %vm8526_vm10, %v1354_v43, %v1358_v25  ;;  %v1364_v3 = vrot.slane %v1363_v10, 4  ;;  %v3875_v1 = vrot.slane %v6676_v29, 5  ;;  %7490 = vmatprep.subr.bf16.mxu1 %v8175_v54  ;;  %v8178_v43 = vld [vmem:[%s10590_s3 + $0xa0] sm:$0xff]  }
  0xb6   : > { %v1376_v50 = vrot.slane %v10694_v4, 5  ;;  %v1386_v15 = vrot.slane %v10695_v34, 4  ;;  %v641_v42 = vrot.slane %v9097_v52, 4  ;;  %v1382_v45 = vrot.slane %v1380_v44, 5  ;;  %v9314_v4 = vld [vmem:[#allocation2 + $0x50] sm:$0x1] }
  0xb7   : > { %v1369_v58 = vsel %vm8526_vm10, %v1364_v3, %v1368_v13  ;;  %v6782_v25 = vrot.slane %v6680_v22, 9  ;;  %v3886_v19 = vrot.slane %v6681_v61, 5  ;;  %v3876_v2 = vsel %vm8900_vm13, %v3874_v38, %v3875_v1  ;;  %v6683_v61 = vld [vmem:[#allocation2 + $0xb4] sm:$0xf]  ;;  %7491 = vmatpush3.bf16.msra.mxu1 %v8175_v54  ;;  %v9329_v1 = vld [vmem:[#allocation2 + $0x4c] sm:$0xf] }
  0xb8   : > { %v1377_v6 = vor.u32 %v1376_v50, %v1373_v5  ;;  %v6565_v10 = vcombine.low %v1359_v53, %v1369_v58  ;;  %v1392_v5 = vrot.slane %v1390_v12, 5  ;;  %v6812_v52 = vcombine.low %v9263_v33, %v3876_v2  ;;  %v6684_v50 = vld [vmem:[#allocation2 + $0xb8] sm:$0xf]  ;;  %7492 = vmatprep.subr.bf16.mxu1 %v8178_v43  ;;  %v8182_v58 = vld [vmem:[%s10590_s3 + $0xa8] sm:$0xff]  }
  0xb9   : > { %v1387_v57 = vor.u32 %v1386_v15, %v1382_v45  ;;  %v826_v13 = vsel %vm8497_vm5, %v641_v42, %v825_v31  ;;  %v9321_v22 = vsel %vm8900_vm13, %v6782_v25, %v3886_v19  ;;  %v3888_v53 = vrot.slane %v3886_v19, 4  ;;  %v832_v25 = vld [vmem:[#allocation2 + $0xbc] sm:$0x1] }
  0xba   : > { %v1378_v49 = vrot.slane %v1377_v6, 4  ;;  %7460 = vmatprep.mubr.bf16.mxu1 %v6565_v10  ;;  %v6679_v29 = vld [vmem:[#allocation2 + $0xa4] sm:$0x1]  ;;  %827 = vst [vmem:[#allocation2 + $0xb0] sm:$0x1] %v826_v13  ;;  %v10696_v3 = vshrl.u32 %v8864_v46, 16  ;;  %7665 = vmatmul.mubr.bf16.gmra.mrb[20].mxu0 %v6812_v52 }
  0xbb   : > { %v10697_v44 = vshll.u32 %v8864_v46, 16  ;;  %v3882_v31 = vrot.slane %v6679_v29, 5  ;;  %v1388_v15 = vrot.slane %v1387_v57, 4  ;;  %v1404_v6 = vshll.u32 %v9329_v1, 16  ;;  %7493 = vmatpush3.bf16.msra.mxu1 %v8178_v43 }
  0xbc   : > { %v1383_v38 = vsel %vm8526_vm10, %v1378_v49, %v1382_v45  ;;  %v1397_v33 = vrot.slane %v10696_v3, 4  ;;  %v10698_v12 = vshrl.u32 %v8870_v30, 16  ;;  %v1414_v46 = vshll.u32 %v9314_v4, 16  ;;  %v9344_v3 = vld [vmem:[#allocation2 + $0x5c] sm:$0x1]  ;;  %7494 = vmatprep.subr.bf16.mxu1 %v8182_v58 }
  0xbd   : > { %v1400_v34 = vrot.slane %v10697_v44, 5  ;;  %v658_v54 = vrot.slane %v9112_v16, 4  ;;  %v6783_v19 = vrot.slane %v6683_v61, 9  ;;  %v3883_v2 = vsel %vm8900_vm13, %v3881_v18, %v3882_v31  ;;  %v9364_v31 = vld [vmem:[#allocation2 + $0x58] sm:$0xf] }
  0xbe   : > { %v1410_v42 = vrot.slane %v10698_v12, 4  ;;  %v1393_v30 = vsel %vm8526_vm10, %v1388_v15, %v1392_v5  ;;  %v1406_v10 = vrot.slane %v1404_v6, 5  ;;  %v3893_v49 = vrot.slane %v6684_v50, 5  ;;  %v400_v6 = vld [vmem:[%s8469_s24 + $0x7c] sm:$0xf] }
  0xbf   : > { %v1401_v45 = vor.u32 %v1400_v34, %v1397_v33  ;;  %v6813_v52 = vcombine.low %v9292_v40, %v3883_v2  ;;  %v6566_v57 = vcombine.low %v1383_v38, %v1393_v30  ;;  %v1416_v29 = vrot.slane %v1414_v46, 5  ;;  %v399_v33 = vld [vmem:[%s8469_s24 + $0x78] sm:$0xf]  ;;  %v8186_v40 = vld [vmem:[%s10590_s3 + $0xb0] sm:$0xff]   ;;  %7495 = vmatpush3.bf16.msra.mxu1 %v8182_v58 }
  0xc0   : > { %v1411_v16 = vor.u32 %v1410_v42, %v1406_v10  ;;  %v833_v61 = vsel %vm8497_vm5, %v658_v54, %v832_v25  ;;  %v9351_v18 = vsel %vm8900_vm13, %v6783_v19, %v3893_v49  ;;  %v9353_v5 = vrot.slane %v3893_v49, 4  ;;  %7496 = vmatprep.subr.bf16.mxu1 %v8186_v40 }
  0xc1   : > { %v1402_v13 = vrot.slane %v1401_v45, 4  ;;  %7668 = vmatprep.mubr.bf16.mxu0 %v6813_v52  ;;  %7461 = vmatmul.mubr.bf16.gmra.mrb[8].mxu1 %v6566_v57  ;;  %834 = vst [vmem:[#allocation2 + $0xbc] sm:$0x1] %v833_v61  ;;  %v10699_v50 = vshrl.u32 %v8888_v37, 16  ;;  %v10700_v44 = vshll.u32 %v8888_v37, 16  ;;  %v1428_v15 = vshll.u32 %v9364_v31, 16 }
  0xc2   : > { %v6682_v12 = vld [vmem:[#allocation2 + $0xb0] sm:$0x1]  ;;  %v1412_v42 = vrot.slane %v1411_v16, 4  ;;  %v10701_v45 = vshrl.u32 %v8896_v9, 16  ;;  %v1438_v54 = vshll.u32 %v9344_v3, 16  ;;  %v660_v25 = vshrl.u32 %v399_v33, 16 }
  0xc3   : > { %v1407_v43 = vsel %vm8526_vm10, %v1402_v13, %v1406_v10  ;;  %v1421_v38 = vrot.slane %v10699_v50, 4  ;;  %v1424_v34 = vrot.slane %v10700_v44, 5  ;;  %v3889_v19 = vrot.slane %v6682_v12, 5  ;;  %v835_v13 = vld [vmem:[#allocation2 + $0xc0] sm:$0xf]  ;;  %v8190_v9 = vld [vmem:[%s10590_s3 + $0xb8] sm:$0xff]   ;;  %7497 = vmatpush3.bf16.msra.mxu1 %v8186_v40 }
  0xc4   : > { %v1434_v46 = vrot.slane %v10701_v45, 4  ;;  %v1430_v30 = vrot.slane %v1428_v15, 5  ;;  %v663_v10 = vshll.u32 %v399_v33, 16  ;;  %v1417_v37 = vsel %vm8526_vm10, %v1412_v42, %v1416_v29  ;;  %v9379_v15 = vld [vmem:[#allocation2 + $0x68] sm:$0x1]  ;;  %7498 = vmatprep.subr.bf16.mxu1 %v8190_v9 }
  0xc5   : > { %v1425_v2 = vor.u32 %v1424_v34, %v1421_v38  ;;  %v1440_v49 = vrot.slane %v1438_v54, 5  ;;  %v662_v52 = vrot.slane %v660_v25, 7  ;;  %v668_v57 = vshrl.u32 %v400_v6, 16  ;;  %v839_v34 = vld [vmem:[#allocation2 + $0xc8] sm:$0x1] }
  0xc6   : > { %v3890_v16 = vsel %vm8900_vm13, %v3888_v53, %v3889_v19  ;;  %v6567_v61 = vcombine.low %v1407_v43, %v1417_v37  ;;  %v1435_v38 = vor.u32 %v1434_v46, %v1430_v30  ;;  %v671_v45 = vshll.u32 %v400_v6, 16  ;;  %v9395_v6 = vld [vmem:[%s10590_s3 + $0xc0] sm:$0xff]  }
  0xc7   : > { %v1426_v50 = vrot.slane %v1425_v2, 4  ;;  %v6814_v58 = vcombine.low %v9321_v22, %v3890_v16  ;;  %v665_v33 = vor.u32 %v663_v10, %v662_v52  ;;  %v666_v44 = vrot.slane %v662_v52, 4  ;;  %v9389_v2 = vld [vmem:[#allocation2 + $0x64] sm:$0xf]  ;;  %7499 = vmatpush3.bf16.msra.mxu1 %v8190_v9 }
  0xc8   : > { %v670_v29 = vrot.slane %v668_v57, 7  ;;  %7464 = vmatprep.mubr.bf16.mxu1 %v6567_v61  ;;  %v1436_v42 = vrot.slane %v1435_v38, 4  ;;  %v10702_v54 = vshrl.u32 %v8934_v62, 16  ;;  %v6685_v43 = vld [vmem:[#allocation2 + $0xbc] sm:$0x1]  ;;  %v10703_v25 = vshll.u32 %v8934_v62, 16  ;;  %7532 = vmatprep.subr.bf16.mxu1 %v9395_v6 }
  0xc9   : > { %v1431_v12 = vsel %vm8526_vm10, %v1426_v50, %v1430_v30  ;;  %7669 = vmatmul.mubr.bf16.gmra.mrb[24].mxu0 %v6814_v58  ;;  %v836_v22 = vsel %vm8513_vm9, %v665_v33, %v835_v13  ;;  %v1452_v10 = vshll.u32 %v9389_v2, 16  ;;  %v3896_v40 = vrot.slane %v6685_v43, 5 }
  0xca   : > { %v1445_v53 = vrot.slane %v10702_v54, 4  ;;  %v675_v46 = vrot.slane %v670_v29, 4  ;;  %v1448_v19 = vrot.slane %v10703_v25, 5  ;;  %v1441_v30 = vsel %vm8526_vm10, %v1436_v42, %v1440_v49  ;;  %837 = vst [vmem:[#allocation2 + $0xc0] sm:$0xf] %v836_v22 }
  0xcb   : > { %v673_v37 = vor.u32 %v671_v45, %v670_v29  ;;  %v1458_v62 = vrot.slane %v10704_v39, 4  ;;  %v6568_v52 = vcombine.low %v1431_v12, %v1441_v30  ;;  %v1454_v16 = vrot.slane %v1452_v10, 5  ;;  %v9412_v29 = vld [vmem:[#allocation2 + $0x18] sm:$0xf] }
  0xcc   : > { %v840_v57 = vsel %vm8497_vm5, %v675_v46, %v839_v34  ;;  %v1449_v13 = vor.u32 %v1448_v19, %v1445_v53  ;;  %v1590_v61 = vshll.u32 %v9150_v32, 16  ;;  %v3897_v50 = vsel %vm8900_vm13, %v9353_v5, %v3896_v40  ;;  %v9414_v34 = vld [vmem:[#allocation2 + $0x74] sm:$0x1]  ;;  %v9417_v5 = vld [vmem:[#allocation2 + $0x1c] sm:$0xf] }
  0xcd   : > { %v674_v49 = vsel %vm8506_vm6, %v666_v44, %v673_v37  ;;  %841 = vst [vmem:[#allocation2 + $0xc8] sm:$0x1] %v840_v57  ;;  %v1462_v38 = vshll.u32 %v9379_v15, 16  ;;  %v6815_v11 = vcombine.low %v9351_v18, %v3897_v50  ;;  %7465 = vmatmul.mubr.bf16.gmra.mrb[12].mxu1 %v6568_v52  ;;  %v1459_v33 = vor.u32 %v1458_v62, %v1454_v16  ;;  %v9434_v37 = vld [vmem:[#allocation2 + $0x80] sm:$0x1] }
  0xce   : > { %838 = vst [vmem:[#allocation2 + $0xc4] sm:$0xf] %v674_v49  ;;  %v1450_v58 = vrot.slane %v1449_v13, 4  ;;  %v10705_v44 = vshrl.u32 %v8998_v63, 16  ;;  %v10706_v42 = vshll.u32 %v8998_v63, 16  ;;  %v1476_v54 = vshll.u32 %v9001_v55, 16 }
  0xcf   : > { %v1464_v35 = vrot.slane %v1462_v38, 5  ;;  %7672 = vmatprep.mubr.bf16.mxu0 %v6815_v11  ;;  %v1460_v12 = vrot.slane %v1459_v33, 4  ;;  %v1611_v53 = vshrl.u32 %v9184_v36, 16  ;;  %v1614_v43 = vshll.u32 %v9184_v36, 16 }
  0xd0   : > { %v1469_v9 = vrot.slane %v10705_v44, 4  ;;  %v1455_v18 = vsel %vm8526_vm10, %v1450_v58, %v1454_v16  ;;  %v1472_v45 = vrot.slane %v10706_v42, 5  ;;  %v10707_v46 = vshrl.u32 %v9001_v55, 16 }
  0xd1   : > { %v1486_v25 = vshll.u32 %v9414_v34, 16  ;;  %v1624_v19 = vshrl.u32 %v9186_v47, 16  ;;  %v6686_v10 = vld [vmem:[#allocation2 + $0xc0] sm:$0xf]  ;;  %v1465_v40 = vsel %vm8526_vm10, %v1460_v12, %v1464_v35  ;;  %v1478_v63 = vrot.slane %v1476_v54, 5 }
  0xd2   : > { %v1482_v22 = vrot.slane %v10707_v46, 4  ;;  %v1473_v30 = vor.u32 %v1472_v45, %v1469_v9  ;;  %v6784_v39 = vrot.slane %v6686_v10, 9  ;;  %v6569_v62 = vcombine.low %v1455_v18, %v1465_v40 }
  0xd3   : > { %v6889_v52 = vcombine.low %v9412_v29, %v9417_v5  ;;  %v1488_v57 = vrot.slane %v1486_v25, 5  ;;  %v10708_v50 = vshrl.u32 %v9023_v24, 16  ;;  %v10709_v38 = vshll.u32 %v9023_v24, 16  ;;  %v9451_v25 = vld [vmem:[#allocation2 + $0x24] sm:$0xf] }
  0xd4   : > { %v6688_v55 = vld [vmem:[#allocation2 + $0xc8] sm:$0x1]  ;;  %v1474_v13 = vrot.slane %v1473_v30, 4  ;;  %v1483_v16 = vor.u32 %v1482_v22, %v1478_v63  ;;  %7468 = vmatprep.mubr.bf16.mxu1 %v6569_v62  ;;  %v1500_v35 = vshll.u32 %v9035_v17, 16  ;;  %v10710_v44 = vshrl.u32 %v9035_v17, 16 }
  0xd5   : > { %v1493_v49 = vrot.slane %v10708_v50, 4  ;;  %v1496_v11 = vrot.slane %v10709_v38, 5  ;;  %v6687_v58 = vld [vmem:[#allocation2 + $0xc4] sm:$0xf]  ;;  %v3903_v33 = vrot.slane %v6688_v55, 5  ;;  %v1510_v18 = vshll.u32 %v9434_v37, 16 }
  0xd6   : > { %v1506_v9 = vrot.slane %v10710_v44, 4  ;;  %v3900_v12 = vrot.slane %v6687_v58, 5  ;;  %v1479_v42 = vsel %vm8526_vm10, %v1474_v13, %v1478_v63  ;;  %v1484_v45 = vrot.slane %v1483_v16, 4  ;;  %v9457_v55 = vld [vmem:[#allocation2 + $0x28] sm:$0xf] }
  0xd7   : > { %v1497_v54 = vor.u32 %v1496_v11, %v1493_v49  ;;  %v1502_v10 = vrot.slane %v1500_v35, 5  ;;  %v1512_v50 = vrot.slane %v1510_v18, 5  ;;  %v9460_v49 = vld [vmem:[#allocation2 + $0x8c] sm:$0x1]  ;;  %v9466_v11 = vld [vmem:[#allocation2 + $0x30] sm:$0xf] }
  0xd8   : > { %v3901_v17 = vsel %vm8900_vm13, %v6784_v39, %v3900_v12  ;;  %v3902_v40 = vrot.slane %v3900_v12, 4  ;;  %v1489_v30 = vsel %vm8526_vm10, %v1484_v45, %v1488_v57  ;;  %v10711_v57 = vshrl.u32 %v9048_v21, 16  ;;  %v9472_v18 = vld [vmem:[#allocation2 + $0x34] sm:$0xf] }
  0xd9   : > { %v1498_v62 = vrot.slane %v1497_v54, 4  ;;  %v6570_v63 = vcombine.low %v1479_v42, %v1489_v30  ;;  %v1507_v16 = vor.u32 %v1506_v9, %v1502_v10  ;;  %v10712_v35 = vshll.u32 %v9048_v21, 16  ;;  %v9477_v54 = vld [vmem:[#allocation2 + $0x98] sm:$0x1] }
  0xda   : > { %v3904_v38 = vsel %vm8900_vm13, %v3902_v40, %v3903_v33  ;;  %v1517_v58 = vrot.slane %v10711_v57, 4  ;;  %v1524_v42 = vshll.u32 %v9050_v0, 16  ;;  %v10713_v33 = vshrl.u32 %v9050_v0, 16  ;;  %v9490_v40 = vld [vmem:[#allocation2 + $0x40] sm:$0xf] }
  0xdb   : > { %v1503_v39 = vsel %vm8526_vm10, %v1498_v62, %v1502_v10  ;;  %v1520_v44 = vrot.slane %v10712_v35, 5  ;;  %v6816_v12 = vcombine.low %v3901_v17, %v3904_v38  ;;  %7469 = vmatmul.mubr.bf16.gmra.mrb[16].mxu1 %v6570_v63  ;;  %v1508_v9 = vrot.slane %v1507_v16, 4  ;;  %v9486_v35 = vld [vmem:[#allocation2 + $0x3c] sm:$0xf] }
  0xdc   : > { %v1530_v45 = vrot.slane %v10713_v33, 4  ;;  %v1534_v21 = vshll.u32 %v9460_v49, 16  ;;  %v1526_v16 = vrot.slane %v1524_v42, 5  ;;  %v10714_v33 = vshrl.u32 %v9090_v7, 16 }
  0xdd   : > { %v1521_v30 = vor.u32 %v1520_v44, %v1517_v58  ;;  %7673 = vmatmul.mubr.bf16.gmra.mrb[28].mxu0 %v6816_v12  ;;  %v1513_v17 = vsel %vm8526_vm10, %v1508_v9, %v1512_v50  ;;  %v10715_v12 = vshll.u32 %v9090_v7, 16  ;;  %v1548_v9 = vshll.u32 %v9100_v8, 16 }
  0xde   : > { %7692 = vmatprep.mubr.bf16.mxu0 %v6889_v52  ;;  %v6571_v0 = vcombine.low %v1503_v39, %v1513_v17  ;;  %v1536_v57 = vrot.slane %v1534_v21, 5  ;;  %v1541_v58 = vrot.slane %v10714_v33, 4  ;;  %v1531_v44 = vor.u32 %v1530_v45, %v1526_v16 }
  0xdf   : > { %v1522_v38 = vrot.slane %v1521_v30, 4  ;;  %v1544_v50 = vrot.slane %v10715_v12, 5  ;;  %v10716_v63 = vshrl.u32 %v9100_v8, 16  ;;  %v6890_v52 = vcombine.low %v9451_v25, %v9457_v55  ;;  %v9505_v12 = vld [vmem:[#allocation2 + $0xa4] sm:$0x1] }
  0xe0   : > { %7472 = vmatprep.mubr.bf16.mxu1 %v6571_v0  ;;  %v6891_v39 = vcombine.low %v9466_v11, %v9472_v18  ;;  %v1558_v45 = vshll.u32 %v9477_v54, 16  ;;  %v1532_v21 = vrot.slane %v1531_v44, 4  ;;  %v1550_v33 = vrot.slane %v1548_v9, 5  ;;  %v9518_v44 = vld [vmem:[#allocation2 + $0x48] sm:$0xf] }
  0xe1   : > { %v1554_v42 = vrot.slane %v10716_v63, 4  ;;  %v1527_v7 = vsel %vm8526_vm10, %v1522_v38, %v1526_v16  ;;  %v1545_v17 = vor.u32 %v1544_v50, %v1541_v58  ;;  %v6892_v8 = vcombine.low %v9486_v35, %v9490_v40  ;;  %v8184_v63 = vld [vmem:[%s10590_s3 + $0x1c8] sm:$0xff]  }
  0xe2   : > { %v1560_v0 = vrot.slane %v1558_v45, 5  ;;  %v10717_v30 = vshrl.u32 %v9121_v26, 16  ;;  %v10718_v10 = vshll.u32 %v9121_v26, 16  ;;  %v1537_v16 = vsel %vm8526_vm10, %v1532_v21, %v1536_v57  ;;  %v9520_v50 = vld [vmem:[#allocation2 + $0x4c] sm:$0xf] }
  0xe3   : > { %v1546_v38 = vrot.slane %v1545_v17, 4  ;;  %v1555_v58 = vor.u32 %v1554_v42, %v1550_v33  ;;  %v1572_v9 = vshll.u32 %v9123_v59, 16  ;;  %v6572_v22 = vcombine.low %v1527_v7, %v1537_v16  ;;  %v9526_v26 = vld [vmem:[#allocation2 + $0xb0] sm:$0x1]  ;;  %v9538_v17 = vld [vmem:[#allocation2 + $0x54] sm:$0xf] }
  0xe4   : > { %v1565_v62 = vrot.slane %v10717_v30, 4  ;;  %v1568_v13 = vrot.slane %v10718_v10, 5  ;;  %v10719_v45 = vshrl.u32 %v9123_v59, 16  ;;  %v1582_v30 = vshll.u32 %v9505_v12, 16  ;;  %v8188_v7 = vld [vmem:[%s10590_s3 + $0x1d0] sm:$0xff]   ;;  %v10731_v59 = vld [vmem:[#allocation18_spill] sm:$0xff] }
  0xe5   : > { %7693 = vmatmul.mubr.bf16.vlgmr.msra.gmra.mrb[0].mxu0 %v6890_v52  ;;  %v1551_v57 = vsel %vm8526_vm10, %v1546_v38, %v1550_v33  ;;  %v1556_v42 = vrot.slane %v1555_v58, 4  ;;  %v1574_v21 = vrot.slane %v1572_v9, 5  ;;  %7473 = vmatmul.mubr.bf16.gmra.mrb[20].mxu1 %v6572_v22  ;;  %v9542_v58 = vld [vmem:[#allocation2 + $0x58] sm:$0xf]  ;;  %v1596_v22 = vshll.u32 %v9164_v20, 16 }
  0xe6   : > { %v1569_v24 = vor.u32 %v1568_v13, %v1565_v62  ;;  %v1578_v46 = vrot.slane %v10719_v45, 4  ;;  %7725 = vmatpush3.bf16.msra.mxu0 %v9161_v41  ;;  %7696 = vmatprep.mubr.bf16.mxu0 %v6891_v39  ;;  %v1584_v38 = vrot.slane %v1582_v30, 5  ;;  %v10720_v41 = vshrl.u32 %v9150_v32, 16  ;;  %v9617_v13 = vld [vmem:[#allocation2 + $0x88] sm:$0xf] }
  0xe7   : > { %7726 = vmatprep.subr.bf16.mxu0 %v8184_v63  ;;  %v1561_v33 = vsel %vm8526_vm10, %v1556_v42, %v1560_v0  ;;  %v6893_v45 = vcombine.low %v9518_v44, %v9520_v50  ;;  %v1606_v30 = vshll.u32 %v9526_v26, 16  ;;  %v9556_v42 = vld [vmem:[#allocation2 + $0xbc] sm:$0x1]  ;;  %10726 = vst [vmem:[#allocation7_spill] sm:$0xff] %v9617_v13 }
  0xe8   : > { %v1570_v52 = vrot.slane %v1569_v24, 4  ;;  %v1579_v16 = vor.u32 %v1578_v46, %v1574_v21  ;;  %v1589_v39 = vrot.slane %v10720_v41, 4  ;;  %v6573_v9 = vcombine.low %v1551_v57, %v1561_v33  ;;  %10721 = vst [vmem:[#allocation12_spill] sm:$0xff] %v9556_v42  ;;  %v9580_v57 = vld [vmem:[#allocation2 + $0x6c] sm:$0xf] }
  0xe9   : > { %v1592_v24 = vrot.slane %v1590_v61, 5  ;;  %v1602_v46 = vrot.slane %v1600_v56, 4  ;;  %v1598_v33 = vrot.slane %v1596_v22, 5  ;;  %v6894_v56 = vcombine.low %v9538_v17, %v9542_v58 }
  0xea   : > { %v1575_v62 = vsel %vm8526_vm10, %v1570_v52, %v1574_v21  ;;  %v1580_v0 = vrot.slane %v1579_v16, 4  ;;  %7727 = vmatpush3.bf16.msra.mxu0 %v8184_v63  ;;  %7476 = vmatprep.mubr.bf16.mxu1 %v6573_v9  ;;  %v8192_v21 = vld [vmem:[%s10590_s3 + $0x1d8] sm:$0xff]   ;;  %v1608_v52 = vrot.slane %v1606_v30, 5  ;;  %v9567_v63 = vld [vmem:[#allocation2 + $0x60] sm:$0xf]  ;;  %v1613_v16 = vrot.slane %v1611_v53, 4 }
  0xeb   : > { %v1593_v61 = vor.u32 %v1592_v24, %v1589_v39  ;;  %7728 = vmatprep.subr.bf16.mxu0 %v8188_v7  ;;  %v1603_v9 = vor.u32 %v1602_v46, %v1598_v33  ;;  %v9571_v24 = vld [vmem:[#allocation2 + $0x64] sm:$0xf]  ;;  %v1616_v22 = vrot.slane %v1614_v43, 5  ;;  %v1626_v30 = vrot.slane %v1624_v19, 4 }
  0xec   : > { %v1585_v20 = vsel %vm8526_vm10, %v1580_v0, %v1584_v38  ;;  %v1620_v0 = vshll.u32 %v9186_v47, 16  ;;  %v1630_v32 = vshll.u32 %v9556_v42, 16  ;;  %v6895_v47 = vcombine.low %v9567_v63, %v9571_v24  ;;  %v8200_v38 = vld [vmem:[%s10590_s3 + $0x1e8] sm:$0xff]  }
  0xed   : > { %v6574_v41 = vcombine.low %v1575_v62, %v1585_v20  ;;  %v1594_v39 = vrot.slane %v1593_v61, 4  ;;  %7697 = vmatmul.mubr.bf16.gmra.mrb[4].mxu0 %v6892_v8  ;;  %v1604_v43 = vrot.slane %v1603_v9, 4  ;;  %v1617_v8 = vor.u32 %v1616_v22, %v1613_v16  ;;  %v9585_v62 = vld [vmem:[#allocation2 + $0x70] sm:$0xf]  ;;  %v9600_v22 = vld [vmem:[#allocation2 + $0x7c] sm:$0xf] }
  0xee   : > { %7700 = vmatprep.mubr.bf16.mxu0 %v6893_v45  ;;  %7729 = vmatpush3.bf16.msra.mxu0 %v8188_v7  ;;  %v1622_v61 = vrot.slane %v1620_v0, 5  ;;  %v9591_v45 = vld [vmem:[#allocation2 + $0x78] sm:$0xf]  ;;  %v8196_v7 = vld [vmem:[%s10590_s3 + $0x1e0] sm:$0xff]   ;;  %v10723_v16 = vrot.slane %v8479_v14, 5  ;;  %10724 = vst [vmem:[#allocation8_spill] sm:$0xff] %v9600_v22 }
  0xef   : > { %v1599_v36 = vsel %vm8526_vm10, %v1594_v39, %v1598_v33  ;;  %7477 = vmatmul.mubr.bf16.gmra.mrb[24].mxu1 %v6574_v41  ;;  %7730 = vmatprep.subr.bf16.mxu0 %v8192_v21  ;;  %10722 = vst [vmem:[#allocation11_spill] sm:$0xff] %v9591_v45  ;;  %v1609_v33 = vsel %vm8526_vm10, %v1604_v43, %v1608_v52  ;;  %v1618_v20 = vrot.slane %v1617_v8, 4  ;;  %v8245_v39 = vld [vmem:[#allocation2 + $0x8] sm:$0x1]  ;;  %v1632_v53 = vrot.slane %v1630_v32, 5  ;;  %v10725_v8 = vld [vmem:[#allocation20_spill] sm:$0xff] }
  0xf0   : > { %v2043_v41 = vrot.slane %v10723_v16, 4  ;;  %v2044_v9 = vrot.slane %v8245_v39, 5  ;;  %v6575_v19 = vcombine.low %v1599_v36, %v1609_v33  ;;  %v1627_v46 = vor.u32 %v1626_v30, %v1622_v61  ;;  %v9612_v36 = vld [vmem:[#allocation2 + $0x84] sm:$0xf]  ;;  %v8246_v16 = vld [vmem:[#allocation2 + $0x14] sm:$0x1] }
  0xf1   : > { %v1623_v32 = vsel %vm8526_vm10, %v1618_v20, %v1622_v61  ;;  %v2051_v39 = vrot.slane %v8246_v16, 5  ;;  %v9626_v61 = vld [vmem:[#allocation2 + $0x94] sm:$0xf]  ;;  %v10729_v20 = vld [vmem:[#allocation13_spill] sm:$0xff]  ;;  %v2076_v42 = vrot.slane %v9300_v51, 5  ;;  %v2093_v51 = vrot.slane %v9344_v3, 5 }
  0xf2   : > { %7731 = vmatpush3.bf16.msra.mxu0 %v8192_v21  ;;  %v2045_v43 = vsel %vm8900_vm13, %v2043_v41, %v2044_v9  ;;  %7480 = vmatprep.mubr.bf16.mxu1 %v6575_v19  ;;  %v1628_v30 = vrot.slane %v1627_v46, 4  ;;  %v6897_v41 = vcombine.low %v9591_v45, %v9600_v22  ;;  %v9624_v9 = vld [vmem:[#allocation2 + $0x90] sm:$0xf]  ;;  %10728 = vst [vmem:[#allocation9_spill] sm:$0xff] %v9626_v61 }
  0xf3   : > { %v6617_v33 = vcombine.low %v10725_v8, %v2045_v43  ;;  %7732 = vmatprep.subr.bf16.mxu0 %v8196_v7  ;;  %10727 = vst [vmem:[#allocation6_spill] sm:$0xff] %v9624_v9  ;;  %v9633_v43 = vsel %vm8900_vm13, %v10729_v20, %v2051_v39  ;;  %v8247_v8 = vld [vmem:[#allocation2 + $0x18] sm:$0xf]  ;;  %v10730_v21 = vld [vmem:[#allocation19_spill] sm:$0xff]  ;;  %v10733_v39 = vld [vmem:[#allocation5_spill] sm:$0xff] }
  0xf4   : > { %v1633_v46 = vsel %vm8526_vm10, %v1628_v30, %v1632_v53  ;;  %v6587_v16 = vrot.slane %v8247_v8, 9  ;;  %v2055_v14 = vrot.slane %v10730_v21, 5  ;;  %v6618_v10 = vcombine.low %v10731_v59, %v9633_v43  ;;  %v9639_v53 = vld [vmem:[#allocation2 + $0x9c] sm:$0xf]  ;;  %v9641_v30 = vld [vmem:[#allocation2 + $0xa0] sm:$0xf] }
  0xf5   : > { %7701 = vmatmul.mubr.bf16.gmra.mrb[8].mxu0 %v6894_v56  ;;  %v6576_v0 = vcombine.low %v1623_v32, %v1633_v46  ;;  %v8248_v56 = vld [vmem:[#allocation2 + $0x20] sm:$0x1]  ;;  %v8204_v59 = vld [vmem:[%s10590_s3 + $0x1f0] sm:$0xff]   ;;  %v8249_v21 = vld [vmem:[#allocation2 + $0x24] sm:$0xf]  ;;  %v2062_v43 = vrot.slane %v9239_v23, 5 }
  0xf6   : > { %7704 = vmatprep.mubr.bf16.mxu0 %v6895_v47  ;;  %7733 = vmatpush3.bf16.msra.mxu0 %v8196_v7  ;;  %v2058_v52 = vrot.slane %v8248_v56, 5  ;;  %v2057_v32 = vrot.slane %v2055_v14, 4  ;;  %v6588_v46 = vrot.slane %v8249_v21, 9  ;;  %v10732_v8 = vld [vmem:[#allocation4_spill] sm:$0xff]  ;;  %v2056_v47 = vsel %vm8900_vm13, %v6587_v16, %v2055_v14  ;;  %v9661_v7 = vld [vmem:[#allocation2 + $0xac] sm:$0xf] }
  0xf7   : > { %7734 = vmatprep.subr.bf16.mxu0 %v8200_v38  ;;  %7481 = vmatmul.mubr.bf16.gmra.mrb[28].mxu1 %v6576_v0  ;;  %v2065_v56 = vrot.slane %v10732_v8, 5  ;;  %v9659_v0 = vld [vmem:[#allocation2 + $0xa8] sm:$0xf]  ;;  %v2064_v8 = vrot.slane %v2062_v43, 4  ;;  %v2069_v19 = vrot.slane %v10733_v39, 5  ;;  %v2072_v16 = vrot.slane %v9251_v27, 5 }
  0xf8   : > { %7500 = vmatprep.mubr.bf16.mxu1 %v6617_v33  ;;  %v2059_v23 = vsel %vm8900_vm13, %v2057_v32, %v2058_v52  ;;  %v8208_v52 = vld [vmem:[%s10590_s3 + $0x1f8] sm:$0xff]   ;;  %v9677_v32 = vsel %vm8900_vm13, %v6588_v46, %v2062_v43  ;;  %v8250_v33 = vld [vmem:[#allocation2 + $0x30] sm:$0xf]  ;;  %v9684_v20 = vld [vmem:[#allocation2 + $0xb4] sm:$0xf]  ;;  %v10734_v14 = vcombine.low %v9580_v57, %v9585_v62 }
  0xf9   : > { %v6589_v21 = vrot.slane %v8250_v33, 9  ;;  %v9686_v39 = vld [vmem:[#allocation2 + $0xb8] sm:$0xf]  ;;  %v6619_v22 = vcombine.low %v2056_v47, %v2059_v23  ;;  %v2071_v45 = vrot.slane %v2069_v19, 4  ;;  %v8251_v46 = vld [vmem:[#allocation2 + $0x3c] sm:$0xf] }
  0xfa   : > { %7735 = vmatpush3.bf16.msra.mxu0 %v8200_v38  ;;  %v9681_v38 = vsel %vm8900_vm13, %v2064_v8, %v2065_v56  ;;  %v6590_v43 = vrot.slane %v8251_v46, 9  ;;  %v8198_v56 = vld [vmem:[%s10590_s3 + $0xc8] sm:$0xff]   ;;  %v2078_v23 = vrot.slane %v2076_v42, 4  ;;  %v9707_v46 = vld [vmem:[%s10590_s3 + $0x200] sm:$0xff]  }
  0xfb   : > { %7736 = vmatprep.subr.bf16.mxu0 %v8204_v59  ;;  %v6620_v47 = vcombine.low %v9677_v32, %v9681_v38  ;;  %v2070_v8 = vsel %vm8900_vm13, %v6589_v21, %v2069_v19  ;;  %v2083_v32 = vrot.slane %v9329_v1, 5  ;;  %v8252_v19 = vld [vmem:[#allocation2 + $0x48] sm:$0xf]  ;;  %v8202_v1 = vld [vmem:[%s10590_s3 + $0xd0] sm:$0xff]   ;;  %v8254_v33 = vld [vmem:[#allocation2 + $0x60] sm:$0xf] }
  0xfc   : > { %v9719_v38 = vsel %vm8900_vm13, %v6590_v43, %v2076_v42  ;;  %v6591_v21 = vrot.slane %v8252_v19, 9  ;;  %v2090_v19 = vrot.slane %v9364_v31, 5  ;;  %v9759_v42 = vld [vmem:[#allocation2 + $0xcc] sm:$0xf] }
  0xfd   : > { %7705 = vmatmul.mubr.bf16.gmra.mrb[12].mxu0 %v10734_v14  ;;  %v2079_v14 = vrot.slane %v9284_v60, 5  ;;  %v2073_v60 = vsel %vm8900_vm13, %v2071_v45, %v2072_v16  ;;  %v2086_v45 = vrot.slane %v9314_v4, 5  ;;  %v9726_v16 = vld [vmem:[#allocation2 + $0xc0] sm:$0xf]  ;;  %v2085_v43 = vrot.slane %v2083_v32, 4 }
  0xfe   : > { %7708 = vmatprep.mubr.bf16.mxu0 %v6897_v41  ;;  %7737 = vmatpush3.bf16.msra.mxu0 %v8204_v59  ;;  %v9728_v41 = vld [vmem:[#allocation2 + $0xc4] sm:$0xf]  ;;  %v9752_v3 = vsel %vm8900_vm13, %v6591_v21, %v2083_v32  ;;  %v8206_v32 = vld [vmem:[%s10590_s3 + $0xd8] sm:$0xff]   ;;  %v2097_v21 = vrot.slane %v9389_v2, 5  ;;  %v4771_v59 = vshll.u32 %v9417_v5, 16 }
  0xff   : > { %7738 = vmatprep.subr.bf16.mxu0 %v8208_v52  ;;  %7501 = vmatmul.mubr.bf16.vlgmr.msra.gmra.mrb[0].mxu1 %v6618_v10  ;;  %v9723_v10 = vsel %vm8900_vm13, %v2078_v23, %v2079_v14  ;;  %v6621_v14 = vcombine.low %v2070_v8, %v2073_v60  ;;  %v8253_v23 = vld [vmem:[#allocation2 + $0x54] sm:$0xf]  ;;  %v10736_v8 = vcombine.low %v9612_v36, %v9617_v13  ;;  %v8256_v13 = vld [vmem:[#allocation2 + $0x70] sm:$0xf] }
 0x100   : > { %7533 = vmatpush3.bf16.msra.mxu1 %v9395_v6  ;;  %7504 = vmatprep.mubr.bf16.mxu1 %v6619_v22  ;;  %v6592_v4 = vrot.slane %v8253_v23, 9  ;;  %v9756_v31 = vsel %vm8900_vm13, %v2085_v43, %v2086_v45  ;;  %v2092_v23 = vrot.slane %v2090_v19, 4  ;;  %v9761_v22 = vld [vmem:[#allocation2 + $0xd0] sm:$0xf]  ;;  %v10737_v6 = vcombine.low %v9624_v9, %v9626_v61  ;;  %v8255_v61 = vld [vmem:[#allocation2 + $0x6c] sm:$0xf] }
 0x101   : > { %7534 = vmatprep.subr.bf16.mxu1 %v8198_v56  ;;  %v10738_v45 = vshrl.u32 %v9412_v29, 16  ;;  %v6594_v9 = vrot.slane %v8255_v61, 9 }
 0x102   : > { %7739 = vmatpush3.bf16.msra.mxu0 %v8208_v52  ;;  %v9745_v52 = vld [vmem:[#allocation2 + $0x20] sm:$0x1] }
 0x103   : > { %7772 = vmatprep.subr.bf16.mxu0 %v9707_v46  ;;  %10735 = vst [vmem:[#allocation10_spill] sm:$0xff] %v9745_v52  ;;  %v4764_v43 = vrot.slane %v10738_v45, 4  ;;  %v4781_v27 = vshll.u32 %v9745_v52, 16  ;;  %v6593_v45 = vrot.slane %v8254_v33, 9  ;;  %v9796_v33 = vld [vmem:[#allocation2 + $0x2c] sm:$0x1] }
 0x104   : > { %7535 = vmatpush3.bf16.msra.mxu1 %v8198_v56  ;;  %v9768_v56 = vsel %vm8900_vm13, %v6592_v4, %v2090_v19  ;;  %v10740_v4 = vshrl.u32 %v9417_v5, 16  ;;  %v2104_v5 = vrot.slane %v8256_v13, 5 }
 0x105   : > { %7709 = vmatmul.mubr.bf16.gmra.mrb[16].mxu0 %v10736_v8  ;;  %7536 = vmatprep.subr.bf16.mxu1 %v8202_v1  ;;  %v10739_v8 = vshll.u32 %v9412_v29, 16  ;;  %v2100_v29 = vrot.slane %v9379_v15, 5  ;;  %v8209_v15 = vld [vmem:[%s10590_s3 + $0xe0] sm:$0xff]  }
 0x106   : > { %7712 = vmatprep.mubr.bf16.mxu0 %v10737_v6  ;;  %v9780_v6 = vsel %vm8900_vm13, %v2092_v23, %v2093_v51  ;;  %v4777_v19 = vrot.slane %v10740_v4, 4  ;;  %v2099_v51 = vrot.slane %v2097_v21, 4  ;;  %v4773_v23 = vrot.slane %v4771_v59, 5 }
 0x107   : > { %v4767_v60 = vrot.slane %v10739_v8, 5  ;;  %7505 = vmatmul.mubr.bf16.gmra.mrb[4].mxu1 %v6620_v47  ;;  %v6623_v4 = vcombine.low %v9752_v3, %v9756_v31  ;;  %v10741_v59 = vshrl.u32 %v9451_v25, 16  ;;  %v2106_v13 = vrot.slane %v2104_v5, 4 }
 0x108   : > { %7508 = vmatprep.mubr.bf16.mxu1 %v6621_v14  ;;  %7537 = vmatpush3.bf16.msra.mxu1 %v8202_v1  ;;  %v4778_v61 = vor.u32 %v4777_v19, %v4773_v23  ;;  %v4783_v14 = vrot.slane %v4781_v27, 5  ;;  %v9803_v3 = vsel %vm8900_vm13, %v6593_v45, %v2097_v21  ;;  %v10742_v31 = vshll.u32 %v9451_v25, 16 }
 0x109   : > { %v4768_v8 = vor.u32 %v4767_v60, %v4764_v43  ;;  %7538 = vmatprep.subr.bf16.mxu1 %v8206_v32  ;;  %v4788_v1 = vrot.slane %v10741_v59, 4  ;;  %v2107_v60 = vrot.slane %v9414_v34, 5  ;;  %v10743_v47 = vshrl.u32 %v9457_v55, 16 }
 0x10a   : > { %v4791_v43 = vrot.slane %v10742_v31, 5  ;;  %v10744_v59 = vcombine.low %v9639_v53, %v9641_v30  ;;  %v9815_v34 = vsel %vm8900_vm13, %v2099_v51, %v2100_v29  ;;  %v4779_v27 = vrot.slane %v4778_v61, 4  ;;  %v8257_v29 = vld [vmem:[#allocation2 + $0x7c] sm:$0xf]  ;;  %v8258_v61 = vld [vmem:[#allocation2 + $0x78] sm:$0xf] }
 0x10b   : > { %v4769_v2 = vrot.slane %v4768_v8, 4  ;;  %v4795_v8 = vshll.u32 %v9457_v55, 16  ;;  %v4801_v52 = vrot.slane %v10743_v47, 4  ;;  %v9819_v21 = vsel %vm8900_vm13, %v6594_v9, %v2104_v5  ;;  %v8211_v9 = vld [vmem:[%s10590_s3 + $0xe8] sm:$0xff]  }
 0x10c   : > { %7539 = vmatpush3.bf16.msra.mxu1 %v8206_v32  ;;  %v4805_v25 = vshll.u32 %v9796_v33, 16  ;;  %v10745_v55 = vcombine.low %v9659_v0, %v9661_v7  ;;  %v4792_v32 = vor.u32 %v4791_v43, %v4788_v1  ;;  %v2111_v51 = vrot.slane %v8257_v29, 5 }
 0x10d   : > { %7713 = vmatmul.mubr.bf16.gmra.mrb[20].mxu0 %v10744_v59  ;;  %v4774_v19 = vsel %vm8526_vm10, %v4769_v2, %v4773_v23  ;;  %7540 = vmatprep.subr.bf16.mxu1 %v8209_v15  ;;  %v9827_v45 = vrot.slane %v4795_v8, 5  ;;  %v4784_v5 = vsel %vm8526_vm10, %v4779_v27, %v4783_v14  ;;  %v9836_v47 = vsel %vm8900_vm13, %v2106_v13, %v2107_v60  ;;  %v9849_v27 = vld [vmem:[#allocation2 + $0x38] sm:$0x1] }
 0x10e   : > { %7716 = vmatprep.mubr.bf16.mxu0 %v10745_v55  ;;  %v6595_v31 = vrot.slane %v8258_v61, 9  ;;  %v10746_v2 = vshrl.u32 %v9466_v11, 16  ;;  %v10747_v1 = vcombine.low %v9719_v38, %v9723_v10  ;;  %v9843_v43 = vrot.slane %v4792_v32, 4  ;;  %v8259_v61 = vld [vmem:[#allocation2 + $0x88] sm:$0xf] }
 0x10f   : > { %v4802_v8 = vor.u32 %v4801_v52, %v9827_v45  ;;  %v9846_v59 = vrot.slane %v4805_v25, 5  ;;  %v2114_v14 = vrot.slane %v9434_v37, 5  ;;  %v2113_v13 = vrot.slane %v2111_v51, 4 }
 0x110   : > { %v4812_v23 = vrot.slane %v10746_v2, 4  ;;  %7509 = vmatmul.mubr.bf16.gmra.mrb[8].mxu1 %v10747_v1  ;;  %v10748_v60 = vshll.u32 %v9466_v11, 16  ;;  %v4819_v29 = vshll.u32 %v9472_v18, 16  ;;  %v10749_v38 = vshrl.u32 %v9472_v18, 16  ;;  %v8213_v11 = vld [vmem:[%s10590_s3 + $0xf0] sm:$0xff]  }
 0x111   : > { %7512 = vmatprep.mubr.bf16.mxu1 %v6623_v4  ;;  %7541 = vmatpush3.bf16.msra.mxu1 %v8209_v15  ;;  %v6625_v52 = vcombine.low %v9803_v3, %v9815_v34  ;;  %v9858_v25 = vcombine.low %v4774_v19, %v4784_v5  ;;  %v6626_v37 = vcombine.low %v9819_v21, %v9836_v47  ;;  %v4803_v32 = vrot.slane %v4802_v8, 4  ;;  %v8260_v5 = vld [vmem:[#allocation2 + $0x84] sm:$0xf] }
 0x112   : > { %v4815_v55 = vrot.slane %v10748_v60, 5  ;;  %v4825_v10 = vrot.slane %v10749_v38, 4  ;;  %7542 = vmatprep.subr.bf16.mxu1 %v8211_v9  ;;  %v9865_v15 = vrot.slane %v4819_v29, 5  ;;  %v4829_v18 = vshll.u32 %v9849_v27, 16  ;;  %v9880_v1 = vld [vmem:[#allocation2 + $0x44] sm:$0x1] }
 0x113   : > { %v2118_v2 = vrot.slane %v8259_v61, 5  ;;  %v4798_v3 = vsel %vm8526_vm10, %v9843_v43, %v9827_v45  ;;  %v9874_v34 = vsel %vm8900_vm13, %v6595_v31, %v2111_v51  ;;  %v9878_v19 = vsel %vm8900_vm13, %v2113_v13, %v2114_v14 }
 0x114   : > { %v4816_v4 = vor.u32 %v4815_v55, %v4812_v23  ;;  %v6596_v23 = vrot.slane %v8260_v5, 9  ;;  %v10750_v8 = vcombine.low %v9684_v20, %v9686_v39  ;;  %v4808_v45 = vsel %vm8526_vm10, %v4803_v32, %v9846_v59  ;;  %v8215_v59 = vld [vmem:[%s10590_s3 + $0xf8] sm:$0xff]  }
 0x115   : > { %v4826_v51 = vor.u32 %v4825_v10, %v9865_v15  ;;  %v2121_v31 = vrot.slane %v9460_v49, 5  ;;  %7543 = vmatpush3.bf16.msra.mxu1 %v8211_v9  ;;  %v10751_v14 = vcombine.low %v9726_v16, %v9728_v41  ;;  %v2120_v13 = vrot.slane %v2118_v2, 4 }
 0x116   : > { %7717 = vmatmul.mubr.bf16.gmra.mrb[24].mxu0 %v10750_v8  ;;  %v4817_v43 = vrot.slane %v4816_v4, 4  ;;  %v10752_v60 = vshrl.u32 %v9486_v35, 16  ;;  %v10753_v29 = vshll.u32 %v9486_v35, 16  ;;  %v4843_v61 = vshll.u32 %v9490_v40, 16  ;;  %7544 = vmatprep.subr.bf16.mxu1 %v8213_v11 }
 0x117   : > { %7720 = vmatprep.mubr.bf16.mxu0 %v10751_v14  ;;  %v4827_v49 = vrot.slane %v4826_v51, 4  ;;  %v4831_v9 = vrot.slane %v4829_v18, 5  ;;  %v10754_v10 = vshrl.u32 %v9490_v40, 16  ;;  %v4853_v4 = vshll.u32 %v9880_v1, 16 }
 0x118   : > { %v4836_v55 = vrot.slane %v10752_v60, 4  ;;  %v4839_v38 = vrot.slane %v10753_v29, 5  ;;  %v10755_v5 = vcombine.low %v9768_v56, %v9780_v6  ;;  %v6627_v35 = vcombine.low %v9874_v34, %v9878_v19  ;;  %v8261_v60 = vld [vmem:[#allocation2 + $0x90] sm:$0xf]  ;;  %v8262_v6 = vld [vmem:[#allocation2 + $0x94] sm:$0xf] }
 0x119   : > { %v4849_v32 = vrot.slane %v10754_v10, 4  ;;  %v4845_v14 = vrot.slane %v4843_v61, 5  ;;  %v6597_v29 = vrot.slane %v8261_v60, 9  ;;  %v4822_v18 = vsel %vm8526_vm10, %v4817_v43, %v9865_v15  ;;  %7545 = vmatpush3.bf16.msra.mxu1 %v8213_v11 }
 0x11a   : > { %7513 = vmatmul.mubr.bf16.gmra.mrb[12].mxu1 %v10755_v5  ;;  %v4840_v8 = vor.u32 %v4839_v38, %v4836_v55  ;;  %v9914_v40 = vsel %vm8900_vm13, %v6596_v23, %v2118_v2  ;;  %v9918_v56 = vsel %vm8900_vm13, %v2120_v13, %v2121_v31  ;;  %v2125_v51 = vrot.slane %v8262_v6, 5  ;;  %v9921_v38 = vld [vmem:[#allocation2 + $0x50] sm:$0x1]  ;;  %7546 = vmatprep.subr.bf16.mxu1 %v8215_v59 }
 0x11b   : > { %7516 = vmatprep.mubr.bf16.mxu1 %v6625_v52  ;;  %v4850_v19 = vor.u32 %v4849_v32, %v4845_v14  ;;  %v4855_v55 = vrot.slane %v4853_v4, 5  ;;  %v2128_v52 = vrot.slane %v9477_v54, 5  ;;  %v4832_v15 = vsel %vm8526_vm10, %v4827_v49, %v4831_v9 }
 0x11c   : > { %v4841_v34 = vrot.slane %v4840_v8, 4  ;;  %v2127_v2 = vrot.slane %v2125_v51, 4  ;;  %v10756_v23 = vshrl.u32 %v9518_v44, 16  ;;  %v10757_v31 = vshll.u32 %v9518_v44, 16 }
 0x11d   : > { %v4851_v61 = vrot.slane %v4850_v19, 4  ;;  %v9931_v11 = vsel %vm8900_vm13, %v6597_v29, %v2125_v51  ;;  %v4867_v54 = vshll.u32 %v9520_v50, 16  ;;  %v10758_v10 = vshrl.u32 %v9520_v50, 16  ;;  %7547 = vmatpush3.bf16.msra.mxu1 %v8215_v59  ;;  %v8263_v29 = vld [vmem:[#allocation2 + $0x9c] sm:$0xf] }
 0x11e   : > { %v4860_v43 = vrot.slane %v10756_v23, 4  ;;  %v4863_v13 = vrot.slane %v10757_v31, 5  ;;  %v10759_v49 = vcombine.low %v9759_v42, %v9761_v22  ;;  %v6930_v9 = vcombine.low %v4798_v3, %v4808_v45  ;;  %v9952_v3 = vld [vmem:[%s10590_s3 + $0x100] sm:$0xff]  }
 0x11f   : > { %v4873_v32 = vrot.slane %v10758_v10, 4  ;;  %v9941_v4 = vsel %vm8900_vm13, %v2127_v2, %v2128_v52  ;;  %v4877_v5 = vshll.u32 %v9921_v38, 16  ;;  %v4846_v8 = vsel %vm8526_vm10, %v4841_v34, %v4845_v14  ;;  %7820 = vmatprep.subr.bf16.mxu1 %v9952_v3  ;;  %v8265_v14 = vld [vmem:[#allocation2 + $0xa0] sm:$0xf]  ;;  %v9959_v34 = vld [vmem:[#allocation2 + $0x5c] sm:$0x1] }
 0x120   : > { %7721 = vmatmul.mubr.bf16.gmra.mrb[28].mxu0 %v10759_v49  ;;  %v4864_v44 = vor.u32 %v4863_v13, %v4860_v43  ;;  %v4856_v50 = vsel %vm8526_vm10, %v4851_v61, %v4855_v55  ;;  %v4869_v60 = vrot.slane %v4867_v54, 5  ;;  %v6598_v6 = vrot.slane %v8263_v29, 9  ;;  %v8266_v54 = vld [vmem:[#allocation2 + $0xac] sm:$0xf]  ;;  %v8267_v49 = vld [vmem:[#allocation2 + $0xa8] sm:$0xf] }
 0x121   : > { %7740 = vmatprep.mubr.bf16.mxu0 %v9858_v25  ;;  %v6931_v45 = vcombine.low %v4822_v18, %v4832_v15  ;;  %v6628_v25 = vcombine.low %v9914_v40, %v9918_v56  ;;  %v6629_v59 = vcombine.low %v9931_v11, %v9941_v4  ;;  %v2132_v51 = vrot.slane %v8265_v14, 5 }
 0x122   : > { %7517 = vmatmul.mubr.bf16.gmra.mrb[16].mxu1 %v6626_v37  ;;  %v4865_v19 = vrot.slane %v4864_v44, 4  ;;  %v4874_v55 = vor.u32 %v4873_v32, %v4869_v60  ;;  %v4879_v52 = vrot.slane %v4877_v5, 5  ;;  %v10760_v2 = vshrl.u32 %v9538_v17, 16 }
 0x123   : > { %7520 = vmatprep.mubr.bf16.mxu1 %v6627_v35  ;;  %v9966_v15 = vcombine.low %v4846_v8, %v4856_v50  ;;  %v10761_v40 = vshll.u32 %v9538_v17, 16  ;;  %v4891_v23 = vshll.u32 %v9542_v58, 16  ;;  %v10762_v43 = vshrl.u32 %v9542_v58, 16  ;;  %v8212_v35 = vld [vmem:[%s10590_s3 + $0x208] sm:$0xff]  }
 0x124   : > { %v4884_v18 = vrot.slane %v10760_v2, 4  ;;  %v4875_v13 = vrot.slane %v4874_v55, 4  ;;  %v9975_v21 = vsel %vm8900_vm13, %v6598_v6, %v2132_v51  ;;  %v2135_v47 = vrot.slane %v9505_v12, 5  ;;  %v9986_v12 = vld [vmem:[#allocation2 + $0x68] sm:$0x1] }
 0x125   : > { %v4887_v56 = vrot.slane %v10761_v40, 5  ;;  %v4897_v31 = vrot.slane %v10762_v43, 4  ;;  %v4901_v37 = vshll.u32 %v9959_v34, 16  ;;  %v2134_v17 = vrot.slane %v2132_v51, 4 }
 0x126   : > { %v4893_v11 = vrot.slane %v4891_v23, 5  ;;  %v2139_v10 = vrot.slane %v8266_v54, 5  ;;  %v4870_v58 = vsel %vm8526_vm10, %v4865_v19, %v4869_v60  ;;  %v4880_v32 = vsel %vm8526_vm10, %v4875_v13, %v4879_v52  ;;  %v8269_v13 = vld [vmem:[#allocation2 + $0xb4] sm:$0xf]  ;;  %v10766_v54 = vld [vmem:[#allocation12_spill] sm:$0xff] }
 0x127   : > { %v4888_v61 = vor.u32 %v4887_v56, %v4884_v18  ;;  %v6599_v4 = vrot.slane %v8267_v49, 9  ;;  %v10763_v44 = vshrl.u32 %v9567_v63, 16  ;;  %v4903_v29 = vrot.slane %v4901_v37, 5 }
 0x128   : > { %7741 = vmatmul.mubr.bf16.vlgmr.msra.gmra.mrb[0].mxu0 %v6930_v9  ;;  %v4898_v50 = vor.u32 %v4897_v31, %v4893_v11  ;;  %v2142_v6 = vrot.slane %v9526_v26, 5  ;;  %v2141_v60 = vrot.slane %v2139_v10, 4  ;;  %v10764_v14 = vshll.u32 %v9567_v63, 16  ;;  %v8214_v26 = vld [vmem:[%s10590_s3 + $0x210] sm:$0xff]  }
 0x129   : > { %v4908_v5 = vrot.slane %v10763_v44, 4  ;;  %v4889_v8 = vrot.slane %v4888_v61, 4  ;;  %7773 = vmatpush3.bf16.msra.mxu0 %v9707_v46  ;;  %7744 = vmatprep.mubr.bf16.mxu0 %v6931_v45  ;;  %v4915_v19 = vshll.u32 %v9571_v24, 16  ;;  %v10765_v55 = vshrl.u32 %v9571_v24, 16  ;;  %v8268_v24 = vld [vmem:[#allocation2 + $0xb8] sm:$0xf] }
 0x12a   : > { %v4911_v51 = vrot.slane %v10764_v14, 5  ;;  %7774 = vmatprep.subr.bf16.mxu0 %v8212_v35  ;;  %v6933_v2 = vcombine.low %v4870_v58, %v4880_v32  ;;  %v2136_v9 = vsel %vm8900_vm13, %v2134_v17, %v2135_v47  ;;  %v4899_v18 = vrot.slane %v4898_v50, 4  ;;  %7521 = vmatmul.mubr.bf16.gmra.mrb[20].mxu1 %v6628_v25  ;;  %v10011_v25 = vld [vmem:[#allocation2 + $0x74] sm:$0x1]  ;;  %v8216_v44 = vld [vmem:[%s10590_s3 + $0x218] sm:$0xff]  }
 0x12b   : > { %v4921_v52 = vrot.slane %v10765_v55, 4  ;;  %v4925_v46 = vshll.u32 %v9986_v12, 16  ;;  %v2140_v63 = vsel %vm8900_vm13, %v6599_v4, %v2139_v10  ;;  %v4917_v40 = vrot.slane %v4915_v19, 5  ;;  %7524 = vmatprep.mubr.bf16.mxu1 %v6629_v59  ;;  %v10770_v55 = vld [vmem:[#allocation11_spill] sm:$0xff] }
 0x12c   : > { %v4912_v45 = vor.u32 %v4911_v51, %v4908_v5  ;;  %v2146_v56 = vrot.slane %v8268_v24, 5  ;;  %v4894_v23 = vsel %vm8526_vm10, %v4889_v8, %v4893_v11  ;;  %v4904_v43 = vsel %vm8526_vm10, %v4899_v18, %v4903_v29  ;;  %v10030_v51 = vld [vmem:[#allocation2 + $0x80] sm:$0x1] }
 0x12d   : > { %v2143_v31 = vsel %vm8900_vm13, %v2141_v60, %v2142_v6  ;;  %v6600_v47 = vrot.slane %v8269_v13, 9  ;;  %7775 = vmatpush3.bf16.msra.mxu0 %v8212_v35  ;;  %v4922_v17 = vor.u32 %v4921_v52, %v4917_v40  ;;  %v4927_v61 = vrot.slane %v4925_v46, 5 }
 0x12e   : > { %v4913_v37 = vrot.slane %v4912_v45, 4  ;;  %v2149_v10 = vrot.slane %v10766_v54, 5  ;;  %7776 = vmatprep.subr.bf16.mxu0 %v8214_v26  ;;  %v2148_v59 = vrot.slane %v2146_v56, 4  ;;  %v10767_v11 = vshrl.u32 %v9580_v57, 16 }
 0x12f   : > { %v10768_v32 = vshll.u32 %v9580_v57, 16  ;;  %v4939_v4 = vshll.u32 %v9585_v62, 16  ;;  %v6630_v35 = vcombine.low %v9975_v21, %v2136_v9  ;;  %v4923_v5 = vrot.slane %v4922_v17, 4 }
 0x130   : > { %v4932_v58 = vrot.slane %v10767_v11, 4  ;;  %v10769_v8 = vshrl.u32 %v9585_v62, 16  ;;  %v4949_v29 = vshll.u32 %v10011_v25, 16  ;;  %v5122_v6 = vshrl.u32 %v9759_v42, 16  ;;  %7745 = vmatmul.mubr.bf16.gmra.mrb[4].mxu0 %v9966_v15 }
 0x131   : > { %v4935_v49 = vrot.slane %v10768_v32, 5  ;;  %v6631_v57 = vcombine.low %v2140_v63, %v2143_v31  ;;  %v10028_v14 = vrot.slane %v4939_v4, 5  ;;  %7748 = vmatprep.mubr.bf16.mxu0 %v6933_v2  ;;  %v6934_v19 = vcombine.low %v4894_v23, %v4904_v43  ;;  %7777 = vmatpush3.bf16.msra.mxu0 %v8214_v26  ;;  %v8219_v63 = vld [vmem:[%s10590_s3 + $0x220] sm:$0xff]   ;;  %v10052_v31 = vld [vmem:[#allocation2 + $0x8c] sm:$0x1] }
 0x132   : > { %v4945_v50 = vrot.slane %v10769_v8, 4  ;;  %v4918_v21 = vsel %vm8526_vm10, %v4913_v37, %v4917_v40  ;;  %v2147_v62 = vsel %vm8900_vm13, %v6600_v47, %v2146_v56  ;;  %v10771_v52 = vshrl.u32 %v10770_v55, 16  ;;  %7778 = vmatprep.subr.bf16.mxu0 %v8216_v44  ;;  %7525 = vmatmul.mubr.bf16.gmra.mrb[24].mxu1 %v6630_v35  ;;  %v10773_v40 = vld [vmem:[#allocation8_spill] sm:$0xff] }
 0x133   : > { %v4936_v60 = vor.u32 %v4935_v49, %v4932_v58  ;;  %v4928_v15 = vsel %vm8526_vm10, %v4923_v5, %v4927_v61  ;;  %v2150_v18 = vsel %vm8900_vm13, %v2148_v59, %v2149_v10  ;;  %v10772_v2 = vshll.u32 %v10770_v55, 16  ;;  %7528 = vmatprep.mubr.bf16.mxu1 %v6631_v57  ;;  %v10777_v58 = vld [vmem:[#allocation7_spill] sm:$0xff]  ;;  %v8270_v55 = vld [vmem:[#allocation2 + $0xc] sm:$0xf] }
 0x134   : > { %v4956_v9 = vrot.slane %v10771_v52, 4  ;;  %v4946_v46 = vor.u32 %v4945_v50, %v10028_v14  ;;  %v4951_v45 = vrot.slane %v4949_v29, 5  ;;  %v4963_v24 = vshll.u32 %v10773_v40, 16  ;;  %v8222_v50 = vld [vmem:[%s10590_s3 + $0x228] sm:$0xff]   ;;  %v8271_v52 = vld [vmem:[#allocation2 + $0x10] sm:$0xf] }
 0x135   : > { %v4959_v26 = vrot.slane %v10772_v2, 5  ;;  %v10774_v56 = vshrl.u32 %v10773_v40, 16  ;;  %v4973_v43 = vshll.u32 %v10030_v51, 16  ;;  %v4937_v13 = vrot.slane %v4936_v60, 4  ;;  %7779 = vmatpush3.bf16.msra.mxu0 %v8216_v44 }
 0x136   : > { %v4947_v47 = vrot.slane %v4946_v46, 4  ;;  %v10775_v17 = vshrl.u32 %v9612_v36, 16  ;;  %v6935_v54 = vcombine.low %v4918_v21, %v4928_v15  ;;  %v4965_v10 = vrot.slane %v4963_v24, 5  ;;  %7780 = vmatprep.subr.bf16.mxu0 %v8219_v63  ;;  %v10779_v15 = vld [vmem:[#allocation6_spill] sm:$0xff] }
 0x137   : > { %v4969_v23 = vrot.slane %v10774_v56, 4  ;;  %v4960_v37 = vor.u32 %v4959_v26, %v4956_v9  ;;  %v10776_v59 = vshll.u32 %v9612_v36, 16  ;;  %v4987_v32 = vshll.u32 %v10777_v58, 16  ;;  %v10067_v36 = vld [vmem:[#allocation2 + $0x98] sm:$0x1]  ;;  %v10782_v56 = vld [vmem:[#allocation9_spill] sm:$0xff] }
 0x138   : > { %v4980_v61 = vrot.slane %v10775_v17, 4  ;;  %v6632_v49 = vcombine.low %v2147_v62, %v2150_v18  ;;  %v10778_v35 = vshrl.u32 %v10777_v58, 16  ;;  %v4997_v8 = vshll.u32 %v10052_v31, 16  ;;  %7749 = vmatmul.mubr.bf16.gmra.mrb[8].mxu0 %v6934_v19 }
 0x139   : > { %v4983_v11 = vrot.slane %v10776_v59, 5  ;;  %v4961_v4 = vrot.slane %v4960_v37, 4  ;;  %v4970_v29 = vor.u32 %v4969_v23, %v4965_v10  ;;  %v4975_v44 = vrot.slane %v4973_v43, 5  ;;  %7752 = vmatprep.mubr.bf16.mxu0 %v6935_v54  ;;  %7781 = vmatpush3.bf16.msra.mxu0 %v8219_v63  ;;  %v8273_v59 = vld [vmem:[#allocation2 + $0x1c] sm:$0xf] }
 0x13a   : > { %v4993_v5 = vrot.slane %v10778_v35, 4  ;;  %v10065_v60 = vrot.slane %v4987_v32, 5  ;;  %v4942_v21 = vsel %vm8526_vm10, %v4937_v13, %v10028_v14  ;;  %v4952_v62 = vsel %vm8526_vm10, %v4947_v47, %v4951_v45  ;;  %7782 = vmatprep.subr.bf16.mxu0 %v8222_v50  ;;  %v8225_v47 = vld [vmem:[%s10590_s3 + $0x230] sm:$0xff]   ;;  %7529 = vmatmul.mubr.bf16.gmra.mrb[28].mxu1 %v6632_v49  ;;  %v10090_v32 = vld [vmem:[#allocation2 + $0xa4] sm:$0x1] }
 0x13b   : > { %v4984_v57 = vor.u32 %v4983_v11, %v4980_v61  ;;  %v6705_v9 = vcombine.low %v8270_v55, %v8271_v52  ;;  %v10780_v18 = vshrl.u32 %v10779_v15, 16  ;;  %v4966_v2 = vsel %vm8526_vm10, %v4961_v4, %v4965_v10  ;;  %v8272_v10 = vld [vmem:[#allocation2 + $0x18] sm:$0xf]  ;;  %v8275_v49 = vld [vmem:[#allocation2 + $0x28] sm:$0xf] }
 0x13c   : > { %v4971_v26 = vrot.slane %v4970_v29, 4  ;;  %v4994_v19 = vor.u32 %v4993_v5, %v10065_v60  ;;  %v10781_v40 = vshll.u32 %v10779_v15, 16  ;;  %v4999_v24 = vrot.slane %v4997_v8, 5  ;;  %v8274_v8 = vld [vmem:[#allocation2 + $0x24] sm:$0xf] }
 0x13d   : > { %v5004_v46 = vrot.slane %v10780_v18, 4  ;;  %v5011_v45 = vshll.u32 %v10782_v56, 16  ;;  %v10783_v23 = vshrl.u32 %v10782_v56, 16  ;;  %v5021_v13 = vshll.u32 %v10067_v36, 16  ;;  %7548 = vmatprep.mubr.bf16.mxu1 %v6705_v9  ;;  %7783 = vmatpush3.bf16.msra.mxu0 %v8222_v50  ;;  %v8228_v18 = vld [vmem:[%s10590_s3 + $0x238] sm:$0xff]  }
 0x13e   : > { %v5007_v14 = vrot.slane %v10781_v40, 5  ;;  %v4976_v63 = vsel %vm8526_vm10, %v4971_v26, %v4975_v44  ;;  %v4985_v37 = vrot.slane %v4984_v57, 4  ;;  %v4995_v17 = vrot.slane %v4994_v19, 4  ;;  %7784 = vmatprep.subr.bf16.mxu0 %v8225_v47  ;;  %v10110_v26 = vld [vmem:[#allocation2 + $0xb0] sm:$0x1] }
 0x13f   : > { %v5017_v43 = vrot.slane %v10783_v23, 4  ;;  %v6936_v54 = vcombine.low %v4942_v21, %v4952_v62  ;;  %v6706_v11 = vcombine.low %v8272_v10, %v8273_v59  ;;  %v5013_v58 = vrot.slane %v5011_v45, 5  ;;  %v8277_v10 = vld [vmem:[#allocation2 + $0x34] sm:$0xf] }
 0x140   : > { %v5008_v61 = vor.u32 %v5007_v14, %v5004_v46  ;;  %v10784_v4 = vshrl.u32 %v9639_v53, 16  ;;  %v6937_v5 = vcombine.low %v4966_v2, %v4976_v63  ;;  %v6707_v29 = vcombine.low %v8274_v8, %v8275_v49 }
 0x141   : > { %v10785_v44 = vshll.u32 %v9639_v53, 16  ;;  %v5035_v55 = vshll.u32 %v9641_v30, 16  ;;  %v5018_v62 = vor.u32 %v5017_v43, %v5013_v58  ;;  %v5023_v52 = vrot.slane %v5021_v13, 5  ;;  %7753 = vmatmul.mubr.bf16.gmra.mrb[12].mxu0 %v6936_v54  ;;  %v8276_v54 = vld [vmem:[#allocation2 + $0x30] sm:$0xf] }
 0x142   : > { %v5028_v35 = vrot.slane %v10784_v4, 4  ;;  %v5009_v21 = vrot.slane %v5008_v61, 4  ;;  %v10786_v9 = vshrl.u32 %v9641_v30, 16  ;;  %v4990_v46 = vsel %vm8526_vm10, %v4985_v37, %v10065_v60  ;;  %7756 = vmatprep.mubr.bf16.mxu0 %v6937_v5  ;;  %7785 = vmatpush3.bf16.msra.mxu0 %v8225_v47 }
 0x143   : > { %v5031_v57 = vrot.slane %v10785_v44, 5  ;;  %v5000_v53 = vsel %vm8526_vm10, %v4995_v17, %v4999_v24  ;;  %v10107_v2 = vrot.slane %v5035_v55, 5  ;;  %v5045_v50 = vshll.u32 %v10090_v32, 16  ;;  %7786 = vmatprep.subr.bf16.mxu0 %v8228_v18  ;;  %7549 = vmatmul.mubr.bf16.vlgmr.msra.gmra.mrb[0].mxu1 %v6706_v11 }
 0x144   : > { %v5041_v15 = vrot.slane %v10786_v9, 4  ;;  %v5019_v30 = vrot.slane %v5018_v62, 4  ;;  %v10787_v40 = vshrl.u32 %v9659_v0, 16  ;;  %v10788_v56 = vshll.u32 %v9659_v0, 16  ;;  %7828 = vmatpush3.bf16.msra.mxu1 %v9952_v3  ;;  %7552 = vmatprep.mubr.bf16.mxu1 %v6707_v29  ;;  %v8279_v62 = vld [vmem:[#allocation2 + $0x3c] sm:$0xf] }
 0x145   : > { %v5032_v19 = vor.u32 %v5031_v57, %v5028_v35  ;;  %v5125_v60 = vshll.u32 %v9759_v42, 16  ;;  %v5059_v23 = vshll.u32 %v9661_v7, 16  ;;  %v10789_v43 = vshrl.u32 %v9661_v7, 16  ;;  %v8278_v57 = vld [vmem:[%s10590_s3 + $0x108] sm:$0xff]  }
 0x146   : > { %v5052_v14 = vrot.slane %v10787_v40, 4  ;;  %v5055_v45 = vrot.slane %v10788_v56, 5  ;;  %v5042_v24 = vor.u32 %v5041_v15, %v10107_v2  ;;  %v5014_v63 = vsel %vm8526_vm10, %v5009_v21, %v5013_v58  ;;  %v10127_v58 = vld [vmem:[#allocation2 + $0xbc] sm:$0x1]  ;;  %7821 = vmatprep.subr.bf16.mxu1 %v8278_v57  ;;  %7787 = vmatpush3.bf16.msra.mxu0 %v8228_v18 }
 0x147   : > { %v5065_v13 = vrot.slane %v10789_v43, 4  ;;  %v5024_v37 = vsel %vm8526_vm10, %v5019_v30, %v5023_v52  ;;  %v5069_v0 = vshll.u32 %v10110_v26, 16  ;;  %v6938_v61 = vcombine.low %v4990_v46, %v5000_v53  ;;  %v8280_v52 = vld [vmem:[#allocation2 + $0x40] sm:$0xf]  ;;  %v10139_v53 = vld [vmem:[#allocation2 + $0xc8] sm:$0x1] }
 0x148   : > { %v5056_v17 = vor.u32 %v5055_v45, %v5052_v14  ;;  %v6708_v59 = vcombine.low %v8276_v54, %v8277_v10  ;;  %v5047_v4 = vrot.slane %v5045_v50, 5  ;;  %v5061_v35 = vrot.slane %v5059_v23, 5  ;;  %7829 = vmatpush3.bf16.msra.mxu1 %v8278_v57  ;;  %v8281_v43 = vld [vmem:[%s10590_s3 + $0x110] sm:$0xff]  }
 0x149   : > { %v5033_v7 = vrot.slane %v5032_v19, 4  ;;  %v5043_v47 = vrot.slane %v5042_v24, 4  ;;  %v10790_v5 = vshrl.u32 %v9684_v20, 16  ;;  %v10791_v49 = vshll.u32 %v9684_v20, 16  ;;  %7757 = vmatmul.mubr.bf16.gmra.mrb[16].mxu0 %v6938_v61  ;;  %7822 = vmatprep.subr.bf16.mxu1 %v8281_v43 }
 0x14a   : > { %v6939_v11 = vcombine.low %v5014_v63, %v5024_v37  ;;  %v5066_v55 = vor.u32 %v5065_v13, %v5061_v35  ;;  %v5083_v3 = vshll.u32 %v9686_v39, 16  ;;  %v10792_v29 = vshrl.u32 %v9686_v39, 16 }
 0x14b   : > { %v5076_v8 = vrot.slane %v10790_v5, 4  ;;  %v5079_v44 = vrot.slane %v10791_v49, 5  ;;  %v6709_v9 = vcombine.low %v8279_v62, %v8280_v52  ;;  %v5057_v15 = vrot.slane %v5056_v17, 4  ;;  %7553 = vmatmul.mubr.bf16.gmra.mrb[4].mxu1 %v6708_v59  ;;  %v10168_v5 = vld [vmem:[#allocation2 + $0xd4] sm:$0x1] }
 0x14c   : > { %v5089_v21 = vrot.slane %v10792_v29, 4  ;;  %v5071_v46 = vrot.slane %v5069_v0, 5  ;;  %v5067_v50 = vrot.slane %v5066_v55, 4  ;;  %v10141_v30 = vrot.slane %v5083_v3, 5  ;;  %7760 = vmatprep.mubr.bf16.mxu0 %v6939_v11  ;;  %7830 = vmatpush3.bf16.msra.mxu1 %v8281_v43  ;;  %v8282_v11 = vld [vmem:[%s10590_s3 + $0x118] sm:$0xff]  }
 0x14d   : > { %v5080_v20 = vor.u32 %v5079_v44, %v5076_v8  ;;  %v5093_v19 = vshll.u32 %v10127_v58, 16  ;;  %v10793_v40 = vshrl.u32 %v9726_v16, 16  ;;  %v5038_v39 = vsel %vm8526_vm10, %v5033_v7, %v10107_v2  ;;  %7556 = vmatprep.mubr.bf16.mxu1 %v6709_v9  ;;  %7823 = vmatprep.subr.bf16.mxu1 %v8282_v11  ;;  %v8283_v55 = vld [vmem:[#allocation2 + $0x48] sm:$0xf]  ;;  %v8284_v3 = vld [vmem:[#allocation2 + $0x4c] sm:$0xf] }
 0x14e   : > { %v5048_v18 = vsel %vm8526_vm10, %v5043_v47, %v5047_v4  ;;  %v10794_v56 = vshll.u32 %v9726_v16, 16  ;;  %v5107_v24 = vshll.u32 %v9728_v41, 16  ;;  %v5135_v23 = vshrl.u32 %v9761_v22, 16  ;;  %v8285_v52 = vld [vmem:[#allocation2 + $0x54] sm:$0xf] }
 0x14f   : > { %v5100_v14 = vrot.slane %v10793_v40, 4  ;;  %v5090_v13 = vor.u32 %v5089_v21, %v10141_v30  ;;  %v10795_v2 = vshrl.u32 %v9728_v41, 16  ;;  %v5117_v37 = vshll.u32 %v10139_v53, 16  ;;  %v8286_v9 = vld [vmem:[#allocation2 + $0x58] sm:$0xf] }
 0x150   : > { %v5103_v45 = vrot.slane %v10794_v56, 5  ;;  %v5062_v16 = vsel %vm8526_vm10, %v5057_v15, %v5061_v35  ;;  %v5072_v17 = vsel %vm8526_vm10, %v5067_v50, %v5071_v46  ;;  %v5109_v61 = vrot.slane %v5107_v24, 5  ;;  %7831 = vmatpush3.bf16.msra.mxu1 %v8282_v11  ;;  %v8287_v46 = vld [vmem:[#allocation2 + $0x1c] sm:$0xf]  ;;  %v10184_v50 = vld [vmem:[#allocation2 + $0x78] sm:$0xf] }
 0x151   : > { %v5113_v63 = vrot.slane %v10795_v2, 4  ;;  %v6940_v54 = vcombine.low %v5038_v39, %v5048_v18  ;;  %v5081_v10 = vrot.slane %v5080_v20, 4  ;;  %v5095_v4 = vrot.slane %v5093_v19, 5  ;;  %v8289_v39 = vld [vmem:[%s10590_s3 + $0x120] sm:$0xff]   ;;  %v10196_v56 = vld [vmem:[#allocation2 + $0x7c] sm:$0xf] }
 0x152   : > { %v5104_v0 = vor.u32 %v5103_v45, %v5100_v14  ;;  %v5124_v7 = vrot.slane %v5122_v6, 4  ;;  %v5091_v41 = vrot.slane %v5090_v13, 4  ;;  %v5127_v35 = vrot.slane %v5125_v60, 5  ;;  %7824 = vmatprep.subr.bf16.mxu1 %v8289_v39  ;;  %v8291_v24 = vld [vmem:[#allocation2 + $0x80] sm:$0x1] }
 0x153   : > { %v5114_v47 = vor.u32 %v5113_v63, %v5109_v61  ;;  %v5131_v8 = vshll.u32 %v9761_v22, 16  ;;  %v6941_v49 = vcombine.low %v5062_v16, %v5072_v17  ;;  %v5119_v59 = vrot.slane %v5117_v37, 5  ;;  %7761 = vmatmul.mubr.bf16.gmra.mrb[20].mxu0 %v6940_v54  ;;  %v8292_v43 = vld [vmem:[#allocation2 + $0x28] sm:$0xf]  ;;  %v8293_v16 = vld [vmem:[#allocation2 + $0x18] sm:$0xf] }
 0x154   : > { %v5105_v44 = vrot.slane %v5104_v0, 4  ;;  %v5137_v6 = vrot.slane %v5135_v23, 4  ;;  %v6710_v29 = vcombine.low %v8283_v55, %v8284_v3  ;;  %v5128_v21 = vor.u32 %v5127_v35, %v5124_v7  ;;  %v10796_v54 = vld [vmem:[#allocation10_spill] sm:$0xff]  ;;  %7832 = vmatpush3.bf16.msra.mxu1 %v8289_v39  ;;  %v8297_v3 = vld [vmem:[#allocation2 + $0x60] sm:$0xf] }
 0x155   : > { %v5115_v57 = vrot.slane %v5114_v47, 4  ;;  %v10176_v62 = vrot.slane %v5131_v8, 5  ;;  %v5141_v42 = vshll.u32 %v10168_v5, 16  ;;  %v5086_v22 = vsel %vm8526_vm10, %v5081_v10, %v10141_v30  ;;  %7764 = vmatprep.mubr.bf16.mxu0 %v6941_v49  ;;  %v8295_v8 = vld [vmem:[#allocation2 + $0x34] sm:$0xf] }
 0x156   : > { %v5096_v60 = vsel %vm8526_vm10, %v5091_v41, %v5095_v4  ;;  %v6711_v15 = vcombine.low %v8285_v52, %v8286_v9  ;;  %v5549_v20 = vrot.slane %v8287_v46, 5  ;;  %v3224_v19 = vshrl.u32 %v10184_v50, 16  ;;  %7557 = vmatmul.mubr.bf16.gmra.mrb[8].mxu1 %v6710_v29  ;;  %v8294_v4 = vld [vmem:[#allocation2 + $0x24] sm:$0xf]  ;;  %v8301_v46 = vld [vmem:[#allocation2 + $0x30] sm:$0xf] }
 0x157   : > { %v5110_v40 = vsel %vm8526_vm10, %v5105_v44, %v5109_v61  ;;  %v5120_v30 = vsel %vm8526_vm10, %v5115_v57, %v5119_v59  ;;  %v5138_v14 = vor.u32 %v5137_v6, %v10176_v62  ;;  %v3227_v18 = vshll.u32 %v10184_v50, 16  ;;  %v8296_v44 = vld [vmem:[%s10590_s3 + $0x128] sm:$0xff]   ;;  %v8298_v29 = vld [vmem:[#allocation2 + $0x64] sm:$0xf] }
 0x158   : > { %v3237_v45 = vshrl.u32 %v10196_v56, 16  ;;  %v3243_v23 = vshll.u32 %v8291_v24, 16  ;;  %v5556_v13 = vrot.slane %v8292_v43, 5  ;;  %v6942_v2 = vcombine.low %v5086_v22, %v5096_v60  ;;  %7560 = vmatprep.mubr.bf16.mxu1 %v6711_v15  ;;  %7825 = vmatprep.subr.bf16.mxu1 %v8296_v44 }
 0x159   : > { %v5129_v63 = vrot.slane %v5128_v21, 4  ;;  %v5143_v37 = vrot.slane %v5141_v42, 5  ;;  %v6953_v17 = vrot.slane %v8293_v16, 9  ;;  %v6943_v0 = vcombine.low %v5110_v40, %v5120_v30  ;;  %v10213_v21 = vld [vmem:[#allocation2 + $0x6c] sm:$0xf]  ;;  %7833 = vmatpush3.bf16.msra.mxu1 %v8296_v44 }
 0x15a   : > { %v5551_v61 = vrot.slane %v5549_v20, 4  ;;  %v5552_v10 = vrot.slane %v10796_v54, 5  ;;  %v6954_v7 = vrot.slane %v8294_v4, 9  ;;  %v5139_v41 = vrot.slane %v5138_v14, 4  ;;  %v10215_v42 = vld [vmem:[#allocation2 + $0x70] sm:$0xf] }
 0x15b   : > { %v5558_v47 = vrot.slane %v5556_v13, 4  ;;  %v5559_v35 = vrot.slane %v9796_v33, 5  ;;  %v5563_v49 = vrot.slane %v8295_v8, 5  ;;  %v10204_v59 = vrot.slane %v3224_v19, 4  ;;  %7765 = vmatmul.mubr.bf16.gmra.mrb[24].mxu0 %v6942_v2  ;;  %v8302_v14 = vld [vmem:[%s10590_s3 + $0x130] sm:$0xff]  }
 0x15c   : > { %v10206_v11 = vrot.slane %v3227_v18, 5  ;;  %v3233_v6 = vshll.u32 %v10196_v56, 16  ;;  %v10209_v57 = vrot.slane %v3237_v45, 4  ;;  %v10211_v55 = vrot.slane %v3243_v23, 5  ;;  %7768 = vmatprep.mubr.bf16.mxu0 %v6943_v0  ;;  %7826 = vmatprep.subr.bf16.mxu1 %v8302_v14  ;;  %v10244_v18 = vld [vmem:[#allocation2 + $0x84] sm:$0xf] }
 0x15d   : > { %v6712_v33 = vcombine.low %v8297_v3, %v8298_v29  ;;  %v6713_v22 = vcombine.low %v10213_v21, %v10215_v42  ;;  %v10221_v60 = vsel %vm8900_vm13, %v6953_v17, %v5549_v20  ;;  %v5134_v52 = vsel %vm8526_vm10, %v5129_v63, %v10176_v62  ;;  %v10246_v45 = vld [vmem:[#allocation2 + $0x88] sm:$0xf]  ;;  %v8305_v23 = vld [vmem:[#allocation2 + $0x40] sm:$0xf]  ;;  %v10251_v63 = vld [vmem:[#allocation2 + $0x90] sm:$0xf]  ;;  %7834 = vmatpush3.bf16.msra.mxu1 %v8302_v14 }
 0x15e   : > { %v5553_v9 = vsel %vm8900_vm13, %v5551_v61, %v5552_v10  ;;  %v10230_v15 = vsel %vm8900_vm13, %v6954_v7, %v5556_v13  ;;  %v6955_v19 = vrot.slane %v8301_v46, 9  ;;  %v5144_v20 = vsel %vm8526_vm10, %v5139_v41, %v5143_v37  ;;  %v8306_v13 = vld [vmem:[#allocation2 + $0x4c] sm:$0xf]  ;;  %v10253_v37 = vld [vmem:[#allocation2 + $0x94] sm:$0xf]  ;;  %v8313_v29 = vld [vmem:[%s10590_s3 + $0x138] sm:$0xff]  }
 0x15f   : > { %v10236_v40 = vsel %vm8900_vm13, %v5558_v47, %v5559_v35  ;;  %v5565_v30 = vrot.slane %v5563_v49, 4  ;;  %v5566_v62 = vrot.slane %v9849_v27, 5  ;;  %v6714_v39 = vcombine.low %v10184_v50, %v10196_v56  ;;  %7561 = vmatmul.mubr.bf16.gmra.mrb[12].mxu1 %v6712_v33  ;;  %v8309_v16 = vld [vmem:[#allocation2 + $0x3c] sm:$0xf]  ;;  %v8310_v0 = vld [vmem:[#allocation2 + $0x58] sm:$0xf]  ;;  %7827 = vmatprep.subr.bf16.mxu1 %v8313_v29 }
 0x160   : > { %v6715_v24 = vcombine.low %v10244_v18, %v10246_v45  ;;  %v5570_v43 = vrot.slane %v8305_v23, 5  ;;  %v5577_v2 = vrot.slane %v8306_v13, 5  ;;  %v6985_v27 = vcombine.low %v10221_v60, %v5553_v9  ;;  %7564 = vmatprep.mubr.bf16.mxu1 %v6713_v22  ;;  %v8311_v47 = vld [vmem:[#allocation2 + $0x48] sm:$0xf]  ;;  %v8312_v44 = vld [vmem:[#allocation2 + $0x64] sm:$0xf] }
 0x161   : > { %v6716_v50 = vcombine.low %v10251_v63, %v10253_v37  ;;  %v6956_v17 = vrot.slane %v8309_v16, 9  ;;  %v5584_v61 = vrot.slane %v8310_v0, 5  ;;  %v6944_v54 = vcombine.low %v5134_v52, %v5144_v20  ;;  %v8314_v22 = vld [vmem:[#allocation2 + $0x54] sm:$0xf]  ;;  %v8315_v60 = vld [vmem:[#allocation2 + $0x70] sm:$0xf]  ;;  %7835 = vmatpush3.bf16.msra.mxu1 %v8313_v29 }
 0x162   : > { %v6986_v10 = vcombine.low %v10230_v15, %v10236_v40  ;;  %v10261_v4 = vsel %vm8900_vm13, %v6955_v19, %v5563_v49  ;;  %v5573_v7 = vrot.slane %v9880_v1, 5  ;;  %v10266_v41 = vsel %vm8900_vm13, %v5565_v30, %v5566_v62  ;;  %v8316_v19 = vld [vmem:[#allocation2 + $0x60] sm:$0xf]  ;;  %v8317_v30 = vld [vmem:[#allocation2 + $0x6c] sm:$0xf] }
 0x163   : > { %v6957_v35 = vrot.slane %v8311_v47, 9  ;;  %v5580_v8 = vrot.slane %v9921_v38, 5  ;;  %v5591_v3 = vrot.slane %v8312_v44, 5  ;;  %v5572_v49 = vrot.slane %v5570_v43, 4  ;;  %7769 = vmatmul.mubr.bf16.gmra.mrb[28].mxu0 %v6944_v54  ;;  %v10287_v44 = vld [vmem:[#allocation2 + $0xa0] sm:$0xf] }
 0x164   : > { %v5579_v33 = vrot.slane %v5577_v2, 4  ;;  %v6958_v1 = vrot.slane %v8314_v22, 9  ;;  %v5598_v52 = vrot.slane %v8315_v60, 5  ;;  %v5586_v9 = vrot.slane %v5584_v61, 4  ;;  %7788 = vmatprep.mubr.bf16.mxu0 %v6985_v27  ;;  %v10344_v60 = vld [vmem:[#allocation2 + $0xb8] sm:$0xf] }
 0x165   : > { %v5587_v46 = vrot.slane %v9959_v34, 5  ;;  %v6959_v20 = vrot.slane %v8316_v19, 9  ;;  %v5594_v38 = vrot.slane %v9986_v12, 5  ;;  %v6960_v62 = vrot.slane %v8317_v30, 9  ;;  %v10352_v19 = vld [vmem:[#allocation2 + $0xc4] sm:$0xf] }
 0x166   : > { %v5601_v14 = vrot.slane %v10011_v25, 5  ;;  %v3200_v23 = vshrl.u32 %v10213_v21, 16  ;;  %v3203_v13 = vshll.u32 %v10213_v21, 16  ;;  %v5593_v16 = vrot.slane %v5591_v3, 4  ;;  %v10285_v25 = vld [vmem:[#allocation2 + $0x9c] sm:$0xf] }
 0x167   : > { %v5600_v0 = vrot.slane %v5598_v52, 4  ;;  %v3209_v47 = vshll.u32 %v10215_v42, 16  ;;  %v3213_v34 = vshrl.u32 %v10215_v42, 16  ;;  %v6987_v12 = vcombine.low %v10261_v4, %v10266_v41  ;;  %7565 = vmatmul.mubr.bf16.gmra.mrb[16].mxu1 %v6714_v39  ;;  %v8329_v40 = vld [vmem:[#allocation2 + $0x84] sm:$0xf] }
 0x168   : > { %v10283_v54 = vsel %vm8900_vm13, %v6956_v17, %v5570_v43  ;;  %v6717_v21 = vcombine.low %v10285_v25, %v10287_v44  ;;  %v10293_v27 = vsel %vm8900_vm13, %v6957_v35, %v5577_v2  ;;  %v10297_v42 = vsel %vm8900_vm13, %v5572_v49, %v5573_v7  ;;  %7568 = vmatprep.mubr.bf16.mxu1 %v6715_v24  ;;  %v10336_v49 = vld [vmem:[#allocation2 + $0xa8] sm:$0xf] }
 0x169   : > { %v10301_v43 = vsel %vm8900_vm13, %v5579_v33, %v5580_v8  ;;  %v10305_v17 = vsel %vm8900_vm13, %v6958_v1, %v5584_v61  ;;  %v10309_v4 = vsel %vm8900_vm13, %v5586_v9, %v5587_v46  ;;  %v10316_v39 = vsel %vm8900_vm13, %v6959_v20, %v5591_v3  ;;  %v10338_v33 = vld [vmem:[#allocation2 + $0xac] sm:$0xf]  ;;  %v10342_v1 = vld [vmem:[#allocation2 + $0xb4] sm:$0xf]  ;;  %v10350_v46 = vld [vmem:[#allocation2 + $0xc0] sm:$0xf] }
 0x16a   : > { %v10320_v2 = vsel %vm8900_vm13, %v6960_v62, %v5598_v52  ;;  %v3202_v7 = vrot.slane %v3200_v23, 4  ;;  %v3205_v41 = vrot.slane %v3203_v13, 5  ;;  %v10324_v61 = vsel %vm8900_vm13, %v5593_v16, %v5594_v38  ;;  %v8326_v38 = vld [vmem:[#allocation2 + $0x74] sm:$0x1]  ;;  %v8327_v62 = vld [vmem:[#allocation2 + $0x7c] sm:$0xf] }
 0x16b   : > { %v10328_v35 = vsel %vm8900_vm13, %v5600_v0, %v5601_v14  ;;  %v10330_v8 = vrot.slane %v3209_v47, 5  ;;  %v3215_v24 = vrot.slane %v3213_v34, 4  ;;  %v6988_v3 = vcombine.low %v10283_v54, %v10297_v42  ;;  %7789 = vmatmul.mubr.bf16.vlgmr.msra.gmra.mrb[0].mxu0 %v6986_v10  ;;  %v8328_v0 = vld [vmem:[#allocation2 + $0x78] sm:$0xf]  ;;  %v8330_v42 = vld [vmem:[#allocation2 + $0x88] sm:$0xf] }
 0x16c   : > { %v6989_v29 = vcombine.low %v10293_v27, %v10301_v43  ;;  %v6718_v22 = vcombine.low %v10336_v49, %v10338_v33  ;;  %v6719_v52 = vcombine.low %v10342_v1, %v10344_v60  ;;  %v6990_v9 = vcombine.low %v10305_v17, %v10309_v4  ;;  %7792 = vmatprep.mubr.bf16.mxu0 %v6987_v12 }
 0x16d   : > { %v6720_v20 = vcombine.low %v10350_v46, %v10352_v19  ;;  %v3219_v30 = vshll.u32 %v8326_v38, 16  ;;  %v5605_v14 = vrot.slane %v8327_v62, 5  ;;  %v6991_v23 = vcombine.low %v10316_v39, %v10324_v61 }
 0x16e   : > { %v6992_v13 = vcombine.low %v10320_v2, %v10328_v35  ;;  %v3206_v16 = vor.u32 %v3205_v41, %v3202_v7  ;;  %v6961_v47 = vrot.slane %v8328_v0, 9  ;;  %v3216_v34 = vor.u32 %v3215_v24, %v10330_v8 }
 0x16f   : > { %v3230_v54 = vor.u32 %v10206_v11, %v10204_v59  ;;  %v10368_v27 = vrot.slane %v3233_v6, 5  ;;  %v3248_v15 = vshrl.u32 %v10244_v18, 16  ;;  %v6962_v10 = vrot.slane %v8329_v40, 9  ;;  %7569 = vmatmul.mubr.bf16.gmra.mrb[20].mxu1 %v6716_v50 }
 0x170   : > { %v5612_v43 = vrot.slane %v8330_v42, 5  ;;  %v3251_v7 = vshll.u32 %v10244_v18, 16  ;;  %v3257_v41 = vshll.u32 %v10246_v45, 16  ;;  %v3221_v12 = vrot.slane %v3219_v30, 5  ;;  %7572 = vmatprep.mubr.bf16.mxu1 %v6717_v21  ;;  %v8332_v42 = vld [vmem:[#allocation2 + $0x94] sm:$0xf] }
 0x171   : > { %v5607_v59 = vrot.slane %v5605_v14, 4  ;;  %v5608_v56 = vrot.slane %v10030_v51, 5  ;;  %v3261_v11 = vshrl.u32 %v10246_v45, 16  ;;  %v3207_v6 = vrot.slane %v3206_v16, 4 }
 0x172   : > { %v10380_v24 = vsel %vm8900_vm13, %v6961_v47, %v5605_v14  ;;  %v3250_v38 = vrot.slane %v3248_v15, 4  ;;  %v3253_v18 = vrot.slane %v3251_v7, 5  ;;  %v3217_v62 = vrot.slane %v3216_v34, 4 }
 0x173   : > { %v10382_v0 = vrot.slane %v3230_v54, 4  ;;  %v10384_v40 = vrot.slane %v3257_v41, 5  ;;  %v3263_v50 = vrot.slane %v3261_v11, 4  ;;  %v3240_v30 = vor.u32 %v10209_v57, %v10368_v27  ;;  %7793 = vmatmul.mubr.bf16.gmra.mrb[4].mxu0 %v6988_v3  ;;  %v8331_v57 = vld [vmem:[#allocation2 + $0x8c] sm:$0x1] }
 0x174   : > { %v10390_v51 = vsel %vm8900_vm13, %v6962_v10, %v5612_v43  ;;  %v5614_v45 = vrot.slane %v5612_v43, 4  ;;  %v5615_v21 = vrot.slane %v10052_v31, 5  ;;  %v10395_v14 = vsel %vm8900_vm13, %v5607_v59, %v5608_v56  ;;  %7796 = vmatprep.mubr.bf16.mxu0 %v6989_v29  ;;  %v8333_v29 = vld [vmem:[#allocation2 + $0x90] sm:$0xf] }
 0x175   : > { %v3272_v16 = vshrl.u32 %v10251_v63, 16  ;;  %v3275_v47 = vshll.u32 %v10251_v63, 16  ;;  %v3281_v34 = vshll.u32 %v10253_v37, 16  ;;  %v3254_v54 = vor.u32 %v3253_v18, %v3250_v38 }
 0x176   : > { %v3267_v15 = vshll.u32 %v8331_v57, 16  ;;  %v5619_v10 = vrot.slane %v8332_v42, 5  ;;  %v3285_v43 = vshrl.u32 %v10253_v37, 16  ;;  %v3212_v31 = vsel %vm8526_vm10, %v3207_v6, %v10330_v8 }
 0x177   : > { %v3222_v7 = vsel %vm8526_vm10, %v3217_v62, %v3221_v12  ;;  %v3236_v63 = vsel %vm8526_vm10, %v10382_v0, %v10368_v27  ;;  %v3264_v3 = vor.u32 %v3263_v50, %v10384_v40  ;;  %v6993_v41 = vcombine.low %v10380_v24, %v10395_v14  ;;  %7573 = vmatmul.mubr.bf16.gmra.mrb[24].mxu1 %v6718_v22  ;;  %v8334_v50 = vld [vmem:[#allocation2 + $0x98] sm:$0x1]  ;;  %v8340_v14 = vld [vmem:[#allocation2 + $0xb0] sm:$0x1] }
 0x178   : > { %v3241_v59 = vrot.slane %v3240_v30, 4  ;;  %v10415_v37 = vsel %vm8900_vm13, %v5614_v45, %v5615_v21  ;;  %v6963_v8 = vrot.slane %v8333_v29, 9  ;;  %v3274_v12 = vrot.slane %v3272_v16, 4  ;;  %7576 = vmatprep.mubr.bf16.mxu1 %v6719_v52 }
 0x179   : > { %v3277_v56 = vrot.slane %v3275_v47, 5  ;;  %v10420_v11 = vrot.slane %v3281_v34, 5  ;;  %v3287_v27 = vrot.slane %v3285_v43, 4  ;;  %v3255_v6 = vrot.slane %v3254_v54, 4 }
 0x17a   : > { %v3269_v38 = vrot.slane %v3267_v15, 5  ;;  %v5621_v18 = vrot.slane %v5619_v10, 4  ;;  %v5622_v62 = vrot.slane %v10067_v36, 5  ;;  %v3265_v0 = vrot.slane %v3264_v3, 4  ;;  %v8336_v3 = vld [vmem:[#allocation2 + $0xa4] sm:$0x1] }
 0x17b   : > { %v3291_v30 = vshll.u32 %v8334_v50, 16  ;;  %v3296_v45 = vshrl.u32 %v10285_v25, 16  ;;  %v3299_v22 = vshll.u32 %v10285_v25, 16  ;;  %v6753_v21 = vcombine.low %v3212_v31, %v3222_v7  ;;  %7797 = vmatmul.mubr.bf16.gmra.mrb[8].mxu0 %v6990_v9 }
 0x17c   : > { %v3246_v16 = vsel %vm8526_vm10, %v3241_v59, %v10211_v55  ;;  %v3305_v47 = vshll.u32 %v10287_v44, 16  ;;  %v3309_v52 = vshrl.u32 %v10287_v44, 16  ;;  %v3278_v34 = vor.u32 %v3277_v56, %v3274_v12  ;;  %7800 = vmatprep.mubr.bf16.mxu0 %v6991_v23 }
 0x17d   : > { %v3288_v54 = vor.u32 %v3287_v27, %v10420_v11  ;;  %v3298_v36 = vrot.slane %v3296_v45, 4  ;;  %v3301_v57 = vrot.slane %v3299_v22, 5  ;;  %v6994_v25 = vcombine.low %v10390_v51, %v10415_v37  ;;  %v8344_v37 = vld [vmem:[#allocation2 + $0xb4] sm:$0xf] }
 0x17e   : > { %v10441_v15 = vsel %vm8900_vm13, %v6963_v8, %v5619_v10  ;;  %v10443_v55 = vrot.slane %v3305_v47, 5  ;;  %v3311_v42 = vrot.slane %v3309_v52, 4  ;;  %v3260_v44 = vsel %vm8526_vm10, %v3255_v6, %v10384_v40  ;;  %v8335_v10 = vld [vmem:[#allocation2 + $0xa0] sm:$0xf]  ;;  %v8337_v6 = vld [vmem:[#allocation2 + $0x9c] sm:$0xf] }
 0x17f   : > { %v3270_v17 = vsel %vm8526_vm10, %v3265_v0, %v3269_v38  ;;  %v10455_v4 = vsel %vm8900_vm13, %v5621_v18, %v5622_v62  ;;  %v3293_v9 = vrot.slane %v3291_v30, 5  ;;  %v5626_v43 = vrot.slane %v8335_v10, 5  ;;  %7577 = vmatmul.mubr.bf16.gmra.mrb[28].mxu1 %v6720_v20  ;;  %v8338_v18 = vld [vmem:[#allocation2 + $0xac] sm:$0xf] }
 0x180   : > { %v3302_v31 = vor.u32 %v3301_v57, %v3298_v36  ;;  %v3312_v7 = vor.u32 %v3311_v42, %v10443_v55  ;;  %v3315_v39 = vshll.u32 %v8336_v3, 16  ;;  %v3279_v61 = vrot.slane %v3278_v34, 4  ;;  %7612 = vmatprep.mubr.bf16.mxu1 %v6753_v21 }
 0x181   : > { %v3289_v23 = vrot.slane %v3288_v54, 4  ;;  %v3320_v40 = vshrl.u32 %v10336_v49, 16  ;;  %v3323_v59 = vshll.u32 %v10336_v49, 16  ;;  %v6754_v29 = vcombine.low %v3236_v63, %v3246_v16 }
 0x182   : > { %v6995_v8 = vcombine.low %v10441_v15, %v10455_v4  ;;  %v3329_v12 = vshll.u32 %v10338_v33, 16  ;;  %v3333_v56 = vshrl.u32 %v10338_v33, 16  ;;  %v6755_v27 = vcombine.low %v3260_v44, %v3270_v17 }
 0x183   : > { %v6964_v38 = vrot.slane %v8337_v6, 9  ;;  %v5629_v20 = vrot.slane %v10090_v32, 5  ;;  %v5633_v62 = vrot.slane %v8338_v18, 5  ;;  %v5628_v0 = vrot.slane %v5626_v43, 4  ;;  %7801 = vmatmul.mubr.bf16.gmra.mrb[12].mxu0 %v6992_v13  ;;  %v8339_v32 = vld [vmem:[#allocation2 + $0xa8] sm:$0xf] }
 0x184   : > { %v3303_v50 = vrot.slane %v3302_v31, 4  ;;  %v3313_v30 = vrot.slane %v3312_v7, 4  ;;  %v3317_v49 = vrot.slane %v3315_v39, 5  ;;  %v3284_v63 = vsel %vm8526_vm10, %v3279_v61, %v10420_v11  ;;  %7804 = vmatprep.mubr.bf16.mxu0 %v6993_v41 }
 0x185   : > { %v3294_v45 = vsel %vm8526_vm10, %v3289_v23, %v3293_v9  ;;  %v3322_v22 = vrot.slane %v3320_v40, 4  ;;  %v3325_v33 = vrot.slane %v3323_v59, 5  ;;  %v6965_v21 = vrot.slane %v8339_v32, 9  ;;  %v8341_v9 = vld [vmem:[#allocation2 + $0xbc] sm:$0x1] }
 0x186   : > { %v10476_v16 = vrot.slane %v3329_v12, 5  ;;  %v3335_v47 = vrot.slane %v3333_v56, 4  ;;  %v3344_v52 = vshrl.u32 %v10342_v1, 16  ;;  %v5635_v11 = vrot.slane %v5633_v62, 4  ;;  %v8342_v23 = vld [vmem:[#allocation2 + $0xb8] sm:$0xf] }
 0x187   : > { %v5636_v34 = vrot.slane %v10110_v26, 5  ;;  %v3347_v54 = vshll.u32 %v10342_v1, 16  ;;  %v3353_v36 = vshll.u32 %v10344_v60, 16  ;;  %v3308_v2 = vsel %vm8526_vm10, %v3303_v50, %v10443_v55  ;;  %7613 = vmatmul.mubr.bf16.vlgmr.msra.gmra.mrb[16].mxu1 %v6754_v29 }
 0x188   : > { %v3318_v35 = vsel %vm8526_vm10, %v3313_v30, %v3317_v49  ;;  %v3346_v13 = vrot.slane %v3344_v52, 4  ;;  %v3357_v57 = vshrl.u32 %v10344_v60, 16  ;;  %v3326_v24 = vor.u32 %v3325_v33, %v3322_v22  ;;  %7616 = vmatprep.mubr.bf16.mxu1 %v6755_v27 }
 0x189   : > { %v3339_v41 = vshll.u32 %v8340_v14, 16  ;;  %v3349_v15 = vrot.slane %v3347_v54, 5  ;;  %v3355_v26 = vrot.slane %v3353_v36, 5  ;;  %v5627_v1 = vsel %vm8900_vm13, %v6964_v38, %v5626_v43 }
 0x18a   : > { %v5630_v42 = vsel %vm8900_vm13, %v5628_v0, %v5629_v20  ;;  %v3336_v55 = vor.u32 %v3335_v47, %v10476_v16  ;;  %v3359_v44 = vrot.slane %v3357_v57, 4  ;;  %v6756_v17 = vcombine.low %v3284_v63, %v3294_v45  ;;  %v8345_v45 = vld [vmem:[#allocation2 + $0xc8] sm:$0x1] }
 0x18b   : > { %v5634_v60 = vsel %vm8900_vm13, %v6965_v21, %v5633_v62  ;;  %v3350_v4 = vor.u32 %v3349_v15, %v3346_v13  ;;  %v3363_v10 = vshll.u32 %v8341_v9, 16  ;;  %v6757_v31 = vcombine.low %v3308_v2, %v3318_v35  ;;  %7805 = vmatmul.mubr.bf16.gmra.mrb[16].mxu0 %v6994_v25  ;;  %v8343_v62 = vld [vmem:[#allocation2 + $0xc4] sm:$0xf] }
 0x18c   : > { %v5637_v7 = vsel %vm8900_vm13, %v5635_v11, %v5636_v34  ;;  %v3360_v3 = vor.u32 %v3359_v44, %v3355_v26  ;;  %v3368_v43 = vshrl.u32 %v10350_v46, 16  ;;  %v3327_v39 = vrot.slane %v3326_v24, 4  ;;  %7808 = vmatprep.mubr.bf16.mxu0 %v6995_v8  ;;  %v8347_v24 = vld [vmem:[#allocation2 + $0xd0] sm:$0xf] }
 0x18d   : > { %v3341_v61 = vrot.slane %v3339_v41, 5  ;;  %v5640_v40 = vrot.slane %v8342_v23, 5  ;;  %v3371_v59 = vshll.u32 %v10350_v46, 16  ;;  %v3337_v29 = vrot.slane %v3336_v55, 4  ;;  %v8348_v55 = vld [vmem:[#allocation2 + $0xcc] sm:$0xf] }
 0x18e   : > { %v3370_v12 = vrot.slane %v3368_v43, 4  ;;  %v3377_v56 = vshll.u32 %v10352_v19, 16  ;;  %v3381_v27 = vshrl.u32 %v10352_v19, 16  ;;  %v3351_v6 = vrot.slane %v3350_v4, 4 }
 0x18f   : > { %v3361_v38 = vrot.slane %v3360_v3, 4  ;;  %v3365_v20 = vrot.slane %v3363_v10, 5  ;;  %v3373_v18 = vrot.slane %v3371_v59, 5  ;;  %v5647_v0 = vrot.slane %v8343_v62, 5  ;;  %7617 = vmatmul.mubr.bf16.gmra.mrb[20].mxu1 %v6756_v17 }
 0x190   : > { %v3379_v50 = vrot.slane %v3377_v56, 5  ;;  %v3383_v30 = vrot.slane %v3381_v27, 4  ;;  %v6996_v46 = vcombine.low %v5627_v1, %v5630_v42  ;;  %v6997_v49 = vcombine.low %v5634_v60, %v5637_v7  ;;  %7620 = vmatprep.mubr.bf16.mxu1 %v6757_v31 }
 0x191   : > { %v3332_v51 = vsel %vm8526_vm10, %v3327_v39, %v10476_v16  ;;  %v6966_v25 = vrot.slane %v8344_v37, 9  ;;  %v3342_v19 = vsel %vm8526_vm10, %v3337_v29, %v3341_v61  ;;  %v3374_v8 = vor.u32 %v3373_v18, %v3370_v12  ;;  %v8346_v16 = vld [vmem:[#allocation2 + $0xc0] sm:$0xf] }
 0x192   : > { %v3384_v63 = vor.u32 %v3383_v30, %v3379_v50  ;;  %v3387_v22 = vshll.u32 %v8345_v45, 16  ;;  %v5642_v33 = vrot.slane %v5640_v40, 4  ;;  %v5643_v32 = vrot.slane %v10127_v58, 5 }
 0x193   : > { %v3356_v21 = vsel %vm8526_vm10, %v3351_v6, %v3355_v26  ;;  %v3366_v47 = vsel %vm8526_vm10, %v3361_v38, %v3365_v20  ;;  %v6967_v52 = vrot.slane %v8346_v16, 9  ;;  %v5649_v11 = vrot.slane %v5647_v0, 4  ;;  %7809 = vmatmul.mubr.bf16.gmra.mrb[20].mxu0 %v6996_v46 }
 0x194   : > { %v5650_v34 = vrot.slane %v10139_v53, 5  ;;  %v6758_v54 = vcombine.low %v3332_v51, %v3342_v19  ;;  %v6759_v36 = vcombine.low %v3356_v21, %v3366_v47  ;;  %v3375_v2 = vrot.slane %v3374_v8, 4  ;;  %7812 = vmatprep.mubr.bf16.mxu0 %v6997_v49 }
 0x195   : > { %v3385_v35 = vrot.slane %v3384_v63, 4  ;;  %v3389_v13 = vrot.slane %v3387_v22, 5  ;;  %v5641_v58 = vsel %vm8900_vm13, %v6966_v25, %v5640_v40  ;;  %v5644_v57 = vsel %vm8900_vm13, %v5642_v33, %v5643_v32 }
 0x196   : > { %v5654_v14 = vrot.slane %v8347_v24, 5  ;;  %v5648_v41 = vsel %vm8900_vm13, %v6967_v52, %v5647_v0  ;;  %v5651_v53 = vsel %vm8900_vm13, %v5649_v11, %v5650_v34  ;;  %v6998_v15 = vcombine.low %v5641_v58, %v5644_v57 }
 0x197   : > { %7621 = vmatmul.mubr.bf16.gmra.mrb[24].mxu1 %v6758_v54  ;;  %v3380_v26 = vsel %vm8526_vm10, %v3375_v2, %v3379_v50  ;;  %v3390_v1 = vsel %vm8526_vm10, %v3385_v35, %v3389_v13  ;;  %v6999_v42 = vcombine.low %v5648_v41, %v5651_v53  ;;  %v6968_v44 = vrot.slane %v8348_v55, 9 }
 0x198   : > { %7624 = vmatprep.mubr.bf16.mxu1 %v6759_v36  ;;  %v5656_v17 = vrot.slane %v5654_v14, 4  ;;  %v5657_v60 = vrot.slane %v10168_v5, 5  ;;  %v6760_v4 = vcombine.low %v3380_v26, %v3390_v1 }
 0x199   : > { %v5655_v9 = vsel %vm8900_vm13, %v6968_v44, %v5654_v14 }
 0x19a   : > { %v5658_v10 = vsel %vm8900_vm13, %v5656_v17, %v5657_v60 }
 0x19b   : > { %7813 = vmatmul.mubr.bf16.gmra.mrb[24].mxu0 %v6998_v15  ;;  %v7000_v31 = vcombine.low %v5655_v9, %v5658_v10 }
 0x19c   : > { %7816 = vmatprep.mubr.bf16.mxu0 %v6999_v42 }
 0x19f   : > { %7625 = vmatmul.mubr.bf16.gmra.mrb[28].mxu1 %v6760_v4 }
 0x1a3   : > { %7817 = vmatmul.mubr.bf16.gmra.mrb[28].mxu0 %v7000_v31 }
 0x216   : > { %v7550_v48 = vpop.f32.mrb[0].mxu1 }
 0x217   : > { %v2784_v7 = vpop.f32.mrb[1].mxu1 }
 0x218   : > { %v7551_v3 = vpop.f32.mrb[2].mxu1 }
 0x219   : > { %v2787_v43 = vpop.f32.mrb[3].mxu1 }
 0x21e   : > { %v7554_v39 = vpop.f32.mrb[4].mxu1 }
 0x21f   : > { %v2800_v61 = vpop.f32.mrb[5].mxu1 }
 0x220   : > { %v7555_v23 = vpop.f32.mrb[6].mxu1 }
 0x221   : > { %v2803_v5 = vpop.f32.mrb[7].mxu1 }
 0x229   : > { %v7558_v40 = vpop.f32.mrb[8].mxu1 }
 0x22a   : > { %v2816_v59 = vpop.f32.mrb[9].mxu1 }
 0x22b   : > { %v7559_v29 = vpop.f32.mrb[10].mxu1 }
 0x22c   : > { %v2819_v12 = vpop.f32.mrb[11].mxu1 }
 0x232   : > { %v10535_v56 = vpop.f32.mrb[12].mxu1 }
 0x233   : > { %v10537_v28 = vpop.f32.mrb[13].mxu1 }
 0x234   : > { %v10539_v27 = vpop.f32.mrb[14].mxu1 }
 0x235   : > { %v10541_v6 = vpop.f32.mrb[15].mxu1 }
 0x23e   : > { %v7790_v38 = vpop.f32.mrb[0].mxu0 }
 0x23f   : > { %v7836_v20 = vadd.f32 %v7790_v38, %v7550_v48  ;;  %v5822_v18 = vpop.f32.mrb[1].mxu0 }
 0x240   : > { %v7837_v62 = vadd.f32 %v5822_v18, %v2784_v7  ;;  %v7791_v0 = vpop.f32.mrb[2].mxu0 }
 0x241   : > { %v7838_v50 = vadd.f32 %v7791_v0, %v7551_v3  ;;  %v5825_v30 = vpop.f32.mrb[3].mxu0  ;;  %v6277_v8 = vmul.f32 %v7836_v20, %v7836_v20 }
 0x242   : > { %v7839_v46 = vadd.f32 %v5825_v30, %v2787_v43  ;;  %v6275_v51 = vmul.f32 %v7837_v62, %v7837_v62 }
 0x243   : > { %v7085_v49 = vpack.c.bf16 %v7838_v50, %v7836_v20  ;;  %v6278_v21 = vmul.f32 %v7838_v50, %v7838_v50 }
 0x244   : > { %v7080_v37 = vpack.c.bf16 %v7839_v46, %v7837_v62  ;;  %v6237_v25 = vadd.f32 %v7839_v46, %v7837_v62  ;;  %v6276_v19 = vmul.f32 %v7839_v46, %v7839_v46 }
 0x245   : > { %7157 = vst [vmem:[%s10548_s25 + $0x8] sm:$0xff] %v7085_v49  }
 0x246   : > { %7081 = vst [vmem:[%s10548_s25] sm:$0xff] %v7080_v37   ;;  %v6238_v63 = vadd.f32 %v7836_v20, %v6237_v25  ;;  %v6307_v45 = vadd.f32 %v6276_v19, %v6275_v51  ;;  %v7794_v22 = vpop.f32.mrb[4].mxu0 }
 0x247   : > { %v7840_v33 = vadd.f32 %v7794_v22, %v7554_v39  ;;  %v5838_v32 = vpop.f32.mrb[5].mxu0 }
 0x248   : > { %v6308_v47 = vadd.f32 %v6307_v45, %v6277_v8  ;;  %v7841_v16 = vadd.f32 %v5838_v32, %v2800_v61  ;;  %v6239_v52 = vadd.f32 %v7838_v50, %v6238_v63  ;;  %v7795_v11 = vpop.f32.mrb[6].mxu0 }
 0x249   : > { %v7842_v34 = vadd.f32 %v7795_v11, %v7555_v23  ;;  %v5841_v54 = vpop.f32.mrb[7].mxu0  ;;  %v6281_v53 = vmul.f32 %v7840_v33, %v7840_v33 }
 0x24a   : > { %v6240_v36 = vadd.f32 %v7841_v16, %v6239_v52  ;;  %v6279_v2 = vmul.f32 %v7841_v16, %v7841_v16  ;;  %v6309_v35 = vadd.f32 %v6308_v47, %v6278_v21  ;;  %v7843_v13 = vadd.f32 %v5841_v54, %v2803_v5 }
 0x24b   : > { %v7095_v58 = vpack.c.bf16 %v7842_v34, %v7840_v33  ;;  %v6282_v44 = vmul.f32 %v7842_v34, %v7842_v34 }
 0x24c   : > { %v6310_v57 = vadd.f32 %v6309_v35, %v6279_v2  ;;  %v7090_v24 = vpack.c.bf16 %v7843_v13, %v7841_v16  ;;  %v6241_v14 = vadd.f32 %v7843_v13, %v6240_v36  ;;  %v6280_v41 = vmul.f32 %v7843_v13, %v7843_v13 }
 0x24d   : > { %7159 = vst [vmem:[%s10548_s25 + $0x18] sm:$0xff] %v7095_v58  }
 0x24e   : > { %7158 = vst [vmem:[%s10548_s25 + $0x10] sm:$0xff] %v7090_v24   ;;  %v6242_v15 = vadd.f32 %v7840_v33, %v6241_v14  ;;  %v6311_v26 = vadd.f32 %v6310_v57, %v6280_v41  ;;  %v7798_v1 = vpop.f32.mrb[8].mxu0 }
 0x24f   : > { %v7844_v42 = vadd.f32 %v7798_v1, %v7558_v40  ;;  %v5854_v55 = vpop.f32.mrb[9].mxu0 }
 0x250   : > { %v6312_v17 = vadd.f32 %v6311_v26, %v6281_v53  ;;  %v7845_v60 = vadd.f32 %v5854_v55, %v2816_v59  ;;  %v6243_v4 = vadd.f32 %v7842_v34, %v6242_v15  ;;  %v7799_v9 = vpop.f32.mrb[10].mxu0 }
 0x251   : > { %v7846_v10 = vadd.f32 %v7799_v9, %v7559_v29  ;;  %v5857_v31 = vpop.f32.mrb[11].mxu0  ;;  %v6285_v40 = vmul.f32 %v7844_v42, %v7844_v42 }
 0x252   : > { %v6244_v48 = vadd.f32 %v7845_v60, %v6243_v4  ;;  %v6283_v7 = vmul.f32 %v7845_v60, %v7845_v60  ;;  %v6313_v3 = vadd.f32 %v6312_v17, %v6282_v44  ;;  %v7847_v43 = vadd.f32 %v5857_v31, %v2819_v12 }
 0x253   : > { %v7105_v39 = vpack.c.bf16 %v7846_v10, %v7844_v42  ;;  %v6286_v29 = vmul.f32 %v7846_v10, %v7846_v10 }
 0x254   : > { %v6314_v61 = vadd.f32 %v6313_v3, %v6283_v7  ;;  %v7100_v23 = vpack.c.bf16 %v7847_v43, %v7845_v60  ;;  %v6245_v5 = vadd.f32 %v7847_v43, %v6244_v48  ;;  %v6284_v38 = vmul.f32 %v7847_v43, %v7847_v43 }
 0x255   : > { %7161 = vst [vmem:[%s10548_s25 + $0x28] sm:$0xff] %v7105_v39  }
 0x256   : > { %7160 = vst [vmem:[%s10548_s25 + $0x20] sm:$0xff] %v7100_v23   ;;  %v6246_v20 = vadd.f32 %v7844_v42, %v6245_v5  ;;  %v6315_v18 = vadd.f32 %v6314_v61, %v6284_v38  ;;  %v7802_v59 = vpop.f32.mrb[12].mxu0 }
 0x257   : > { %v7848_v62 = vadd.f32 %v7802_v59, %v10535_v56  ;;  %v5870_v0 = vpop.f32.mrb[13].mxu0 }
 0x258   : > { %v6316_v50 = vadd.f32 %v6315_v18, %v6285_v40  ;;  %v7849_v30 = vadd.f32 %v5870_v0, %v10537_v28  ;;  %v6247_v46 = vadd.f32 %v7846_v10, %v6246_v20  ;;  %v7803_v12 = vpop.f32.mrb[14].mxu0 }
 0x259   : > { %v7850_v49 = vadd.f32 %v7803_v12, %v10539_v27  ;;  %v5873_v51 = vpop.f32.mrb[15].mxu0  ;;  %v6289_v16 = vmul.f32 %v7848_v62, %v7848_v62 }
 0x25a   : > { %v7614_v37 = vpop.f32.mrb[16].mxu1  ;;  %v6248_v25 = vadd.f32 %v7849_v30, %v6247_v46  ;;  %v6287_v19 = vmul.f32 %v7849_v30, %v7849_v30  ;;  %v6317_v8 = vadd.f32 %v6316_v50, %v6286_v29  ;;  %v7851_v63 = vadd.f32 %v5873_v51, %v10541_v6 }
 0x25b   : > { %v3618_v45 = vpop.f32.mrb[17].mxu1  ;;  %v7115_v56 = vpack.c.bf16 %v7850_v49, %v7848_v62  ;;  %v6290_v36 = vmul.f32 %v7850_v49, %v7850_v49 }
 0x25c   : > { %v7615_v22 = vpop.f32.mrb[18].mxu1  ;;  %v6318_v33 = vadd.f32 %v6317_v8, %v6287_v19  ;;  %v7110_v32 = vpack.c.bf16 %v7851_v63, %v7849_v30  ;;  %v6249_v21 = vadd.f32 %v7851_v63, %v6248_v25  ;;  %v6288_v28 = vmul.f32 %v7851_v63, %v7851_v63 }
 0x25d   : > { %v3621_v47 = vpop.f32.mrb[19].mxu1  ;;  %7163 = vst [vmem:[%s10548_s25 + $0x38] sm:$0xff] %v7115_v56  }
 0x25e   : > { %7162 = vst [vmem:[%s10548_s25 + $0x30] sm:$0xff] %v7110_v32   ;;  %v6250_v27 = vadd.f32 %v7848_v62, %v6249_v21  ;;  %v6319_v52 = vadd.f32 %v6318_v33, %v6288_v28  ;;  %v7806_v11 = vpop.f32.mrb[16].mxu0 }
 0x25f   : > { %v7852_v34 = vadd.f32 %v7806_v11, %v7614_v37  ;;  %v5886_v54 = vpop.f32.mrb[17].mxu0 }
 0x260   : > { %v6320_v2 = vadd.f32 %v6319_v52, %v6289_v16  ;;  %v7853_v35 = vadd.f32 %v5886_v54, %v3618_v45  ;;  %v6251_v6 = vadd.f32 %v7850_v49, %v6250_v27  ;;  %v7807_v13 = vpop.f32.mrb[18].mxu0 }
 0x261   : > { %v7854_v58 = vadd.f32 %v7807_v13, %v7615_v22  ;;  %v5889_v57 = vpop.f32.mrb[19].mxu0  ;;  %v6293_v9 = vmul.f32 %v7852_v34, %v7852_v34 }
 0x262   : > { %v7618_v24 = vpop.f32.mrb[20].mxu1  ;;  %v6252_v14 = vadd.f32 %v7853_v35, %v6251_v6  ;;  %v6291_v41 = vmul.f32 %v7853_v35, %v7853_v35  ;;  %v6321_v53 = vadd.f32 %v6320_v2, %v6290_v36  ;;  %v7855_v15 = vadd.f32 %v5889_v57, %v3621_v47 }
 0x263   : > { %v3634_v26 = vpop.f32.mrb[21].mxu1  ;;  %v7125_v1 = vpack.c.bf16 %v7854_v58, %v7852_v34  ;;  %v6294_v43 = vmul.f32 %v7854_v58, %v7854_v58 }
 0x264   : > { %v7619_v42 = vpop.f32.mrb[22].mxu1  ;;  %v6322_v55 = vadd.f32 %v6321_v53, %v6291_v41  ;;  %v7120_v44 = vpack.c.bf16 %v7855_v15, %v7853_v35  ;;  %v6253_v17 = vadd.f32 %v7855_v15, %v6252_v14  ;;  %v6292_v60 = vmul.f32 %v7855_v15, %v7855_v15 }
 0x265   : > { %v3637_v4 = vpop.f32.mrb[23].mxu1  ;;  %7165 = vst [vmem:[%s10548_s25 + $0x48] sm:$0xff] %v7125_v1  }
 0x266   : > { %7164 = vst [vmem:[%s10548_s25 + $0x40] sm:$0xff] %v7120_v44   ;;  %v6254_v10 = vadd.f32 %v7852_v34, %v6253_v17  ;;  %v6323_v31 = vadd.f32 %v6322_v55, %v6292_v60  ;;  %v7810_v48 = vpop.f32.mrb[20].mxu0 }
 0x267   : > { %v7856_v7 = vadd.f32 %v7810_v48, %v7618_v24  ;;  %v5902_v3 = vpop.f32.mrb[21].mxu0 }
 0x268   : > { %v6324_v39 = vadd.f32 %v6323_v31, %v6293_v9  ;;  %v7857_v61 = vadd.f32 %v5902_v3, %v3634_v26  ;;  %v6255_v23 = vadd.f32 %v7854_v58, %v6254_v10  ;;  %v7811_v5 = vpop.f32.mrb[22].mxu0 }
 0x269   : > { %v7858_v38 = vadd.f32 %v7811_v5, %v7619_v42  ;;  %v5905_v40 = vpop.f32.mrb[23].mxu0  ;;  %v6297_v25 = vmul.f32 %v7856_v7, %v7856_v7 }
 0x26a   : > { %v7622_v20 = vpop.f32.mrb[24].mxu1  ;;  %v6256_v18 = vadd.f32 %v7857_v61, %v6255_v23  ;;  %v6295_v59 = vmul.f32 %v7857_v61, %v7857_v61  ;;  %v6325_v62 = vadd.f32 %v6324_v39, %v6294_v43  ;;  %v7859_v0 = vadd.f32 %v5905_v40, %v3637_v4 }
 0x26b   : > { %v3650_v29 = vpop.f32.mrb[25].mxu1  ;;  %v7135_v50 = vpack.c.bf16 %v7858_v38, %v7856_v7  ;;  %v6298_v22 = vmul.f32 %v7858_v38, %v7858_v38 }
 0x26c   : > { %v7623_v30 = vpop.f32.mrb[26].mxu1  ;;  %v6326_v46 = vadd.f32 %v6325_v62, %v6295_v59  ;;  %v7130_v12 = vpack.c.bf16 %v7859_v0, %v7857_v61  ;;  %v6257_v49 = vadd.f32 %v7859_v0, %v6256_v18  ;;  %v6296_v51 = vmul.f32 %v7859_v0, %v7859_v0 }
 0x26d   : > { %v3653_v37 = vpop.f32.mrb[27].mxu1  ;;  %7167 = vst [vmem:[%s10548_s25 + $0x58] sm:$0xff] %v7135_v50  }
 0x26e   : > { %7166 = vst [vmem:[%s10548_s25 + $0x50] sm:$0xff] %v7130_v12   ;;  %v6258_v19 = vadd.f32 %v7856_v7, %v6257_v49  ;;  %v6327_v8 = vadd.f32 %v6326_v46, %v6296_v51  ;;  %v7814_v63 = vpop.f32.mrb[24].mxu0 }
 0x26f   : > { %v7860_v45 = vadd.f32 %v7814_v63, %v7622_v20  ;;  %v5918_v56 = vpop.f32.mrb[25].mxu0 }
 0x270   : > { %v6328_v33 = vadd.f32 %v6327_v8, %v6297_v25  ;;  %v7861_v32 = vadd.f32 %v5918_v56, %v3650_v29  ;;  %v6259_v21 = vadd.f32 %v7858_v38, %v6258_v19  ;;  %v7815_v28 = vpop.f32.mrb[26].mxu0 }
 0x271   : > { %v7862_v47 = vadd.f32 %v7815_v28, %v7623_v30  ;;  %v5921_v16 = vpop.f32.mrb[27].mxu0  ;;  %v6301_v14 = vmul.f32 %v7860_v45, %v7860_v45 }
 0x272   : > { %v7626_v27 = vpop.f32.mrb[28].mxu1  ;;  %v6260_v52 = vadd.f32 %v7861_v32, %v6259_v21  ;;  %v6299_v11 = vmul.f32 %v7861_v32, %v7861_v32  ;;  %v6329_v34 = vadd.f32 %v6328_v33, %v6298_v22  ;;  %v7863_v54 = vadd.f32 %v5921_v16, %v3653_v37 }
 0x273   : > { %v3666_v36 = vpop.f32.mrb[29].mxu1  ;;  %v7145_v2 = vpack.c.bf16 %v7862_v47, %v7860_v45  ;;  %v6302_v42 = vmul.f32 %v7862_v47, %v7862_v47 }
 0x274   : > { %v7627_v35 = vpop.f32.mrb[30].mxu1  ;;  %v6330_v6 = vadd.f32 %v6329_v34, %v6299_v11  ;;  %v7140_v13 = vpack.c.bf16 %v7863_v54, %v7861_v32  ;;  %v6261_v58 = vadd.f32 %v7863_v54, %v6260_v52  ;;  %v6300_v57 = vmul.f32 %v7863_v54, %v7863_v54 }
 0x275   : > { %v3669_v24 = vpop.f32.mrb[31].mxu1  ;;  %7169 = vst [vmem:[%s10548_s25 + $0x68] sm:$0xff] %v7145_v2  }
 0x276   : > { %7168 = vst [vmem:[%s10548_s25 + $0x60] sm:$0xff] %v7140_v13   ;;  %v6262_v41 = vadd.f32 %v7860_v45, %v6261_v58  ;;  %v6331_v53 = vadd.f32 %v6330_v6, %v6300_v57  ;;  %v7818_v15 = vpop.f32.mrb[28].mxu0 }
 0x277   : > { %v7864_v26 = vadd.f32 %v7818_v15, %v7626_v27  ;;  %v5934_v1 = vpop.f32.mrb[29].mxu0 }
 0x278   : > { %v6332_v55 = vadd.f32 %v6331_v53, %v6301_v14  ;;  %v7865_v44 = vadd.f32 %v5934_v1, %v3666_v36  ;;  %v6263_v17 = vadd.f32 %v7862_v47, %v6262_v41  ;;  %v7819_v60 = vpop.f32.mrb[30].mxu0 }
 0x279   : > { %v7866_v4 = vadd.f32 %v7819_v60, %v7627_v35  ;;  %v5937_v9 = vpop.f32.mrb[31].mxu0  ;;  %v6305_v5 = vmul.f32 %v7864_v26, %v7864_v26 }
 0x27a   : > { %v6264_v10 = vadd.f32 %v7865_v44, %v6263_v17  ;;  %v6303_v31 = vmul.f32 %v7865_v44, %v7865_v44  ;;  %v6333_v48 = vadd.f32 %v6332_v55, %v6302_v42  ;;  %v7867_v7 = vadd.f32 %v5937_v9, %v3669_v24 }
 0x27b   : > { %v7155_v3 = vpack.c.bf16 %v7866_v4, %v7864_v26  ;;  %v6306_v20 = vmul.f32 %v7866_v4, %v7866_v4 }
 0x27c   : > { %v6334_v43 = vadd.f32 %v6333_v48, %v6303_v31  ;;  %v7150_v39 = vpack.c.bf16 %v7867_v7, %v7865_v44  ;;  %v6265_v61 = vadd.f32 %v7867_v7, %v6264_v10  ;;  %v6304_v23 = vmul.f32 %v7867_v7, %v7867_v7 }
 0x27d   : > { %7171 = vst [vmem:[%s10548_s25 + $0x78] sm:$0xff] %v7155_v3  }
 0x27e   : > { %7170 = vst [vmem:[%s10548_s25 + $0x70] sm:$0xff] %v7150_v39   ;;  %v6266_v38 = vadd.f32 %v7864_v26, %v6265_v61  ;;  %v6335_v40 = vadd.f32 %v6334_v43, %v6304_v23 }
 0x280   : > { %v6267_v18 = vadd.f32 %v7866_v4, %v6266_v38  ;;  %v6336_v59 = vadd.f32 %v6335_v40, %v6305_v5 }
 0x282   : > { %v6268_v62 = vrot.slane %v6267_v18, 4  ;;  %v6337_v0 = vadd.f32 %v6336_v59, %v6306_v20 }
 0x284   : > { %v6269_v29 = vadd.f32 %v6268_v62, %v6267_v18  ;;  %v6338_v50 = vrot.slane %v6337_v0, 4 }
 0x286   : > { %v6270_v30 = vrot.slane %v6269_v29, 2  ;;  %v6339_v46 = vadd.f32 %v6338_v50, %v6337_v0 }
 0x288   : > { %v6271_v12 = vadd.f32 %v6270_v30, %v6269_v29  ;;  %v6340_v49 = vrot.slane %v6339_v46, 2 }
 0x28a   : > { %v6272_v51 = vrot.slane %v6271_v12, 1  ;;  %v6341_v37 = vadd.f32 %v6340_v49, %v6339_v46 }
 0x28c   : > { %v6273_v25 = vadd.f32 %v6272_v51, %v6271_v12  ;;  %v6342_v19 = vrot.slane %v6341_v37, 1 }
 0x28e   : > { %6274 = vst [vmem:[%s303_s27] sm:$0x1] %v6273_v25  ;;  %v6343_v8 = vadd.f32 %v6342_v19, %v6341_v37 }
 0x290   : > { %6344 = vst [vmem:[%s309_s30] sm:$0x1] %v6343_v8 }
 0x291 PF: > { %s17_s1 = sadd.s32 1, %s8371_s1   ;;  %s10797_s21 = smov %s8367_s22 }
 0x292   : > { %p14_p5 = scmp.ge.s32.totalorder %s17_s1, 4   ;;  %s10798_s22 = smov %s10800_s2 }
 0x294   :  { %16 = sbr.rel (!%p14_p5) target bundleno = 2 (0x2), region = 106 }

// kernel: double_conv.4
= control target key start
LH: loop header
LB: loop body
LE: loop exit
PB: predicated region body
PF: predicated region fallthrough
CT: control target
= control target key end

     0   :  { %s8796_s21 = smov 0   ;;  %s8798_s22 = smov 0   ;;  %s11041_s0 = inlined_call_operand.vmem [shape: bf16[2,16,16,128], index: 0, kind: input, shape index: {}]   ;;  %s11042_s1 = inlined_call_operand.vmem [shape: f32[1,128], index: 1, kind: input, shape index: {}]   ;;  %s11043_s2 = inlined_call_operand.vmem [shape: f32[1,128], index: 2, kind: input, shape index: {}]   ;;  %s11044_s3 = inlined_call_operand.vmem [shape: bf16[9,128,128], index: 3, kind: input, shape index: {}]   ;;  %s11045_s4 = inlined_call_operand.vmem [shape: bf16[2,16,16,128], index: 4, kind: output, shape index: {0}]   ;;  %s11046_s5 = inlined_call_operand.vmem [shape: f32[2,1,128], index: 5, kind: output, shape index: {1}]   ;;  %s11047_s6 = inlined_call_operand.vmem [shape: f32[2,1,128], index: 6, kind: output, shape index: {2}]  }
   0x1   :  { %s8800_s23 = smov 0  }
   0x2 LB: > { %s29_s24 = sadd.s32 1, %s8754_s22  ;;  %p6754_p0 = scmp.ge.s32.totalorder %s8758_s23, 1  ;;  %s8758_s23 = sphi %s8800_s23, %s17_s23   ;;  %s8754_s22 = sphi %s8798_s22, %s11265_s22   ;;  %s8750_s21 = sphi %s8796_s21, %s11264_s21  }
   0x3   : > { %p31_p1 = scmp.ge.s32.totalorder %s29_s24, 2  ;;  %p235_p2 = scmp.lt.s32.totalorder %s8758_s23, 3 }
   0x5   : > { %s11267_s24 = smov (%p31_p1, %s29_s24), 0  ;;  %p236_p3 = pnand %p6754_p0, %p235_p2 }
   0x7   : > { %239 = sbr.rel (%p236_p3) target bundleno = 700 (0x2bc), region = 36 }
   0xe   : > { %v8500_v0 = vld [vmem:[%s11044_s3] sm:$0xff]   ;;  %v8822_v1 = vld [vmem:[%s11044_s3 + $0x8] sm:$0xff]   ;;  %v8760_v2 = vmov 0   ;;  %p282_p4 = scmp.lt.s32.totalorder %s8750_s21, 1  ;;  %v8502_v4 = vld [vmem:[%s11044_s3 + $0x10] sm:$0xff]   ;;  %vm963_vm0 = vcmask 1043456  }
   0xf   : > { %315 = vst [vmem:[#allocation2] sm:$0xf] %v8760_v2  ;;  %316 = vst [vmem:[#allocation2 + $0x4] sm:$0xf] %v8760_v2  ;;  %7771 = vmatprep.subr.bf16.mxu1 %v8500_v0  ;;  %v8503_v3 = vld [vmem:[%s11044_s3 + $0x100] sm:$0xff]   ;;  %v8505_v5 = vld [vmem:[%s11044_s3 + $0x108] sm:$0xff]  }
  0x10   : > { %317 = vst [vmem:[#allocation2 + $0x8] sm:$0x1] %v8760_v2  ;;  %318 = vst [vmem:[#allocation2 + $0xc] sm:$0xf] %v8760_v2  ;;  %7772 = vmatpush3.bf16.msra.mxu1 %v8500_v0  ;;  %s11269_s21 = smov (!%p282_p4, %s8750_s21), 1  ;;  %7963 = vmatprep.subr.bf16.mxu0 %v8503_v3  ;;  %v8507_v6 = vld [vmem:[%s11044_s3 + $0x110] sm:$0xff]  }
  0x11   : > { %319 = vst [vmem:[#allocation2 + $0x10] sm:$0xf] %v8760_v2  ;;  %320 = vst [vmem:[#allocation2 + $0x14] sm:$0x1] %v8760_v2  ;;  %7773 = vmatprep.subr.bf16.mxu1 %v8822_v1  ;;  %7964 = vmatpush3.bf16.msra.mxu0 %v8503_v3  ;;  %v8504_v7 = vld [vmem:[%s11044_s3 + $0x18] sm:$0xff]   ;;  %s7315_s15 = sshll.u32 %s11269_s21, 7  ;;  %s303_s16 = scalar_lea.vmem %s11046_s5, %s11269_s21 }
  0x12   : > { %321 = vst [vmem:[#allocation2 + $0x18] sm:$0xf] %v8760_v2  ;;  %322 = vst [vmem:[#allocation2 + $0x1c] sm:$0xf] %v8760_v2  ;;  %7965 = vmatprep.subr.bf16.mxu0 %v8505_v5  ;;  %v8509_v8 = vld [vmem:[%s11044_s3 + $0x118] sm:$0xff]   ;;  %s8854_s20 = scalar_lea.vmem %s11041_s0, %s7315_s15  ;;  %v8506_v9 = vld [vmem:[%s11044_s3 + $0x20] sm:$0xff]   ;;  %s10953_s13 = scalar_lea.vmem %s11045_s4, %s7315_s15 }
  0x13   : > { %323 = vst [vmem:[#allocation2 + $0x20] sm:$0x1] %v8760_v2  ;;  %324 = vst [vmem:[#allocation2 + $0x24] sm:$0xf] %v8760_v2  ;;  %v7382_v12 = vld [vmem:[%s8854_s20] sm:$0xff]   ;;  %v8508_v16 = vld [vmem:[%s11044_s3 + $0x28] sm:$0xff]   ;;  %s309_s19 = scalar_lea.vmem %s11047_s6, %s11269_s21 }
  0x14   : > { %325 = vst [vmem:[#allocation2 + $0x28] sm:$0xf] %v8760_v2  ;;  %326 = vst [vmem:[#allocation2 + $0x2c] sm:$0x1] %v8760_v2  ;;  %7774 = vmatpush3.bf16.msra.mxu1 %v8822_v1  ;;  %v8511_v13 = vld [vmem:[%s11044_s3 + $0x120] sm:$0xff]   ;;  %v7383_v17 = vunpack.c.l.bf16 %v7382_v12  ;;  %v7384_v18 = vunpack.c.h.bf16 %v7382_v12  ;;  %v7525_v20 = vld [vmem:[%s8854_s20 + $0x8] sm:$0xff]  }
  0x15   : > { %327 = vst [vmem:[#allocation2 + $0x30] sm:$0xf] %v8760_v2  ;;  %328 = vst [vmem:[#allocation2 + $0x34] sm:$0xf] %v8760_v2  ;;  %7775 = vmatprep.subr.bf16.mxu1 %v8502_v4  ;;  %7966 = vmatpush3.bf16.msra.mxu0 %v8505_v5  ;;  %v8872_v15 = vld [vmem:[%s11042_s1] ss:$0 sm:$0xff]  ;;  %v7387_v25 = vunpack.c.l.bf16 %v7525_v20  ;;  %v7388_v26 = vunpack.c.h.bf16 %v7525_v20 }
  0x16   : > { %329 = vst [vmem:[#allocation2 + $0x38] sm:$0x1] %v8760_v2  ;;  %330 = vst [vmem:[#allocation2 + $0x3c] sm:$0xf] %v8760_v2  ;;  %7967 = vmatprep.subr.bf16.mxu0 %v8507_v6  ;;  %v8859_v10 = vld [vmem:[#allocation2] sm:$0xf]  ;;  %v440_v21 = vmul.f32 %v7383_v17, %v8872_v15  ;;  %v441_v24 = vmul.f32 %v7384_v18, %v8872_v15 }
  0x17   : > { %331 = vst [vmem:[#allocation2 + $0x40] sm:$0xf] %v8760_v2  ;;  %332 = vst [vmem:[#allocation2 + $0x44] sm:$0x1] %v8760_v2  ;;  %v8861_v11 = vld [vmem:[#allocation2 + $0x4] sm:$0xf]  ;;  %v442_v34 = vmul.f32 %v7387_v25, %v8872_v15  ;;  %v443_v35 = vmul.f32 %v7388_v26, %v8872_v15 }
  0x18   : > { %333 = vst [vmem:[#allocation2 + $0x48] sm:$0xf] %v8760_v2  ;;  %334 = vst [vmem:[#allocation2 + $0x4c] sm:$0xf] %v8760_v2  ;;  %7776 = vmatpush3.bf16.msra.mxu1 %v8502_v4  ;;  %v6793_v14 = vcombine.low %v8859_v10, %v8861_v11  ;;  %v8880_v19 = vld [vmem:[%s11043_s2] ss:$0 sm:$0xff] }
  0x19   : > { %335 = vst [vmem:[#allocation2 + $0x50] sm:$0x1] %v8760_v2  ;;  %336 = vst [vmem:[#allocation2 + $0x54] sm:$0xf] %v8760_v2  ;;  %7777 = vmatprep.subr.bf16.mxu1 %v8504_v7  ;;  %7968 = vmatpush3.bf16.msra.mxu0 %v8507_v6  ;;  %v7526_v22 = vld [vmem:[%s8854_s20 + $0x10] sm:$0xff]   ;;  %v8513_v23 = vld [vmem:[%s11044_s3 + $0x128] sm:$0xff]   ;;  %v479_v29 = vadd.f32 %v8880_v19, %v440_v21  ;;  %v480_v33 = vadd.f32 %v8880_v19, %v441_v24 }
  0x1a   : > { %337 = vst [vmem:[#allocation2 + $0x58] sm:$0xf] %v8760_v2  ;;  %338 = vst [vmem:[#allocation2 + $0x5c] sm:$0x1] %v8760_v2  ;;  %7969 = vmatprep.subr.bf16.mxu0 %v8509_v8  ;;  %7787 = vmatprep.mubr.bf16.mxu1 %v6793_v14  ;;  %v8510_v27 = vld [vmem:[%s11044_s3 + $0x30] sm:$0xff]   ;;  %v1489_v28 = vshrl.u32 %v8859_v10, 16  ;;  %v7391_v30 = vunpack.c.l.bf16 %v7526_v22  ;;  %v7392_v31 = vunpack.c.h.bf16 %v7526_v22  ;;  %v481_v41 = vadd.f32 %v8880_v19, %v442_v34 }
  0x1b   : > { %339 = vst [vmem:[#allocation2 + $0x60] sm:$0xf] %v8760_v2  ;;  %340 = vst [vmem:[#allocation2 + $0x64] sm:$0xf] %v8760_v2  ;;  %v1492_v32 = vshll.u32 %v8859_v10, 16  ;;  %v511_v36 = vmax.f32 %v479_v29, 0.0  ;;  %v482_v42 = vadd.f32 %v8880_v19, %v443_v35 }
  0x1c   : > { %341 = vst [vmem:[#allocation2 + $0x68] sm:$0x1] %v8760_v2  ;;  %342 = vst [vmem:[#allocation2 + $0x6c] sm:$0xf] %v8760_v2  ;;  %7778 = vmatpush3.bf16.msra.mxu1 %v8504_v7  ;;  %vm639_vm1 = vsmask.f32 256  ;;  %v444_v37 = vmul.f32 %v7391_v30, %v8872_v15  ;;  %v445_v38 = vmul.f32 %v7392_v31, %v8872_v15 }
  0x1d   : > { %343 = vst [vmem:[#allocation2 + $0x70] sm:$0xf] %v8760_v2  ;;  %344 = vst [vmem:[#allocation2 + $0x74] sm:$0x1] %v8760_v2  ;;  %7779 = vmatprep.subr.bf16.mxu1 %v8506_v9  ;;  %7970 = vmatpush3.bf16.msra.mxu0 %v8509_v8  ;;  %vm970_vm2 = vcmask 1040384   ;;  %v512_v39 = vmax.f32 %v480_v33, 0.0  ;;  %v7317_v44 = vpack.c.bf16 %v511_v36, %v511_v36 }
  0x1e   : > { %345 = vst [vmem:[#allocation2 + $0x78] sm:$0xf] %v8760_v2  ;;  %346 = vst [vmem:[#allocation2 + $0x7c] sm:$0xf] %v8760_v2  ;;  %7971 = vmatprep.subr.bf16.mxu0 %v8511_v13  ;;  %vm640_vm3 = vsmask.f32 4368  ;;  %v483_v45 = vadd.f32 %v8880_v19, %v444_v37  ;;  %v484_v46 = vadd.f32 %v8880_v19, %v445_v38 }
  0x1f   : > { %347 = vst [vmem:[#allocation2 + $0x80] sm:$0x1] %v8760_v2  ;;  %348 = vst [vmem:[#allocation2 + $0x84] sm:$0xf] %v8760_v2  ;;  %v8516_v40 = vld [vmem:[%s11044_s3 + $0x130] sm:$0xff]   ;;  %v8512_v43 = vld [vmem:[%s11044_s3 + $0x38] sm:$0xff]   ;;  %v7318_v47 = vpack.c.bf16 %v512_v39, %v512_v39 }
  0x20   : > { %349 = vst [vmem:[#allocation2 + $0x88] sm:$0xf] %v8760_v2  ;;  %350 = vst [vmem:[#allocation2 + $0x8c] sm:$0x1] %v8760_v2  ;;  %7780 = vmatpush3.bf16.msra.mxu1 %v8506_v9  ;;  %vm964_vm4 = vsmask.f32 7938 }
  0x21   : > { %351 = vst [vmem:[#allocation2 + $0x90] sm:$0xf] %v8760_v2  ;;  %352 = vst [vmem:[#allocation2 + $0x94] sm:$0xf] %v8760_v2  ;;  %7781 = vmatprep.subr.bf16.mxu1 %v8508_v16  ;;  %7972 = vmatpush3.bf16.msra.mxu0 %v8511_v13  ;;  %v513_v48 = vmax.f32 %v481_v41, 0.0  ;;  %v514_v49 = vmax.f32 %v482_v42, 0.0 }
  0x22   : > { %353 = vst [vmem:[#allocation2 + $0x98] sm:$0x1] %v8760_v2  ;;  %354 = vst [vmem:[#allocation2 + $0x9c] sm:$0xf] %v8760_v2  ;;  %7973 = vmatprep.subr.bf16.mxu0 %v8513_v23  ;;  %v643_v50 = vshrl.u32 %v7317_v44, 16  ;;  %v646_v51 = vshll.u32 %v7317_v44, 16 }
  0x23   : > { %355 = vst [vmem:[#allocation2 + $0xa0] sm:$0xf] %v8760_v2  ;;  %356 = vst [vmem:[#allocation2 + $0xa4] sm:$0x1] %v8760_v2  ;;  %v515_v52 = vmax.f32 %v483_v45, 0.0  ;;  %v516_v53 = vmax.f32 %v484_v46, 0.0  ;;  %v7319_v58 = vpack.c.bf16 %v513_v48, %v513_v48  ;;  %v7320_v59 = vpack.c.bf16 %v514_v49, %v514_v49 }
  0x24   : > { %357 = vst [vmem:[#allocation2 + $0xa8] sm:$0xf] %v8760_v2  ;;  %358 = vst [vmem:[#allocation2 + $0xac] sm:$0xf] %v8760_v2  ;;  %7782 = vmatpush3.bf16.msra.mxu1 %v8508_v16  ;;  %v8911_v54 = vld [vmem:[%s8854_s20 + $0x18] sm:$0xff]   ;;  %v651_v55 = vshrl.u32 %v7318_v47, 16 }
  0x25   : > { %359 = vst [vmem:[#allocation2 + $0xb0] sm:$0x1] %v8760_v2  ;;  %360 = vst [vmem:[#allocation2 + $0xb4] sm:$0xf] %v8760_v2  ;;  %7783 = vmatprep.subr.bf16.mxu1 %v8510_v27  ;;  %7974 = vmatpush3.bf16.msra.mxu0 %v8513_v23  ;;  %v654_v56 = vshll.u32 %v7318_v47, 16  ;;  %v8517_v57 = vld [vmem:[%s11044_s3 + $0x138] sm:$0xff]   ;;  %v7321_v62 = vpack.c.bf16 %v515_v52, %v515_v52  ;;  %v7322_v63 = vpack.c.bf16 %v516_v53, %v516_v53 }
  0x26   : > { %361 = vst [vmem:[#allocation2 + $0xb8] sm:$0xf] %v8760_v2  ;;  %362 = vst [vmem:[#allocation2 + $0xbc] sm:$0x1] %v8760_v2  ;;  %7975 = vmatprep.subr.bf16.mxu0 %v8516_v40  ;;  %v645_v60 = vrot.slane %v643_v50, 7  ;;  %v8919_v0 = vld [vmem:[%s11044_s3 + $0x40] sm:$0xff]   ;;  %v7395_v1 = vunpack.c.l.bf16 %v8911_v54 }
  0x27   : > { %363 = vst [vmem:[#allocation2 + $0xc0] sm:$0xf] %v8760_v2  ;;  %364 = vst [vmem:[#allocation2 + $0xc4] sm:$0xf] %v8760_v2  ;;  %v966_v61 = vld [vmem:[#allocation2 + $0xc] sm:$0xf] }
  0x28   : > { %365 = vst [vmem:[#allocation2 + $0xc8] sm:$0x1] %v8760_v2  ;;  %366 = vst [vmem:[#allocation2 + $0xcc] sm:$0xf] %v8760_v2  ;;  %7784 = vmatpush3.bf16.msra.mxu1 %v8510_v27  ;;  %v660_v4 = vshrl.u32 %v7319_v58, 16  ;;  %v663_v5 = vshll.u32 %v7319_v58, 16  ;;  %v648_v8 = vor.u32 %v646_v51, %v645_v60 }
  0x29   : > { %367 = vst [vmem:[#allocation2 + $0xd0] sm:$0xf] %v8760_v2  ;;  %368 = vst [vmem:[#allocation2 + $0xd4] sm:$0x1] %v8760_v2  ;;  %7785 = vmatprep.subr.bf16.mxu1 %v8512_v43  ;;  %v653_v2 = vrot.slane %v651_v55, 7  ;;  %v668_v6 = vshrl.u32 %v7320_v59, 16  ;;  %7976 = vmatpush3.bf16.msra.mxu0 %v8516_v40 }
  0x2a   : > { %vm8924_vm5 = vmand %vm963_vm0, %vm964_vm4  ;;  %v649_v9 = vrot.slane %v645_v60, 4  ;;  %v671_v12 = vshll.u32 %v7320_v59, 16  ;;  %v975_v13 = vld [vmem:[#allocation2 + $0x18] sm:$0xf]  ;;  %v677_v14 = vshrl.u32 %v7321_v62, 16  ;;  %7977 = vmatprep.subr.bf16.mxu0 %v8517_v57  ;;  %v662_v17 = vrot.slane %v660_v4, 7 }
  0x2b   : > { %vm8930_vm6 = vmor %vm639_vm1, %vm640_vm3  ;;  %v656_v16 = vor.u32 %v654_v56, %v653_v2  ;;  %v670_v18 = vrot.slane %v668_v6, 7  ;;  %v680_v20 = vshll.u32 %v7321_v62, 16  ;;  %v982_v21 = vld [vmem:[#allocation2 + $0x24] sm:$0xf]  ;;  %v967_v23 = vsel %vm8924_vm5, %v648_v8, %v966_v61  ;;  %v972_v27 = vld [vmem:[#allocation2 + $0x14] sm:$0x1] }
  0x2c   : > { %7786 = vmatpush3.bf16.msra.mxu1 %v8512_v43  ;;  %v8937_v22 = vld [vmem:[%s11044_s3 + $0x140] sm:$0xff]   ;;  %v679_v24 = vrot.slane %v677_v14, 7  ;;  %v685_v25 = vshrl.u32 %v7322_v63, 16  ;;  %v688_v26 = vshll.u32 %v7322_v63, 16  ;;  %968 = vst [vmem:[#allocation2 + $0xc] sm:$0xf] %v967_v23  ;;  %v665_v30 = vor.u32 %v663_v5, %v662_v17  ;;  %vm8946_vm7 = vmand %vm970_vm2, %vm639_vm1 }
  0x2d   : > { %7819 = vmatprep.subr.bf16.mxu1 %v8919_v0  ;;  %v657_v29 = vsel %vm8930_vm6, %v649_v9, %v656_v16  ;;  %v666_v31 = vrot.slane %v662_v17, 4  ;;  %v673_v33 = vor.u32 %v671_v12, %v670_v18  ;;  %v11093_v34 = vmov 0  ;;  %v979_v35 = vld [vmem:[#allocation2 + $0x20] sm:$0x1]  ;;  %7978 = vmatpush3.bf16.msra.mxu0 %v8517_v57  ;;  %v986_v44 = vld [vmem:[#allocation2 + $0x2c] sm:$0x1] }
  0x2e   : > { %v11094_v34 = vsel %vm8946_vm7, 4294967295, %v11093_v34  ;;  %969 = vst [vmem:[#allocation2 + $0x10] sm:$0xf] %v657_v29  ;;  %v675_v36 = vrot.slane %v670_v18, 4  ;;  %v682_v37 = vor.u32 %v680_v20, %v679_v24  ;;  %v683_v38 = vrot.slane %v679_v24, 4  ;;  %8011 = vmatprep.subr.bf16.mxu0 %v8937_v22  ;;  %v7528_v51 = vld [vmem:[%s8854_s20 + $0x20] sm:$0xff]  }
  0x2f   : > { %11095 = vst [vmem:[#allocation4_spill] sm:$0xff] %v11094_v34  ;;  %v687_v39 = vrot.slane %v685_v25, 7  ;;  %v674_v40 = vsel %vm8930_vm6, %v666_v31, %v673_v33  ;;  %v976_v41 = vsel %vm8924_vm5, %v665_v30, %v975_v13  ;;  %v658_v42 = vrot.slane %v653_v2, 4  ;;  %v8970_v56 = vld [vmem:[%s8854_s20 + $0x28] sm:$0xff]   ;;  %v8530_v30 = vld [vmem:[%s11044_s3 + $0x50] sm:$0xff]  }
  0x30   : > { %v7396_v43 = vunpack.c.h.bf16 %v8911_v54  ;;  %977 = vst [vmem:[#allocation2 + $0x18] sm:$0xf] %v976_v41  ;;  %978 = vst [vmem:[#allocation2 + $0x1c] sm:$0xf] %v674_v40  ;;  %v983_v47 = vsel %vm8924_vm5, %v682_v37, %v982_v21  ;;  %v980_v48 = vsel %vm8946_vm7, %v675_v36, %v979_v35  ;;  %v1498_v49 = vshll.u32 %v8861_v11, 16  ;;  %v8525_v10 = vld [vmem:[%s11044_s3 + $0x48] sm:$0xff]  }
  0x31   : > { %v690_v45 = vor.u32 %v688_v26, %v687_v39  ;;  %v692_v46 = vrot.slane %v687_v39, 4  ;;  %984 = vst [vmem:[#allocation2 + $0x24] sm:$0xf] %v983_v47  ;;  %v973_v50 = vsel %vm8946_vm7, %v658_v42, %v972_v27  ;;  %981 = vst [vmem:[#allocation2 + $0x20] sm:$0x1] %v980_v48  ;;  %v1502_v52 = vshrl.u32 %v8861_v11, 16 }
  0x32   : > { %974 = vst [vmem:[#allocation2 + $0x14] sm:$0x1] %v973_v50  ;;  %v8974_v57 = vrot.slane %v1489_v28, 4  ;;  %v446_v11 = vmul.f32 %v7395_v1, %v8872_v15  ;;  %v447_v60 = vmul.f32 %v7396_v43, %v8872_v15  ;;  %v8986_v61 = vrot.slane %v1492_v32, 5  ;;  %v9001_v32 = vld [vmem:[%s8854_s20 + $0x30] sm:$0xff]  }
  0x33   : > { %v691_v53 = vsel %vm8930_vm6, %v683_v38, %v690_v45  ;;  %v987_v55 = vsel %vm8946_vm7, %v692_v46, %v986_v44  ;;  %v8976_v58 = vld [vmem:[#allocation2 + $0xc] sm:$0xf]  ;;  %v7399_v28 = vunpack.c.l.bf16 %v7528_v51  ;;  %v7400_v63 = vunpack.c.h.bf16 %v7528_v51 }
  0x34   : > { %11096 = vst [vmem:[#allocation5_spill] sm:$0xff] %v8974_v57  ;;  %985 = vst [vmem:[#allocation2 + $0x28] sm:$0xf] %v691_v53  ;;  %v8978_v59 = vld [vmem:[#allocation2 + $0xc] sm:$0xf]  ;;  %v7403_v2 = vunpack.c.l.bf16 %v8970_v56  ;;  %v8991_v4 = vrot.slane %v1498_v49, 5  ;;  %v9012_v13 = vadd.f32 %v8880_v19, %v446_v11  ;;  %v9015_v14 = vadd.f32 %v8880_v19, %v447_v60 }
  0x35   : > { %988 = vst [vmem:[#allocation2 + $0x2c] sm:$0x1] %v987_v55  ;;  %11097 = vst [vmem:[#allocation6_spill] sm:$0xff] %v8986_v61  ;;  %v8988_v62 = vld [vmem:[#allocation2 + $0x10] sm:$0xf]  ;;  %v8993_v5 = vrot.slane %v1502_v52, 4  ;;  %v448_v20 = vmul.f32 %v7399_v28, %v8872_v15  ;;  %v449_v21 = vmul.f32 %v7400_v63, %v8872_v15  ;;  %v7404_v23 = vunpack.c.h.bf16 %v8970_v56 }
  0x36   : > { %11098 = vst [vmem:[#allocation7_spill] sm:$0xff] %v8991_v4  ;;  %v6794_v54 = vcombine.low %v8976_v58, %v8988_v62  ;;  %vm1485_vm8 = vsmask.f32 3328  ;;  %v1513_v1 = vshrl.u32 %v8976_v58, 16  ;;  %v3246_v9 = vshrl.u32 %v8978_v59, 16  ;;  %v8535_v52 = vld [vmem:[%s11044_s3 + $0x58] sm:$0xff]  }
  0x37   : > { %11099 = vst [vmem:[#allocation8_spill] sm:$0xff] %v8993_v5  ;;  %v9004_v6 = vld [vmem:[#allocation2 + $0x18] sm:$0xf]  ;;  %v9006_v8 = vld [vmem:[#allocation2 + $0x1c] sm:$0xf]  ;;  %v9028_v24 = vmul.f32 %v7403_v2, %v8872_v15  ;;  %v1516_v25 = vshll.u32 %v8976_v58, 16  ;;  %v7407_v29 = vunpack.c.l.bf16 %v9001_v32  ;;  %v487_v47 = vadd.f32 %v8880_v19, %v448_v20 }
  0x38   : > { %11100 = vst [vmem:[#allocation9_spill] sm:$0xff] %v9004_v6  ;;  %11101 = vst [vmem:[#allocation10_spill] sm:$0xff] %v9006_v8  ;;  %7788 = vmatmul.mubr.bf16.vlgmr.msra.gmra.mrb[0].mxu1 %v6794_v54  ;;  %v6795_v12 = vcombine.low %v9004_v6, %v9006_v8  ;;  %vm1486_vm9 = vsmask.f32 7440  ;;  %v9017_v16 = vld [vmem:[#allocation2 + $0x24] sm:$0xf]  ;;  %v488_v51 = vadd.f32 %v8880_v19, %v449_v21 }
  0x39   : > { %11102 = vst [vmem:[#allocation11_spill] sm:$0xff] %v9017_v16  ;;  %v9019_v17 = vld [vmem:[#allocation2 + $0x10] sm:$0xf]  ;;  %v9021_v18 = vld [vmem:[#allocation2 + $0x14] sm:$0x1]  ;;  %7820 = vmatpush3.bf16.msra.mxu1 %v8919_v0  ;;  %v1522_v26 = vshll.u32 %v8988_v62, 16  ;;  %v7408_v0 = vunpack.c.h.bf16 %v9001_v32  ;;  %vm9065_vm10 = vmor %vm1485_vm8, %vm1486_vm9 }
  0x3a   : > { %7791 = vmatprep.mubr.bf16.mxu1 %v6795_v12  ;;  %7821 = vmatprep.subr.bf16.mxu1 %v8525_v10  ;;  %v9039_v31 = vrot.slane %v1513_v1, 4  ;;  %v1526_v33 = vshrl.u32 %v8988_v62, 16  ;;  %v3248_v35 = vrot.slane %v3246_v9, 4  ;;  %v3249_v36 = vshll.u32 %v8978_v59, 16  ;;  %v9043_v37 = vld [vmem:[#allocation2 + $0x18] sm:$0xf] }
  0x3b   : > { %v9032_v27 = vld [vmem:[#allocation2 + $0x28] sm:$0xf]  ;;  %v3255_v39 = vshll.u32 %v9019_v17, 16  ;;  %v3259_v40 = vshrl.u32 %v9019_v17, 16  ;;  %v3265_v41 = vshll.u32 %v9021_v18, 16  ;;  %v3270_v45 = vshrl.u32 %v9043_v37, 16 }
  0x3c   : > { %v6796_v38 = vcombine.low %v9017_v16, %v9032_v27  ;;  %v9050_v42 = vld [vmem:[#allocation2 + $0x1c] sm:$0xf]  ;;  %v3251_v43 = vrot.slane %v3249_v36, 5  ;;  %v9052_v44 = vld [vmem:[#allocation2 + $0x20] sm:$0x1]  ;;  %v3273_v46 = vshll.u32 %v9043_v37, 16 }
  0x3d   : > { %7822 = vmatpush3.bf16.msra.mxu1 %v8525_v10  ;;  %v3257_v48 = vrot.slane %v3255_v39, 5  ;;  %v3261_v49 = vrot.slane %v3259_v40, 4  ;;  %v3279_v50 = vshll.u32 %v9050_v42, 16  ;;  %v3272_v55 = vrot.slane %v3270_v45, 4  ;;  %v8540_v39 = vld [vmem:[%s11044_s3 + $0x60] sm:$0xff]   ;;  %v7531_v56 = vld [vmem:[%s8854_s20 + $0x38] sm:$0xff]  }
  0x3e   : > { %7823 = vmatprep.subr.bf16.mxu1 %v8530_v30  ;;  %v3252_v53 = vor.u32 %v3251_v43, %v3248_v35  ;;  %v3275_v11 = vrot.slane %v3273_v46, 5  ;;  %v3283_v60 = vshrl.u32 %v9050_v42, 16  ;;  %v3267_v2 = vrot.slane %v3265_v41, 5 }
  0x3f   : > { %v3262_v63 = vor.u32 %v3261_v49, %v3257_v48  ;;  %v3281_v54 = vrot.slane %v3279_v50, 5  ;;  %v3289_v10 = vshll.u32 %v9052_v44, 16  ;;  %v517_v20 = vmax.f32 %v9012_v13, 0.0 }
  0x40   : > { %7792 = vmatmul.mubr.bf16.gmra.mrb[4].mxu1 %v6796_v38  ;;  %v3253_v1 = vrot.slane %v3252_v53, 4  ;;  %v3276_v9 = vor.u32 %v3275_v11, %v3272_v55  ;;  %v3285_v12 = vrot.slane %v3283_v60, 4  ;;  %v518_v36 = vmax.f32 %v9015_v14, 0.0 }
  0x41   : > { %7824 = vmatpush3.bf16.msra.mxu1 %v8530_v30  ;;  %v3263_v21 = vrot.slane %v3262_v63, 4  ;;  %v3291_v35 = vrot.slane %v3289_v10, 5  ;;  %v519_v38 = vmax.f32 %v487_v47, 0.0  ;;  %v7323_v45 = vpack.c.bf16 %v517_v20, %v517_v20  ;;  %v9081_v10 = vld [vmem:[#allocation2 + $0x24] sm:$0xf] }
  0x42   : > { %7825 = vmatprep.subr.bf16.mxu1 %v8535_v52  ;;  %v3258_v40 = vsel %vm9065_vm10, %v3253_v1, %v3257_v48  ;;  %v3277_v41 = vrot.slane %v3276_v9, 4  ;;  %v3286_v43 = vor.u32 %v3285_v12, %v3281_v54  ;;  %v7324_v30 = vpack.c.bf16 %v518_v36, %v518_v36  ;;  %v989_v48 = vld [vmem:[#allocation2 + $0x30] sm:$0xf]  ;;  %v8522_v12 = vld [vmem:[%s11044_s3 + $0x148] sm:$0xff]  }
  0x43   : > { %v3268_v13 = vsel %vm9065_vm10, %v3263_v21, %v3267_v2  ;;  %v520_v46 = vmax.f32 %v488_v51, 0.0  ;;  %v7325_v49 = vpack.c.bf16 %v519_v38, %v519_v38  ;;  %v694_v53 = vshrl.u32 %v7323_v45, 16  ;;  %v8544_v51 = vld [vmem:[%s11044_s3 + $0x68] sm:$0xff]   ;;  %v996_v38 = vld [vmem:[#allocation2 + $0x3c] sm:$0xf] }
  0x44   : > { %v7017_v50 = vcombine.low %v3258_v40, %v3268_v13  ;;  %v3282_v14 = vsel %vm9065_vm10, %v3277_v41, %v3281_v54  ;;  %v3287_v47 = vrot.slane %v3286_v43, 4  ;;  %v697_v55 = vshll.u32 %v7323_v45, 16  ;;  %v9091_v40 = vld [vmem:[#allocation2 + $0x28] sm:$0xf]  ;;  %v9093_v41 = vld [vmem:[#allocation2 + $0x2c] sm:$0x1] }
  0x45   : > { %7826 = vmatpush3.bf16.msra.mxu1 %v8535_v52  ;;  %v702_v11 = vshrl.u32 %v7324_v30, 16  ;;  %v705_v60 = vshll.u32 %v7324_v30, 16  ;;  %v7326_v63 = vpack.c.bf16 %v520_v46, %v520_v46  ;;  %v696_v54 = vrot.slane %v694_v53, 7 }
  0x46   : > { %7827 = vmatprep.subr.bf16.mxu1 %v8540_v39  ;;  %7979 = vmatprep.mubr.bf16.mxu0 %v7017_v50  ;;  %v3292_v2 = vsel %vm9065_vm10, %v3287_v47, %v3291_v35  ;;  %v711_v1 = vshrl.u32 %v7325_v49, 16  ;;  %v714_v9 = vshll.u32 %v7325_v49, 16  ;;  %v3294_v35 = vshrl.u32 %v9081_v10, 16 }
  0x47   : > { %v7018_v52 = vcombine.low %v3282_v14, %v3292_v2  ;;  %v704_v20 = vrot.slane %v702_v11, 7  ;;  %v719_v21 = vshrl.u32 %v7326_v63, 16  ;;  %v722_v36 = vshll.u32 %v7326_v63, 16  ;;  %v8548_v14 = vld [vmem:[%s11044_s3 + $0x70] sm:$0xff]  }
  0x48   : > { %v699_v43 = vor.u32 %v697_v55, %v696_v54  ;;  %v700_v45 = vrot.slane %v696_v54, 4  ;;  %v713_v13 = vrot.slane %v711_v1, 7  ;;  %v3297_v50 = vshll.u32 %v9081_v10, 16 }
  0x49   : > { %7828 = vmatpush3.bf16.msra.mxu1 %v8540_v39  ;;  %7980 = vmatmul.mubr.bf16.vlgmr.msra.gmra.mrb[0].mxu0 %v7018_v52  ;;  %v707_v30 = vor.u32 %v705_v60, %v704_v20  ;;  %v709_v46 = vrot.slane %v704_v20, 4  ;;  %v721_v49 = vrot.slane %v719_v21, 7  ;;  %v3296_v11 = vrot.slane %v3294_v35, 4  ;;  %v8526_v39 = vld [vmem:[%s11044_s3 + $0x150] sm:$0xff]   ;;  %v993_v60 = vld [vmem:[#allocation2 + $0x38] sm:$0x1] }
  0x4a   : > { %7829 = vmatprep.subr.bf16.mxu1 %v8544_v51  ;;  %8012 = vmatpush3.bf16.msra.mxu0 %v8937_v22  ;;  %v990_v47 = vsel %vm8924_vm5, %v699_v43, %v989_v48  ;;  %v716_v53 = vor.u32 %v714_v9, %v713_v13  ;;  %v717_v55 = vrot.slane %v713_v13, 4  ;;  %v3299_v1 = vrot.slane %v3297_v50, 5 }
  0x4b   : > { %8013 = vmatprep.subr.bf16.mxu0 %v8522_v12  ;;  %v708_v63 = vsel %vm8930_vm6, %v700_v45, %v707_v30  ;;  %991 = vst [vmem:[#allocation2 + $0x30] sm:$0xf] %v990_v47  ;;  %v724_v2 = vor.u32 %v722_v36, %v721_v49  ;;  %v726_v54 = vrot.slane %v721_v49, 4  ;;  %v3303_v48 = vshll.u32 %v9091_v40, 16  ;;  %v1000_v45 = vld [vmem:[#allocation2 + $0x44] sm:$0x1] }
  0x4c   : > { %992 = vst [vmem:[#allocation2 + $0x34] sm:$0xf] %v708_v63  ;;  %v997_v22 = vsel %vm8924_vm5, %v716_v53, %v996_v38  ;;  %v3307_v9 = vshrl.u32 %v9091_v40, 16  ;;  %v3313_v52 = vshll.u32 %v9093_v41, 16  ;;  %v3300_v21 = vor.u32 %v3299_v1, %v3296_v11  ;;  %v8527_v38 = vld [vmem:[%s11044_s3 + $0x158] sm:$0xff]   ;;  %v8552_v11 = vld [vmem:[%s11044_s3 + $0x80] sm:$0xff]  }
  0x4d   : > { %7830 = vmatpush3.bf16.msra.mxu1 %v8544_v51  ;;  %v725_v20 = vsel %vm8930_vm6, %v717_v55, %v724_v2  ;;  %998 = vst [vmem:[#allocation2 + $0x3c] sm:$0xf] %v997_v22  ;;  %v994_v36 = vsel %vm8946_vm7, %v709_v46, %v993_v60  ;;  %v451_v43 = vmul.f32 %v7404_v23, %v8872_v15  ;;  %v8550_v51 = vld [vmem:[%s11044_s3 + $0x78] sm:$0xff]   ;;  %v9128_v13 = vrot.slane %v1516_v25, 5 }
  0x4e   : > { %7831 = vmatprep.subr.bf16.mxu1 %v8548_v14  ;;  %8014 = vmatpush3.bf16.msra.mxu0 %v8522_v12  ;;  %999 = vst [vmem:[#allocation2 + $0x40] sm:$0xf] %v725_v20  ;;  %v3305_v35 = vrot.slane %v3303_v48, 5  ;;  %v3309_v30 = vrot.slane %v3307_v9, 4  ;;  %995 = vst [vmem:[#allocation2 + $0x38] sm:$0x1] %v994_v36  ;;  %v489_v46 = vadd.f32 %v8880_v19, %v9028_v24  ;;  %v7411_v55 = vunpack.c.l.bf16 %v7531_v56 }
  0x4f   : > { %v9135_v23 = vrot.slane %v1522_v26, 5  ;;  %v3301_v49 = vrot.slane %v3300_v21, 4  ;;  %8015 = vmatprep.subr.bf16.mxu0 %v8526_v39  ;;  %v490_v50 = vadd.f32 %v8880_v19, %v451_v43  ;;  %v3315_v25 = vrot.slane %v3313_v52, 5 }
  0x50   : > { %v3310_v58 = vor.u32 %v3309_v30, %v3305_v35  ;;  %v521_v47 = vmax.f32 %v489_v46, 0.0  ;;  %v1001_v12 = vsel %vm8946_vm7, %v726_v54, %v1000_v45  ;;  %v452_v24 = vmul.f32 %v7407_v29, %v8872_v15 }
  0x51   : > { %7832 = vmatpush3.bf16.msra.mxu1 %v8548_v14  ;;  %v522_v53 = vmax.f32 %v490_v50, 0.0  ;;  %v453_v26 = vmul.f32 %v7408_v0, %v8872_v15  ;;  %1002 = vst [vmem:[#allocation2 + $0x44] sm:$0x1] %v1001_v12  ;;  %v9151_v60 = vrot.slane %v1526_v33, 4  ;;  %v3306_v29 = vsel %vm9065_vm10, %v3301_v49, %v3305_v35  ;;  %v8531_v33 = vld [vmem:[%s11044_s3 + $0x160] sm:$0xff]  }
  0x52   : > { %7833 = vmatprep.subr.bf16.mxu1 %v8550_v51  ;;  %v9153_v14 = vld [vmem:[#allocation2 + $0x30] sm:$0xf]  ;;  %v3311_v63 = vrot.slane %v3310_v58, 4  ;;  %8016 = vmatpush3.bf16.msra.mxu0 %v8526_v39  ;;  %v7412_v32 = vunpack.c.h.bf16 %v7531_v56  ;;  %v7327_v62 = vpack.c.bf16 %v521_v47, %v521_v47  ;;  %v491_v35 = vadd.f32 %v8880_v19, %v452_v24 }
  0x53   : > { %v9157_v2 = vld [vmem:[#allocation2 + $0x30] sm:$0xf]  ;;  %v9162_v22 = vld [vmem:[#allocation2 + $0x34] sm:$0xf]  ;;  %8017 = vmatprep.subr.bf16.mxu0 %v8527_v38  ;;  %v7328_v21 = vpack.c.bf16 %v522_v53, %v522_v53  ;;  %v492_v30 = vadd.f32 %v8880_v19, %v453_v26  ;;  %v9183_v46 = vmul.f32 %v7411_v55, %v8872_v15  ;;  %v8532_v53 = vld [vmem:[%s11044_s3 + $0x168] sm:$0xff]   ;;  %vm2274_vm11 = vcmask 1042432  }
  0x54   : > { %v6797_v48 = vcombine.low %v9153_v14, %v9162_v22  ;;  %v9169_v9 = vld [vmem:[#allocation2 + $0x3c] sm:$0xf]  ;;  %v3316_v39 = vsel %vm9065_vm10, %v3311_v63, %v3315_v25  ;;  %v9173_v52 = vld [vmem:[#allocation2 + $0x34] sm:$0xf]  ;;  %v3318_v20 = vshrl.u32 %v9157_v2, 16  ;;  %v9189_v50 = vmul.f32 %v7412_v32, %v8872_v15 }
  0x55   : > { %7834 = vmatpush3.bf16.msra.mxu1 %v8550_v51  ;;  %v9176_v36 = vld [vmem:[#allocation2 + $0x40] sm:$0xf]  ;;  %v7019_v43 = vcombine.low %v3306_v29, %v3316_v39  ;;  %v9178_v45 = vld [vmem:[#allocation2 + $0x38] sm:$0x1]  ;;  %v3321_v51 = vshll.u32 %v9157_v2, 16  ;;  %v3327_v58 = vshll.u32 %v9173_v52, 16 }
  0x56   : > { %7867 = vmatprep.subr.bf16.mxu1 %v8552_v11  ;;  %7795 = vmatprep.mubr.bf16.mxu1 %v6797_v48  ;;  %v6798_v56 = vcombine.low %v9169_v9, %v9176_v36  ;;  %v3320_v49 = vrot.slane %v3318_v20, 4  ;;  %v3331_v25 = vshrl.u32 %v9173_v52, 16  ;;  %v3337_v47 = vshll.u32 %v9178_v45, 16  ;;  %v1003_v11 = vld [vmem:[#allocation2 + $0x48] sm:$0xf] }
  0x57   : > { %8018 = vmatpush3.bf16.msra.mxu0 %v8527_v38  ;;  %7983 = vmatprep.mubr.bf16.mxu0 %v7019_v43  ;;  %v728_v12 = vshrl.u32 %v7327_v62, 16  ;;  %v3323_v24 = vrot.slane %v3321_v51, 5  ;;  %v731_v26 = vshll.u32 %v7327_v62, 16  ;;  %v736_v38 = vshrl.u32 %v7328_v21, 16  ;;  %v9197_v29 = vld [vmem:[#allocation2 + $0x3c] sm:$0xf] }
  0x58   : > { %8019 = vmatprep.subr.bf16.mxu0 %v8531_v33  ;;  %7796 = vmatmul.mubr.bf16.gmra.mrb[8].mxu1 %v6798_v56  ;;  %v739_v55 = vshll.u32 %v7328_v21, 16  ;;  %v3329_v63 = vrot.slane %v3327_v58, 5  ;;  %v3333_v32 = vrot.slane %v3331_v25, 4  ;;  %v3339_v48 = vrot.slane %v3337_v47, 5  ;;  %v8536_v62 = vld [vmem:[%s11044_s3 + $0x170] sm:$0xff]  }
  0x59   : > { %v730_v39 = vrot.slane %v728_v12, 7  ;;  %v3324_v20 = vor.u32 %v3323_v24, %v3320_v49  ;;  %v738_v43 = vrot.slane %v736_v38, 7  ;;  %v523_v1 = vmax.f32 %v491_v35, 0.0  ;;  %v1007_v47 = vld [vmem:[#allocation2 + $0x50] sm:$0x1] }
  0x5a   : > { %v524_v54 = vmax.f32 %v492_v30, 0.0  ;;  %v3334_v0 = vor.u32 %v3333_v32, %v3329_v63  ;;  %v3342_v56 = vshrl.u32 %v9197_v29, 16  ;;  %v9205_v30 = vld [vmem:[#allocation2 + $0x40] sm:$0xf]  ;;  %v3345_v32 = vshll.u32 %v9197_v29, 16 }
  0x5b   : > { %8020 = vmatpush3.bf16.msra.mxu0 %v8531_v33  ;;  %v733_v8 = vor.u32 %v731_v26, %v730_v39  ;;  %v734_v6 = vrot.slane %v730_v39, 4  ;;  %v3325_v21 = vrot.slane %v3324_v20, 4  ;;  %v741_v51 = vor.u32 %v739_v55, %v738_v43 }
  0x5c   : > { %8021 = vmatprep.subr.bf16.mxu0 %v8532_v53  ;;  %v743_v58 = vrot.slane %v738_v43, 4  ;;  %v7329_v25 = vpack.c.bf16 %v523_v1, %v523_v1  ;;  %v3335_v49 = vrot.slane %v3334_v0, 4  ;;  %v7330_v33 = vpack.c.bf16 %v524_v54, %v524_v54  ;;  %v9211_v1 = vld [vmem:[#allocation2 + $0x44] sm:$0x1] }
  0x5d   : > { %v1004_v35 = vsel %vm8924_vm5, %v733_v8, %v1003_v11  ;;  %v3344_v12 = vrot.slane %v3342_v56, 4  ;;  %v3330_v24 = vsel %vm9065_vm10, %v3325_v21, %v3329_v63  ;;  %v742_v26 = vsel %vm8930_vm6, %v734_v6, %v741_v51  ;;  %v1010_v11 = vld [vmem:[#allocation2 + $0x54] sm:$0xf]  ;;  %v7532_v43 = vld [vmem:[%s8854_s20 + $0x40] sm:$0xff]  }
  0x5e   : > { %1005 = vst [vmem:[#allocation2 + $0x48] sm:$0xf] %v1004_v35  ;;  %v745_v38 = vshrl.u32 %v7329_v25, 16  ;;  %v748_v55 = vshll.u32 %v7329_v25, 16  ;;  %v3340_v8 = vsel %vm9065_vm10, %v3335_v49, %v3339_v48  ;;  %1006 = vst [vmem:[#allocation2 + $0x4c] sm:$0xf] %v742_v26  ;;  %v1008_v51 = vsel %vm8946_vm7, %v743_v58, %v1007_v47 }
  0x5f   : > { %8022 = vmatpush3.bf16.msra.mxu0 %v8532_v53  ;;  %v753_v0 = vshrl.u32 %v7330_v33, 16  ;;  %v756_v54 = vshll.u32 %v7330_v33, 16  ;;  %v7020_v63 = vcombine.low %v3330_v24, %v3340_v8  ;;  %v3351_v6 = vshll.u32 %v9205_v30, 16  ;;  %v8537_v53 = vld [vmem:[%s11044_s3 + $0x178] sm:$0xff]   ;;  %1009 = vst [vmem:[#allocation2 + $0x50] sm:$0x1] %v1008_v51 }
  0x60   : > { %8023 = vmatprep.subr.bf16.mxu0 %v8536_v62  ;;  %v747_v39 = vrot.slane %v745_v38, 7  ;;  %v3355_v20 = vshrl.u32 %v9205_v30, 16  ;;  %v3347_v48 = vrot.slane %v3345_v32, 5  ;;  %v3361_v21 = vshll.u32 %v9211_v1, 16  ;;  %v9234_v58 = vld [vmem:[%s11044_s3 + $0x180] sm:$0xff]  }
  0x61   : > { %v9222_v56 = vrot.slane %v753_v0, 7  ;;  %7984 = vmatmul.mubr.bf16.gmra.mrb[4].mxu0 %v7020_v63  ;;  %v3353_v35 = vrot.slane %v3351_v6, 5  ;;  %v7415_v8 = vunpack.c.l.bf16 %v7532_v43  ;;  %vm2275_vm12 = vcmask 1046532  }
  0x62   : > { %v750_v25 = vor.u32 %v748_v55, %v747_v39  ;;  %v751_v49 = vrot.slane %v747_v39, 4  ;;  %v3357_v33 = vrot.slane %v3355_v20, 4  ;;  %v3348_v38 = vor.u32 %v3347_v48, %v3344_v12  ;;  %vm9368_vm13 = vmor %vm2274_vm11, %vm2275_vm12 }
  0x63   : > { %v758_v26 = vor.u32 %v756_v54, %v9222_v56  ;;  %8024 = vmatpush3.bf16.msra.mxu0 %v8536_v62  ;;  %v3363_v5 = vrot.slane %v3361_v21, 5  ;;  %v493_v62 = vadd.f32 %v8880_v19, %v9183_v46  ;;  %v760_v39 = vrot.slane %v9222_v56, 4 }
  0x64   : > { %v1011_v0 = vsel %vm8924_vm5, %v750_v25, %v1010_v11  ;;  %v3358_v32 = vor.u32 %v3357_v33, %v3353_v35  ;;  %8025 = vmatprep.subr.bf16.mxu0 %v8537_v53  ;;  %v3349_v12 = vrot.slane %v3348_v38, 4  ;;  %v494_v11 = vadd.f32 %v8880_v19, %v9189_v50  ;;  %v1014_v33 = vld [vmem:[#allocation2 + $0x5c] sm:$0x1] }
  0x65   : > { %v9236_v47 = vld [vmem:[#allocation2 + $0x48] sm:$0xf]  ;;  %v759_v55 = vsel %vm8930_vm6, %v751_v49, %v758_v26  ;;  %1012 = vst [vmem:[#allocation2 + $0x54] sm:$0xf] %v1011_v0  ;;  %v9246_v63 = vld [vmem:[#allocation2 + $0x4c] sm:$0xf]  ;;  %v7416_v48 = vunpack.c.h.bf16 %v7532_v43  ;;  %v456_v19 = vmul.f32 %v7415_v8, %v8872_v15 }
  0x66   : > { %v9240_v54 = vld [vmem:[#allocation2 + $0x48] sm:$0xf]  ;;  %1013 = vst [vmem:[#allocation2 + $0x58] sm:$0xf] %v759_v55  ;;  %v3359_v6 = vrot.slane %v3358_v32, 4  ;;  %v6799_v21 = vcombine.low %v9236_v47, %v9246_v63  ;;  %v3354_v51 = vsel %vm9065_vm10, %v3349_v12, %v3353_v35  ;;  %v525_v0 = vmax.f32 %v493_v62, 0.0 }
  0x67   : > { %v3366_v20 = vshrl.u32 %v9240_v54, 16  ;;  %v9254_v25 = vld [vmem:[#allocation2 + $0x4c] sm:$0xf]  ;;  %v3369_v46 = vshll.u32 %v9240_v54, 16  ;;  %8026 = vmatpush3.bf16.msra.mxu0 %v8537_v53  ;;  %v9263_v26 = vld [vmem:[#allocation2 + $0x50] sm:$0x1] }
  0x68   : > { %v3364_v50 = vsel %vm9065_vm10, %v3359_v6, %v3363_v5  ;;  %v3375_v49 = vshll.u32 %v9254_v25, 16  ;;  %v3379_v43 = vshrl.u32 %v9254_v25, 16  ;;  %8059 = vmatprep.subr.bf16.mxu0 %v9234_v58  ;;  %7799 = vmatprep.mubr.bf16.mxu1 %v6799_v21  ;;  %v526_v32 = vmax.f32 %v494_v11, 0.0  ;;  %v9269_v5 = vld [vmem:[%s11042_s1] ss:$0 sm:$0xff] }
  0x69   : > { %v3368_v56 = vrot.slane %v3366_v20, 4  ;;  %v7021_v35 = vcombine.low %v3354_v51, %v3364_v50  ;;  %v3371_v38 = vrot.slane %v3369_v46, 5  ;;  %v3385_v8 = vshll.u32 %v9263_v26, 16  ;;  %v9275_v62 = vld [vmem:[%s11043_s2] ss:$0 sm:$0xff] }
  0x6a   : > { %v3377_v15 = vrot.slane %v3375_v49, 5  ;;  %v3381_v53 = vrot.slane %v3379_v43, 4  ;;  %v457_v55 = vmul.f32 %v9269_v5, %v7416_v48  ;;  %v7331_v6 = vpack.c.bf16 %v525_v0, %v525_v0 }
  0x6b   : > { %7987 = vmatprep.mubr.bf16.mxu0 %v7021_v35  ;;  %v3372_v12 = vor.u32 %v3371_v38, %v3368_v56  ;;  %v7332_v20 = vpack.c.bf16 %v526_v32, %v526_v32  ;;  %v495_v11 = vadd.f32 %v9275_v62, %v456_v19  ;;  %v3387_v46 = vrot.slane %v3385_v8, 5  ;;  %v1017_v8 = vld [vmem:[#allocation2 + $0x60] sm:$0xf] }
  0x6c   : > { %v9278_v21 = vld [vmem:[#allocation2 + $0x54] sm:$0xf]  ;;  %v3382_v51 = vor.u32 %v3381_v53, %v3377_v15  ;;  %v496_v50 = vadd.f32 %v9275_v62, %v457_v55  ;;  %v1015_v48 = vsel %vm8946_vm7, %v760_v39, %v1014_v33  ;;  %v762_v35 = vshrl.u32 %v7331_v6, 16 }
  0x6d   : > { %11105 = vst [vmem:[#allocation12_spill] sm:$0xff] %v9278_v21  ;;  %v9285_v49 = vld [vmem:[#allocation2 + $0x58] sm:$0xf]  ;;  %v3373_v43 = vrot.slane %v3372_v12, 4  ;;  %1016 = vst [vmem:[#allocation2 + $0x5c] sm:$0x1] %v1015_v48 }
  0x6e   : > { %11106 = vst [vmem:[#allocation13_spill] sm:$0xff] %v9285_v49  ;;  %v9287_v38 = vld [vmem:[#allocation2 + $0x54] sm:$0xf]  ;;  %v6800_v0 = vcombine.low %v9278_v21, %v9285_v49  ;;  %v3383_v32 = vrot.slane %v3382_v51, 4  ;;  %v765_v53 = vshll.u32 %v7331_v6, 16  ;;  %v764_v33 = vrot.slane %v762_v35, 7 }
  0x6f   : > { %v9292_v55 = vld [vmem:[#allocation2 + $0x58] sm:$0xf]  ;;  %v3378_v39 = vsel %vm9065_vm10, %v3373_v43, %v3377_v15  ;;  %v770_v12 = vshrl.u32 %v7332_v20, 16  ;;  %v773_v24 = vshll.u32 %v7332_v20, 16  ;;  %v527_v19 = vmax.f32 %v495_v11, 0.0  ;;  %v7533_v43 = vld [vmem:[%s8854_s20 + $0x48] sm:$0xff]  }
  0x70   : > { %11107 = vst [vmem:[#allocation14_spill] sm:$0xff] %v9292_v55  ;;  %7800 = vmatmul.mubr.bf16.gmra.mrb[12].mxu1 %v6800_v0  ;;  %v3388_v48 = vsel %vm9065_vm10, %v3383_v32, %v3387_v46  ;;  %v528_v56 = vmax.f32 %v496_v50, 0.0  ;;  %v3390_v16 = vshrl.u32 %v9287_v38, 16  ;;  %v767_v6 = vor.u32 %v765_v53, %v764_v33  ;;  %v1021_v50 = vld [vmem:[#allocation2 + $0x68] sm:$0x1] }
  0x71   : > { %v7022_v51 = vcombine.low %v3378_v39, %v3388_v48  ;;  %v768_v49 = vrot.slane %v764_v33, 4  ;;  %v772_v21 = vrot.slane %v770_v12, 7  ;;  %v7333_v4 = vpack.c.bf16 %v527_v19, %v527_v19 }
  0x72   : > { %v7334_v61 = vpack.c.bf16 %v528_v56, %v528_v56  ;;  %v3392_v57 = vrot.slane %v3390_v16, 4  ;;  %v3393_v15 = vshll.u32 %v9287_v38, 16  ;;  %v1018_v46 = vsel %vm8924_vm5, %v767_v6, %v1017_v8  ;;  %v1024_v56 = vld [vmem:[#allocation2 + $0x6c] sm:$0xf] }
  0x73   : > { %7988 = vmatmul.mubr.bf16.gmra.mrb[8].mxu0 %v7022_v51  ;;  %v775_v20 = vor.u32 %v773_v24, %v772_v21  ;;  %v777_v35 = vrot.slane %v772_v21, 4  ;;  %v3399_v11 = vshll.u32 %v9292_v55, 16  ;;  %1019 = vst [vmem:[#allocation2 + $0x60] sm:$0xf] %v1018_v46  ;;  %v779_v0 = vshrl.u32 %v7333_v4, 16 }
  0x74   : > { %v782_v32 = vshll.u32 %v7333_v4, 16  ;;  %v787_v53 = vshrl.u32 %v7334_v61, 16  ;;  %v790_v39 = vshll.u32 %v7334_v61, 16  ;;  %v9304_v19 = vld [vmem:[#allocation2 + $0x5c] sm:$0x1]  ;;  %v3395_v24 = vrot.slane %v3393_v15, 5 }
  0x75   : > { %11108 = vst [vmem:[#allocation15_spill] sm:$0xff] %v9304_v19  ;;  %v776_v16 = vsel %vm8930_vm6, %v768_v49, %v775_v20  ;;  %v3401_v21 = vrot.slane %v3399_v11, 5  ;;  %v3403_v33 = vshrl.u32 %v9292_v55, 16  ;;  %v781_v8 = vrot.slane %v779_v0, 7  ;;  %v7534_v49 = vld [vmem:[%s8854_s20 + $0x50] sm:$0xff]  }
  0x76   : > { %1020 = vst [vmem:[#allocation2 + $0x64] sm:$0xf] %v776_v16  ;;  %v9309_v12 = vrot.slane %v787_v53, 7  ;;  %v3409_v48 = vshll.u32 %v9304_v19, 16  ;;  %v1022_v61 = vsel %vm8946_vm7, %v777_v35, %v1021_v50  ;;  %v3396_v4 = vor.u32 %v3395_v24, %v3392_v57 }
  0x77   : > { %v3405_v51 = vrot.slane %v3403_v33, 4  ;;  %1023 = vst [vmem:[#allocation2 + $0x68] sm:$0x1] %v1022_v61  ;;  %v7419_v6 = vunpack.c.l.bf16 %v7533_v43  ;;  %v7420_v46 = vunpack.c.h.bf16 %v7533_v43  ;;  %v784_v20 = vor.u32 %v782_v32, %v781_v8 }
  0x78   : > { %11109 = vst [vmem:[#allocation16_spill] sm:$0xff] %v9309_v12  ;;  %v785_v15 = vrot.slane %v781_v8, 4  ;;  %v792_v11 = vor.u32 %v790_v39, %v9309_v12  ;;  %v3411_v55 = vrot.slane %v3409_v48, 5  ;;  %v3397_v16 = vrot.slane %v3396_v4, 4 }
  0x79   : > { %v3406_v0 = vor.u32 %v3405_v51, %v3401_v21  ;;  %v458_v53 = vmul.f32 %v9269_v5, %v7419_v6  ;;  %v459_v19 = vmul.f32 %v9269_v5, %v7420_v46  ;;  %v1025_v43 = vsel %vm8924_vm5, %v784_v20, %v1024_v56 }
  0x7a   : > { %v793_v57 = vsel %vm8930_vm6, %v785_v15, %v792_v11  ;;  %v7423_v35 = vunpack.c.l.bf16 %v7534_v49  ;;  %v9322_v50 = vld [vmem:[#allocation2 + $0x60] sm:$0xf]  ;;  %1026 = vst [vmem:[#allocation2 + $0x6c] sm:$0xf] %v1025_v43  ;;  %v3402_v32 = vsel %vm9065_vm10, %v3397_v16, %v3401_v21  ;;  %v11110_v48 = vor.u32 %v9128_v13, %v9039_v31 }
  0x7b   : > { %1027 = vst [vmem:[#allocation2 + $0x70] sm:$0xf] %v793_v57  ;;  %v3407_v39 = vrot.slane %v3406_v0, 4  ;;  %v9326_v24 = vld [vmem:[#allocation2 + $0x60] sm:$0xf]  ;;  %v497_v33 = vadd.f32 %v9275_v62, %v458_v53  ;;  %v498_v8 = vadd.f32 %v9275_v62, %v459_v19  ;;  %v7424_v51 = vunpack.c.h.bf16 %v7534_v49 }
  0x7c   : > { %v9333_v61 = vrot.slane %v11110_v48, 4  ;;  %v3414_v56 = vshrl.u32 %v9326_v24, 16  ;;  %v3417_v4 = vshll.u32 %v9326_v24, 16  ;;  %v460_v49 = vmul.f32 %v9269_v5, %v7423_v35 }
  0x7d   : > { %v9339_v6 = vld [vmem:[#allocation2 + $0x64] sm:$0xf]  ;;  %v3412_v46 = vsel %vm9065_vm10, %v3407_v39, %v3411_v55  ;;  %v529_v19 = vmax.f32 %v497_v33, 0.0  ;;  %v530_v15 = vmax.f32 %v498_v8, 0.0  ;;  %v4036_v8 = vrot.slane %v9021_v18, 5 }
  0x7e   : > { %v9343_v20 = vld [vmem:[#allocation2 + $0x64] sm:$0xf]  ;;  %v6801_v31 = vcombine.low %v9322_v50, %v9339_v6  ;;  %v7023_v13 = vcombine.low %v3402_v32, %v3412_v46  ;;  %v9347_v11 = vld [vmem:[#allocation2 + $0x68] sm:$0x1]  ;;  %v3416_v16 = vrot.slane %v3414_v56, 4  ;;  %v3419_v0 = vrot.slane %v3417_v4, 5 }
  0x7f   : > { %v3423_v53 = vshll.u32 %v9343_v20, 16  ;;  %v3427_v57 = vshrl.u32 %v9343_v20, 16  ;;  %v3433_v55 = vshll.u32 %v9347_v11, 16  ;;  %v7335_v39 = vpack.c.bf16 %v529_v19, %v529_v19 }
  0x80   : > { %7803 = vmatprep.mubr.bf16.mxu1 %v6801_v31  ;;  %7991 = vmatprep.mubr.bf16.mxu0 %v7023_v13  ;;  %v7336_v33 = vpack.c.bf16 %v530_v15, %v530_v15  ;;  %v461_v32 = vmul.f32 %v9269_v5, %v7424_v51  ;;  %v3420_v48 = vor.u32 %v3419_v0, %v3416_v16  ;;  %v4043_v19 = vrot.slane %v9052_v44, 5  ;;  %v1031_v44 = vld [vmem:[#allocation2 + $0x78] sm:$0xf] }
  0x81   : > { %v3425_v56 = vrot.slane %v3423_v53, 5  ;;  %v3429_v35 = vrot.slane %v3427_v57, 4  ;;  %v9356_v4 = vld [vmem:[#allocation2 + $0x6c] sm:$0xf]  ;;  %v796_v21 = vshrl.u32 %v7335_v39, 16  ;;  %v799_v34 = vshll.u32 %v7335_v39, 16 }
  0x82   : > { %11111 = vst [vmem:[#allocation17_spill] sm:$0xff] %v9356_v4  ;;  %v9358_v46 = vld [vmem:[#allocation2 + $0x70] sm:$0xf]  ;;  %v499_v12 = vadd.f32 %v9275_v62, %v460_v49  ;;  %v500_v31 = vadd.f32 %v9275_v62, %v461_v32  ;;  %v3435_v15 = vrot.slane %v3433_v55, 5  ;;  %v7041_v18 = vrot.slane %v8978_v59, 9 }
  0x83   : > { %11112 = vst [vmem:[#allocation18_spill] sm:$0xff] %v9358_v46  ;;  %v6802_v51 = vcombine.low %v9356_v4, %v9358_v46  ;;  %v3421_v13 = vrot.slane %v3420_v48, 4  ;;  %v3430_v16 = vor.u32 %v3429_v35, %v3425_v56  ;;  %v798_v0 = vrot.slane %v796_v21, 7 }
  0x84   : > { %v804_v53 = vshrl.u32 %v7336_v33, 16  ;;  %v807_v49 = vshll.u32 %v7336_v33, 16  ;;  %v531_v39 = vmax.f32 %v499_v12, 0.0  ;;  %v532_v32 = vmax.f32 %v500_v31, 0.0  ;;  %v7535_v33 = vld [vmem:[%s8854_s20 + $0x58] sm:$0xff]  }
  0x85   : > { %7804 = vmatmul.mubr.bf16.gmra.mrb[16].mxu1 %v6802_v51  ;;  %v4033_v55 = vrot.slane %v9019_v17, 5  ;;  %v3426_v59 = vsel %vm9065_vm10, %v3421_v13, %v3425_v56  ;;  %v3431_v48 = vrot.slane %v3430_v16, 4  ;;  %v801_v21 = vor.u32 %v799_v34, %v798_v0 }
  0x86   : > { %v802_v35 = vrot.slane %v798_v0, 4  ;;  %v9375_v43 = vrot.slane %v804_v53, 7  ;;  %v7337_v46 = vpack.c.bf16 %v531_v39, %v531_v39  ;;  %v7338_v4 = vpack.c.bf16 %v532_v32, %v532_v32 }
  0x87   : > { %v4034_v51 = vsel %vm9368_vm13, %v7041_v18, %v4033_v55  ;;  %v3436_v12 = vsel %vm9065_vm10, %v3431_v48, %v3435_v15  ;;  %v1032_v17 = vsel %vm8924_vm5, %v801_v21, %v1031_v44  ;;  %v4035_v31 = vrot.slane %v4033_v55, 4  ;;  %v7536_v15 = vld [vmem:[%s8854_s20 + $0x60] sm:$0xff]  }
  0x88   : > { %v7042_v56 = vrot.slane %v9043_v37, 9  ;;  %v7024_v34 = vcombine.low %v3426_v59, %v3436_v12  ;;  %v809_v13 = vor.u32 %v807_v49, %v9375_v43  ;;  %1033 = vst [vmem:[#allocation2 + $0x78] sm:$0xf] %v1032_v17  ;;  %v813_v16 = vshrl.u32 %v7337_v46, 16  ;;  %v1038_v48 = vld [vmem:[#allocation2 + $0x84] sm:$0xf] }
  0x89   : > { %v816_v0 = vshll.u32 %v7337_v46, 16  ;;  %v821_v53 = vshrl.u32 %v7338_v4, 16  ;;  %v824_v39 = vshll.u32 %v7338_v4, 16  ;;  %v4037_v18 = vsel %vm9368_vm13, %v4035_v31, %v4036_v8 }
  0x8a   : > { %v4040_v32 = vrot.slane %v9050_v42, 5  ;;  %7992 = vmatmul.mubr.bf16.gmra.mrb[12].mxu0 %v7024_v34  ;;  %v810_v44 = vsel %vm8930_vm6, %v802_v35, %v809_v13  ;;  %v815_v55 = vrot.slane %v813_v16, 7  ;;  %v7073_v37 = vcombine.low %v4034_v51, %v4037_v18 }
  0x8b   : > { %v7427_v59 = vunpack.c.l.bf16 %v7535_v33  ;;  %1034 = vst [vmem:[#allocation2 + $0x7c] sm:$0xf] %v810_v44  ;;  %v9392_v49 = vrot.slane %v821_v53, 7  ;;  %v7428_v21 = vunpack.c.h.bf16 %v7535_v33  ;;  %v7431_v17 = vunpack.c.l.bf16 %v7536_v15 }
  0x8c   : > { %v4041_v4 = vsel %vm9368_vm13, %v7042_v56, %v4040_v32  ;;  %v4042_v46 = vrot.slane %v4040_v32, 4  ;;  %v818_v8 = vor.u32 %v816_v0, %v815_v55  ;;  %v819_v12 = vrot.slane %v815_v55, 4  ;;  %8027 = vmatprep.mubr.bf16.mxu0 %v7073_v37  ;;  %v7538_v37 = vld [vmem:[%s8854_s20 + $0x70] sm:$0xff]  }
  0x8d   : > { %v462_v42 = vmul.f32 %v9269_v5, %v7427_v59  ;;  %v826_v35 = vor.u32 %v824_v39, %v9392_v49  ;;  %v463_v31 = vmul.f32 %v9269_v5, %v7428_v21  ;;  %v7432_v34 = vunpack.c.h.bf16 %v7536_v15 }
  0x8e   : > { %v4044_v51 = vsel %vm9368_vm13, %v4042_v46, %v4043_v19  ;;  %v1039_v13 = vsel %vm8924_vm5, %v818_v8, %v1038_v48  ;;  %v464_v16 = vmul.f32 %v9269_v5, %v7431_v17  ;;  %v11115_v0 = vor.u32 %v9151_v60, %v9135_v23  ;;  %v8545_v60 = vld [vmem:[%s11044_s3 + $0x188] sm:$0xff]  }
  0x8f   : > { %v7074_v56 = vcombine.low %v4041_v4, %v4044_v51  ;;  %v501_v33 = vadd.f32 %v9275_v62, %v462_v42  ;;  %v827_v39 = vsel %vm8930_vm6, %v819_v12, %v826_v35  ;;  %1040 = vst [vmem:[#allocation2 + $0x84] sm:$0xf] %v1039_v13  ;;  %v502_v19 = vadd.f32 %v9275_v62, %v463_v31  ;;  %v9414_v32 = vld [vmem:[#allocation2 + $0x78] sm:$0xf] }
  0x90   : > { %v9408_v53 = vrot.slane %v11115_v0, 4  ;;  %v465_v18 = vmul.f32 %v9269_v5, %v7432_v34  ;;  %1041 = vst [vmem:[#allocation2 + $0x88] sm:$0xf] %v827_v39  ;;  %v503_v44 = vadd.f32 %v9275_v62, %v464_v16  ;;  %v4047_v12 = vrot.slane %v9091_v40, 5  ;;  %v1045_v0 = vld [vmem:[#allocation2 + $0x90] sm:$0xf] }
  0x91   : > { %v533_v15 = vmax.f32 %v501_v33, 0.0  ;;  %v534_v59 = vmax.f32 %v502_v19, 0.0  ;;  %v7043_v51 = vrot.slane %v9081_v10, 9  ;;  %v7044_v33 = vrot.slane %v9157_v2, 9 }
  0x92   : > { %v504_v48 = vadd.f32 %v9275_v62, %v465_v18  ;;  %v9424_v46 = vld [vmem:[#allocation2 + $0x7c] sm:$0xf]  ;;  %8028 = vmatmul.mubr.bf16.vlgmr.msra.gmra.mrb[0].mxu0 %v7074_v56  ;;  %v535_v8 = vmax.f32 %v503_v44, 0.0  ;;  %v8549_v56 = vld [vmem:[%s11044_s3 + $0x190] sm:$0xff]   ;;  %v4054_v44 = vrot.slane %v9173_v52, 5  ;;  %v4057_v4 = vrot.slane %v9178_v45, 5 }
  0x93   : > { %v7339_v21 = vpack.c.bf16 %v533_v15, %v533_v15  ;;  %v6803_v42 = vcombine.low %v9414_v32, %v9424_v46  ;;  %8060 = vmatpush3.bf16.msra.mxu0 %v9234_v58  ;;  %v7340_v17 = vpack.c.bf16 %v534_v59, %v534_v59  ;;  %v4050_v58 = vrot.slane %v9093_v41, 5 }
  0x94   : > { %v536_v35 = vmax.f32 %v504_v48, 0.0  ;;  %v7341_v13 = vpack.c.bf16 %v535_v8, %v535_v8  ;;  %8061 = vmatprep.subr.bf16.mxu0 %v8545_v60  ;;  %v4049_v15 = vrot.slane %v4047_v12, 4  ;;  %v4048_v8 = vsel %vm9368_vm13, %v7043_v51, %v4047_v12  ;;  %v7537_v12 = vld [vmem:[%s8854_s20 + $0x68] sm:$0xff]  }
  0x95   : > { %v830_v31 = vshrl.u32 %v7339_v21, 16  ;;  %v833_v34 = vshll.u32 %v7339_v21, 16  ;;  %7807 = vmatprep.mubr.bf16.mxu1 %v6803_v42  ;;  %v838_v40 = vshrl.u32 %v7340_v17, 16  ;;  %v841_v16 = vshll.u32 %v7340_v17, 16 }
  0x96   : > { %v7342_v39 = vpack.c.bf16 %v536_v35, %v536_v35  ;;  %v9436_v19 = vld [vmem:[#allocation2 + $0x84] sm:$0xf]  ;;  %v847_v18 = vshrl.u32 %v7341_v13, 16  ;;  %v850_v48 = vshll.u32 %v7341_v13, 16  ;;  %v4055_v52 = vsel %vm9368_vm13, %v7044_v33, %v4054_v44  ;;  %v8551_v35 = vld [vmem:[%s11044_s3 + $0x198] sm:$0xff]  }
  0x97   : > { %v832_v10 = vrot.slane %v830_v31, 7  ;;  %v9439_v59 = vld [vmem:[#allocation2 + $0x88] sm:$0xf]  ;;  %v9441_v2 = vrot.slane %v838_v40, 7  ;;  %8062 = vmatpush3.bf16.msra.mxu0 %v8545_v60  ;;  %v4051_v33 = vsel %vm9368_vm13, %v4049_v15, %v4050_v58  ;;  %v7435_v45 = vunpack.c.l.bf16 %v7537_v12 }
  0x98   : > { %v855_v21 = vshrl.u32 %v7342_v39, 16  ;;  %v6804_v41 = vcombine.low %v9436_v19, %v9439_v59  ;;  %8063 = vmatprep.subr.bf16.mxu0 %v8549_v56  ;;  %v849_v13 = vrot.slane %v847_v18, 7  ;;  %v858_v60 = vshll.u32 %v7342_v39, 16 }
  0x99   : > { %v835_v42 = vor.u32 %v833_v34, %v832_v10  ;;  %v836_v17 = vrot.slane %v832_v10, 4  ;;  %v843_v31 = vor.u32 %v841_v16, %v9441_v2  ;;  %v1052_v34 = vld [vmem:[#allocation2 + $0x9c] sm:$0xf]  ;;  %v4056_v10 = vrot.slane %v4054_v44, 4 }
  0x9a   : > { %v9453_v40 = vrot.slane %v855_v21, 7  ;;  %7808 = vmatmul.mubr.bf16.gmra.mrb[20].mxu1 %v6804_v41  ;;  %v852_v18 = vor.u32 %v850_v48, %v849_v13  ;;  %v853_v21 = vrot.slane %v849_v13, 4  ;;  %v7075_v41 = vcombine.low %v4048_v8, %v4051_v33 }
  0x9b   : > { %v1046_v51 = vsel %vm8924_vm5, %v835_v42, %v1045_v0  ;;  %v844_v16 = vsel %vm8930_vm6, %v836_v17, %v843_v31  ;;  %8064 = vmatpush3.bf16.msra.mxu0 %v8549_v56  ;;  %v8553_v0 = vld [vmem:[%s11044_s3 + $0x1a0] sm:$0xff]   ;;  %v4058_v58 = vsel %vm9368_vm13, %v4056_v10, %v4057_v4  ;;  %v7436_v15 = vunpack.c.h.bf16 %v7537_v12 }
  0x9c   : > { %1047 = vst [vmem:[#allocation2 + $0x90] sm:$0xf] %v1046_v51  ;;  %v860_v39 = vor.u32 %v858_v60, %v9453_v40  ;;  %1048 = vst [vmem:[#allocation2 + $0x94] sm:$0xf] %v844_v16  ;;  %8065 = vmatprep.subr.bf16.mxu0 %v8551_v35  ;;  %v1053_v48 = vsel %vm8924_vm5, %v852_v18, %v1052_v34  ;;  %v7076_v42 = vcombine.low %v4055_v52, %v4058_v58  ;;  %v1035_v51 = vld [vmem:[#allocation2 + $0x80] sm:$0x1] }
  0x9d   : > { %v7439_v56 = vunpack.c.l.bf16 %v7538_v37  ;;  %1054 = vst [vmem:[#allocation2 + $0x9c] sm:$0xf] %v1053_v48  ;;  %8031 = vmatprep.mubr.bf16.mxu0 %v7075_v41  ;;  %v466_v17 = vmul.f32 %v9269_v5, %v7435_v45  ;;  %v467_v8 = vmul.f32 %v9269_v5, %v7436_v15  ;;  %v7440_v31 = vunpack.c.h.bf16 %v7538_v37 }
  0x9e   : > { %v861_v44 = vsel %vm8930_vm6, %v853_v21, %v860_v39  ;;  %v7045_v4 = vrot.slane %v9197_v29, 9  ;;  %8032 = vmatmul.mubr.bf16.gmra.mrb[4].mxu0 %v7076_v42  ;;  %v4061_v12 = vrot.slane %v9205_v30, 5  ;;  %v4064_v52 = vrot.slane %v9211_v1, 5  ;;  %v8555_v30 = vld [vmem:[%s11044_s3 + $0x1a8] sm:$0xff]   ;;  %v8557_v42 = vld [vmem:[%s11044_s3 + $0x1b0] sm:$0xff]  }
  0x9f   : > { %1055 = vst [vmem:[#allocation2 + $0xa0] sm:$0xf] %v861_v44  ;;  %v468_v60 = vmul.f32 %v9269_v5, %v7439_v56  ;;  %v505_v34 = vadd.f32 %v9275_v62, %v466_v17  ;;  %v506_v33 = vadd.f32 %v9275_v62, %v467_v8  ;;  %v469_v10 = vmul.f32 %v9269_v5, %v7440_v31 }
  0xa0   : > { %8066 = vmatpush3.bf16.msra.mxu0 %v8551_v35  ;;  %v4063_v37 = vrot.slane %v4061_v12, 4  ;;  %v7046_v16 = vrot.slane %v9240_v54, 9  ;;  %v4068_v18 = vrot.slane %v9254_v25, 5  ;;  %v4062_v5 = vsel %vm9368_vm13, %v7045_v4, %v4061_v12 }
  0xa1   : > { %v507_v29 = vadd.f32 %v9275_v62, %v468_v60  ;;  %8067 = vmatprep.subr.bf16.mxu0 %v8553_v0  ;;  %v537_v21 = vmax.f32 %v505_v34, 0.0  ;;  %v538_v39 = vmax.f32 %v506_v33, 0.0  ;;  %v508_v41 = vadd.f32 %v9275_v62, %v469_v10 }
  0xa2   : > { %v4065_v45 = vsel %vm9368_vm13, %v4063_v37, %v4064_v52  ;;  %v4071_v62 = vrot.slane %v9263_v26, 5  ;;  %v4070_v60 = vrot.slane %v4068_v18, 4  ;;  %v11116_v52 = vld [vmem:[#allocation5_spill] sm:$0xff] }
  0xa3   : > { %v9491_v1 = vld [vmem:[#allocation2 + $0x90] sm:$0xf]  ;;  %v9498_v58 = vld [vmem:[#allocation2 + $0x94] sm:$0xf]  ;;  %v539_v25 = vmax.f32 %v507_v29, 0.0  ;;  %v7343_v44 = vpack.c.bf16 %v537_v21, %v537_v21  ;;  %v7344_v48 = vpack.c.bf16 %v538_v39, %v538_v39  ;;  %v540_v8 = vmax.f32 %v508_v41, 0.0 }
  0xa4   : > { %v6805_v15 = vcombine.low %v9491_v1, %v9498_v58  ;;  %8068 = vmatpush3.bf16.msra.mxu0 %v8553_v0  ;;  %v9508_v56 = vld [vmem:[#allocation2 + $0x9c] sm:$0xf]  ;;  %v7077_v4 = vcombine.low %v4062_v5, %v4065_v45  ;;  %v4069_v0 = vsel %vm9368_vm13, %v7046_v16, %v4068_v18  ;;  %v4072_v41 = vsel %vm9368_vm13, %v4070_v60, %v4071_v62  ;;  %v1059_v45 = vld [vmem:[#allocation2 + $0xa8] sm:$0xf]  ;;  %v11118_v62 = vld [vmem:[#allocation7_spill] sm:$0xff] }
  0xa5   : > { %v7345_v31 = vpack.c.bf16 %v539_v25, %v539_v25  ;;  %8069 = vmatprep.subr.bf16.mxu0 %v8555_v30  ;;  %v864_v34 = vshrl.u32 %v7343_v44, 16  ;;  %v867_v33 = vshll.u32 %v7343_v44, 16  ;;  %v872_v10 = vshrl.u32 %v7344_v48, 16  ;;  %v11117_v16 = vld [vmem:[#allocation6_spill] sm:$0xff]  ;;  %v8559_v44 = vld [vmem:[%s11044_s3 + $0x1b8] sm:$0xff]  }
  0xa6   : > { %v9510_v17 = vld [vmem:[#allocation2 + $0xa0] sm:$0xf]  ;;  %7811 = vmatprep.mubr.bf16.mxu1 %v6805_v15  ;;  %v875_v29 = vshll.u32 %v7344_v48, 16  ;;  %8035 = vmatprep.mubr.bf16.mxu0 %v7077_v4  ;;  %v7346_v37 = vpack.c.bf16 %v540_v8, %v540_v8  ;;  %v7078_v15 = vcombine.low %v4069_v0, %v4072_v41  ;;  %v1495_v18 = vor.u32 %v11117_v16, %v11116_v52  ;;  %v9527_v4 = vld [vmem:[#allocation2 + $0x8] sm:$0x1] }
  0xa7   : > { %v6806_v26 = vcombine.low %v9508_v56, %v9510_v17  ;;  %v881_v21 = vshrl.u32 %v7345_v31, 16  ;;  %v884_v39 = vshll.u32 %v7345_v31, 16  ;;  %v866_v5 = vrot.slane %v864_v34, 7  ;;  %v9532_v41 = vld [vmem:[#allocation2 + $0x14] sm:$0x1] }
  0xa8   : > { %8070 = vmatpush3.bf16.msra.mxu0 %v8555_v30  ;;  %v9520_v25 = vrot.slane %v872_v10, 7  ;;  %v889_v8 = vshrl.u32 %v7346_v37, 16  ;;  %v892_v31 = vshll.u32 %v7346_v37, 16  ;;  %v11119_v30 = vld [vmem:[#allocation8_spill] sm:$0xff]  ;;  %v1066_v10 = vld [vmem:[#allocation2 + $0xb4] sm:$0xf] }
  0xa9   : > { %7812 = vmatmul.mubr.bf16.gmra.mrb[24].mxu1 %v6806_v26  ;;  %8071 = vmatprep.subr.bf16.mxu0 %v8557_v42  ;;  %v883_v48 = vrot.slane %v881_v21, 7  ;;  %v1505_v60 = vor.u32 %v11119_v30, %v11118_v62  ;;  %v869_v26 = vor.u32 %v867_v33, %v866_v5  ;;  %v870_v34 = vrot.slane %v866_v5, 4  ;;  %11120 = vst [vmem:[#allocation5_spill] sm:$0xff] %v9532_v41 }
  0xaa   : > { %v877_v0 = vor.u32 %v875_v29, %v9520_v25  ;;  %8036 = vmatmul.mubr.bf16.gmra.mrb[8].mxu0 %v7078_v15  ;;  %v1496_v52 = vrot.slane %v1495_v18, 4  ;;  %v9534_v54 = vrot.slane %v889_v8, 7  ;;  %v1508_v5 = vshll.u32 %v9527_v4, 16 }
  0xab   : > { %v886_v16 = vor.u32 %v884_v39, %v883_v48  ;;  %v887_v12 = vrot.slane %v883_v48, 4  ;;  %v1506_v21 = vrot.slane %v1505_v60, 4  ;;  %v1060_v33 = vsel %vm8924_vm5, %v869_v26, %v1059_v45  ;;  %v9547_v39 = vld [vmem:[%s11044_s3 + $0x1c0] sm:$0xff]   ;;  %v11123_v60 = vld [vmem:[#allocation15_spill] sm:$0xff] }
  0xac   : > { %8072 = vmatpush3.bf16.msra.mxu0 %v8557_v42  ;;  %v878_v37 = vsel %vm8930_vm6, %v870_v34, %v877_v0  ;;  %v1501_v29 = vsel %vm9065_vm10, %v1496_v52, %v11118_v62  ;;  %11121 = vst [vmem:[#allocation6_spill] sm:$0xff] %v9547_v39  ;;  %1061 = vst [vmem:[#allocation2 + $0xa8] sm:$0xf] %v1060_v33  ;;  %v894_v42 = vor.u32 %v892_v31, %v9534_v54  ;;  %v11122_v62 = vld [vmem:[#allocation14_spill] sm:$0xff]  ;;  %v11125_v33 = vld [vmem:[#allocation9_spill] sm:$0xff] }
  0xad   : > { %8073 = vmatprep.subr.bf16.mxu0 %v8559_v44  ;;  %1062 = vst [vmem:[#allocation2 + $0xac] sm:$0xf] %v878_v37  ;;  %v1067_v15 = vsel %vm8924_vm5, %v886_v16, %v1066_v10  ;;  %v1525_v45 = vsel %vm9065_vm10, %v9333_v61, %v9135_v23  ;;  %v1532_v18 = vshll.u32 %v9532_v41, 16  ;;  %v1510_v48 = vrot.slane %v1508_v5, 5  ;;  %v9569_v16 = vld [vmem:[#allocation2 + $0x20] sm:$0x1] }
  0xae   : > { %1068 = vst [vmem:[#allocation2 + $0xb4] sm:$0xf] %v1067_v15  ;;  %v7047_v8 = vrot.slane %v9287_v38, 9  ;;  %v4075_v30 = vrot.slane %v11122_v62, 5  ;;  %v4078_v26 = vrot.slane %v11123_v60, 5  ;;  %v895_v31 = vsel %vm8930_vm6, %v887_v12, %v894_v42  ;;  %11124 = vst [vmem:[#allocation7_spill] sm:$0xff] %v9569_v16 }
  0xaf   : > { %v1534_v34 = vrot.slane %v1532_v18, 5  ;;  %v7048_v0 = vrot.slane %v9326_v24, 9  ;;  %v4082_v10 = vrot.slane %v9343_v20, 5  ;;  %1069 = vst [vmem:[#allocation2 + $0xb8] sm:$0xf] %v895_v31  ;;  %v1511_v23 = vsel %vm9065_vm10, %v1506_v21, %v1510_v48  ;;  %v11130_v31 = vld [vmem:[#allocation10_spill] sm:$0xff] }
  0xb0   : > { %8074 = vmatpush3.bf16.msra.mxu0 %v8559_v44  ;;  %v4076_v38 = vsel %vm9368_vm13, %v7047_v8, %v4075_v30  ;;  %v4077_v61 = vrot.slane %v4075_v30, 4  ;;  %v4085_v52 = vrot.slane %v9347_v11, 5  ;;  %v6833_v12 = vcombine.low %v1501_v29, %v1511_v23  ;;  %v11128_v29 = vld [vmem:[#allocation12_spill] sm:$0xff]  ;;  %v9598_v23 = vld [vmem:[#allocation2 + $0x2c] sm:$0x1] }
  0xb1   : > { %8107 = vmatprep.subr.bf16.mxu0 %v9547_v39  ;;  %v1535_v24 = vsel %vm9065_vm10, %v9408_v53, %v1534_v34  ;;  %v4083_v20 = vsel %vm9368_vm13, %v7048_v0, %v4082_v10  ;;  %v4084_v44 = vrot.slane %v4082_v10, 4  ;;  %v11126_v11 = vshrl.u32 %v11125_v33, 16  ;;  %v9588_v8 = vld [vmem:[#allocation2 + $0x1c] sm:$0xf]  ;;  %11132 = vst [vmem:[#allocation14_spill] sm:$0xff] %v9598_v23 }
  0xb2   : > { %v9577_v21 = vcombine.low %v1525_v45, %v1535_v24  ;;  %v4079_v37 = vsel %vm9368_vm13, %v4077_v61, %v4078_v26  ;;  %v11127_v42 = vshll.u32 %v11125_v33, 16  ;;  %11129 = vst [vmem:[#allocation8_spill] sm:$0xff] %v9588_v8  ;;  %v1546_v45 = vshll.u32 %v9588_v8, 16  ;;  %v11133_v61 = vld [vmem:[#allocation13_spill] sm:$0xff] }
  0xb3   : > { %v1539_v5 = vrot.slane %v11126_v11, 4  ;;  %v7079_v48 = vcombine.low %v4076_v38, %v4079_v37  ;;  %v4086_v53 = vsel %vm9368_vm13, %v4084_v44, %v4085_v52  ;;  %v9591_v62 = vld [vmem:[#allocation2 + $0xa8] sm:$0xf]  ;;  %v11131_v34 = vshrl.u32 %v11130_v31, 16  ;;  %v11134_v37 = vld [vmem:[#allocation11_spill] sm:$0xff] }
  0xb4   : > { %v1542_v15 = vrot.slane %v11127_v42, 5  ;;  %v9593_v30 = vld [vmem:[#allocation2 + $0xac] sm:$0xf]  ;;  %v7080_v60 = vcombine.low %v4083_v20, %v4086_v53  ;;  %v1556_v10 = vshll.u32 %v9569_v16, 16  ;;  %v11135_v20 = vshrl.u32 %v11134_v37, 16 }
  0xb5   : > { %v1552_v0 = vrot.slane %v11131_v34, 4  ;;  %v6807_v24 = vcombine.low %v9591_v62, %v9593_v30  ;;  %v9604_v44 = vld [vmem:[#allocation2 + $0xb4] sm:$0xf]  ;;  %8039 = vmatprep.mubr.bf16.mxu0 %v7079_v48  ;;  %v11136_v52 = vshll.u32 %v11134_v37, 16  ;;  %v9615_v48 = vld [vmem:[#allocation2 + $0x28] sm:$0xf] }
  0xb6   : > { %v1543_v26 = vor.u32 %v1542_v15, %v1539_v5  ;;  %v1563_v33 = vrot.slane %v11135_v20, 4  ;;  %8040 = vmatmul.mubr.bf16.gmra.mrb[12].mxu0 %v7080_v60  ;;  %v1548_v15 = vrot.slane %v1546_v45, 5  ;;  %v1028_v53 = vld [vmem:[#allocation2 + $0x74] sm:$0x1]  ;;  %v9611_v31 = vld [vmem:[#allocation2 + $0xb8] sm:$0xf] }
  0xb7   : > { %7815 = vmatprep.mubr.bf16.mxu1 %v6807_v24  ;;  %v1566_v38 = vrot.slane %v11136_v52, 5  ;;  %11137 = vst [vmem:[#allocation15_spill] sm:$0xff] %v9615_v48  ;;  %v1570_v20 = vshll.u32 %v9615_v48, 16  ;;  %v11138_v11 = vshrl.u32 %v9032_v27, 16  ;;  %v11139_v5 = vld [vmem:[#allocation17_spill] sm:$0xff]  ;;  %v6808_v45 = vcombine.low %v9604_v44, %v9611_v31  ;;  %v11140_v37 = vld [vmem:[#allocation16_spill] sm:$0xff] }
  0xb8   : > { %v1544_v34 = vrot.slane %v1543_v26, 4  ;;  %v1553_v60 = vor.u32 %v1552_v0, %v1548_v15  ;;  %v1558_v24 = vrot.slane %v1556_v10, 5  ;;  %v6937_v42 = vld [vmem:[#allocation2 + $0x6c] sm:$0xf]  ;;  %v1580_v52 = vshll.u32 %v9598_v23, 16 }
  0xb9   : > { %v1576_v18 = vrot.slane %v11138_v11, 4  ;;  %v1567_v26 = vor.u32 %v1566_v38, %v1563_v33  ;;  %v9623_v13 = vrot.slane %v1570_v20, 5  ;;  %v794_v55 = vrot.slane %v11140_v37, 4  ;;  %v6938_v48 = vld [vmem:[#allocation2 + $0x70] sm:$0xf]  ;;  %v11141_v11 = vld [vmem:[#allocation18_spill] sm:$0xff]  ;;  %7816 = vmatmul.mubr.bf16.gmra.mrb[28].mxu1 %v6808_v45 }
  0xba   : > { %v1554_v35 = vrot.slane %v1553_v60, 4  ;;  %v811_v8 = vrot.slane %v9375_v43, 4  ;;  %7835 = vmatprep.mubr.bf16.mxu1 %v6833_v12  ;;  %v1549_v0 = vsel %vm9065_vm10, %v1544_v34, %v1548_v15  ;;  %v7049_v20 = vrot.slane %v6937_v42, 9  ;;  %v9635_v37 = vld [vmem:[#allocation2 + $0x78] sm:$0xf]  ;;  %v8625_v15 = vld [vmem:[%s11044_s3 + $0x80] sm:$0xff]  }
  0xbb   : > { %v1577_v10 = vor.u32 %v1576_v18, %v9623_v13  ;;  %v1029_v33 = vsel %vm8946_vm7, %v794_v55, %v1028_v53  ;;  %v1568_v16 = vrot.slane %v1567_v26, 4  ;;  %v4089_v45 = vrot.slane %v6938_v48, 5  ;;  %v9641_v12 = vld [vmem:[#allocation2 + $0x7c] sm:$0xf]  ;;  %v9662_v60 = vld [vmem:[#allocation2 + $0x44] sm:$0x1] }
  0xbc   : > { %v1559_v27 = vsel %vm9065_vm10, %v1554_v35, %v1558_v24  ;;  %1030 = vst [vmem:[#allocation2 + $0x74] sm:$0x1] %v1029_v33  ;;  %v1036_v43 = vsel %vm8946_vm7, %v811_v8, %v1035_v51  ;;  %11143 = vst [vmem:[#allocation9_spill] sm:$0xff] %v9641_v12  ;;  %v1582_v55 = vrot.slane %v1580_v52, 5  ;;  %v7050_v48 = vrot.slane %v9635_v37, 9 }
  0xbd   : > { %v1578_v34 = vrot.slane %v1577_v10, 4  ;;  %1037 = vst [vmem:[#allocation2 + $0x80] sm:$0x1] %v1036_v43  ;;  %v6835_v51 = vcombine.low %v1549_v0, %v1559_v27  ;;  %v4096_v8 = vrot.slane %v9641_v12, 5  ;;  %v9651_v24 = vld [vmem:[#allocation2 + $0x38] sm:$0x1]  ;;  %v1573_v52 = vsel %vm9065_vm10, %v1568_v16, %v9623_v13 }
  0xbe   : > { %11144 = vst [vmem:[#allocation12_spill] sm:$0xff] %v9651_v24  ;;  %v11145_v26 = vshrl.u32 %v9153_v14, 16  ;;  %v4090_v33 = vsel %vm9368_vm13, %v7049_v20, %v4089_v45  ;;  %v4091_v43 = vrot.slane %v4089_v45, 4  ;;  %v11146_v35 = vshll.u32 %v9153_v14, 16  ;;  %11147 = vst [vmem:[#allocation10_spill] sm:$0xff] %v9662_v60  ;;  %v8554_v27 = vld [vmem:[%s11044_s3 + $0x88] sm:$0xff]  }
  0xbf   : > { %v1583_v0 = vsel %vm9065_vm10, %v1578_v34, %v1582_v55  ;;  %v9671_v13 = vld [vmem:[#allocation2 + $0x34] sm:$0xf]  ;;  %v11149_v20 = vshrl.u32 %v9162_v22, 16  ;;  %v11150_v42 = vshrl.u32 %v9169_v9, 16  ;;  %v11151_v34 = vshll.u32 %v9169_v9, 16 }
  0xc0   : > { %v1587_v10 = vrot.slane %v11145_v26, 4  ;;  %v1590_v53 = vrot.slane %v11146_v35, 5  ;;  %v4097_v26 = vsel %vm9368_vm13, %v7050_v48, %v4096_v8  ;;  %11148 = vst [vmem:[#allocation13_spill] sm:$0xff] %v9671_v13  ;;  %v1594_v16 = vshll.u32 %v9671_v13, 16  ;;  %v9685_v13 = vld [vmem:[#allocation2 + $0x40] sm:$0xf] }
  0xc1   : > { %v1600_v14 = vrot.slane %v11149_v20, 4  ;;  %7836 = vmatmul.mubr.bf16.vlgmr.msra.gmra.mrb[0].mxu1 %v9577_v21  ;;  %v1604_v35 = vshll.u32 %v9651_v24, 16  ;;  %v1611_v18 = vrot.slane %v11150_v42, 4  ;;  %v1614_v55 = vrot.slane %v11151_v34, 5  ;;  %11152 = vst [vmem:[#allocation11_spill] sm:$0xff] %v9685_v13 }
  0xc2   : > { %v1591_v45 = vor.u32 %v1590_v53, %v1587_v10  ;;  %7839 = vmatprep.mubr.bf16.mxu1 %v6835_v51  ;;  %7868 = vmatpush3.bf16.msra.mxu1 %v8625_v15  ;;  %v4098_v22 = vrot.slane %v4096_v8, 4  ;;  %v1596_v20 = vrot.slane %v1594_v16, 5  ;;  %v1618_v21 = vshll.u32 %v9685_v13, 16  ;;  %v8556_v15 = vld [vmem:[%s11044_s3 + $0x90] sm:$0xff]  }
  0xc3   : > { %v6939_v48 = vld [vmem:[#allocation2 + $0x74] sm:$0x1]  ;;  %v1628_v53 = vshll.u32 %v9662_v60, 16  ;;  %v1615_v34 = vor.u32 %v1614_v55, %v1611_v18  ;;  %v11154_v51 = vshrl.u32 %v9176_v36, 16  ;;  %7869 = vmatprep.subr.bf16.mxu1 %v8554_v27  ;;  %v1606_v23 = vrot.slane %v1604_v35, 5 }
  0xc4   : > { %v4092_v10 = vrot.slane %v6939_v48, 5  ;;  %v9689_v42 = vld [vmem:[#allocation2 + $0x80] sm:$0x1]  ;;  %v1592_v9 = vrot.slane %v1591_v45, 4  ;;  %v1601_v16 = vor.u32 %v1600_v14, %v1596_v20  ;;  %v1620_v13 = vrot.slane %v1618_v21, 5 }
  0xc5   : > { %11153 = vst [vmem:[#allocation17_spill] sm:$0xff] %v9689_v42  ;;  %v1624_v24 = vrot.slane %v11154_v51, 4  ;;  %v4099_v8 = vrot.slane %v9689_v42, 5  ;;  %v6836_v39 = vcombine.low %v1573_v52, %v1583_v0  ;;  %v1616_v45 = vrot.slane %v1615_v34, 4  ;;  %v6943_v36 = vld [vmem:[#allocation2 + $0x84] sm:$0xf] }
  0xc6   : > { %v4093_v48 = vsel %vm9368_vm13, %v4091_v43, %v4092_v10  ;;  %v1597_v18 = vsel %vm9065_vm10, %v1592_v9, %v1596_v20  ;;  %v6944_v55 = vld [vmem:[#allocation2 + $0x88] sm:$0xf]  ;;  %v1602_v12 = vrot.slane %v1601_v16, 4  ;;  %v1630_v41 = vrot.slane %v1628_v53, 5  ;;  %v1042_v42 = vld [vmem:[#allocation2 + $0x8c] sm:$0x1]  ;;  %7870 = vmatpush3.bf16.msra.mxu1 %v8554_v27 }
  0xc7   : > { %v7081_v51 = vcombine.low %v4090_v33, %v4093_v48  ;;  %v4100_v60 = vsel %vm9368_vm13, %v4098_v22, %v4099_v8  ;;  %v6946_v14 = vld [vmem:[#allocation2 + $0x90] sm:$0xf]  ;;  %v1621_v52 = vsel %vm9065_vm10, %v1616_v45, %v1620_v13  ;;  %v1625_v43 = vor.u32 %v1624_v24, %v1620_v13  ;;  %v1049_v20 = vld [vmem:[#allocation2 + $0x98] sm:$0x1]  ;;  %v6947_v21 = vld [vmem:[#allocation2 + $0x94] sm:$0xf]  ;;  %7871 = vmatprep.subr.bf16.mxu1 %v8556_v15 }
  0xc8   : > { %v7082_v35 = vcombine.low %v4097_v26, %v4100_v60  ;;  %v828_v0 = vrot.slane %v9392_v49, 4  ;;  %v8558_v33 = vld [vmem:[%s11044_s3 + $0x98] sm:$0xff]   ;;  %v1607_v22 = vsel %vm9065_vm10, %v1602_v12, %v1606_v23  ;;  %v7051_v27 = vrot.slane %v6943_v36, 9  ;;  %v9730_v48 = vld [vmem:[#allocation2 + $0x4c] sm:$0xf] }
  0xc9   : > { %8043 = vmatprep.mubr.bf16.mxu0 %v7081_v51  ;;  %v4103_v53 = vrot.slane %v6944_v55, 5  ;;  %v845_v60 = vrot.slane %v9441_v2, 4  ;;  %7840 = vmatmul.mubr.bf16.gmra.mrb[4].mxu1 %v6836_v39  ;;  %v6837_v24 = vcombine.low %v1597_v18, %v1607_v22  ;;  %v1626_v26 = vrot.slane %v1625_v43, 4  ;;  %v9722_v2 = vld [vmem:[#allocation2 + $0x50] sm:$0x1] }
  0xca   : > { %8044 = vmatmul.mubr.bf16.gmra.mrb[16].mxu0 %v7082_v35  ;;  %v1043_v49 = vsel %vm8946_vm7, %v828_v0, %v1042_v42  ;;  %v7052_v13 = vrot.slane %v6946_v14, 9  ;;  %v4110_v12 = vrot.slane %v6947_v21, 5  ;;  %7872 = vmatpush3.bf16.msra.mxu1 %v8556_v15  ;;  %v11155_v42 = vshrl.u32 %v9236_v47, 16  ;;  %v9733_v45 = vld [vmem:[#allocation2 + $0x5c] sm:$0x1]  ;;  %v8560_v15 = vld [vmem:[%s11044_s3 + $0xa0] sm:$0xff]  }
  0xcb   : > { %1044 = vst [vmem:[#allocation2 + $0x8c] sm:$0x1] %v1043_v49  ;;  %v9716_v10 = vsel %vm9368_vm13, %v7051_v27, %v4103_v53  ;;  %v9718_v9 = vrot.slane %v4103_v53, 4  ;;  %v1050_v23 = vsel %vm8946_vm7, %v845_v60, %v1049_v20  ;;  %7843 = vmatprep.mubr.bf16.mxu1 %v6837_v24  ;;  %v1631_v39 = vsel %vm9065_vm10, %v1626_v26, %v1630_v41  ;;  %v1056_v14 = vld [vmem:[#allocation2 + $0xa4] sm:$0x1] }
  0xcc   : > { %1051 = vst [vmem:[#allocation2 + $0x98] sm:$0x1] %v1050_v23  ;;  %v1635_v34 = vrot.slane %v11155_v42, 4  ;;  %v11156_v8 = vshll.u32 %v9236_v47, 16  ;;  %v1642_v18 = vshll.u32 %v9730_v48, 16  ;;  %7873 = vmatprep.subr.bf16.mxu1 %v8558_v33  ;;  %v6838_v36 = vcombine.low %v1621_v52, %v1631_v39 }
  0xcd   : > { %v9740_v41 = vsel %vm9368_vm13, %v7052_v13, %v4110_v12  ;;  %v4112_v55 = vrot.slane %v4110_v12, 4  ;;  %v11157_v47 = vshrl.u32 %v9246_v63, 16  ;;  %v1652_v0 = vshll.u32 %v9722_v2, 16  ;;  %v6949_v22 = vld [vmem:[#allocation2 + $0x9c] sm:$0xf] }
  0xce   : > { %v1638_v16 = vrot.slane %v11156_v8, 5  ;;  %v1644_v43 = vrot.slane %v1642_v18, 5  ;;  %v11158_v20 = vshrl.u32 %v11128_v29, 16  ;;  %v11159_v27 = vshll.u32 %v11128_v29, 16  ;;  %v9749_v53 = vld [vmem:[#allocation2 + $0x58] sm:$0xf]  ;;  %7874 = vmatpush3.bf16.msra.mxu1 %v8558_v33 }
  0xcf   : > { %v1648_v51 = vrot.slane %v11157_v47, 4  ;;  %v1666_v60 = vshll.u32 %v9749_v53, 16  ;;  %v11160_v24 = vshrl.u32 %v11133_v61, 16  ;;  %v1676_v26 = vshll.u32 %v9733_v45, 16  ;;  %v6950_v49 = vld [vmem:[#allocation2 + $0xa0] sm:$0xf]  ;;  %7875 = vmatprep.subr.bf16.mxu1 %v8560_v15 }
  0xd0   : > { %v1639_v35 = vor.u32 %v1638_v16, %v1635_v34  ;;  %v1659_v21 = vrot.slane %v11158_v20, 4  ;;  %v1662_v52 = vrot.slane %v11159_v27, 5  ;;  %v1654_v12 = vrot.slane %v1652_v0, 5  ;;  %v8564_v29 = vld [vmem:[%s11044_s3 + $0xa8] sm:$0xff]   ;;  %v1063_v61 = vld [vmem:[#allocation2 + $0xb0] sm:$0x1] }
  0xd1   : > { %v1672_v63 = vrot.slane %v11160_v24, 4  ;;  %v1649_v23 = vor.u32 %v1648_v51, %v1644_v43  ;;  %v862_v39 = vrot.slane %v9453_v40, 4  ;;  %v1668_v34 = vrot.slane %v1666_v60, 5  ;;  %7844 = vmatmul.mubr.bf16.gmra.mrb[8].mxu1 %v6838_v36  ;;  %v8568_v60 = vld [vmem:[%s11044_s3 + $0xb0] sm:$0xff]  }
  0xd2   : > { %v1640_v13 = vrot.slane %v1639_v35, 4  ;;  %v1663_v42 = vor.u32 %v1662_v52, %v1659_v21  ;;  %v1678_v8 = vrot.slane %v1676_v26, 5  ;;  %v7053_v16 = vrot.slane %v6949_v22, 9  ;;  %v6945_v18 = vld [vmem:[#allocation2 + $0x8c] sm:$0x1]  ;;  %7876 = vmatpush3.bf16.msra.mxu1 %v8560_v15 }
  0xd3   : > { %v1650_v47 = vrot.slane %v1649_v23, 4  ;;  %v1057_v51 = vsel %vm8946_vm7, %v862_v39, %v1056_v14  ;;  %v4117_v40 = vrot.slane %v6950_v49, 5  ;;  %v6952_v35 = vld [vmem:[#allocation2 + $0xa8] sm:$0xf]  ;;  %v4106_v0 = vrot.slane %v6945_v18, 5  ;;  %7877 = vmatprep.subr.bf16.mxu1 %v8564_v29 }
  0xd4   : > { %v1645_v33 = vsel %vm9065_vm10, %v1640_v13, %v1644_v43  ;;  %v6948_v20 = vld [vmem:[#allocation2 + $0x98] sm:$0x1]  ;;  %v1664_v27 = vrot.slane %v1663_v42, 4  ;;  %v1673_v24 = vor.u32 %v1672_v63, %v1668_v34  ;;  %1058 = vst [vmem:[#allocation2 + $0xa4] sm:$0x1] %v1057_v51  ;;  %v879_v21 = vrot.slane %v9520_v25, 4 }
  0xd5   : > { %v4113_v22 = vrot.slane %v6948_v20, 5  ;;  %v1655_v36 = vsel %vm9065_vm10, %v1650_v47, %v1654_v12  ;;  %v9768_v43 = vsel %vm9368_vm13, %v7053_v16, %v4117_v40  ;;  %v4119_v52 = vrot.slane %v4117_v40, 4  ;;  %v6953_v14 = vld [vmem:[#allocation2 + $0xac] sm:$0xf]  ;;  %v9783_v39 = vld [vmem:[#allocation2 + $0x68] sm:$0x1] }
  0xd6   : > { %v4107_v25 = vsel %vm9368_vm13, %v9718_v9, %v4106_v0  ;;  %v6839_v15 = vcombine.low %v1645_v33, %v1655_v36  ;;  %v1669_v63 = vsel %vm9065_vm10, %v1664_v27, %v1668_v34  ;;  %v1674_v26 = vrot.slane %v1673_v24, 4  ;;  %7878 = vmatpush3.bf16.msra.mxu1 %v8564_v29  ;;  %v9792_v33 = vld [vmem:[#allocation2 + $0x64] sm:$0xf]  ;;  %v9797_v40 = vld [vmem:[#allocation2 + $0x74] sm:$0x1] }
  0xd7   : > { %v7083_v49 = vcombine.low %v9716_v10, %v4107_v25  ;;  %v4114_v13 = vsel %vm9368_vm13, %v4112_v55, %v4113_v22  ;;  %v1064_v23 = vsel %vm8946_vm7, %v879_v21, %v1063_v61  ;;  %v7054_v12 = vrot.slane %v6952_v35, 9  ;;  %7879 = vmatprep.subr.bf16.mxu1 %v8568_v60  ;;  %v6955_v27 = vld [vmem:[#allocation2 + $0xb4] sm:$0xf] }
  0xd8   : > { %v7084_v42 = vcombine.low %v9740_v41, %v4114_v13  ;;  %7847 = vmatprep.mubr.bf16.mxu1 %v6839_v15  ;;  %v1679_v9 = vsel %vm9065_vm10, %v1674_v26, %v1678_v8  ;;  %1065 = vst [vmem:[#allocation2 + $0xb0] sm:$0x1] %v1064_v23  ;;  %v4124_v34 = vrot.slane %v6953_v14, 5  ;;  %v11161_v16 = vshrl.u32 %v9322_v50, 16  ;;  %v8572_v8 = vld [vmem:[%s11044_s3 + $0xb8] sm:$0xff]  }
  0xd9   : > { %8047 = vmatprep.mubr.bf16.mxu0 %v7083_v49  ;;  %v6840_v55 = vcombine.low %v1669_v63, %v1679_v9  ;;  %v11162_v18 = vshll.u32 %v9322_v50, 16  ;;  %v1690_v47 = vshll.u32 %v9792_v33, 16  ;;  %v11163_v41 = vshrl.u32 %v9339_v6, 16  ;;  %v9809_v14 = vld [vmem:[#allocation2 + $0x70] sm:$0xf] }
  0xda   : > { %v1683_v10 = vrot.slane %v11161_v16, 4  ;;  %8048 = vmatmul.mubr.bf16.gmra.mrb[20].mxu0 %v7084_v42  ;;  %v4125_v29 = vsel %vm9368_vm13, %v7054_v12, %v4124_v34  ;;  %v4126_v50 = vrot.slane %v4124_v34, 4  ;;  %v1700_v35 = vshll.u32 %v9783_v39, 16  ;;  %v1070_v23 = vld [vmem:[#allocation2 + $0xbc] sm:$0x1]  ;;  %7880 = vmatpush3.bf16.msra.mxu1 %v8568_v60  ;;  %v9818_v16 = vld [vmem:[%s11044_s3 + $0xc0] sm:$0xff]  }
  0xdb   : > { %v1686_v61 = vrot.slane %v11162_v18, 5  ;;  %v1696_v51 = vrot.slane %v11163_v41, 4  ;;  %v11164_v0 = vshrl.u32 %v11139_v5, 16  ;;  %7848 = vmatmul.mubr.bf16.gmra.mrb[12].mxu1 %v6840_v55  ;;  %v6951_v6 = vld [vmem:[#allocation2 + $0xa4] sm:$0x1]  ;;  %v1692_v21 = vrot.slane %v1690_v47, 5  ;;  %7881 = vmatprep.subr.bf16.mxu1 %v8572_v8 }
  0xdc   : > { %v11165_v22 = vshll.u32 %v11139_v5, 16  ;;  %v1714_v25 = vshll.u32 %v9809_v14, 16  ;;  %v4120_v15 = vrot.slane %v6951_v6, 5  ;;  %v1702_v63 = vrot.slane %v1700_v35, 5  ;;  %v6956_v5 = vld [vmem:[#allocation2 + $0xb8] sm:$0xf] }
  0xdd   : > { %v1707_v20 = vrot.slane %v11164_v0, 4  ;;  %v1687_v24 = vor.u32 %v1686_v61, %v1683_v10  ;;  %v11166_v26 = vshrl.u32 %v11141_v11, 16  ;;  %v1724_v13 = vshll.u32 %v9797_v40, 16  ;;  %v7539_v61 = vld [vmem:[%s8854_s20 + $0x78] sm:$0xff]  }
  0xde   : > { %v1710_v36 = vrot.slane %v11165_v22, 5  ;;  %v1697_v42 = vor.u32 %v1696_v51, %v1692_v21  ;;  %v1716_v34 = vrot.slane %v1714_v25, 5  ;;  %v4121_v11 = vsel %vm9368_vm13, %v4119_v52, %v4120_v15  ;;  %7882 = vmatpush3.bf16.msra.mxu1 %v8572_v8 }
  0xdf   : > { %v1720_v49 = vrot.slane %v11166_v26, 4  ;;  %v1688_v12 = vrot.slane %v1687_v24, 4  ;;  %v1726_v10 = vrot.slane %v1724_v13, 5  ;;  %v896_v55 = vrot.slane %v9534_v54, 4  ;;  %v6954_v47 = vld [vmem:[#allocation2 + $0xb0] sm:$0x1]  ;;  %7915 = vmatprep.subr.bf16.mxu1 %v9818_v16 }
  0xe0   : > { %v1711_v9 = vor.u32 %v1710_v36, %v1707_v20  ;;  %v7055_v18 = vrot.slane %v6955_v27, 9  ;;  %v7085_v60 = vcombine.low %v9768_v43, %v4121_v11  ;;  %v1698_v51 = vrot.slane %v1697_v42, 4  ;;  %v9841_v13 = vld [vmem:[#allocation2 + $0x80] sm:$0x1] }
  0xe1   : > { %v1693_v41 = vsel %vm9065_vm10, %v1688_v12, %v1692_v21  ;;  %v4127_v0 = vrot.slane %v6954_v47, 5  ;;  %v1721_v20 = vor.u32 %v1720_v49, %v1716_v34  ;;  %v1071_v6 = vsel %vm8946_vm7, %v896_v55, %v1070_v23 }
  0xe2   : > { %v1712_v35 = vrot.slane %v1711_v9, 4  ;;  %v4131_v24 = vrot.slane %v6956_v5, 5  ;;  %8051 = vmatprep.mubr.bf16.mxu0 %v7085_v60  ;;  %v1703_v54 = vsel %vm9065_vm10, %v1698_v51, %v1702_v63  ;;  %1072 = vst [vmem:[#allocation2 + $0xbc] sm:$0x1] %v1071_v6  ;;  %v7443_v52 = vunpack.c.l.bf16 %v7539_v61  ;;  %v8631_v63 = vld [vmem:[%s11042_s1] ss:$0 sm:$0xff] }
  0xe3   : > { %v7444_v27 = vunpack.c.h.bf16 %v7539_v61  ;;  %v4128_v21 = vsel %vm9368_vm13, %v4126_v50, %v4127_v0  ;;  %v6841_v22 = vcombine.low %v1693_v41, %v1703_v54  ;;  %v1722_v36 = vrot.slane %v1721_v20, 4  ;;  %v8632_v5 = vld [vmem:[%s11043_s2] ss:$0 sm:$0xff]  ;;  %v9858_v0 = vld [vmem:[#allocation2 + $0x8c] sm:$0x1] }
  0xe4   : > { %v1717_v43 = vsel %vm9065_vm10, %v1712_v35, %v1716_v34  ;;  %v4132_v8 = vsel %vm9368_vm13, %v7055_v18, %v4131_v24  ;;  %v7086_v25 = vcombine.low %v4125_v29, %v4128_v21  ;;  %v4133_v15 = vrot.slane %v4131_v24, 4 }
  0xe5   : > { %v470_v26 = vmul.f32 %v8631_v63, %v7443_v52  ;;  %v471_v49 = vmul.f32 %v8631_v63, %v7444_v27  ;;  %7851 = vmatprep.mubr.bf16.mxu1 %v6841_v22  ;;  %v1727_v23 = vsel %vm9065_vm10, %v1722_v36, %v1726_v10  ;;  %v11167_v50 = vshrl.u32 %v9414_v32, 16 }
  0xe6   : > { %v11168_v42 = vshll.u32 %v9414_v32, 16  ;;  %v1738_v29 = vshll.u32 %v9424_v46, 16  ;;  %8052 = vmatmul.mubr.bf16.gmra.mrb[24].mxu0 %v7086_v25  ;;  %v6842_v34 = vcombine.low %v1717_v43, %v1727_v23  ;;  %v11169_v18 = vshrl.u32 %v9424_v46, 16 }
  0xe7   : > { %v1731_v12 = vrot.slane %v11167_v50, 4  ;;  %v509_v11 = vadd.f32 %v8632_v5, %v470_v26  ;;  %v510_v55 = vadd.f32 %v8632_v5, %v471_v49  ;;  %v1748_v47 = vshll.u32 %v9841_v13, 16 }
  0xe8   : > { %v1734_v9 = vrot.slane %v11168_v42, 5  ;;  %v1744_v61 = vrot.slane %v11169_v18, 4  ;;  %v1740_v60 = vrot.slane %v1738_v29, 5  ;;  %v11170_v32 = vshrl.u32 %v9436_v19, 16  ;;  %7852 = vmatmul.mubr.bf16.gmra.mrb[16].mxu1 %v6842_v34  ;;  %v1073_v18 = vld [vmem:[#allocation2 + $0xc0] sm:$0xf] }
  0xe9   : > { %v541_v51 = vmax.f32 %v509_v11, 0.0  ;;  %v542_v35 = vmax.f32 %v510_v55, 0.0  ;;  %v11171_v20 = vshll.u32 %v9436_v19, 16  ;;  %v1762_v24 = vshll.u32 %v9439_v59, 16  ;;  %v6957_v54 = vld [vmem:[#allocation2 + $0xbc] sm:$0x1] }
  0xea   : > { %v1735_v10 = vor.u32 %v1734_v9, %v1731_v12  ;;  %v1755_v41 = vrot.slane %v11170_v32, 4  ;;  %v1745_v43 = vor.u32 %v1744_v61, %v1740_v60  ;;  %v1750_v52 = vrot.slane %v1748_v47, 5  ;;  %v1077_v32 = vld [vmem:[#allocation2 + $0xc8] sm:$0x1] }
  0xeb   : > { %v1758_v6 = vrot.slane %v11171_v20, 5  ;;  %v11172_v27 = vshrl.u32 %v9439_v59, 16  ;;  %v4134_v22 = vrot.slane %v6957_v54, 5  ;;  %v7347_v36 = vpack.c.bf16 %v541_v51, %v541_v51 }
  0xec   : > { %v1736_v46 = vrot.slane %v1735_v10, 4  ;;  %v7348_v25 = vpack.c.bf16 %v542_v35, %v542_v35  ;;  %v1746_v49 = vrot.slane %v1745_v43, 4  ;;  %v1764_v23 = vrot.slane %v1762_v24, 5 }
  0xed   : > { %v1768_v21 = vrot.slane %v11172_v27, 4  ;;  %v1759_v63 = vor.u32 %v1758_v6, %v1755_v41  ;;  %v1772_v19 = vshll.u32 %v9858_v0, 16  ;;  %v4135_v50 = vsel %vm9368_vm13, %v4133_v15, %v4134_v22  ;;  %v9888_v22 = vld [vmem:[#allocation2] sm:$0xf] }
  0xee   : > { %v1741_v26 = vsel %vm9065_vm10, %v1736_v46, %v1740_v60  ;;  %v898_v12 = vshrl.u32 %v7347_v36, 16  ;;  %v901_v42 = vshll.u32 %v7347_v36, 16  ;;  %v906_v9 = vshrl.u32 %v7348_v25, 16  ;;  %v9891_v36 = vld [vmem:[#allocation2 + $0x10] sm:$0xf] }
  0xef   : > { %v7087_v29 = vcombine.low %v4132_v8, %v4135_v50  ;;  %v909_v59 = vshll.u32 %v7348_v25, 16  ;;  %v1751_v34 = vsel %vm9065_vm10, %v1746_v49, %v1750_v52  ;;  %v1760_v5 = vrot.slane %v1759_v63, 4  ;;  %v9896_v63 = vld [vmem:[#allocation2 + $0xa4] sm:$0x1] }
  0xf0   : > { %v900_v11 = vrot.slane %v898_v12, 7  ;;  %v908_v55 = vrot.slane %v906_v9, 7  ;;  %v6843_v61 = vcombine.low %v1741_v26, %v1751_v34  ;;  %v1769_v10 = vor.u32 %v1768_v21, %v1764_v23  ;;  %v9886_v21 = vld [vmem:[#allocation2 + $0x98] sm:$0x1] }
  0xf1   : > { %v1777_v60 = vshrl.u32 %v9491_v1, 16  ;;  %v1780_v47 = vshll.u32 %v9491_v1, 16  ;;  %v1790_v15 = vshrl.u32 %v9498_v58, 16  ;;  %8055 = vmatprep.mubr.bf16.mxu0 %v7087_v29  ;;  %v1774_v41 = vrot.slane %v1772_v19, 5 }
  0xf2   : > { %v903_v8 = vor.u32 %v901_v42, %v900_v11  ;;  %v904_v51 = vrot.slane %v900_v11, 4  ;;  %v911_v35 = vor.u32 %v909_v59, %v908_v55  ;;  %v913_v20 = vrot.slane %v908_v55, 4  ;;  %7855 = vmatprep.mubr.bf16.mxu1 %v6843_v61 }
  0xf3   : > { %v1801_v6 = vshrl.u32 %v9508_v56, 16  ;;  %v1804_v24 = vshll.u32 %v9508_v56, 16  ;;  %v1765_v54 = vsel %vm9065_vm10, %v1760_v5, %v1764_v23  ;;  %v1770_v46 = vrot.slane %v1769_v10, 4  ;;  %v9906_v10 = vld [vmem:[#allocation2 + $0x18] sm:$0xf] }
  0xf4   : > { %v1814_v1 = vshrl.u32 %v9510_v17, 16  ;;  %v912_v43 = vsel %vm8930_vm6, %v904_v51, %v911_v35  ;;  %v1074_v52 = vsel %vm8924_vm5, %v903_v8, %v1073_v18  ;;  %v1078_v27 = vsel %vm8946_vm7, %v913_v20, %v1077_v32 }
  0xf5   : > { %v6857_v56 = vrot.slane %v9888_v22, 9  ;;  %v2286_v25 = vrot.slane %v9891_v36, 5  ;;  %1075 = vst [vmem:[#allocation2 + $0xc0] sm:$0xf] %v1074_v52  ;;  %1076 = vst [vmem:[#allocation2 + $0xc4] sm:$0xf] %v912_v43  ;;  %v1775_v3 = vsel %vm9065_vm10, %v1770_v46, %v1774_v41 }
  0xf6   : > { %1079 = vst [vmem:[#allocation2 + $0xc8] sm:$0x1] %v1078_v27  ;;  %v1779_v7 = vrot.slane %v1777_v60, 4  ;;  %v6844_v38 = vcombine.low %v1765_v54, %v1775_v3  ;;  %v1782_v26 = vrot.slane %v1780_v47, 5  ;;  %v1786_v49 = vshll.u32 %v9498_v58, 16 }
  0xf7   : > { %v1792_v23 = vrot.slane %v1790_v15, 4  ;;  %v1796_v19 = vshll.u32 %v9886_v21, 16  ;;  %v1803_v50 = vrot.slane %v1801_v6, 4  ;;  %v1806_v12 = vrot.slane %v1804_v24, 5  ;;  %v9908_v47 = vld [vmem:[#allocation2 + $0x1c] sm:$0xf] }
  0xf8   : > { %v1810_v42 = vshll.u32 %v9510_v17, 16  ;;  %7856 = vmatmul.mubr.bf16.gmra.mrb[20].mxu1 %v6844_v38  ;;  %v1783_v9 = vor.u32 %v1782_v26, %v1779_v7  ;;  %v1788_v29 = vrot.slane %v1786_v49, 5  ;;  %v1816_v59 = vrot.slane %v1814_v1, 4  ;;  %v9922_v49 = vld [vmem:[#allocation2 + $0xb0] sm:$0x1] }
  0xf9   : > { %v1820_v34 = vshll.u32 %v9896_v63, 16  ;;  %v1825_v5 = vshrl.u32 %v9591_v62, 16  ;;  %v1828_v11 = vshll.u32 %v9591_v62, 16  ;;  %v1807_v55 = vor.u32 %v1806_v12, %v1803_v50 }
  0xfa   : > { %v1812_v18 = vrot.slane %v1810_v42, 5  ;;  %v1838_v58 = vshrl.u32 %v9593_v30, 16  ;;  %v1849_v61 = vshrl.u32 %v9604_v44, 16  ;;  %v1784_v60 = vrot.slane %v1783_v9, 4 }
  0xfb   : > { %v1793_v17 = vor.u32 %v1792_v23, %v1788_v29  ;;  %v1798_v15 = vrot.slane %v1796_v19, 5  ;;  %v1808_v32 = vrot.slane %v1807_v55, 4  ;;  %v1822_v8 = vrot.slane %v1820_v34, 5  ;;  %v9931_v55 = vld [vmem:[#allocation2 + $0x24] sm:$0xf] }
  0xfc   : > { %v1817_v41 = vor.u32 %v1816_v59, %v1812_v18  ;;  %v6958_v51 = vld [vmem:[#allocation2 + $0xc0] sm:$0xf]  ;;  %v6959_v35 = vld [vmem:[#allocation2 + $0xc4] sm:$0xf]  ;;  %v1789_v62 = vsel %vm9065_vm10, %v1784_v60, %v1788_v29  ;;  %v1852_v1 = vshll.u32 %v9604_v44, 16  ;;  %v1862_v43 = vshrl.u32 %v9611_v31, 16 }
  0xfd   : > { %v6960_v20 = vld [vmem:[#allocation2 + $0xc8] sm:$0x1]  ;;  %v7056_v6 = vrot.slane %v6958_v51, 9  ;;  %v4138_v24 = vrot.slane %v6959_v35, 5  ;;  %v1794_v46 = vrot.slane %v1793_v17, 4  ;;  %v1813_v52 = vsel %vm9065_vm10, %v1808_v32, %v1812_v18 }
  0xfe   : > { %v4141_v54 = vrot.slane %v6960_v20, 5  ;;  %v1818_v27 = vrot.slane %v1817_v41, 4  ;;  %v7161_v38 = vcombine.low %v9906_v10, %v9908_v47  ;;  %v1827_v19 = vrot.slane %v1825_v5, 4  ;;  %v9929_v59 = vld [vmem:[#allocation2 + $0xbc] sm:$0x1] }
  0xff   : > { %v4139_v3 = vsel %vm9368_vm13, %v7056_v6, %v4138_v24  ;;  %v4140_v7 = vrot.slane %v4138_v24, 4  ;;  %v1799_v26 = vsel %vm9065_vm10, %v1794_v46, %v1798_v15  ;;  %v1830_v50 = vrot.slane %v1828_v11, 5  ;;  %v9934_v15 = vld [vmem:[#allocation2 + $0x28] sm:$0xf] }
 0x100   : > { %v6845_v23 = vcombine.low %v1789_v62, %v1799_v26  ;;  %v1823_v44 = vsel %vm9065_vm10, %v1818_v27, %v1822_v8  ;;  %v1834_v9 = vshll.u32 %v9593_v30, 16  ;;  %v1840_v29 = vrot.slane %v1838_v58, 4  ;;  %v8635_v30 = vld [vmem:[#allocation2 + $0x4] sm:$0xf]  ;;  %v8636_v8 = vld [vmem:[#allocation2 + $0xc] sm:$0xf] }
 0x101   : > { %v4142_v12 = vsel %vm9368_vm13, %v4140_v7, %v4141_v54  ;;  %v6846_v42 = vcombine.low %v1813_v52, %v1823_v44  ;;  %v1831_v18 = vor.u32 %v1830_v50, %v1827_v19  ;;  %v1844_v60 = vshll.u32 %v9922_v49, 16  ;;  %v9938_v62 = vld [vmem:[#allocation2 + $0x30] sm:$0xf] }
 0x102   : > { %v7088_v34 = vcombine.low %v4139_v3, %v4142_v12  ;;  %7859 = vmatprep.mubr.bf16.mxu1 %v6845_v23  ;;  %v1851_v17 = vrot.slane %v1849_v61, 4  ;;  %v1836_v5 = vrot.slane %v1834_v9, 5  ;;  %v1854_v11 = vrot.slane %v1852_v1, 5  ;;  %v9940_v61 = vld [vmem:[#allocation2 + $0x34] sm:$0xf] }
 0x103   : > { %7860 = vmatmul.mubr.bf16.gmra.mrb[24].mxu1 %v6846_v42  ;;  %v1858_v32 = vshll.u32 %v9611_v31, 16  ;;  %v1864_v41 = vrot.slane %v1862_v43, 4  ;;  %v2279_v58 = vrot.slane %v8635_v30, 5  ;;  %v6858_v51 = vrot.slane %v8636_v8, 9  ;;  %v9986_v8 = vld [vmem:[#allocation2 + $0x48] sm:$0xf] }
 0x104   : > { %8056 = vmatmul.mubr.bf16.gmra.mrb[28].mxu0 %v7088_v34  ;;  %v1832_v35 = vrot.slane %v1831_v18, 4  ;;  %v1868_v20 = vshll.u32 %v9929_v59, 16  ;;  %v1841_v6 = vor.u32 %v1840_v29, %v1836_v5  ;;  %v1846_v24 = vrot.slane %v1844_v60, 5  ;;  %v11173_v34 = vld [vmem:[#allocation5_spill] sm:$0xff]  ;;  %v8639_v30 = vld [vmem:[#allocation2 + $0x30] sm:$0xf] }
 0x105   : > { %8075 = vmatprep.mubr.bf16.mxu0 %v7161_v38  ;;  %v1855_v54 = vor.u32 %v1854_v11, %v1851_v17  ;;  %v1860_v46 = vrot.slane %v1858_v32, 5  ;;  %v2288_v31 = vrot.slane %v2286_v25, 4  ;;  %v3462_v1 = vshrl.u32 %v9635_v37, 16  ;;  %v11174_v60 = vld [vmem:[#allocation9_spill] sm:$0xff] }
 0x106   : > { %v7162_v43 = vcombine.low %v9931_v55, %v9934_v15  ;;  %v1837_v52 = vsel %vm9065_vm10, %v1832_v35, %v1836_v5  ;;  %v1842_v27 = vrot.slane %v1841_v6, 4  ;;  %v1870_v38 = vrot.slane %v1868_v20, 5  ;;  %v9994_v6 = vld [vmem:[#allocation2 + $0x4c] sm:$0xf] }
 0x107   : > { %v1856_v3 = vrot.slane %v1855_v54, 4  ;;  %v1865_v7 = vor.u32 %v1864_v41, %v1860_v46  ;;  %v7163_v26 = vcombine.low %v9938_v62, %v9940_v61  ;;  %v2280_v23 = vsel %vm9368_vm13, %v6857_v56, %v2279_v58  ;;  %v8566_v56 = vld [vmem:[%s11044_s3 + $0x1c8] sm:$0xff]  }
 0x108   : > { %v2281_v44 = vrot.slane %v2279_v58, 4  ;;  %v2282_v19 = vrot.slane %v9527_v4, 5  ;;  %v1847_v50 = vsel %vm9065_vm10, %v1842_v27, %v1846_v24  ;;  %v9964_v9 = vsel %vm9368_vm13, %v6858_v51, %v2286_v25  ;;  %v9976_v25 = vld [vmem:[#allocation2 + $0x3c] sm:$0xf]  ;;  %v11176_v58 = vld [vmem:[#allocation6_spill] sm:$0xff]  ;;  %v8570_v51 = vld [vmem:[%s11044_s3 + $0x1d0] sm:$0xff]  }
 0x109   : > { %v1861_v12 = vsel %vm9065_vm10, %v1856_v3, %v1860_v46  ;;  %v1866_v42 = vrot.slane %v1865_v7, 4  ;;  %v3465_v22 = vshll.u32 %v9635_v37, 16  ;;  %v6847_v4 = vcombine.low %v1837_v52, %v1847_v50  ;;  %v9978_v37 = vld [vmem:[#allocation2 + $0x40] sm:$0xf]  ;;  %v8637_v24 = vld [vmem:[#allocation2 + $0x18] sm:$0xf] }
 0x10a   : > { %v2283_v29 = vsel %vm9368_vm13, %v2281_v44, %v2282_v19  ;;  %v2289_v18 = vrot.slane %v11173_v34, 5  ;;  %v3475_v17 = vshrl.u32 %v11174_v60, 16  ;;  %v9982_v41 = vrot.slane %v3462_v1, 4  ;;  %v11178_v46 = vld [vmem:[#allocation8_spill] sm:$0xff]  ;;  %v11179_v1 = vld [vmem:[#allocation7_spill] sm:$0xff] }
 0x10b   : > { %v1871_v36 = vsel %vm9065_vm10, %v1866_v42, %v1870_v38  ;;  %v6889_v5 = vcombine.low %v2280_v23, %v2283_v29  ;;  %7863 = vmatprep.mubr.bf16.mxu1 %v6847_v4  ;;  %v9992_v20 = vrot.slane %v3465_v22, 5  ;;  %v6859_v54 = vrot.slane %v8637_v24, 9  ;;  %v11182_v38 = vld [vmem:[#allocation15_spill] sm:$0xff]  ;;  %v11185_v34 = vld [vmem:[#allocation12_spill] sm:$0xff]  ;;  %v10199_v27 = vld [vmem:[#allocation2 + $0x20] sm:$0x1] }
 0x10c   : > { %8076 = vmatmul.mubr.bf16.vlgmr.msra.gmra.mrb[0].mxu0 %v7162_v43  ;;  %v6848_v11 = vcombine.low %v1861_v12, %v1871_v36  ;;  %v2290_v32 = vsel %vm9368_vm13, %v2288_v31, %v2289_v18  ;;  %11175 = vst [vmem:[#allocation16_spill] sm:$0xff] %v9982_v41  ;;  %v2293_v31 = vrot.slane %v11178_v46, 5  ;;  %v2296_v43 = vrot.slane %v11179_v1, 5  ;;  %v10013_v4 = vld [vmem:[#allocation2 + $0x54] sm:$0xf]  ;;  %11192 = vst [vmem:[#allocation7_spill] sm:$0xff] %v10199_v27 }
 0x10d   : > { %8108 = vmatpush3.bf16.msra.mxu0 %v11176_v58  ;;  %8079 = vmatprep.mubr.bf16.mxu0 %v7163_v26  ;;  %v6890_v35 = vcombine.low %v9964_v9, %v2290_v32  ;;  %11177 = vst [vmem:[#allocation18_spill] sm:$0xff] %v9992_v20  ;;  %v9998_v52 = vrot.slane %v3475_v17, 4  ;;  %v2300_v26 = vrot.slane %v11182_v38, 5  ;;  %v7164_v44 = vcombine.low %v9976_v25, %v9978_v37  ;;  %v10017_v18 = vld [vmem:[#allocation2 + $0x58] sm:$0xf]  ;;  %v11183_v58 = vld [vmem:[#allocation14_spill] sm:$0xff] }
 0x10e   : > { %8109 = vmatprep.subr.bf16.mxu0 %v8566_v56  ;;  %7864 = vmatmul.mubr.bf16.gmra.mrb[28].mxu1 %v6848_v11  ;;  %v2294_v19 = vsel %vm9368_vm13, %v6859_v54, %v2293_v31  ;;  %v2295_v50 = vrot.slane %v2293_v31, 4  ;;  %v7165_v22 = vcombine.low %v9986_v8, %v9994_v6  ;;  %v8574_v17 = vld [vmem:[%s11044_s3 + $0x1d8] sm:$0xff]   ;;  %v2303_v24 = vrot.slane %v11183_v58, 5  ;;  %v11184_v54 = vld [vmem:[#allocation13_spill] sm:$0xff] }
 0x10f   : > { %11180 = vst [vmem:[#allocation4_spill] sm:$0xff] %v9998_v52  ;;  %7883 = vmatprep.mubr.bf16.mxu1 %v6889_v5  ;;  %v2302_v32 = vrot.slane %v2300_v26, 4  ;;  %v2307_v46 = vrot.slane %v11184_v54, 5  ;;  %v10028_v38 = vld [vmem:[#allocation2 + $0x60] sm:$0xf]  ;;  %v6861_v3 = vrot.slane %v8639_v30, 9 }
 0x110   : > { %v2297_v36 = vsel %vm9368_vm13, %v2295_v50, %v2296_v43  ;;  %v2310_v29 = vrot.slane %v11185_v34, 5  ;;  %v8580_v43 = vld [vmem:[%s11044_s3 + $0xc8] sm:$0xff]   ;;  %v10060_v50 = vld [vmem:[#allocation2 + $0x78] sm:$0xf]  ;;  %v10062_v31 = vld [vmem:[#allocation2 + $0x7c] sm:$0xf] }
 0x111   : > { %8110 = vmatpush3.bf16.msra.mxu0 %v8566_v56  ;;  %v8638_v56 = vld [vmem:[#allocation2 + $0x24] sm:$0xf]  ;;  %v6891_v11 = vcombine.low %v2294_v19, %v2297_v36  ;;  %v7166_v36 = vcombine.low %v10013_v4, %v10017_v18  ;;  %v10050_v19 = vld [vmem:[#allocation2 + $0x70] sm:$0xf]  ;;  %v2304_v58 = vsel %vm9368_vm13, %v2302_v32, %v2303_v24  ;;  %11187 = vst [vmem:[#allocation5_spill] sm:$0xff] %v10060_v50  ;;  %v8582_v24 = vld [vmem:[%s11044_s3 + $0x1e8] sm:$0xff]  }
 0x112   : > { %8111 = vmatprep.subr.bf16.mxu0 %v8570_v51  ;;  %v6860_v5 = vrot.slane %v8638_v56, 9  ;;  %v2309_v56 = vrot.slane %v2307_v46, 4  ;;  %v10082_v30 = vld [vmem:[#allocation2 + $0x88] sm:$0xf]  ;;  %v8640_v32 = vld [vmem:[#allocation2 + $0x3c] sm:$0xf] }
 0x113   : > { %v6862_v9 = vrot.slane %v8640_v32, 9  ;;  %v2324_v7 = vrot.slane %v9722_v2, 5  ;;  %v7169_v32 = vcombine.low %v10060_v50, %v10062_v31  ;;  %v10117_v2 = vld [vmem:[#allocation2 + $0xa0] sm:$0xf]  ;;  %v2352_v41 = vrot.slane %v9841_v13, 5 }
 0x114   : > { %8080 = vmatmul.mubr.bf16.gmra.mrb[4].mxu0 %v7164_v44  ;;  %v10038_v44 = vld [vmem:[#allocation2 + $0x64] sm:$0xf]  ;;  %v2301_v34 = vsel %vm9368_vm13, %v6860_v5, %v2300_v26  ;;  %v2311_v26 = vsel %vm9368_vm13, %v2309_v56, %v2310_v29  ;;  %v10140_v29 = vld [vmem:[#allocation2 + $0xb4] sm:$0xf]  ;;  %v10165_v20 = vld [vmem:[#allocation2 + $0xc0] sm:$0xf] }
 0x115   : > { %8083 = vmatprep.mubr.bf16.mxu0 %v7165_v22  ;;  %8112 = vmatpush3.bf16.msra.mxu0 %v8570_v51  ;;  %v8578_v22 = vld [vmem:[%s11044_s3 + $0x1e0] sm:$0xff]   ;;  %v10048_v51 = vld [vmem:[#allocation2 + $0x6c] sm:$0xf]  ;;  %v7167_v5 = vcombine.low %v10028_v38, %v10038_v44  ;;  %v6892_v1 = vcombine.low %v2301_v34, %v2304_v58  ;;  %v8641_v34 = vld [vmem:[#allocation2 + $0x48] sm:$0xf]  ;;  %v2359_v13 = vrot.slane %v9858_v0, 5 }
 0x116   : > { %7884 = vmatmul.mubr.bf16.vlgmr.msra.gmra.mrb[0].mxu1 %v6890_v35  ;;  %8113 = vmatprep.subr.bf16.mxu0 %v8574_v17  ;;  %v11186_v35 = vld [vmem:[#allocation11_spill] sm:$0xff]  ;;  %v6863_v58 = vrot.slane %v8641_v34, 9  ;;  %v10115_v34 = vld [vmem:[#allocation2 + $0x9c] sm:$0xf]  ;;  %v5019_v0 = vshll.u32 %v10199_v27, 16 }
 0x117   : > { %7887 = vmatprep.mubr.bf16.mxu1 %v6891_v11  ;;  %7916 = vmatpush3.bf16.msra.mxu1 %v9818_v16  ;;  %v2314_v54 = vrot.slane %v11186_v35, 5  ;;  %v2308_v11 = vsel %vm9368_vm13, %v6861_v3, %v2307_v46  ;;  %v8584_v16 = vld [vmem:[%s11044_s3 + $0xd0] sm:$0xff]   ;;  %v10075_v35 = vld [vmem:[#allocation2 + $0x84] sm:$0xf]  ;;  %v2321_v3 = vrot.slane %v9730_v48, 5  ;;  %v11188_v48 = vld [vmem:[#allocation10_spill] sm:$0xff] }
 0x118   : > { %7917 = vmatprep.subr.bf16.mxu1 %v8580_v43  ;;  %v2317_v12 = vrot.slane %v11188_v48, 5  ;;  %v10088_v46 = vld [vmem:[#allocation2 + $0x90] sm:$0xf]  ;;  %v2328_v48 = vrot.slane %v9749_v53, 5 }
 0x119   : > { %8114 = vmatpush3.bf16.msra.mxu0 %v8574_v17  ;;  %v6893_v17 = vcombine.low %v2308_v11, %v2311_v26  ;;  %v2316_v42 = vrot.slane %v2314_v54, 4  ;;  %11189 = vst [vmem:[#allocation6_spill] sm:$0xff] %v10088_v46  ;;  %v2323_v23 = vrot.slane %v2321_v3, 4  ;;  %v8588_v11 = vld [vmem:[%s11044_s3 + $0xd8] sm:$0xff]   ;;  %v2315_v53 = vsel %vm9368_vm13, %v6862_v9, %v2314_v54  ;;  %v10127_v54 = vld [vmem:[#allocation2 + $0xa8] sm:$0xf] }
 0x11a   : > { %8115 = vmatprep.subr.bf16.mxu0 %v8578_v22  ;;  %v2335_v26 = vrot.slane %v9792_v33, 5  ;;  %v2330_v56 = vrot.slane %v2328_v48, 4  ;;  %v10145_v33 = vld [vmem:[#allocation2 + $0xb8] sm:$0xf] }
 0x11b   : > { %7918 = vmatpush3.bf16.msra.mxu1 %v8580_v43  ;;  %v8586_v43 = vld [vmem:[%s11044_s3 + $0x1f0] sm:$0xff]   ;;  %v2325_v9 = vsel %vm9368_vm13, %v2323_v23, %v2324_v7  ;;  %v11190_v23 = vcombine.low %v10048_v51, %v10050_v19 }
 0x11c   : > { %8084 = vmatmul.mubr.bf16.gmra.mrb[8].mxu0 %v7166_v36  ;;  %7919 = vmatprep.subr.bf16.mxu1 %v8584_v16  ;;  %v10099_v36 = vld [vmem:[#allocation2 + $0x94] sm:$0xf] }
 0x11d   : > { %8087 = vmatprep.mubr.bf16.mxu0 %v7167_v5  ;;  %8116 = vmatpush3.bf16.msra.mxu0 %v8578_v22  ;;  %v2331_v22 = vrot.slane %v9733_v45, 5  ;;  %v10134_v5 = vld [vmem:[#allocation2 + $0xac] sm:$0xf]  ;;  %v8643_v45 = vld [vmem:[#allocation2 + $0x60] sm:$0xf] }
 0x11e   : > { %7888 = vmatmul.mubr.bf16.gmra.mrb[4].mxu1 %v6892_v1  ;;  %8117 = vmatprep.subr.bf16.mxu0 %v8582_v24  ;;  %v2318_v1 = vsel %vm9368_vm13, %v2316_v42, %v2317_v12  ;;  %v8592_v12 = vld [vmem:[%s11044_s3 + $0xe0] sm:$0xff]   ;;  %v8642_v42 = vld [vmem:[#allocation2 + $0x54] sm:$0xf]  ;;  %v6865_v52 = vrot.slane %v8643_v45, 9 }
 0x11f   : > { %7891 = vmatprep.mubr.bf16.mxu1 %v6893_v17  ;;  %7920 = vmatpush3.bf16.msra.mxu1 %v8584_v16  ;;  %v2322_v17 = vsel %vm9368_vm13, %v6863_v58, %v2321_v3  ;;  %v6864_v16 = vrot.slane %v8642_v42, 9  ;;  %v6894_v3 = vcombine.low %v2315_v53, %v2318_v1  ;;  %v2337_v53 = vrot.slane %v2335_v26, 4 }
 0x120   : > { %7921 = vmatprep.subr.bf16.mxu1 %v8588_v11  ;;  %v6895_v42 = vcombine.low %v2322_v17, %v2325_v9  ;;  %v2338_v1 = vrot.slane %v9783_v39, 5  ;;  %v8594_v9 = vld [vmem:[%s11044_s3 + $0xe8] sm:$0xff]   ;;  %v5009_v17 = vshll.u32 %v9908_v47, 16 }
 0x121   : > { %8118 = vmatpush3.bf16.msra.mxu0 %v8582_v24  ;;  %v8590_v24 = vld [vmem:[%s11044_s3 + $0x1f8] sm:$0xff]   ;;  %v2329_v39 = vsel %vm9368_vm13, %v6864_v16, %v2328_v48  ;;  %v2342_v48 = vrot.slane %v9809_v14, 5  ;;  %v10172_v16 = vld [vmem:[#allocation2 + $0xc4] sm:$0xf] }
 0x122   : > { %8119 = vmatprep.subr.bf16.mxu0 %v8586_v43 }
 0x123   : > { %7922 = vmatpush3.bf16.msra.mxu1 %v8588_v11  ;;  %v2332_v11 = vsel %vm9368_vm13, %v2330_v56, %v2331_v22  ;;  %v10177_v56 = vld [vmem:[%s11044_s3 + $0x200] sm:$0xff]   ;;  %v2336_v22 = vsel %vm9368_vm13, %v6865_v52, %v2335_v26  ;;  %v2345_v26 = vrot.slane %v9797_v40, 5 }
 0x124   : > { %8088 = vmatmul.mubr.bf16.gmra.mrb[12].mxu0 %v11190_v23  ;;  %7923 = vmatprep.subr.bf16.mxu1 %v8592_v12  ;;  %11191 = vst [vmem:[#allocation8_spill] sm:$0xff] %v10177_v56  ;;  %v6896_v14 = vcombine.low %v2329_v39, %v2332_v11  ;;  %v8645_v23 = vld [vmem:[#allocation2 + $0x88] sm:$0xf]  ;;  %v2344_v11 = vrot.slane %v2342_v48, 4  ;;  %v8648_v40 = vld [vmem:[#allocation2 + $0x84] sm:$0xf] }
 0x125   : > { %8091 = vmatprep.mubr.bf16.mxu0 %v7169_v32  ;;  %8120 = vmatpush3.bf16.msra.mxu0 %v8586_v43  ;;  %v8644_v32 = vld [vmem:[#allocation2 + $0x7c] sm:$0xf]  ;;  %v2356_v7 = vrot.slane %v8645_v23, 5  ;;  %v8646_v43 = vld [vmem:[#allocation2 + $0x6c] sm:$0xf]  ;;  %v6868_v60 = vrot.slane %v8648_v40, 9 }
 0x126   : > { %7892 = vmatmul.mubr.bf16.gmra.mrb[8].mxu1 %v6894_v3  ;;  %8121 = vmatprep.subr.bf16.mxu0 %v8590_v24  ;;  %v2339_v3 = vsel %vm9368_vm13, %v2337_v53, %v2338_v1  ;;  %v2349_v58 = vrot.slane %v8644_v32, 5  ;;  %v6866_v52 = vrot.slane %v8646_v43, 9  ;;  %v10193_v1 = vld [vmem:[#allocation2 + $0xcc] sm:$0xf]  ;;  %v10195_v23 = vld [vmem:[#allocation2 + $0xd0] sm:$0xf] }
 0x127   : > { %7895 = vmatprep.mubr.bf16.mxu1 %v6895_v42  ;;  %7924 = vmatpush3.bf16.msra.mxu1 %v8592_v12  ;;  %v8596_v42 = vld [vmem:[%s11044_s3 + $0xf0] sm:$0xff]   ;;  %v6897_v39 = vcombine.low %v2336_v22, %v2339_v3  ;;  %v8647_v32 = vld [vmem:[#allocation2 + $0x78] sm:$0xf]  ;;  %v11193_v12 = vshrl.u32 %v9906_v10, 16  ;;  %v11195_v3 = vcombine.low %v10075_v35, %v10082_v30  ;;  %v11196_v40 = vshrl.u32 %v9908_v47, 16 }
 0x128   : > { %7925 = vmatprep.subr.bf16.mxu1 %v8594_v9  ;;  %v6867_v45 = vrot.slane %v8647_v32, 9  ;;  %v2351_v43 = vrot.slane %v2349_v58, 4  ;;  %v2358_v32 = vrot.slane %v2356_v7, 4  ;;  %v2346_v47 = vsel %vm9368_vm13, %v2344_v11, %v2345_v26 }
 0x129   : > { %8122 = vmatpush3.bf16.msra.mxu0 %v8590_v24  ;;  %v5002_v53 = vrot.slane %v11193_v12, 4  ;;  %v11194_v24 = vshll.u32 %v9906_v10, 16  ;;  %v5015_v50 = vrot.slane %v11196_v40, 4  ;;  %v8598_v12 = vld [vmem:[%s11044_s3 + $0xf8] sm:$0xff]   ;;  %v11197_v10 = vcombine.low %v10088_v46, %v10099_v36 }
 0x12a   : > { %8155 = vmatprep.subr.bf16.mxu0 %v10177_v56  ;;  %v10209_v56 = vrot.slane %v5009_v17, 5  ;;  %v5033_v17 = vshll.u32 %v9934_v15, 16  ;;  %v2350_v40 = vsel %vm9368_vm13, %v6867_v45, %v2349_v58  ;;  %v10239_v26 = vsel %vm9368_vm13, %v2358_v32, %v2359_v13  ;;  %v8651_v32 = vld [vmem:[#allocation2 + $0xa0] sm:$0xf] }
 0x12b   : > { %v5005_v22 = vrot.slane %v11194_v24, 5  ;;  %7926 = vmatpush3.bf16.msra.mxu1 %v8594_v9  ;;  %v2343_v9 = vsel %vm9368_vm13, %v6866_v52, %v2342_v48  ;;  %v2353_v48 = vsel %vm9368_vm13, %v2351_v43, %v2352_v41  ;;  %v10234_v52 = vsel %vm9368_vm13, %v6868_v60, %v2356_v7  ;;  %v10246_v43 = vld [vmem:[#allocation2 + $0x2c] sm:$0x1] }
 0x12c   : > { %8092 = vmatmul.mubr.bf16.gmra.mrb[16].mxu0 %v11195_v3  ;;  %7927 = vmatprep.subr.bf16.mxu1 %v8596_v42  ;;  %v5016_v58 = vor.u32 %v5015_v50, %v10209_v56  ;;  %v11198_v45 = vshrl.u32 %v9931_v55, 16  ;;  %v11199_v11 = vshll.u32 %v9931_v55, 16  ;;  %11200 = vst [vmem:[#allocation15_spill] sm:$0xff] %v10246_v43  ;;  %v10248_v60 = vrot.slane %v5033_v17, 5 }
 0x12d   : > { %8095 = vmatprep.mubr.bf16.mxu0 %v11197_v10  ;;  %v8649_v10 = vld [vmem:[#allocation2 + $0x94] sm:$0xf]  ;;  %v11201_v7 = vshrl.u32 %v9934_v15, 16  ;;  %v2370_v13 = vrot.slane %v8651_v32, 5  ;;  %v6899_v50 = vcombine.low %v2350_v40, %v2353_v48  ;;  %v6900_v55 = vcombine.low %v10234_v52, %v10239_v26  ;;  %v8653_v48 = vld [vmem:[#allocation2 + $0x9c] sm:$0xf] }
 0x12e   : > { %7896 = vmatmul.mubr.bf16.gmra.mrb[12].mxu1 %v6896_v14  ;;  %v2363_v46 = vrot.slane %v8649_v10, 5  ;;  %v5006_v14 = vor.u32 %v5005_v22, %v5002_v53  ;;  %v5029_v41 = vrot.slane %v11199_v11, 5  ;;  %v8650_v53 = vld [vmem:[#allocation2 + $0x90] sm:$0xf]  ;;  %v6898_v10 = vcombine.low %v2343_v9, %v2346_v47 }
 0x12f   : > { %7899 = vmatprep.mubr.bf16.mxu1 %v6897_v39  ;;  %7928 = vmatpush3.bf16.msra.mxu1 %v8596_v42  ;;  %v5026_v39 = vrot.slane %v11198_v45, 4  ;;  %v5039_v42 = vrot.slane %v11201_v7, 4  ;;  %v6869_v22 = vrot.slane %v8650_v53, 9  ;;  %v2366_v45 = vrot.slane %v9886_v21, 5  ;;  %v10264_v21 = vld [vmem:[%s11044_s3 + $0x100] sm:$0xff]  }
 0x130   : > { %7929 = vmatprep.subr.bf16.mxu1 %v8598_v12  ;;  %v2365_v24 = vrot.slane %v2363_v46, 4  ;;  %v5007_v11 = vrot.slane %v5006_v14, 4  ;;  %v5021_v3 = vrot.slane %v5019_v0, 5  ;;  %v5057_v17 = vshll.u32 %v9940_v61, 16 }
 0x131   : > { %v11202_v15 = vcombine.low %v10115_v34, %v10117_v2  ;;  %v5017_v7 = vrot.slane %v5016_v58, 4  ;;  %v5030_v53 = vor.u32 %v5029_v41, %v5026_v39  ;;  %v5043_v9 = vshll.u32 %v10246_v43, 16 }
 0x132   : > { %v5081_v47 = vshll.u32 %v9978_v37, 16  ;;  %v5040_v0 = vor.u32 %v5039_v42, %v10248_v60  ;;  %v2364_v40 = vsel %vm9368_vm13, %v6869_v22, %v2363_v46  ;;  %v6870_v52 = vrot.slane %v8653_v48, 9  ;;  %v10280_v42 = vld [vmem:[#allocation2 + $0x38] sm:$0x1] }
 0x133   : > { %7930 = vmatpush3.bf16.msra.mxu1 %v8598_v12  ;;  %v11203_v12 = vcombine.low %v10127_v54, %v10134_v5  ;;  %v2372_v14 = vrot.slane %v2370_v13, 4  ;;  %v2367_v26 = vsel %vm9368_vm13, %v2365_v24, %v2366_v45  ;;  %v2373_v58 = vrot.slane %v9896_v63, 5 }
 0x134   : > { %8096 = vmatmul.mubr.bf16.gmra.mrb[20].mxu0 %v11202_v15  ;;  %8203 = vmatprep.subr.bf16.mxu1 %v10264_v21  ;;  %v11204_v39 = vshrl.u32 %v9938_v62, 16  ;;  %v11205_v32 = vshll.u32 %v9938_v62, 16  ;;  %v11206_v46 = vshrl.u32 %v9940_v61, 16  ;;  %v11208_v24 = vshll.u32 %v9976_v25, 16  ;;  %v10293_v62 = vld [vmem:[#allocation2 + $0x44] sm:$0x1] }
 0x135   : > { %8099 = vmatprep.mubr.bf16.mxu0 %v11203_v12  ;;  %v10282_v12 = vrot.slane %v5057_v17, 5  ;;  %v5012_v45 = vsel %vm9065_vm10, %v5007_v11, %v10209_v56  ;;  %v11209_v17 = vshrl.u32 %v9978_v37, 16  ;;  %v5041_v43 = vrot.slane %v5040_v0, 4 }
 0x136   : > { %7900 = vmatmul.mubr.bf16.gmra.mrb[16].mxu1 %v6898_v10  ;;  %v5050_v41 = vrot.slane %v11204_v39, 4  ;;  %v5053_v15 = vrot.slane %v11205_v32, 5  ;;  %v5063_v22 = vrot.slane %v11206_v46, 4  ;;  %v11207_v10 = vshrl.u32 %v9976_v25, 16  ;;  %v8654_v32 = vld [vmem:[#allocation2 + $0xac] sm:$0xf] }
 0x137   : > { %7903 = vmatprep.mubr.bf16.mxu1 %v6899_v50  ;;  %v5077_v63 = vrot.slane %v11208_v24, 5  ;;  %v10295_v50 = vrot.slane %v5081_v47, 5  ;;  %v5087_v39 = vrot.slane %v11209_v17, 4  ;;  %v2377_v61 = vrot.slane %v8654_v32, 5 }
 0x138   : > { %v5074_v48 = vrot.slane %v11207_v10, 4  ;;  %v5022_v46 = vsel %vm9065_vm10, %v5017_v7, %v5021_v3  ;;  %v5031_v10 = vrot.slane %v5030_v53, 4  ;;  %v5045_v25 = vrot.slane %v5043_v9, 5  ;;  %v8655_v53 = vld [vmem:[#allocation2 + $0xa8] sm:$0xf] }
 0x139   : > { %v6901_v24 = vcombine.low %v2364_v40, %v2367_v26  ;;  %v2371_v27 = vsel %vm9368_vm13, %v6870_v52, %v2370_v13  ;;  %v5054_v56 = vor.u32 %v5053_v15, %v5050_v41  ;;  %v5067_v11 = vshll.u32 %v10280_v42, 16 }
 0x13a   : > { %v2374_v47 = vsel %vm9368_vm13, %v2372_v14, %v2373_v58  ;;  %v5064_v37 = vor.u32 %v5063_v22, %v10282_v12  ;;  %v5078_v17 = vor.u32 %v5077_v63, %v5074_v48  ;;  %v5091_v32 = vshll.u32 %v10293_v62, 16  ;;  %v8656_v58 = vld [vmem:[#allocation2 + $0xb8] sm:$0xf] }
 0x13b   : > { %v11210_v3 = vcombine.low %v10140_v29, %v10145_v33  ;;  %v5088_v7 = vor.u32 %v5087_v39, %v10295_v50  ;;  %v6871_v9 = vrot.slane %v8655_v53, 9  ;;  %v2379_v13 = vrot.slane %v2377_v61, 4 }
 0x13c   : > { %v2380_v0 = vrot.slane %v9922_v49, 5  ;;  %v11211_v40 = vcombine.low %v10165_v20, %v10172_v16  ;;  %v7201_v52 = vcombine.low %v5012_v45, %v5022_v46  ;;  %v5036_v14 = vsel %vm9065_vm10, %v5031_v10, %v10248_v60  ;;  %v8657_v45 = vld [vmem:[#allocation2 + $0xb4] sm:$0xf]  ;;  %v10327_v10 = vld [vmem:[#allocation2 + $0x50] sm:$0x1] }
 0x13d   : > { %8100 = vmatmul.mubr.bf16.gmra.mrb[24].mxu0 %v11210_v3  ;;  %v5046_v26 = vsel %vm9065_vm10, %v5041_v43, %v5045_v25  ;;  %v2384_v41 = vrot.slane %v8656_v58, 5  ;;  %v6902_v15 = vcombine.low %v2371_v27, %v2374_v47  ;;  %v5055_v22 = vrot.slane %v5054_v56, 4 }
 0x13e   : > { %8103 = vmatprep.mubr.bf16.mxu0 %v11211_v40  ;;  %7904 = vmatmul.mubr.bf16.gmra.mrb[20].mxu1 %v6900_v55  ;;  %v5069_v48 = vrot.slane %v5067_v11, 5  ;;  %v5105_v49 = vshll.u32 %v9994_v6, 16  ;;  %v5065_v63 = vrot.slane %v5064_v37, 4  ;;  %v5079_v39 = vrot.slane %v5078_v17, 4 }
 0x13f   : > { %7907 = vmatprep.mubr.bf16.mxu1 %v6901_v24  ;;  %v5093_v3 = vrot.slane %v5091_v32, 5  ;;  %v6872_v46 = vrot.slane %v8657_v45, 9  ;;  %v5089_v53 = vrot.slane %v5088_v7, 4  ;;  %v2378_v60 = vsel %vm9368_vm13, %v6871_v9, %v2377_v61 }
 0x140   : > { %v2381_v43 = vsel %vm9368_vm13, %v2379_v13, %v2380_v0  ;;  %v2387_v55 = vrot.slane %v9929_v59, 5  ;;  %v2386_v27 = vrot.slane %v2384_v41, 4  ;;  %v11212_v25 = vshrl.u32 %v9986_v8, 16 }
 0x141   : > { %v11213_v56 = vshll.u32 %v9986_v8, 16  ;;  %v5129_v47 = vshll.u32 %v10017_v18, 16  ;;  %v10334_v37 = vrot.slane %v5105_v49, 5  ;;  %v11214_v61 = vshrl.u32 %v9994_v6, 16 }
 0x142   : > { %v5098_v24 = vrot.slane %v11212_v25, 4  ;;  %v11215_v32 = vshrl.u32 %v10013_v4, 16  ;;  %v11216_v59 = vshll.u32 %v10013_v4, 16  ;;  %v5060_v13 = vsel %vm9065_vm10, %v5055_v22, %v10282_v12 }
 0x143   : > { %v5101_v11 = vrot.slane %v11213_v56, 5  ;;  %v5111_v17 = vrot.slane %v11214_v61, 4  ;;  %v5070_v8 = vsel %vm9065_vm10, %v5065_v63, %v5069_v48  ;;  %v6903_v0 = vcombine.low %v2378_v60, %v2381_v43 }
 0x144   : > { %v5122_v7 = vrot.slane %v11215_v32, 4  ;;  %v5125_v9 = vrot.slane %v11216_v59, 5  ;;  %v5153_v40 = vshll.u32 %v10038_v44, 16  ;;  %v11217_v6 = vcombine.low %v10193_v1, %v10195_v23  ;;  %v8659_v32 = vld [vmem:[#allocation2 + $0x10] sm:$0xf] }
 0x145   : > { %v5084_v58 = vsel %vm9065_vm10, %v5079_v39, %v10295_v50  ;;  %v5094_v4 = vsel %vm9065_vm10, %v5089_v53, %v5093_v3  ;;  %v2385_v12 = vsel %vm9368_vm13, %v6872_v46, %v2384_v41  ;;  %v5115_v22 = vshll.u32 %v10327_v10, 16  ;;  %v10366_v3 = vld [vmem:[#allocation2 + $0x5c] sm:$0x1]  ;;  %v10368_v46 = vld [vmem:[#allocation2 + $0x68] sm:$0x1] }
 0x146   : > { %8104 = vmatmul.mubr.bf16.gmra.mrb[28].mxu0 %v11217_v6  ;;  %v2388_v48 = vsel %vm9368_vm13, %v2386_v27, %v2387_v55  ;;  %v5102_v49 = vor.u32 %v5101_v11, %v5098_v24  ;;  %v10361_v63 = vrot.slane %v5129_v47, 5  ;;  %v11218_v45 = vshrl.u32 %v10017_v18, 16  ;;  %7908 = vmatmul.mubr.bf16.gmra.mrb[24].mxu1 %v6902_v15 }
 0x147   : > { %8123 = vmatprep.mubr.bf16.mxu0 %v7201_v52  ;;  %v7202_v43 = vcombine.low %v5036_v14, %v5046_v26  ;;  %v7203_v50 = vcombine.low %v5060_v13, %v5070_v8  ;;  %v5112_v39 = vor.u32 %v5111_v17, %v10334_v37  ;;  %v5126_v41 = vor.u32 %v5125_v9, %v5122_v7  ;;  %v8658_v17 = vld [vmem:[#allocation2 + $0xc] sm:$0xf] }
 0x148   : > { %v5135_v60 = vrot.slane %v11218_v45, 4  ;;  %7911 = vmatprep.mubr.bf16.mxu1 %v6903_v0  ;;  %v11219_v52 = vshrl.u32 %v10028_v38, 16  ;;  %v11220_v55 = vshll.u32 %v10028_v38, 16  ;;  %v10374_v25 = vrot.slane %v5153_v40, 5  ;;  %v8595_v7 = vld [vmem:[%s11044_s3 + $0x208] sm:$0xff]  }
 0x149   : > { %v11221_v18 = vshrl.u32 %v10038_v44, 16  ;;  %v10378_v26 = vcombine.low %v5084_v58, %v5094_v4  ;;  %v6904_v15 = vcombine.low %v2385_v12, %v2388_v48  ;;  %v5117_v24 = vrot.slane %v5115_v22, 5 }
 0x14a   : > { %v5146_v53 = vrot.slane %v11219_v52, 4  ;;  %v5149_v27 = vrot.slane %v11220_v55, 5  ;;  %v5177_v56 = vshll.u32 %v10050_v19, 16  ;;  %v5103_v11 = vrot.slane %v5102_v49, 4  ;;  %v11225_v49 = vld [vmem:[#allocation5_spill] sm:$0xff]  ;;  %v11228_v52 = vld [vmem:[#allocation8_spill] sm:$0xff] }
 0x14b   : > { %v5159_v14 = vrot.slane %v11221_v18, 4  ;;  %v5136_v47 = vor.u32 %v5135_v60, %v10361_v63  ;;  %v5139_v61 = vshll.u32 %v10366_v3, 16  ;;  %v6977_v38 = vcombine.low %v8658_v17, %v8659_v32  ;;  %v8660_v55 = vld [vmem:[#allocation2 + $0x18] sm:$0xf]  ;;  %v10423_v32 = vld [vmem:[#allocation2 + $0x80] sm:$0x1] }
 0x14c   : > { %v5113_v44 = vrot.slane %v5112_v39, 4  ;;  %v10386_v59 = vrot.slane %v5126_v41, 4  ;;  %v5163_v9 = vshll.u32 %v10368_v46, 16  ;;  %v5201_v13 = vshll.u32 %v10062_v31, 16 }
 0x14d   : > { %v5150_v8 = vor.u32 %v5149_v27, %v5146_v53  ;;  %v5160_v0 = vor.u32 %v5159_v14, %v10374_v25  ;;  %v11222_v40 = vshrl.u32 %v10048_v51, 16  ;;  %v11223_v58 = vshll.u32 %v10048_v51, 16  ;;  %v8661_v27 = vld [vmem:[#allocation2 + $0x1c] sm:$0xf] }
 0x14e   : > { %8124 = vmatmul.mubr.bf16.vlgmr.msra.gmra.mrb[0].mxu0 %v7202_v43  ;;  %v10395_v12 = vrot.slane %v5177_v56, 5  ;;  %v11224_v22 = vshrl.u32 %v10050_v19, 16  ;;  %v11226_v45 = vshrl.u32 %v11225_v49, 16  ;;  %v11227_v39 = vshll.u32 %v11225_v49, 16  ;;  %v10407_v19 = vld [vmem:[#allocation2 + $0x74] sm:$0x1]  ;;  %7912 = vmatmul.mubr.bf16.gmra.mrb[28].mxu1 %v6904_v15 }
 0x14f   : > { %v5170_v6 = vrot.slane %v11222_v40, 4  ;;  %v5173_v4 = vrot.slane %v11223_v58, 5  ;;  %8156 = vmatpush3.bf16.msra.mxu0 %v11228_v52  ;;  %8127 = vmatprep.mubr.bf16.mxu0 %v7203_v50  ;;  %v5108_v51 = vsel %vm9065_vm10, %v5103_v11, %v10334_v37  ;;  %v5137_v53 = vrot.slane %v5136_v47, 4  ;;  %v8597_v50 = vld [vmem:[%s11044_s3 + $0x210] sm:$0xff]  }
 0x150   : > { %v5183_v48 = vrot.slane %v11224_v22, 4  ;;  %v5194_v60 = vrot.slane %v11226_v45, 4  ;;  %v5197_v41 = vrot.slane %v11227_v39, 5  ;;  %v5141_v43 = vrot.slane %v5139_v61, 5  ;;  %8157 = vmatprep.subr.bf16.mxu0 %v8595_v7  ;;  %7931 = vmatprep.mubr.bf16.mxu1 %v6977_v38  ;;  %v8663_v39 = vld [vmem:[#allocation2 + $0x28] sm:$0xf] }
 0x151   : > { %v6978_v18 = vcombine.low %v8660_v55, %v8661_v27  ;;  %v5118_v14 = vsel %vm9065_vm10, %v5113_v44, %v5117_v24  ;;  %v10414_v56 = vrot.slane %v5201_v13, 5  ;;  %v11229_v37 = vshrl.u32 %v10062_v31, 16 }
 0x152   : > { %v5225_v47 = vshll.u32 %v10082_v30, 16  ;;  %v5132_v61 = vsel %vm9065_vm10, %v10386_v59, %v10361_v63  ;;  %v5151_v15 = vrot.slane %v5150_v8, 4  ;;  %v5165_v17 = vrot.slane %v5163_v9, 5  ;;  %v8601_v9 = vld [vmem:[%s11044_s3 + $0x218] sm:$0xff]  }
 0x153   : > { %v5207_v11 = vrot.slane %v11229_v37, 4  ;;  %v5174_v24 = vor.u32 %v5173_v4, %v5170_v6  ;;  %v5161_v44 = vrot.slane %v5160_v0, 4  ;;  %v5184_v13 = vor.u32 %v5183_v48, %v10395_v12  ;;  %8158 = vmatpush3.bf16.msra.mxu0 %v8595_v7  ;;  %v10438_v7 = vld [vmem:[#allocation2 + $0x8c] sm:$0x1] }
 0x154   : > { %v5187_v40 = vshll.u32 %v10407_v19, 16  ;;  %v5198_v31 = vor.u32 %v5197_v41, %v5194_v60  ;;  %v7205_v58 = vcombine.low %v5108_v51, %v5118_v14  ;;  %v5142_v22 = vsel %vm9065_vm10, %v5137_v53, %v5141_v43  ;;  %8159 = vmatprep.subr.bf16.mxu0 %v8597_v50  ;;  %v8662_v60 = vld [vmem:[#allocation2 + $0x24] sm:$0xf] }
 0x155   : > { %v11230_v49 = vshrl.u32 %v10075_v35, 16  ;;  %v11231_v38 = vshll.u32 %v10075_v35, 16  ;;  %v5208_v8 = vor.u32 %v5207_v11, %v10414_v56  ;;  %v5211_v0 = vshll.u32 %v10423_v32, 16 }
 0x156   : > { %v10440_v6 = vrot.slane %v5225_v47, 5  ;;  %v11232_v4 = vshrl.u32 %v10082_v30, 16  ;;  %v5156_v35 = vsel %vm9065_vm10, %v5151_v15, %v10374_v25  ;;  %v5175_v45 = vrot.slane %v5174_v24, 4  ;;  %8128 = vmatmul.mubr.bf16.gmra.mrb[4].mxu0 %v10378_v26  ;;  %v11233_v25 = vld [vmem:[#allocation6_spill] sm:$0xff]  ;;  %7932 = vmatmul.mubr.bf16.vlgmr.msra.gmra.mrb[0].mxu1 %v6978_v18  ;;  %v8604_v24 = vld [vmem:[%s11044_s3 + $0x220] sm:$0xff]  }
 0x157   : > { %v5218_v63 = vrot.slane %v11230_v49, 4  ;;  %v5221_v59 = vrot.slane %v11231_v38, 5  ;;  %v6979_v41 = vcombine.low %v8662_v60, %v8663_v39  ;;  %v5249_v52 = vshll.u32 %v10099_v36, 16  ;;  %8131 = vmatprep.mubr.bf16.mxu0 %v7205_v58  ;;  %8160 = vmatpush3.bf16.msra.mxu0 %v8597_v50 }
 0x158   : > { %v5231_v48 = vrot.slane %v11232_v4, 4  ;;  %v5166_v51 = vsel %vm9065_vm10, %v5161_v44, %v5165_v17  ;;  %v5185_v53 = vrot.slane %v5184_v13, 4  ;;  %v5189_v43 = vrot.slane %v5187_v40, 5  ;;  %8161 = vmatprep.subr.bf16.mxu0 %v8601_v9  ;;  %v10461_v44 = vld [vmem:[#allocation2 + $0x98] sm:$0x1]  ;;  %8211 = vmatpush3.bf16.msra.mxu1 %v10264_v21  ;;  %v8666_v21 = vld [vmem:[%s11044_s3 + $0x108] sm:$0xff]  }
 0x159   : > { %v5199_v55 = vrot.slane %v5198_v31, 4  ;;  %v5222_v30 = vor.u32 %v5221_v59, %v5218_v63  ;;  %v5235_v27 = vshll.u32 %v10438_v7, 16  ;;  %v11234_v14 = vshrl.u32 %v11233_v25, 16  ;;  %7935 = vmatprep.mubr.bf16.mxu1 %v6979_v41  ;;  %v8664_v40 = vld [vmem:[#allocation2 + $0x30] sm:$0xf]  ;;  %8204 = vmatprep.subr.bf16.mxu1 %v8666_v21 }
 0x15a   : > { %v11235_v11 = vshll.u32 %v11233_v25, 16  ;;  %v5360_v15 = vshrl.u32 %v10193_v1, 16  ;;  %v5209_v26 = vrot.slane %v5208_v8, 4  ;;  %v5213_v17 = vrot.slane %v5211_v0, 5  ;;  %v8665_v31 = vld [vmem:[#allocation2 + $0x34] sm:$0xf] }
 0x15b   : > { %v5242_v37 = vrot.slane %v11234_v14, 4  ;;  %v5232_v50 = vor.u32 %v5231_v48, %v10440_v6  ;;  %v7206_v13 = vcombine.low %v5132_v61, %v5142_v22  ;;  %v6980_v58 = vcombine.low %v8664_v40, %v8665_v31  ;;  %8162 = vmatpush3.bf16.msra.mxu0 %v8601_v9  ;;  %v8667_v41 = vld [vmem:[#allocation2 + $0x3c] sm:$0xf]  ;;  %v10495_v25 = vld [vmem:[#allocation2 + $0x4c] sm:$0xf]  ;;  %v8671_v14 = vld [vmem:[%s11044_s3 + $0x110] sm:$0xff]  }
 0x15c   : > { %v5245_v47 = vrot.slane %v11235_v11, 5  ;;  %v10464_v49 = vrot.slane %v5249_v52, 5  ;;  %v11236_v18 = vshrl.u32 %v10099_v36, 16  ;;  %v7207_v38 = vcombine.low %v5156_v35, %v5166_v51  ;;  %8163 = vmatprep.subr.bf16.mxu0 %v8604_v24  ;;  %v8668_v52 = vld [vmem:[#allocation2 + $0x40] sm:$0xf]  ;;  %8212 = vmatpush3.bf16.msra.mxu1 %v8666_v21 }
 0x15d   : > { %v5180_v59 = vsel %vm9065_vm10, %v5175_v45, %v10395_v12  ;;  %v5190_v8 = vsel %vm9065_vm10, %v5185_v53, %v5189_v43  ;;  %v5204_v61 = vsel %vm9065_vm10, %v5199_v55, %v10414_v56  ;;  %v5223_v36 = vrot.slane %v5222_v30, 4  ;;  %v8607_v56 = vld [vmem:[%s11044_s3 + $0x228] sm:$0xff]   ;;  %8205 = vmatprep.subr.bf16.mxu1 %v8671_v14 }
 0x15e   : > { %v5255_v63 = vrot.slane %v11236_v18, 4  ;;  %v5237_v22 = vrot.slane %v5235_v27, 5  ;;  %v5246_v0 = vor.u32 %v5245_v47, %v5242_v37  ;;  %v5259_v4 = vshll.u32 %v10461_v44, 16  ;;  %8132 = vmatmul.mubr.bf16.gmra.mrb[8].mxu0 %v7206_v13  ;;  %v10493_v27 = vld [vmem:[#allocation2 + $0x48] sm:$0xf]  ;;  %7936 = vmatmul.mubr.bf16.gmra.mrb[4].mxu1 %v6980_v58 }
 0x15f   : > { %v5214_v12 = vsel %vm9065_vm10, %v5209_v26, %v5213_v17  ;;  %v5233_v48 = vrot.slane %v5232_v50, 4  ;;  %v11237_v35 = vshrl.u32 %v10115_v34, 16  ;;  %v11238_v60 = vshll.u32 %v10115_v34, 16  ;;  %8135 = vmatprep.mubr.bf16.mxu0 %v7207_v38  ;;  %8164 = vmatpush3.bf16.msra.mxu0 %v8604_v24  ;;  %v10512_v13 = vld [vmem:[#allocation2 + $0xa4] sm:$0x1] }
 0x160   : > { %v5363_v39 = vshll.u32 %v10193_v1, 16  ;;  %v6981_v51 = vcombine.low %v8667_v41, %v8668_v52  ;;  %v5256_v53 = vor.u32 %v5255_v63, %v10464_v49  ;;  %v5273_v43 = vshll.u32 %v10117_v2, 16  ;;  %8165 = vmatprep.subr.bf16.mxu0 %v8607_v56  ;;  %8213 = vmatpush3.bf16.msra.mxu1 %v8671_v14  ;;  %v10549_v52 = vld [vmem:[#allocation2 + $0x60] sm:$0xf]  ;;  %v8678_v1 = vld [vmem:[%s11044_s3 + $0x128] sm:$0xff]  }
 0x161   : > { %v5266_v45 = vrot.slane %v11237_v35, 4  ;;  %v5269_v9 = vrot.slane %v11238_v60, 5  ;;  %v5373_v55 = vshrl.u32 %v10195_v23, 16  ;;  %v7208_v30 = vcombine.low %v5180_v59, %v5190_v8  ;;  %v8672_v35 = vld [vmem:[%s11044_s3 + $0x118] sm:$0xff]  }
 0x162   : > { %v6982_v34 = vcombine.low %v10493_v27, %v10495_v25  ;;  %v5297_v37 = vshll.u32 %v10134_v5, 16  ;;  %v7209_v11 = vcombine.low %v5204_v61, %v5214_v12  ;;  %v5228_v47 = vsel %vm9065_vm10, %v5223_v36, %v10440_v6  ;;  %v8610_v6 = vld [vmem:[%s11044_s3 + $0x230] sm:$0xff]   ;;  %7939 = vmatprep.mubr.bf16.mxu1 %v6981_v51  ;;  %8206 = vmatprep.subr.bf16.mxu1 %v8672_v35  ;;  %v10551_v51 = vld [vmem:[#allocation2 + $0x64] sm:$0xf] }
 0x163   : > { %v10506_v26 = vrot.slane %v5246_v0, 4  ;;  %v10508_v17 = vrot.slane %v5259_v4, 5  ;;  %v5238_v50 = vsel %vm9065_vm10, %v5233_v48, %v5237_v22  ;;  %v5270_v40 = vor.u32 %v5269_v9, %v5266_v45  ;;  %8166 = vmatpush3.bf16.msra.mxu0 %v8607_v56  ;;  %v8673_v9 = vld [vmem:[#allocation2 + $0x54] sm:$0xf]  ;;  %v8613_v56 = vld [vmem:[%s11044_s3 + $0x238] sm:$0xff]  }
 0x164   : > { %v11239_v31 = vshrl.u32 %v10117_v2, 16  ;;  %v5321_v24 = vshll.u32 %v10145_v33, 16  ;;  %v5257_v63 = vrot.slane %v5256_v53, 4  ;;  %v10522_v58 = vrot.slane %v5273_v43, 5  ;;  %v10528_v2 = vld [vmem:[#allocation2 + $0xb0] sm:$0x1]  ;;  %8167 = vmatprep.subr.bf16.mxu0 %v8610_v6  ;;  %8214 = vmatpush3.bf16.msra.mxu1 %v8672_v35 }
 0x165   : > { %v11240_v38 = vshrl.u32 %v10127_v54, 16  ;;  %v11241_v8 = vshll.u32 %v10127_v54, 16  ;;  %v10530_v21 = vrot.slane %v5297_v37, 5  ;;  %v11242_v36 = vshrl.u32 %v10134_v5, 16 }
 0x166   : > { %v10516_v18 = vrot.slane %v11239_v31, 4  ;;  %v11243_v0 = vshrl.u32 %v10140_v29, 16  ;;  %v11244_v12 = vshll.u32 %v10140_v29, 16  ;;  %v10541_v54 = vcombine.low %v5228_v47, %v5238_v50  ;;  %v8674_v29 = vld [vmem:[#allocation2 + $0x58] sm:$0xf]  ;;  %8136 = vmatmul.mubr.bf16.gmra.mrb[12].mxu0 %v7208_v30  ;;  %7940 = vmatmul.mubr.bf16.gmra.mrb[8].mxu1 %v6982_v34 }
 0x167   : > { %v5290_v59 = vrot.slane %v11240_v38, 4  ;;  %v5293_v61 = vrot.slane %v11241_v8, 5  ;;  %v5303_v22 = vrot.slane %v11242_v36, 4  ;;  %v5252_v45 = vsel %vm9065_vm10, %v10506_v26, %v10464_v49  ;;  %v10570_v31 = vld [vmem:[#allocation2 + $0xbc] sm:$0x1]  ;;  %8139 = vmatprep.mubr.bf16.mxu0 %v7209_v11  ;;  %8168 = vmatpush3.bf16.msra.mxu0 %v8610_v6 }
 0x168   : > { %v5314_v4 = vrot.slane %v11243_v0, 4  ;;  %v5317_v48 = vrot.slane %v11244_v12, 5  ;;  %v5283_v5 = vshll.u32 %v10512_v13, 16  ;;  %v5345_v60 = vshll.u32 %v10172_v16, 16  ;;  %v10590_v6 = vld [vmem:[#allocation2 + $0xc8] sm:$0x1]  ;;  %8169 = vmatprep.subr.bf16.mxu0 %v8613_v56 }
 0x169   : > { %v6983_v41 = vcombine.low %v8673_v9, %v8674_v29  ;;  %v6984_v53 = vcombine.low %v10549_v52, %v10551_v51  ;;  %v10555_v43 = vrot.slane %v5321_v24, 5  ;;  %v11245_v49 = vshrl.u32 %v10145_v33, 16  ;;  %v10596_v12 = vld [vmem:[#allocation2 + $0xd4] sm:$0x1]  ;;  %v8686_v52 = vld [vmem:[#allocation2 + $0x7c] sm:$0xf] }
 0x16a   : > { %v5262_v37 = vsel %vm9065_vm10, %v5257_v63, %v10508_v17  ;;  %v10565_v47 = vrot.slane %v5270_v40, 4  ;;  %v5280_v26 = vor.u32 %v10516_v18, %v10522_v58  ;;  %v5307_v50 = vshll.u32 %v10528_v2, 16  ;;  %v8677_v17 = vld [vmem:[%s11044_s3 + $0x120] sm:$0xff]  }
 0x16b   : > { %v5327_v14 = vrot.slane %v11245_v49, 4  ;;  %v5294_v33 = vor.u32 %v5293_v61, %v5290_v59  ;;  %v5304_v24 = vor.u32 %v5303_v22, %v10530_v21  ;;  %v5318_v38 = vor.u32 %v5317_v48, %v5314_v4  ;;  %8207 = vmatprep.subr.bf16.mxu1 %v8677_v17  ;;  %7943 = vmatprep.mubr.bf16.mxu1 %v6983_v41  ;;  %v10612_v49 = vld [vmem:[#allocation2 + $0x6c] sm:$0xf] }
 0x16c   : > { %v5369_v8 = vshll.u32 %v10195_v23, 16  ;;  %v11246_v40 = vshrl.u32 %v10165_v20, 16  ;;  %v11247_v63 = vshll.u32 %v10165_v20, 16  ;;  %v10581_v30 = vrot.slane %v5345_v60, 5  ;;  %8215 = vmatpush3.bf16.msra.mxu1 %v8677_v17  ;;  %8170 = vmatpush3.bf16.msra.mxu0 %v8613_v56  ;;  %v8681_v56 = vld [vmem:[#allocation2 + $0x1c] sm:$0xf] }
 0x16d   : > { %v11248_v59 = vshrl.u32 %v10172_v16, 16  ;;  %v5328_v22 = vor.u32 %v5327_v14, %v10555_v43  ;;  %v5331_v11 = vshll.u32 %v10570_v31, 16  ;;  %v5362_v20 = vrot.slane %v5360_v15, 4  ;;  %8208 = vmatprep.subr.bf16.mxu1 %v8678_v1  ;;  %v10614_v14 = vld [vmem:[#allocation2 + $0x70] sm:$0xf] }
 0x16e   : > { %v5338_v18 = vrot.slane %v11246_v40, 4  ;;  %v5341_v36 = vrot.slane %v11247_v63, 5  ;;  %v5365_v0 = vrot.slane %v5363_v39, 5  ;;  %v7211_v4 = vcombine.low %v5252_v45, %v5262_v37  ;;  %8140 = vmatmul.mubr.bf16.gmra.mrb[16].mxu0 %v10541_v54  ;;  %v8682_v17 = vld [vmem:[%s11044_s3 + $0x130] sm:$0xff]   ;;  %7944 = vmatmul.mubr.bf16.gmra.mrb[12].mxu1 %v6984_v53  ;;  %v8687_v53 = vld [vmem:[#allocation2 + $0x24] sm:$0xf] }
 0x16f   : > { %v5351_v61 = vrot.slane %v11248_v59, 4  ;;  %v5285_v16 = vrot.slane %v5283_v5, 5  ;;  %v10598_v27 = vrot.slane %v5369_v8, 5  ;;  %v5375_v25 = vrot.slane %v5373_v55, 4 }
 0x170   : > { %v5281_v34 = vrot.slane %v5280_v26, 4  ;;  %v5295_v48 = vrot.slane %v5294_v33, 4  ;;  %v5305_v35 = vrot.slane %v5304_v24, 4  ;;  %v5309_v60 = vrot.slane %v5307_v50, 5  ;;  %8216 = vmatpush3.bf16.msra.mxu1 %v8678_v1  ;;  %v11249_v33 = vld [vmem:[#allocation17_spill] sm:$0xff]  ;;  %8143 = vmatprep.mubr.bf16.mxu0 %v7211_v4 }
 0x171   : > { %v5319_v15 = vrot.slane %v5318_v38, 4  ;;  %v5342_v39 = vor.u32 %v5341_v36, %v5338_v18  ;;  %v5352_v45 = vor.u32 %v5351_v61, %v10581_v30  ;;  %v5355_v5 = vshll.u32 %v10590_v6, 16  ;;  %8209 = vmatprep.subr.bf16.mxu1 %v8682_v17  ;;  %v8683_v61 = vld [vmem:[#allocation2 + $0x18] sm:$0xf] }
 0x172   : > { %v5329_v9 = vrot.slane %v5328_v22, 4  ;;  %v5333_v23 = vrot.slane %v5331_v11, 5  ;;  %v5366_v55 = vor.u32 %v5365_v0, %v5362_v20  ;;  %v5379_v29 = vshll.u32 %v10596_v12, 16  ;;  %v11251_v0 = vld [vmem:[#allocation7_spill] sm:$0xff] }
 0x173   : > { %v5276_v41 = vsel %vm9065_vm10, %v10565_v47, %v10522_v58  ;;  %v6985_v37 = vcombine.low %v10612_v49, %v10614_v14  ;;  %v5376_v26 = vor.u32 %v5375_v25, %v10598_v27  ;;  %v5787_v50 = vrot.slane %v8681_v56, 5 }
 0x174   : > { %v11250_v24 = vshll.u32 %v11249_v33, 16  ;;  %v5286_v58 = vsel %vm9065_vm10, %v5281_v34, %v5285_v16  ;;  %v5300_v47 = vsel %vm9065_vm10, %v5295_v48, %v10530_v21  ;;  %v5310_v8 = vsel %vm9065_vm10, %v5305_v35, %v5309_v60  ;;  %8217 = vmatpush3.bf16.msra.mxu1 %v8682_v17  ;;  %v8685_v48 = vld [vmem:[#allocation2 + $0x78] sm:$0xf]  ;;  %v8692_v33 = vld [vmem:[#allocation2 + $0x30] sm:$0xf] }
 0x175   : > { %v5324_v54 = vsel %vm9065_vm10, %v5319_v15, %v10555_v43  ;;  %v5343_v40 = vrot.slane %v5342_v39, 4  ;;  %v5353_v18 = vrot.slane %v5352_v45, 4  ;;  %v5357_v63 = vrot.slane %v5355_v5, 5  ;;  %7947 = vmatprep.mubr.bf16.mxu1 %v6985_v37  ;;  %v8684_v43 = vld [vmem:[#allocation2 + $0x28] sm:$0xf]  ;;  %v8688_v60 = vld [vmem:[%s11044_s3 + $0x138] sm:$0xff]  }
 0x176   : > { %v10621_v38 = vrot.slane %v11250_v24, 5  ;;  %v5334_v21 = vsel %vm9065_vm10, %v5329_v9, %v5333_v23  ;;  %v5367_v36 = vrot.slane %v5366_v55, 4  ;;  %v5381_v59 = vrot.slane %v5379_v29, 5  ;;  %8210 = vmatprep.subr.bf16.mxu1 %v8688_v60  ;;  %v8689_v45 = vld [vmem:[#allocation2 + $0x34] sm:$0xf] }
 0x177   : > { %v7225_v22 = vrot.slane %v8683_v61, 9  ;;  %v5377_v11 = vrot.slane %v5376_v26, 4  ;;  %v5789_v20 = vrot.slane %v5787_v50, 4  ;;  %v5790_v4 = vrot.slane %v11251_v0, 5  ;;  %v10656_v23 = vld [vmem:[#allocation2 + $0x84] sm:$0xf] }
 0x178   : > { %v5794_v16 = vrot.slane %v8684_v43, 5  ;;  %v7212_v25 = vcombine.low %v5276_v41, %v5286_v58  ;;  %v7213_v34 = vcombine.low %v5300_v47, %v5310_v8  ;;  %v6986_v51 = vcombine.low %v8685_v48, %v8686_v52  ;;  %v10658_v55 = vld [vmem:[#allocation2 + $0x88] sm:$0xf]  ;;  %8218 = vmatpush3.bf16.msra.mxu1 %v8688_v60  ;;  %v10673_v47 = vld [vmem:[#allocation2 + $0x90] sm:$0xf] }
 0x179   : > { %v7226_v35 = vrot.slane %v8687_v53, 9  ;;  %v10646_v1 = vcombine.low %v5324_v54, %v5334_v21  ;;  %v5348_v15 = vsel %vm9065_vm10, %v5343_v40, %v10581_v30  ;;  %v5358_v39 = vsel %vm9065_vm10, %v5353_v18, %v5357_v63  ;;  %v11252_v30 = vld [vmem:[#allocation15_spill] sm:$0xff]  ;;  %v10683_v54 = vld [vmem:[#allocation2 + $0x9c] sm:$0xf]  ;;  %v10685_v40 = vld [vmem:[#allocation2 + $0xa0] sm:$0xf] }
 0x17a   : > { %v5801_v5 = vrot.slane %v8689_v45, 5  ;;  %v5372_v9 = vsel %vm9065_vm10, %v5367_v36, %v10598_v27  ;;  %v6987_v29 = vcombine.low %v10656_v23, %v10658_v55  ;;  %v10664_v41 = vsel %vm9368_vm13, %v7225_v22, %v5787_v50  ;;  %8144 = vmatmul.mubr.bf16.gmra.mrb[20].mxu0 %v7212_v25  ;;  %v10675_v8 = vld [vmem:[#allocation2 + $0x94] sm:$0xf]  ;;  %v10689_v63 = vld [vmem:[#allocation2 + $0xa8] sm:$0xf]  ;;  %7948 = vmatmul.mubr.bf16.gmra.mrb[16].mxu1 %v6986_v51 }
 0x17b   : > { %v5797_v37 = vrot.slane %v11252_v30, 5  ;;  %v5382_v26 = vsel %vm9065_vm10, %v5377_v11, %v5381_v59  ;;  %v10671_v56 = vsel %vm9368_vm13, %v5789_v20, %v5790_v4  ;;  %v5796_v27 = vrot.slane %v5794_v16, 4  ;;  %8147 = vmatprep.mubr.bf16.mxu0 %v7213_v34  ;;  %v10691_v21 = vld [vmem:[#allocation2 + $0xac] sm:$0xf]  ;;  %v8699_v22 = vld [vmem:[#allocation2 + $0x40] sm:$0xf] }
 0x17c   : > { %v7227_v24 = vrot.slane %v8692_v33, 9  ;;  %v7215_v58 = vcombine.low %v5348_v15, %v5358_v39  ;;  %v6988_v50 = vcombine.low %v10673_v47, %v10675_v8  ;;  %v10681_v17 = vsel %vm9368_vm13, %v7226_v35, %v5794_v16  ;;  %v8700_v4 = vld [vmem:[#allocation2 + $0x4c] sm:$0xf]  ;;  %v8701_v16 = vld [vmem:[#allocation2 + $0x58] sm:$0xf]  ;;  %7951 = vmatprep.mubr.bf16.mxu1 %v6987_v29 }
 0x17d   : > { %v6989_v18 = vcombine.low %v10683_v54, %v10685_v40  ;;  %v6990_v36 = vcombine.low %v10689_v63, %v10691_v21  ;;  %v5803_v59 = vrot.slane %v5801_v5, 4  ;;  %v5804_v61 = vrot.slane %v10280_v42, 5  ;;  %v8702_v51 = vld [vmem:[#allocation2 + $0x3c] sm:$0xf]  ;;  %v10721_v33 = vld [vmem:[#allocation2 + $0xb4] sm:$0xf] }
 0x17e   : > { %v5808_v11 = vrot.slane %v8699_v22, 5  ;;  %v10696_v20 = vcombine.low %v5372_v9, %v5382_v26  ;;  %v7257_v0 = vcombine.low %v10664_v41, %v10671_v56  ;;  %v5815_v43 = vrot.slane %v8700_v4, 5  ;;  %v8703_v9 = vld [vmem:[#allocation2 + $0x48] sm:$0xf] }
 0x17f   : > { %v5822_v25 = vrot.slane %v8701_v16, 5  ;;  %v10702_v34 = vsel %vm9368_vm13, %v5796_v27, %v5797_v37  ;;  %v10706_v42 = vsel %vm9368_vm13, %v7227_v24, %v5801_v5  ;;  %v3438_v48 = vshrl.u32 %v10612_v49, 16  ;;  %v8704_v37 = vld [vmem:[#allocation2 + $0x54] sm:$0xf] }
 0x180   : > { %v3441_v52 = vshll.u32 %v10612_v49, 16  ;;  %v7228_v53 = vrot.slane %v8702_v51, 9  ;;  %v5811_v35 = vrot.slane %v10293_v62, 5  ;;  %v3447_v60 = vshll.u32 %v10614_v14, 16 }
 0x181   : > { %v3451_v15 = vshrl.u32 %v10614_v14, 16  ;;  %v10715_v39 = vsel %vm9368_vm13, %v5803_v59, %v5804_v61  ;;  %v5810_v45 = vrot.slane %v5808_v11, 4  ;;  %v7229_v5 = vrot.slane %v8703_v9, 9  ;;  %v10723_v14 = vld [vmem:[#allocation2 + $0xb8] sm:$0xf] }
 0x182   : > { %v5818_v29 = vrot.slane %v10327_v10, 5  ;;  %v5817_v30 = vrot.slane %v5815_v43, 4  ;;  %v7230_v49 = vrot.slane %v8704_v37, 9  ;;  %v5824_v26 = vrot.slane %v5822_v25, 4  ;;  %8148 = vmatmul.mubr.bf16.gmra.mrb[24].mxu0 %v10646_v1  ;;  %v10738_v9 = vld [vmem:[#allocation2 + $0xc0] sm:$0xf]  ;;  %7952 = vmatmul.mubr.bf16.gmra.mrb[20].mxu1 %v6988_v50 }
 0x183   : > { %v5825_v27 = vrot.slane %v10366_v3, 5  ;;  %v6991_v24 = vcombine.low %v10721_v33, %v10723_v14  ;;  %v3440_v59 = vrot.slane %v3438_v48, 4  ;;  %v3443_v61 = vrot.slane %v3441_v52, 5  ;;  %8151 = vmatprep.mubr.bf16.mxu0 %v7215_v58  ;;  %v10740_v48 = vld [vmem:[#allocation2 + $0xc4] sm:$0xf]  ;;  %7955 = vmatprep.mubr.bf16.mxu1 %v6989_v18  ;;  %v11256_v18 = vld [vmem:[#allocation18_spill] sm:$0xff] }
 0x184   : > { %v10728_v10 = vrot.slane %v3447_v60, 5  ;;  %v3453_v22 = vrot.slane %v3451_v15, 4  ;;  %v3486_v4 = vshrl.u32 %v10656_v23, 16  ;;  %v3489_v3 = vshll.u32 %v10656_v23, 16  ;;  %v11253_v60 = vld [vmem:[#allocation9_spill] sm:$0xff] }
 0x185   : > { %v10736_v51 = vsel %vm9368_vm13, %v7228_v53, %v5808_v11  ;;  %v10746_v52 = vsel %vm9368_vm13, %v7229_v5, %v5815_v43  ;;  %v10750_v23 = vsel %vm9368_vm13, %v5810_v45, %v5811_v35  ;;  %v10754_v58 = vsel %vm9368_vm13, %v5817_v30, %v5818_v29  ;;  %v8709_v29 = vld [vmem:[#allocation2 + $0x74] sm:$0x1] }
 0x186   : > { %v10758_v11 = vsel %vm9368_vm13, %v7230_v49, %v5822_v25  ;;  %v10762_v53 = vsel %vm9368_vm13, %v5824_v26, %v5825_v27  ;;  %v3444_v43 = vor.u32 %v3443_v61, %v3440_v59  ;;  %v11254_v50 = vshll.u32 %v11253_v60, 16  ;;  %v11255_v26 = vld [vmem:[#allocation16_spill] sm:$0xff]  ;;  %v8710_v49 = vld [vmem:[#allocation2 + $0x60] sm:$0xf] }
 0x187   : > { %v3495_v35 = vshll.u32 %v10658_v55, 16  ;;  %v3499_v45 = vshrl.u32 %v10658_v55, 16  ;;  %v3454_v5 = vor.u32 %v3453_v22, %v10728_v10  ;;  %v3457_v30 = vshll.u32 %v8709_v29, 16 }
 0x188   : > { %v10766_v15 = vrot.slane %v11254_v50, 5  ;;  %v3488_v25 = vrot.slane %v3486_v4, 4  ;;  %v3491_v37 = vrot.slane %v3489_v3, 5  ;;  %v3468_v27 = vor.u32 %v11256_v18, %v11255_v26  ;;  %v11257_v26 = vld [vmem:[#allocation4_spill] sm:$0xff]  ;;  %v8711_v4 = vld [vmem:[#allocation2 + $0x64] sm:$0xf] }
 0x189   : > { %v10775_v59 = vrot.slane %v3495_v35, 5  ;;  %v3501_v61 = vrot.slane %v3499_v45, 4  ;;  %v3510_v60 = vshrl.u32 %v10673_v47, 16  ;;  %v3513_v50 = vshll.u32 %v10673_v47, 16 }
 0x18a   : > { %v3519_v55 = vshll.u32 %v10675_v8, 16  ;;  %v3523_v22 = vshrl.u32 %v10675_v8, 16  ;;  %v3445_v29 = vrot.slane %v3444_v43, 4  ;;  %v3478_v35 = vor.u32 %v11257_v26, %v10766_v15  ;;  %8152 = vmatmul.mubr.bf16.gmra.mrb[28].mxu0 %v10696_v20  ;;  %v8712_v43 = vld [vmem:[#allocation2 + $0x8c] sm:$0x1]  ;;  %7956 = vmatmul.mubr.bf16.gmra.mrb[24].mxu1 %v6990_v36 }
 0x18b   : > { %v3455_v45 = vrot.slane %v3454_v5, 4  ;;  %v3459_v18 = vrot.slane %v3457_v30, 5  ;;  %v7231_v47 = vrot.slane %v8710_v49, 9  ;;  %v3492_v1 = vor.u32 %v3491_v37, %v3488_v25  ;;  %8171 = vmatprep.mubr.bf16.mxu0 %v7257_v0  ;;  %7959 = vmatprep.mubr.bf16.mxu1 %v6991_v24  ;;  %v10801_v37 = vld [vmem:[#allocation2 + $0x6c] sm:$0xf] }
 0x18c   : > { %v3469_v8 = vrot.slane %v3468_v27, 4  ;;  %v5829_v16 = vrot.slane %v8711_v4, 5  ;;  %v3502_v3 = vor.u32 %v3501_v61, %v10775_v59  ;;  %v3505_v62 = vshll.u32 %v8712_v43, 16  ;;  %v8714_v61 = vld [vmem:[#allocation2 + $0x98] sm:$0x1] }
 0x18d   : > { %v3512_v20 = vrot.slane %v3510_v60, 4  ;;  %v3515_v5 = vrot.slane %v3513_v50, 5  ;;  %v10795_v30 = vrot.slane %v3519_v55, 5  ;;  %v3525_v25 = vrot.slane %v3523_v22, 4 }
 0x18e   : > { %v3450_v41 = vsel %vm9065_vm10, %v3445_v29, %v10728_v10  ;;  %v3479_v56 = vrot.slane %v3478_v35, 4  ;;  %v5832_v0 = vrot.slane %v10368_v46, 5  ;;  %v7232_v49 = vrot.slane %v10801_v37, 9 }
 0x18f   : > { %v3460_v36 = vsel %vm9065_vm10, %v3455_v45, %v3459_v18  ;;  %v3493_v27 = vrot.slane %v3492_v1, 4  ;;  %v3529_v60 = vshll.u32 %v8714_v61, 16  ;;  %v3534_v50 = vshrl.u32 %v10683_v54, 16 }
 0x190   : > { %v3474_v24 = vsel %vm9065_vm10, %v3469_v8, %v10766_v15  ;;  %v5831_v10 = vrot.slane %v5829_v16, 4  ;;  %v3503_v55 = vrot.slane %v3502_v3, 4  ;;  %v3507_v22 = vrot.slane %v3505_v62, 5 }
 0x191   : > { %v3516_v46 = vor.u32 %v3515_v5, %v3512_v20  ;;  %v3526_v4 = vor.u32 %v3525_v25, %v10795_v30  ;;  %v3537_v29 = vshll.u32 %v10683_v54, 16  ;;  %v3543_v26 = vshll.u32 %v10685_v40, 16 }
 0x192   : > { %v7025_v35 = vcombine.low %v3450_v41, %v3460_v36  ;;  %v3484_v1 = vsel %vm9065_vm10, %v3479_v56, %v10621_v38  ;;  %v3536_v45 = vrot.slane %v3534_v50, 4  ;;  %v3547_v18 = vshrl.u32 %v10685_v40, 16  ;;  %v8715_v36 = vld [vmem:[#allocation2 + $0xa4] sm:$0x1] }
 0x193   : > { %v11258_v15 = vcombine.low %v10681_v17, %v10702_v34  ;;  %v3498_v62 = vsel %vm9065_vm10, %v3493_v27, %v10775_v59  ;;  %v3531_v3 = vrot.slane %v3529_v60, 5  ;;  %v3539_v54 = vrot.slane %v3537_v29, 5  ;;  %v8716_v60 = vld [vmem:[#allocation2 + $0x70] sm:$0xf] }
 0x194   : > { %v10823_v8 = vrot.slane %v3543_v26, 5  ;;  %v11259_v43 = vcombine.low %v10706_v42, %v10715_v39  ;;  %v3508_v38 = vsel %vm9065_vm10, %v3503_v55, %v3507_v22  ;;  %v3549_v40 = vrot.slane %v3547_v18, 4 }
 0x195   : > { %8172 = vmatmul.mubr.bf16.vlgmr.msra.gmra.mrb[0].mxu0 %v11258_v15  ;;  %v3558_v20 = vshrl.u32 %v10689_v63, 16  ;;  %v3561_v17 = vshll.u32 %v10689_v63, 16  ;;  %v11260_v34 = vcombine.low %v10738_v9, %v10740_v48  ;;  %v3517_v59 = vrot.slane %v3516_v46, 4 }
 0x196   : > { %8175 = vmatprep.mubr.bf16.mxu0 %v11259_v43  ;;  %v3527_v5 = vrot.slane %v3526_v4, 4  ;;  %v3567_v25 = vshll.u32 %v10691_v21, 16  ;;  %v3571_v41 = vshrl.u32 %v10691_v21, 16  ;;  %v10839_v42 = vsel %vm9368_vm13, %v7231_v47, %v5829_v16  ;;  %v10845_v21 = vld [vmem:[#allocation2 + $0x7c] sm:$0xf] }
 0x197   : > { %7960 = vmatmul.mubr.bf16.gmra.mrb[28].mxu1 %v11260_v34  ;;  %v3540_v39 = vor.u32 %v3539_v54, %v3536_v45  ;;  %v3550_v56 = vor.u32 %v3549_v40, %v10823_v8  ;;  %v3553_v63 = vshll.u32 %v8715_v36, 16  ;;  %v7026_v27 = vcombine.low %v3474_v24, %v3484_v1 }
 0x198   : > { %7995 = vmatprep.mubr.bf16.mxu1 %v7025_v35  ;;  %v5833_v61 = vsel %vm9368_vm13, %v5831_v10, %v5832_v0  ;;  %v5836_v50 = vrot.slane %v8716_v60, 5  ;;  %v5839_v55 = vrot.slane %v10407_v19, 5  ;;  %v7027_v22 = vcombine.low %v3498_v62, %v3508_v38  ;;  %v8718_v35 = vld [vmem:[#allocation2 + $0xb0] sm:$0x1]  ;;  %v8719_v62 = vld [vmem:[#allocation2 + $0x78] sm:$0xf] }
 0x199   : > { %v5843_v46 = vrot.slane %v10845_v21, 5  ;;  %v3560_v16 = vrot.slane %v3558_v20, 4  ;;  %v3563_v47 = vrot.slane %v3561_v17, 5  ;;  %v3522_v4 = vsel %vm9065_vm10, %v3517_v59, %v10795_v30 }
 0x19a   : > { %v3532_v24 = vsel %vm9065_vm10, %v3527_v5, %v3531_v3  ;;  %v10853_v29 = vrot.slane %v3567_v25, 5  ;;  %v3573_v0 = vrot.slane %v3571_v41, 4  ;;  %v3541_v10 = vrot.slane %v3540_v39, 4  ;;  %v8720_v41 = vld [vmem:[#allocation2 + $0xbc] sm:$0x1] }
 0x19b   : > { %v3551_v26 = vrot.slane %v3550_v56, 4  ;;  %v3555_v19 = vrot.slane %v3553_v63, 5  ;;  %v3577_v1 = vshll.u32 %v8718_v35, 16  ;;  %v11261_v45 = vcombine.low %v10736_v51, %v10750_v23  ;;  %v8722_v35 = vld [vmem:[#allocation2 + $0x94] sm:$0xf] }
 0x19c   : > { %v7263_v18 = vcombine.low %v10839_v42, %v5833_v61  ;;  %v5838_v15 = vrot.slane %v5836_v50, 4  ;;  %v7233_v30 = vrot.slane %v8719_v62, 9  ;;  %v3582_v54 = vshrl.u32 %v10721_v33, 16 }
 0x19d   : > { %8176 = vmatmul.mubr.bf16.gmra.mrb[4].mxu0 %v11261_v45  ;;  %v11262_v3 = vcombine.low %v10746_v52, %v10754_v58  ;;  %v7028_v43 = vcombine.low %v3522_v4, %v3532_v24  ;;  %v5845_v38 = vrot.slane %v5843_v46, 4  ;;  %v5846_v40 = vrot.slane %v10423_v32, 5  ;;  %v8723_v45 = vld [vmem:[#allocation2 + $0xc8] sm:$0x1] }
 0x19e   : > { %v3564_v20 = vor.u32 %v3563_v47, %v3560_v16  ;;  %v3574_v51 = vor.u32 %v3573_v0, %v10853_v29  ;;  %v3584_v23 = vrot.slane %v3582_v54, 4  ;;  %v3585_v17 = vshll.u32 %v10721_v33, 16  ;;  %v8724_v54 = vld [vmem:[#allocation2 + $0x84] sm:$0xf] }
 0x19f   : > { %8179 = vmatprep.mubr.bf16.mxu0 %v11262_v3  ;;  %7996 = vmatmul.mubr.bf16.vlgmr.msra.gmra.mrb[16].mxu1 %v7026_v27  ;;  %v3591_v34 = vshll.u32 %v10723_v14, 16  ;;  %v3546_v59 = vsel %vm9065_vm10, %v3541_v10, %v10823_v8  ;;  %v3556_v52 = vsel %vm9065_vm10, %v3551_v26, %v3555_v19  ;;  %v3579_v58 = vrot.slane %v3577_v1, 5  ;;  %v8721_v10 = vld [vmem:[#allocation2 + $0x88] sm:$0xf] }
 0x1a0   : > { %7999 = vmatprep.mubr.bf16.mxu1 %v7027_v22  ;;  %v3595_v32 = vshrl.u32 %v10723_v14, 16  ;;  %v3587_v5 = vrot.slane %v3585_v17, 5  ;;  %v3601_v42 = vshll.u32 %v8720_v41, 16  ;;  %v3606_v39 = vshrl.u32 %v10738_v9, 16  ;;  %v8727_v41 = vld [vmem:[#allocation2 + $0xac] sm:$0xf] }
 0x1a1   : > { %v3593_v25 = vrot.slane %v3591_v34, 5  ;;  %v3565_v33 = vrot.slane %v3564_v20, 4  ;;  %v3609_v36 = vshll.u32 %v10738_v9, 16  ;;  %v3615_v63 = vshll.u32 %v10740_v48, 16 }
 0x1a2   : > { %v3597_v56 = vrot.slane %v3595_v32, 4  ;;  %v7029_v27 = vcombine.low %v3546_v59, %v3556_v52  ;;  %v3575_v8 = vrot.slane %v3574_v51, 4  ;;  %v3588_v61 = vor.u32 %v3587_v5, %v3584_v23  ;;  %v8726_v5 = vld [vmem:[#allocation2 + $0xa0] sm:$0xf] }
 0x1a3   : > { %v3619_v60 = vshrl.u32 %v10740_v48, 16  ;;  %v3608_v21 = vrot.slane %v3606_v39, 4  ;;  %v3611_v14 = vrot.slane %v3609_v36, 5  ;;  %v3617_v16 = vrot.slane %v3615_v63, 5  ;;  %v8728_v63 = vld [vmem:[#allocation2 + $0x9c] sm:$0xf] }
 0x1a4   : > { %v3598_v22 = vor.u32 %v3597_v56, %v3593_v25  ;;  %v11263_v47 = vcombine.low %v10758_v11, %v10762_v53  ;;  %v3589_v4 = vrot.slane %v3588_v61, 4  ;;  %v3603_v24 = vrot.slane %v3601_v42, 5 }
 0x1a5   : > { %v3621_v0 = vrot.slane %v3619_v60, 4  ;;  %v5837_v9 = vsel %vm9368_vm13, %v7232_v49, %v5836_v50  ;;  %v5840_v48 = vsel %vm9368_vm13, %v5838_v15, %v5839_v55  ;;  %v5850_v26 = vrot.slane %v8721_v10, 5 }
 0x1a6   : > { %8180 = vmatmul.mubr.bf16.gmra.mrb[8].mxu0 %v11263_v47  ;;  %v3599_v19 = vrot.slane %v3598_v22, 4  ;;  %v5844_v11 = vsel %vm9368_vm13, %v7233_v30, %v5843_v46  ;;  %v5847_v53 = vsel %vm9368_vm13, %v5845_v38, %v5846_v40  ;;  %v3570_v37 = vsel %vm9065_vm10, %v3565_v33, %v10853_v29  ;;  %v8725_v40 = vld [vmem:[#allocation2 + $0x90] sm:$0xf]  ;;  %v8729_v22 = vld [vmem:[#allocation2 + $0xa8] sm:$0xf] }
 0x1a7   : > { %8183 = vmatprep.mubr.bf16.mxu0 %v7263_v18  ;;  %8000 = vmatmul.mubr.bf16.gmra.mrb[20].mxu1 %v7028_v43  ;;  %v5857_v1 = vrot.slane %v8722_v35, 5  ;;  %v3580_v49 = vsel %vm9065_vm10, %v3575_v8, %v3579_v58  ;;  %v3612_v50 = vor.u32 %v3611_v14, %v3608_v21  ;;  %v3622_v55 = vor.u32 %v3621_v0, %v3617_v16 }
 0x1a8   : > { %8003 = vmatprep.mubr.bf16.mxu1 %v7029_v27  ;;  %v3625_v18 = vshll.u32 %v8723_v45, 16  ;;  %v7264_v15 = vcombine.low %v5837_v9, %v5840_v48  ;;  %v3594_v46 = vsel %vm9065_vm10, %v3589_v4, %v3593_v25  ;;  %v3604_v62 = vsel %vm9065_vm10, %v3599_v19, %v3603_v24  ;;  %v8730_v4 = vld [vmem:[#allocation2 + $0xb8] sm:$0xf]  ;;  %v8731_v9 = vld [vmem:[#allocation2 + $0xc4] sm:$0xf] }
 0x1a9   : > { %v7265_v30 = vcombine.low %v5844_v11, %v5847_v53  ;;  %v7234_v29 = vrot.slane %v8724_v54, 9  ;;  %v5852_v3 = vrot.slane %v5850_v26, 4  ;;  %v5853_v43 = vrot.slane %v10438_v7, 5  ;;  %v8734_v45 = vld [vmem:[#allocation2 + $0xd0] sm:$0xf] }
 0x1aa   : > { %v7030_v38 = vcombine.low %v3570_v37, %v3580_v49  ;;  %v7235_v20 = vrot.slane %v8725_v40, 9  ;;  %v5859_v51 = vrot.slane %v5857_v1, 4  ;;  %v5860_v23 = vrot.slane %v10461_v44, 5  ;;  %v8733_v37 = vld [vmem:[#allocation2 + $0xc0] sm:$0xf] }
 0x1ab   : > { %v7031_v17 = vcombine.low %v3594_v46, %v3604_v62  ;;  %v3613_v34 = vrot.slane %v3612_v50, 4  ;;  %v3623_v59 = vrot.slane %v3622_v55, 4  ;;  %v3627_v52 = vrot.slane %v3625_v18, 5 }
 0x1ac   : > { %v5851_v58 = vsel %vm9368_vm13, %v7234_v29, %v5850_v26  ;;  %v5854_v32 = vsel %vm9368_vm13, %v5852_v3, %v5853_v43  ;;  %v5864_v7 = vrot.slane %v8726_v5, 5  ;;  %v5858_v25 = vsel %vm9368_vm13, %v7235_v20, %v5857_v1  ;;  %v8732_v26 = vld [vmem:[#allocation2 + $0xb4] sm:$0xf] }
 0x1ad   : > { %v5861_v44 = vsel %vm9368_vm13, %v5859_v51, %v5860_v23  ;;  %v5871_v42 = vrot.slane %v8727_v41, 5  ;;  %v3618_v39 = vsel %vm9065_vm10, %v3613_v34, %v3617_v16  ;;  %v3628_v33 = vsel %vm9065_vm10, %v3623_v59, %v3627_v52 }
 0x1ae   : > { %8184 = vmatmul.mubr.bf16.gmra.mrb[12].mxu0 %v7264_v15  ;;  %v7266_v56 = vcombine.low %v5851_v58, %v5854_v32  ;;  %v7267_v36 = vcombine.low %v5858_v25, %v5861_v44  ;;  %v7236_v27 = vrot.slane %v8728_v63, 9  ;;  %v5866_v8 = vrot.slane %v5864_v7, 4 }
 0x1af   : > { %8187 = vmatprep.mubr.bf16.mxu0 %v7265_v30  ;;  %8004 = vmatmul.mubr.bf16.gmra.mrb[24].mxu1 %v7030_v38  ;;  %v5867_v61 = vrot.slane %v10512_v13, 5  ;;  %v7032_v60 = vcombine.low %v3618_v39, %v3628_v33  ;;  %v7237_v21 = vrot.slane %v8729_v22, 9  ;;  %v5873_v14 = vrot.slane %v5871_v42, 4  ;;  %v8735_v30 = vld [vmem:[#allocation2 + $0xcc] sm:$0xf] }
 0x1b0   : > { %8007 = vmatprep.mubr.bf16.mxu1 %v7031_v17  ;;  %v5874_v47 = vrot.slane %v10528_v2, 5  ;;  %v5865_v16 = vsel %vm9368_vm13, %v7236_v27, %v5864_v7  ;;  %v5878_v24 = vrot.slane %v8730_v4, 5  ;;  %v5885_v48 = vrot.slane %v8731_v9, 5 }
 0x1b1   : > { %v5868_v28 = vsel %vm9368_vm13, %v5866_v8, %v5867_v61  ;;  %v5872_v13 = vsel %vm9368_vm13, %v7237_v21, %v5871_v42  ;;  %v7238_v19 = vrot.slane %v8732_v26, 9  ;;  %v5881_v53 = vrot.slane %v10570_v31, 5 }
 0x1b2   : > { %v5875_v0 = vsel %vm9368_vm13, %v5873_v14, %v5874_v47  ;;  %v7268_v2 = vcombine.low %v5865_v16, %v5868_v28  ;;  %v5880_v11 = vrot.slane %v5878_v24, 4  ;;  %v7239_v35 = vrot.slane %v8733_v37, 9 }
 0x1b3   : > { %v7269_v10 = vcombine.low %v5872_v13, %v5875_v0  ;;  %v5887_v1 = vrot.slane %v5885_v48, 4  ;;  %v5888_v49 = vrot.slane %v10590_v6, 5  ;;  %v5879_v50 = vsel %vm9368_vm13, %v7238_v19, %v5878_v24 }
 0x1b4   : > { %v5882_v55 = vsel %vm9368_vm13, %v5880_v11, %v5881_v53  ;;  %v5892_v18 = vrot.slane %v8734_v45, 5  ;;  %v5886_v15 = vsel %vm9368_vm13, %v7239_v35, %v5885_v48  ;;  %v7240_v6 = vrot.slane %v8735_v30, 9 }
 0x1b5   : > { %v5889_v31 = vsel %vm9368_vm13, %v5887_v1, %v5888_v49  ;;  %v7270_v46 = vcombine.low %v5879_v50, %v5882_v55  ;;  %v5895_v29 = vrot.slane %v10596_v12, 5 }
 0x1b6   : > { %8188 = vmatmul.mubr.bf16.gmra.mrb[16].mxu0 %v7266_v56  ;;  %v7271_v62 = vcombine.low %v5886_v15, %v5889_v31  ;;  %v5894_v54 = vrot.slane %v5892_v18, 4  ;;  %v5893_v3 = vsel %vm9368_vm13, %v7240_v6, %v5892_v18 }
 0x1b7   : > { %8191 = vmatprep.mubr.bf16.mxu0 %v7267_v36  ;;  %8008 = vmatmul.mubr.bf16.gmra.mrb[28].mxu1 %v7032_v60 }
 0x1b8   : > { %v5896_v43 = vsel %vm9368_vm13, %v5894_v54, %v5895_v29 }
 0x1b9   : > { %v7272_v38 = vcombine.low %v5893_v3, %v5896_v43 }
 0x1be   : > { %8192 = vmatmul.mubr.bf16.gmra.mrb[20].mxu0 %v7268_v2 }
 0x1bf   : > { %8195 = vmatprep.mubr.bf16.mxu0 %v7269_v10 }
 0x1c6   : > { %8196 = vmatmul.mubr.bf16.gmra.mrb[24].mxu0 %v7270_v46 }
 0x1c7   : > { %8199 = vmatprep.mubr.bf16.mxu0 %v7271_v62 }
 0x1ce   : > { %8200 = vmatmul.mubr.bf16.gmra.mrb[28].mxu0 %v7272_v38 }
 0x229   : > { %v7933_v40 = vpop.f32.mrb[0].mxu1 }
 0x22a   : > { %v3022_v20 = vpop.f32.mrb[1].mxu1 }
 0x22b   : > { %v7934_v51 = vpop.f32.mrb[2].mxu1 }
 0x22c   : > { %v3025_v23 = vpop.f32.mrb[3].mxu1 }
 0x231   : > { %v7937_v17 = vpop.f32.mrb[4].mxu1 }
 0x232   : > { %v3038_v34 = vpop.f32.mrb[5].mxu1 }
 0x233   : > { %v7938_v59 = vpop.f32.mrb[6].mxu1 }
 0x234   : > { %v3041_v52 = vpop.f32.mrb[7].mxu1 }
 0x239   : > { %v7941_v12 = vpop.f32.mrb[8].mxu1 }
 0x23a   : > { %v3054_v58 = vpop.f32.mrb[9].mxu1 }
 0x23b   : > { %v7942_v32 = vpop.f32.mrb[10].mxu1 }
 0x23c   : > { %v10938_v5 = vpop.f32.mrb[11].mxu1 }
 0x241   : > { %v10940_v7 = vpop.f32.mrb[12].mxu1 }
 0x242   : > { %v10942_v57 = vpop.f32.mrb[13].mxu1 }
 0x243   : > { %v10944_v25 = vpop.f32.mrb[14].mxu1 }
 0x244   : > { %v10946_v44 = vpop.f32.mrb[15].mxu1 }
 0x268   : > { %v8173_v41 = vpop.f32.mrb[0].mxu0 }
 0x269   : > { %v8219_v42 = vadd.f32 %v8173_v41, %v7933_v40  ;;  %v6060_v39 = vpop.f32.mrb[1].mxu0 }
 0x26a   : > { %v8220_v33 = vadd.f32 %v6060_v39, %v3022_v20  ;;  %v8174_v56 = vpop.f32.mrb[2].mxu0 }
 0x26b   : > { %v8221_v36 = vadd.f32 %v8174_v56, %v7934_v51  ;;  %v6063_v63 = vpop.f32.mrb[3].mxu0  ;;  %v6515_v14 = vmul.f32 %v8219_v42, %v8219_v42 }
 0x26c   : > { %v8222_v27 = vadd.f32 %v6063_v63, %v3025_v23  ;;  %v6513_v61 = vmul.f32 %v8220_v33, %v8220_v33 }
 0x26d   : > { %v7453_v8 = vpack.c.bf16 %v8221_v36, %v8219_v42  ;;  %v6516_v13 = vmul.f32 %v8221_v36, %v8221_v36 }
 0x26e   : > { %v7448_v60 = vpack.c.bf16 %v8222_v27, %v8220_v33  ;;  %v6475_v22 = vadd.f32 %v8222_v27, %v8220_v33  ;;  %v6514_v21 = vmul.f32 %v8222_v27, %v8222_v27 }
 0x26f   : > { %7540 = vst [vmem:[%s10953_s13 + $0x8] sm:$0xff] %v7453_v8  }
 0x270   : > { %7449 = vst [vmem:[%s10953_s13] sm:$0xff] %v7448_v60   ;;  %v6476_v47 = vadd.f32 %v8219_v42, %v6475_v22  ;;  %v6545_v16 = vadd.f32 %v6514_v21, %v6513_v61  ;;  %v8177_v28 = vpop.f32.mrb[4].mxu0 }
 0x271   : > { %v8223_v4 = vadd.f32 %v8177_v28, %v7937_v17  ;;  %v6076_v24 = vpop.f32.mrb[5].mxu0 }
 0x272   : > { %v6546_v0 = vadd.f32 %v6545_v16, %v6515_v14  ;;  %v8224_v9 = vadd.f32 %v6076_v24, %v3038_v34  ;;  %v6477_v48 = vadd.f32 %v8221_v36, %v6476_v47  ;;  %v8178_v2 = vpop.f32.mrb[6].mxu0  ;;  %v10957_v10 = vpop.f32.mrb[16].mxu1 }
 0x273   : > { %v8225_v26 = vadd.f32 %v8178_v2, %v7938_v59  ;;  %v6079_v19 = vpop.f32.mrb[7].mxu0  ;;  %v10959_v11 = vpop.f32.mrb[17].mxu1  ;;  %v6519_v46 = vmul.f32 %v8223_v4, %v8223_v4 }
 0x274   : > { %v6478_v53 = vadd.f32 %v8224_v9, %v6477_v48  ;;  %v6517_v37 = vmul.f32 %v8224_v9, %v8224_v9  ;;  %v6547_v35 = vadd.f32 %v6546_v0, %v6516_v13  ;;  %v8226_v1 = vadd.f32 %v6079_v19, %v3041_v52  ;;  %v10961_v49 = vpop.f32.mrb[18].mxu1 }
 0x275   : > { %v7463_v50 = vpack.c.bf16 %v8225_v26, %v8223_v4  ;;  %v10963_v55 = vpop.f32.mrb[19].mxu1  ;;  %v6520_v3 = vmul.f32 %v8225_v26, %v8225_v26 }
 0x276   : > { %v6548_v45 = vadd.f32 %v6547_v35, %v6517_v37  ;;  %v7458_v18 = vpack.c.bf16 %v8226_v1, %v8224_v9  ;;  %v6479_v15 = vadd.f32 %v8226_v1, %v6478_v53  ;;  %v6518_v31 = vmul.f32 %v8226_v1, %v8226_v1 }
 0x277   : > { %7542 = vst [vmem:[%s10953_s13 + $0x18] sm:$0xff] %v7463_v50  }
 0x278   : > { %7541 = vst [vmem:[%s10953_s13 + $0x10] sm:$0xff] %v7458_v18   ;;  %v6480_v62 = vadd.f32 %v8223_v4, %v6479_v15  ;;  %v6549_v30 = vadd.f32 %v6548_v45, %v6518_v31 }
 0x279   : > { %v8181_v6 = vpop.f32.mrb[8].mxu0 }
 0x27a   : > { %v8227_v54 = vadd.f32 %v8181_v6, %v7941_v12  ;;  %v6092_v29 = vpop.f32.mrb[9].mxu0  ;;  %v6550_v43 = vadd.f32 %v6549_v30, %v6519_v46  ;;  %v6481_v40 = vadd.f32 %v8225_v26, %v6480_v62  ;;  %v10967_v51 = vpop.f32.mrb[20].mxu1 }
 0x27b   : > { %v8228_v38 = vadd.f32 %v6092_v29, %v3054_v58  ;;  %v8182_v20 = vpop.f32.mrb[10].mxu0  ;;  %v10969_v34 = vpop.f32.mrb[21].mxu1 }
 0x27c   : > { %v8229_v23 = vadd.f32 %v8182_v20, %v7942_v32  ;;  %v6095_v17 = vpop.f32.mrb[11].mxu0  ;;  %v6551_v41 = vadd.f32 %v6550_v43, %v6520_v3  ;;  %v10972_v12 = vpop.f32.mrb[22].mxu1  ;;  %v6523_v32 = vmul.f32 %v8227_v54, %v8227_v54 }
 0x27d   : > { %v6482_v59 = vadd.f32 %v8228_v38, %v6481_v40  ;;  %v6521_v52 = vmul.f32 %v8228_v38, %v8228_v38  ;;  %v8230_v42 = vadd.f32 %v6095_v17, %v10938_v5  ;;  %v10974_v33 = vpop.f32.mrb[23].mxu1 }
 0x27e   : > { %v7473_v39 = vpack.c.bf16 %v8229_v23, %v8227_v54  ;;  %v6524_v21 = vmul.f32 %v8229_v23, %v8229_v23 }
 0x27f   : > { %v6552_v58 = vadd.f32 %v6551_v41, %v6521_v52  ;;  %v7468_v56 = vpack.c.bf16 %v8230_v42, %v8228_v38  ;;  %v6483_v36 = vadd.f32 %v8230_v42, %v6482_v59  ;;  %v6522_v63 = vmul.f32 %v8230_v42, %v8230_v42 }
 0x280   : > { %7544 = vst [vmem:[%s10953_s13 + $0x28] sm:$0xff] %v7473_v39  }
 0x281   : > { %7543 = vst [vmem:[%s10953_s13 + $0x20] sm:$0xff] %v7468_v56   ;;  %v6484_v27 = vadd.f32 %v8227_v54, %v6483_v36  ;;  %v6553_v8 = vadd.f32 %v6552_v58, %v6522_v63  ;;  %v8185_v61 = vpop.f32.mrb[12].mxu0 }
 0x282   : > { %v8231_v60 = vadd.f32 %v8185_v61, %v10940_v7  ;;  %v6108_v22 = vpop.f32.mrb[13].mxu0  ;;  %v10980_v28 = vpop.f32.mrb[24].mxu1 }
 0x283   : > { %v6554_v5 = vadd.f32 %v6553_v8, %v6523_v32  ;;  %v8232_v14 = vadd.f32 %v6108_v22, %v10942_v57  ;;  %v6485_v47 = vadd.f32 %v8229_v23, %v6484_v27  ;;  %v8186_v16 = vpop.f32.mrb[14].mxu0  ;;  %v10983_v13 = vpop.f32.mrb[25].mxu1 }
 0x284   : > { %v8233_v4 = vadd.f32 %v8186_v16, %v10944_v25  ;;  %v6111_v24 = vpop.f32.mrb[15].mxu0  ;;  %v10986_v2 = vpop.f32.mrb[26].mxu1  ;;  %v6527_v25 = vmul.f32 %v8231_v60, %v8231_v60 }
 0x285   : > { %v6486_v0 = vadd.f32 %v8232_v14, %v6485_v47  ;;  %v6525_v9 = vmul.f32 %v8232_v14, %v8232_v14  ;;  %v6555_v48 = vadd.f32 %v6554_v5, %v6524_v21  ;;  %v8234_v7 = vadd.f32 %v6111_v24, %v10946_v44  ;;  %v10988_v57 = vpop.f32.mrb[27].mxu1 }
 0x286   : > { %v7483_v26 = vpack.c.bf16 %v8233_v4, %v8231_v60  ;;  %v6528_v31 = vmul.f32 %v8233_v4, %v8233_v4 }
 0x287   : > { %v6556_v19 = vadd.f32 %v6555_v48, %v6525_v9  ;;  %v7478_v53 = vpack.c.bf16 %v8234_v7, %v8232_v14  ;;  %v6487_v37 = vadd.f32 %v8234_v7, %v6486_v0  ;;  %v6526_v35 = vmul.f32 %v8234_v7, %v8234_v7 }
 0x288   : > { %7546 = vst [vmem:[%s10953_s13 + $0x38] sm:$0xff] %v7483_v26  }
 0x289   : > { %7545 = vst [vmem:[%s10953_s13 + $0x30] sm:$0xff] %v7478_v53   ;;  %v6488_v1 = vadd.f32 %v8231_v60, %v6487_v37  ;;  %v6557_v50 = vadd.f32 %v6556_v19, %v6526_v35  ;;  %v8189_v45 = vpop.f32.mrb[16].mxu0 }
 0x28a   : > { %v8235_v18 = vadd.f32 %v8189_v45, %v10957_v10  ;;  %v6124_v15 = vpop.f32.mrb[17].mxu0  ;;  %v10994_v6 = vpop.f32.mrb[28].mxu1 }
 0x28b   : > { %v6558_v44 = vadd.f32 %v6557_v50, %v6527_v25  ;;  %v8236_v46 = vadd.f32 %v6124_v15, %v10959_v11  ;;  %v6489_v62 = vadd.f32 %v8233_v4, %v6488_v1  ;;  %v8190_v30 = vpop.f32.mrb[18].mxu0  ;;  %v10997_v3 = vpop.f32.mrb[29].mxu1 }
 0x28c   : > { %v8237_v54 = vadd.f32 %v8190_v30, %v10961_v49  ;;  %v6127_v29 = vpop.f32.mrb[19].mxu0  ;;  %v11000_v20 = vpop.f32.mrb[30].mxu1  ;;  %v6531_v49 = vmul.f32 %v8235_v18, %v8235_v18 }
 0x28d   : > { %v6490_v43 = vadd.f32 %v8236_v46, %v6489_v62  ;;  %v6529_v38 = vmul.f32 %v8236_v46, %v8236_v46  ;;  %v6559_v40 = vadd.f32 %v6558_v44, %v6528_v31  ;;  %v8238_v10 = vadd.f32 %v6127_v29, %v10963_v55  ;;  %v11002_v11 = vpop.f32.mrb[31].mxu1 }
 0x28e   : > { %v7493_v23 = vpack.c.bf16 %v8237_v54, %v8235_v18  ;;  %v6532_v63 = vmul.f32 %v8237_v54, %v8237_v54 }
 0x28f   : > { %v6560_v17 = vadd.f32 %v6559_v40, %v6529_v38  ;;  %v7488_v59 = vpack.c.bf16 %v8238_v10, %v8236_v46  ;;  %v6491_v52 = vadd.f32 %v8238_v10, %v6490_v43  ;;  %v6530_v41 = vmul.f32 %v8238_v10, %v8238_v10 }
 0x290   : > { %7548 = vst [vmem:[%s10953_s13 + $0x48] sm:$0xff] %v7493_v23  }
 0x291   : > { %7547 = vst [vmem:[%s10953_s13 + $0x40] sm:$0xff] %v7488_v59   ;;  %v6492_v42 = vadd.f32 %v8235_v18, %v6491_v52  ;;  %v6561_v39 = vadd.f32 %v6560_v17, %v6530_v41  ;;  %v8193_v58 = vpop.f32.mrb[20].mxu0 }
 0x292   : > { %v8239_v56 = vadd.f32 %v8193_v58, %v10967_v51  ;;  %v6140_v36 = vpop.f32.mrb[21].mxu0 }
 0x293   : > { %v6562_v55 = vadd.f32 %v6561_v39, %v6531_v49  ;;  %v8240_v32 = vadd.f32 %v6140_v36, %v10969_v34  ;;  %v6493_v27 = vadd.f32 %v8237_v54, %v6492_v42  ;;  %v8194_v8 = vpop.f32.mrb[22].mxu0 }
 0x294   : > { %v8241_v61 = vadd.f32 %v8194_v8, %v10972_v12  ;;  %v6143_v60 = vpop.f32.mrb[23].mxu0  ;;  %v6535_v0 = vmul.f32 %v8239_v56, %v8239_v56 }
 0x295   : > { %v6494_v22 = vadd.f32 %v8240_v32, %v6493_v27  ;;  %v6533_v21 = vmul.f32 %v8240_v32, %v8240_v32  ;;  %v6563_v5 = vadd.f32 %v6562_v55, %v6532_v63  ;;  %v8242_v14 = vadd.f32 %v6143_v60, %v10974_v33 }
 0x296   : > { %v7503_v47 = vpack.c.bf16 %v8241_v61, %v8239_v56  ;;  %v6536_v26 = vmul.f32 %v8241_v61, %v8241_v61 }
 0x297   : > { %v6564_v16 = vadd.f32 %v6563_v5, %v6533_v21  ;;  %v7498_v51 = vpack.c.bf16 %v8242_v14, %v8240_v32  ;;  %v6495_v4 = vadd.f32 %v8242_v14, %v6494_v22  ;;  %v6534_v24 = vmul.f32 %v8242_v14, %v8242_v14 }
 0x298   : > { %7550 = vst [vmem:[%s10953_s13 + $0x58] sm:$0xff] %v7503_v47  }
 0x299   : > { %7549 = vst [vmem:[%s10953_s13 + $0x50] sm:$0xff] %v7498_v51   ;;  %v6496_v34 = vadd.f32 %v8239_v56, %v6495_v4  ;;  %v6565_v9 = vadd.f32 %v6564_v16, %v6534_v24  ;;  %v8197_v48 = vpop.f32.mrb[24].mxu0 }
 0x29a   : > { %v8243_v7 = vadd.f32 %v8197_v48, %v10980_v28  ;;  %v6156_v12 = vpop.f32.mrb[25].mxu0 }
 0x29b   : > { %v6566_v19 = vadd.f32 %v6565_v9, %v6535_v0  ;;  %v8244_v53 = vadd.f32 %v6156_v12, %v10983_v13  ;;  %v6497_v33 = vadd.f32 %v8241_v61, %v6496_v34  ;;  %v8198_v37 = vpop.f32.mrb[26].mxu0 }
 0x29c   : > { %v8245_v35 = vadd.f32 %v8198_v37, %v10986_v2  ;;  %v6159_v25 = vpop.f32.mrb[27].mxu0  ;;  %v6539_v62 = vmul.f32 %v8243_v7, %v8243_v7 }
 0x29d   : > { %v6498_v1 = vadd.f32 %v8244_v53, %v6497_v33  ;;  %v6537_v50 = vmul.f32 %v8244_v53, %v8244_v53  ;;  %v6567_v45 = vadd.f32 %v6566_v19, %v6536_v26  ;;  %v8246_v18 = vadd.f32 %v6159_v25, %v10988_v57 }
 0x29e   : > { %v7513_v15 = vpack.c.bf16 %v8245_v35, %v8243_v7  ;;  %v6540_v43 = vmul.f32 %v8245_v35, %v8245_v35 }
 0x29f   : > { %v6568_v31 = vadd.f32 %v6567_v45, %v6537_v50  ;;  %v7508_v28 = vpack.c.bf16 %v8246_v18, %v8244_v53  ;;  %v6499_v44 = vadd.f32 %v8246_v18, %v6498_v1  ;;  %v6538_v46 = vmul.f32 %v8246_v18, %v8246_v18 }
 0x2a0   : > { %7552 = vst [vmem:[%s10953_s13 + $0x68] sm:$0xff] %v7513_v15  }
 0x2a1   : > { %7551 = vst [vmem:[%s10953_s13 + $0x60] sm:$0xff] %v7508_v28   ;;  %v6500_v13 = vadd.f32 %v8243_v7, %v6499_v44  ;;  %v6569_v30 = vadd.f32 %v6568_v31, %v6538_v46  ;;  %v8201_v54 = vpop.f32.mrb[28].mxu0 }
 0x2a2   : > { %v8247_v29 = vadd.f32 %v8201_v54, %v10994_v6  ;;  %v6172_v2 = vpop.f32.mrb[29].mxu0 }
 0x2a3   : > { %v6570_v38 = vadd.f32 %v6569_v30, %v6539_v62  ;;  %v8248_v40 = vadd.f32 %v6172_v2, %v10997_v3  ;;  %v6501_v57 = vadd.f32 %v8245_v35, %v6500_v13  ;;  %v8202_v10 = vpop.f32.mrb[30].mxu0 }
 0x2a4   : > { %v8249_v23 = vadd.f32 %v8202_v10, %v11000_v20  ;;  %v6175_v17 = vpop.f32.mrb[31].mxu0  ;;  %v6543_v36 = vmul.f32 %v8247_v29, %v8247_v29 }
 0x2a5   : > { %v6502_v59 = vadd.f32 %v8248_v40, %v6501_v57  ;;  %v6541_v52 = vmul.f32 %v8248_v40, %v8248_v40  ;;  %v6571_v41 = vadd.f32 %v6570_v38, %v6540_v43  ;;  %v8250_v49 = vadd.f32 %v6175_v17, %v11002_v11 }
 0x2a6   : > { %v7523_v42 = vpack.c.bf16 %v8249_v23, %v8247_v29  ;;  %v6544_v55 = vmul.f32 %v8249_v23, %v8249_v23 }
 0x2a7   : > { %v6572_v39 = vadd.f32 %v6571_v41, %v6541_v52  ;;  %v7518_v6 = vpack.c.bf16 %v8250_v49, %v8248_v40  ;;  %v6503_v58 = vadd.f32 %v8250_v49, %v6502_v59  ;;  %v6542_v56 = vmul.f32 %v8250_v49, %v8250_v49 }
 0x2a8   : > { %7554 = vst [vmem:[%s10953_s13 + $0x78] sm:$0xff] %v7523_v42  }
 0x2a9   : > { %7553 = vst [vmem:[%s10953_s13 + $0x70] sm:$0xff] %v7518_v6   ;;  %v6504_v3 = vadd.f32 %v8247_v29, %v6503_v58  ;;  %v6573_v63 = vadd.f32 %v6572_v39, %v6542_v56 }
 0x2ab   : > { %v6505_v20 = vadd.f32 %v8249_v23, %v6504_v3  ;;  %v6574_v32 = vadd.f32 %v6573_v63, %v6543_v36 }
 0x2ad   : > { %v6506_v27 = vrot.slane %v6505_v20, 4  ;;  %v6575_v8 = vadd.f32 %v6574_v32, %v6544_v55 }
 0x2af   : > { %v6507_v61 = vadd.f32 %v6506_v27, %v6505_v20  ;;  %v6576_v60 = vrot.slane %v6575_v8, 4 }
 0x2b1   : > { %v6508_v11 = vrot.slane %v6507_v61, 2  ;;  %v6577_v22 = vadd.f32 %v6576_v60, %v6575_v8 }
 0x2b3   : > { %v6509_v21 = vadd.f32 %v6508_v11, %v6507_v61  ;;  %v6578_v5 = vrot.slane %v6577_v22, 2 }
 0x2b5   : > { %v6510_v14 = vrot.slane %v6509_v21, 1  ;;  %v6579_v47 = vadd.f32 %v6578_v5, %v6577_v22 }
 0x2b7   : > { %v6511_v16 = vadd.f32 %v6510_v14, %v6509_v21  ;;  %v6580_v51 = vrot.slane %v6579_v47, 1 }
 0x2b9   : > { %6512 = vst [vmem:[%s303_s16] sm:$0x1] %v6511_v16  ;;  %v6581_v4 = vadd.f32 %v6580_v51, %v6579_v47 }
 0x2bb   : > { %6582 = vst [vmem:[%s309_s19] sm:$0x1] %v6581_v4 }
 0x2bc PF: > { %s17_s23 = sadd.s32 1, %s8758_s23   ;;  %s11264_s21 = smov %s8754_s22 }
 0x2bd   : > { %p14_p5 = scmp.ge.s32.totalorder %s17_s23, 4   ;;  %s11265_s22 = smov %s11267_s24 }
 0x2bf   :  { %16 = sbr.rel (!%p14_p5) target bundleno = 2 (0x2), region = 106 }

</bundles_post_ra>
